<compile_context>
chip_gen: v7x
topology: tpu7x:2x2x1
jax: 0.10.0
libtpu: 0.0.40
codegen_flags: <defaults>
</compile_context>

<pallas_src>
import math
import functools

import jax
import jax.numpy as jnp
from jax import lax
from jax.experimental import pallas as pl
from jax.experimental.pallas import tpu as pltpu


def _encoder_cell_kernel(
    x_ref, bias_ref,
    wq_ref, bq_ref, wk_ref, bk_ref, wv_ref, bv_ref, wo_ref, bo_ref,
    w1_ref, b1_ref, w0_ref, b0_ref,          # FFN: linear[1] first, linear[0] second
    ln1_a_ref, ln1_b_ref, ln0_a_ref, ln0_b_ref,
    out_ref,
    *, heads_number: int, vector_size: int,
):
    b_blk, S, D = x_ref.shape
    M = b_blk * S
    H, V = heads_number, vector_size

    # (B_blk, S, D) -> (M, D): leading-dim merge (S is a multiple of 8, so this
    # is a pure layout reinterpretation) -> all big matmuls run with M rows.
    x = x_ref[...].reshape(M, D)                 # f32
    xb = x.astype(jnp.bfloat16)

    def linear(inp_bf16, wT_ref, b_ref):
        # Weights pre-transposed to (in, out) + pre-cast to bf16 at load time.
        return (jnp.dot(inp_bf16, wT_ref[...],
                        preferred_element_type=jnp.float32) + b_ref[...])

    def layernorm(t, a_ref, b_ref, eps=1e-6):
        # torch-style custom LayerNorm: unbiased std (D-1), eps added to std.
        mean = jnp.mean(t, axis=-1, keepdims=True)
        var = jnp.sum((t - mean) ** 2, axis=-1, keepdims=True) * (1.0 / (D - 1))
        inv = 1.0 / (jnp.sqrt(var) + eps)        # exact reciprocal (cheap here)
        return a_ref[...] * (t - mean) * inv + b_ref[...]

    # ---------------- Multi-head self-attention ----------------
    # Fold the 1/sqrt(V) scale into q once.
    q = linear(xb, wq_ref, bq_ref) * jnp.float32(1.0 / math.sqrt(V))
    k = linear(xb, wk_ref, bk_ref)
    v = linear(xb, wv_ref, bv_ref)
    qb = q.astype(jnp.bfloat16)
    kb = k.astype(jnp.bfloat16)
    vb = v.astype(jnp.bfloat16)

    bias = bias_ref[...]                         # (S, S) or (B_blk, S, S) f32

    attn_acc = jnp.zeros((M, D), jnp.float32)    # lane-dense accumulator
    for h in range(H):
        lo = h * V
        # (M, V) -> (B_blk, S, V): sublane-group split, layout-free.
        qh = qb[:, lo:lo + V].reshape(b_blk, S, V)
        kh = kb[:, lo:lo + V].reshape(b_blk, S, V)
        vh = vb[:, lo:lo + V].reshape(b_blk, S, V)

        # scores[b, i, j] = sum_v q[b,i,v] * k[b,j,v]   (batched over B_blk)
        s = lax.dot_general(qh, kh, (((2,), (2,)), ((0,), (0,))),
                            preferred_element_type=jnp.float32)   # (B_blk,S,S)
        s = s + bias
        s = s - jnp.max(s, axis=-1, keepdims=True)
        p = jnp.exp(s)
        p = p * pl.reciprocal(jnp.sum(p, axis=-1, keepdims=True), approx=True)

        ctx = lax.dot_general(p.astype(jnp.bfloat16), vh,
                              (((2,), (1,)), ((0,), (0,))),
                              preferred_element_type=jnp.float32)  # (B_blk,S,V)
        # Fold head output straight into the output projection: no narrow
        # (32-lane) scratch stores, all writes are full (M, D) wide.
        attn_acc = attn_acc + jnp.dot(ctx.reshape(M, V).astype(jnp.bfloat16),
                                      wo_ref[lo:lo + V, :],
                                      preferred_element_type=jnp.float32)

    # ---------------- Residual + LayerNorm (wrap[1]) ----------------
    y = layernorm(x + attn_acc + bo_ref[...], ln1_a_ref, ln1_b_ref)

    # ---------------- Position-wise feed forward ----------------
    # PositionFeedForward: linear[0]( relu( linear[1](y) ) )
    h_mid = jnp.maximum(linear(y.astype(jnp.bfloat16), w1_ref, b1_ref), 0.0)
    ff = linear(h_mid.astype(jnp.bfloat16), w0_ref, b0_ref)

    # ---------------- Residual + LayerNorm (wrap[0]) ----------------
    out_ref[...] = layernorm(y + ff, ln0_a_ref, ln0_b_ref).reshape(b_blk, S, D)
    # TODO(synk): dropout layers are identity (inference); training-mode
    # dropout would need pltpu.prng_* in-kernel.


def prepare_params(params):
    """One-time prep: transpose weights to (in, out) and cast to bf16.

    Done at parameter-load time so the per-call wrapper does not pay a full
    weights HBM read+write for transpose/cast on every forward pass.
    """
    prepped = dict(params)
    for name in ("wq", "wk", "wv", "wo", "w1", "w0"):
        prepped[name] = params[name].T.astype(jnp.bfloat16)
    return prepped


def _pick_batch_block(batch, seq):
    """Fold enough batch into each grid step for >=128 MXU rows, but keep the
    grid at >= 2 steps when possible (v7x has 2 TensorCores)."""
    divisors = [d for d in range(1, batch + 1) if batch % d == 0]
    target = max(1, 256 // max(seq, 1))
    fitting = [d for d in divisors if d <= target]
    b_blk = max(fitting) if fitting else 1
    while batch // b_blk < 2:
        smaller = [d for d in divisors if d < b_blk]
        if not smaller:
            break
        b_blk = max(smaller)
    return b_blk


@functools.partial(jax.jit, static_argnames=("heads_number", "block_batch"))
def encoder_cell_forward(x, mask, prepped_params, *, heads_number,
                         block_batch=None):
    """x: (B, S, D) f32; mask: (S, S) or (B, S, S) f32 (0 == masked).

    prepped_params: output of prepare_params() (bf16 (in,out) weights,
    f32 biases / LayerNorm params).
    """
    B, S, D = x.shape
    H = heads_number
    V = D // H

    b_blk = block_batch if block_batch is not None else _pick_batch_block(B, S)
    assert B % b_blk == 0
    grid = (B // b_blk,)

    # Additive mask bias, computed once in the wrapper (fused by XLA), so the
    # kernel does no per-step compare+select and no mask DMA beyond the bias.
    bias = jnp.where(mask == 0, jnp.float32(-1e9), jnp.float32(0.0))
    if bias.ndim == 2:
        bias_spec = pl.BlockSpec((S, S), lambda b: (0, 0))
        bias_block_bytes = S * S * 4
    else:
        bias_spec = pl.BlockSpec((b_blk, S, S), lambda b: (b, 0, 0))
        bias_block_bytes = b_blk * S * S * 4

    def const_spec(shape):
        nd = len(shape)
        # Constant index_map: block fetched once and kept resident.
        # (On v7x one could add pipeline_mode=pl.Buffered(1) to single-buffer
        # these and halve their VMEM footprint.)
        return pl.BlockSpec(shape, lambda b, nd=nd: (0,) * nd)

    const_names = ["wq", "bq", "wk", "bk", "wv", "bv", "wo", "bo",
                   "w1", "b1", "w0", "b0",
                   "ln1_a", "ln1_b", "ln0_a", "ln0_b"]
    const_args = [prepped_params[n] for n in const_names]

    in_specs = ([pl.BlockSpec((b_blk, S, D), lambda b: (b, 0, 0)), bias_spec]
                + [const_spec(a.shape) for a in const_args])
    args = [x, bias] + const_args

    kernel = functools.partial(
        _encoder_cell_kernel, heads_number=H, vector_size=V)

    # ---- VMEM budget: derived from actual buffer sizes, capped at 48 MiB ----
    act_block_bytes = b_blk * S * D * 4
    const_bytes = sum(int(a.size) * a.dtype.itemsize for a in const_args)
    vmem_needed = (2 * 2 * act_block_bytes        # x + out, double buffered
                   + 2 * bias_block_bytes
                   + 2 * const_bytes              # (worst case: double buffered)
                   + (8 << 20))                   # headroom for compiler scratch
    vmem_limit = int(min(48 << 20, max(32 << 20, vmem_needed)))

    # ---- Advisory cost estimate (weights counted once, not per batch) ----
    flops = int(2 * B * S * D * D * 6            # 4 projections + 2 FFN matmuls
                + 2 * B * H * S * S * V * 2)     # scores + context
    transcendentals = int(B * H * S * S)
    bytes_accessed = int(2 * B * S * D * 4
                         + bias.size * 4
                         + const_bytes)

    return pl.pallas_call(
        kernel,
        out_shape=jax.ShapeDtypeStruct((B, S, D), jnp.float32),
        grid_spec=pltpu.PrefetchScalarGridSpec(
            num_scalar_prefetch=0,
            grid=grid,
            in_specs=in_specs,
            out_specs=pl.BlockSpec((b_blk, S, D), lambda b: (b, 0, 0)),
        ),
        compiler_params=pltpu.CompilerParams(
            dimension_semantics=("parallel",),
            vmem_limit_bytes=vmem_limit),
        cost_estimate=pl.CostEstimate(
            flops=flops, transcendentals=transcendentals,
            bytes_accessed=bytes_accessed),
    )(*args)


def encoder_cell_reference(x, mask, params, *, heads_number):
    """Pure-JAX f32 reference matching the PyTorch module (dropout = identity)."""
    B, S, D = x.shape
    H = heads_number
    V = D // H

    def linear(t, w, b):
        return t @ w.T + b

    def layernorm(t, a, b, eps=1e-6):
        mean = jnp.mean(t, axis=-1, keepdims=True)
        var = jnp.sum((t - mean) ** 2, axis=-1, keepdims=True) / (D - 1)
        return a * (t - mean) / (jnp.sqrt(var) + eps) + b

    q = linear(x, params["wq"], params["bq"])
    k = linear(x, params["wk"], params["bk"])
    v = linear(x, params["wv"], params["bv"])

    def split(t):
        return t.reshape(B, S, H, V).transpose(0, 2, 1, 3)

    qh, kh, vh = split(q), split(k), split(v)
    scores = jnp.einsum("bhqv,bhkv->bhqk", qh, kh) / math.sqrt(V)
    m = mask if mask.ndim == 3 else jnp.broadcast_to(mask[None], (B, S, S))
    scores = jnp.where(m[:, None] == 0, -1e9, scores)
    p = jax.nn.softmax(scores, axis=-1)
    ctx = jnp.einsum("bhqk,bhkv->bhqv", p, vh)
    ctx = ctx.transpose(0, 2, 1, 3).reshape(B, S, D)
    attn = linear(ctx, params["wo"], params["bo"])
    y = layernorm(x + attn, params["ln1_a"], params["ln1_b"])
    h_mid = jnp.maximum(linear(y, params["w1"], params["b1"]), 0.0)
    ff = linear(h_mid, params["w0"], params["b0"])
    return layernorm(y + ff, params["ln0_a"], params["ln0_b"])


def init_params(key, model_size):
    D = model_size
    keys = jax.random.split(key, 12)
    s = 1.0 / math.sqrt(D)

    def w(k):
        return jax.random.uniform(k, (D, D), jnp.float32, -s, s)

    def b(k):
        return jax.random.uniform(k, (1, D), jnp.float32, -s, s)

    return {
        "wq": w(keys[0]), "bq": b(keys[1]),
        "wk": w(keys[2]), "bk": b(keys[3]),
        "wv": w(keys[4]), "bv": b(keys[5]),
        "wo": w(keys[6]), "bo": b(keys[7]),
        "w1": w(keys[8]), "b1": b(keys[9]),     # PositionFeedForward linear[1]
        "w0": w(keys[10]), "b0": b(keys[11]),   # PositionFeedForward linear[0]
        "ln1_a": jnp.ones((1, D), jnp.float32),
        "ln1_b": jnp.zeros((1, D), jnp.float32),
        "ln0_a": jnp.ones((1, D), jnp.float32),
        "ln0_b": jnp.zeros((1, D), jnp.float32),
    }


if __name__ == "__main__":
    # D = 128 (lane-dense), S = 8 (one sublane tile), B = 32 so the grid folds
    # 16 sequences per step (M = 128 MXU rows) over 2 parallel grid steps.
    B, S, D, H = 32, 8, 128, 4

    key = jax.random.PRNGKey(0)
    kx, kp = jax.random.split(key)
    x = jax.random.normal(kx, (B, S, D), jnp.float32)

    # Causal mask (1 = keep, 0 = masked), shared across the batch.
    idx = jnp.arange(S)
    mask = (idx[None, :] <= idx[:, None]).astype(jnp.float32)

    params = init_params(kp, D)
    prepped = prepare_params(params)     # one-time transpose + bf16 cast

    out = encoder_cell_forward(x, mask, prepped, heads_number=H)
    out = jax.block_until_ready(out)

    assert out.shape == (B, S, D) and out.dtype == jnp.float32
    assert bool(jnp.all(jnp.isfinite(out)))

    # Correctness vs pure-JAX f32 reference (bf16 matmul operands -> tolerance).
    ref = encoder_cell_reference(x, mask, params, heads_number=H)
    err = jnp.abs(out - ref)
    max_err = float(jnp.max(err))
    mean_err = float(jnp.mean(err))
    assert max_err < 0.1 and mean_err < 0.02, \
        f"max abs err {max_err}, mean abs err {mean_err}"

    print("KERNEL_OK")
</pallas_src>

<mosaic_0001>
module attributes {stable_mosaic.version = 11 : i64} {
  func.func @_encoder_cell_kernel(%arg0: i32, %arg1: memref<16x8x128xf32, #tpu.memory_space<vmem>>, %arg2: memref<8x8xf32, #tpu.memory_space<vmem>>, %arg3: memref<128x128xbf16, #tpu.memory_space<vmem>>, %arg4: memref<1x128xf32, #tpu.memory_space<vmem>>, %arg5: memref<128x128xbf16, #tpu.memory_space<vmem>>, %arg6: memref<1x128xf32, #tpu.memory_space<vmem>>, %arg7: memref<128x128xbf16, #tpu.memory_space<vmem>>, %arg8: memref<1x128xf32, #tpu.memory_space<vmem>>, %arg9: memref<128x128xbf16, #tpu.memory_space<vmem>>, %arg10: memref<1x128xf32, #tpu.memory_space<vmem>>, %arg11: memref<128x128xbf16, #tpu.memory_space<vmem>>, %arg12: memref<1x128xf32, #tpu.memory_space<vmem>>, %arg13: memref<128x128xbf16, #tpu.memory_space<vmem>>, %arg14: memref<1x128xf32, #tpu.memory_space<vmem>>, %arg15: memref<1x128xf32, #tpu.memory_space<vmem>>, %arg16: memref<1x128xf32, #tpu.memory_space<vmem>>, %arg17: memref<1x128xf32, #tpu.memory_space<vmem>>, %arg18: memref<1x128xf32, #tpu.memory_space<vmem>>, %arg19: memref<16x8x128xf32, #tpu.memory_space<vmem>>) attributes {dimension_semantics = [#tpu.dimension_semantics<parallel>], iteration_bounds = array<i64: 2>, scalar_prefetch = 0 : i64, scratch_operands = 0 : i64, tpu.core_type = #tpu.core_type<tc>, window_params = [{transform_indices = @transform_0, window_bounds = array<i64: 16, 8, 128>}, {pipeline_mode = #tpu.pipeline_mode<synchronous>, transform_indices = @transform_1, window_bounds = array<i64: 8, 8>}, {pipeline_mode = #tpu.pipeline_mode<synchronous>, transform_indices = @transform_2, window_bounds = array<i64: 128, 128>}, {pipeline_mode = #tpu.pipeline_mode<synchronous>, transform_indices = @transform_3, window_bounds = array<i64: 1, 128>}, {pipeline_mode = #tpu.pipeline_mode<synchronous>, transform_indices = @transform_4, window_bounds = array<i64: 128, 128>}, {pipeline_mode = #tpu.pipeline_mode<synchronous>, transform_indices = @transform_5, window_bounds = array<i64: 1, 128>}, {pipeline_mode = #tpu.pipeline_mode<synchronous>, transform_indices = @transform_6, window_bounds = array<i64: 128, 128>}, {pipeline_mode = #tpu.pipeline_mode<synchronous>, transform_indices = @transform_7, window_bounds = array<i64: 1, 128>}, {pipeline_mode = #tpu.pipeline_mode<synchronous>, transform_indices = @transform_8, window_bounds = array<i64: 128, 128>}, {pipeline_mode = #tpu.pipeline_mode<synchronous>, transform_indices = @transform_9, window_bounds = array<i64: 1, 128>}, {pipeline_mode = #tpu.pipeline_mode<synchronous>, transform_indices = @transform_10, window_bounds = array<i64: 128, 128>}, {pipeline_mode = #tpu.pipeline_mode<synchronous>, transform_indices = @transform_11, window_bounds = array<i64: 1, 128>}, {pipeline_mode = #tpu.pipeline_mode<synchronous>, transform_indices = @transform_12, window_bounds = array<i64: 128, 128>}, {pipeline_mode = #tpu.pipeline_mode<synchronous>, transform_indices = @transform_13, window_bounds = array<i64: 1, 128>}, {pipeline_mode = #tpu.pipeline_mode<synchronous>, transform_indices = @transform_14, window_bounds = array<i64: 1, 128>}, {pipeline_mode = #tpu.pipeline_mode<synchronous>, transform_indices = @transform_15, window_bounds = array<i64: 1, 128>}, {pipeline_mode = #tpu.pipeline_mode<synchronous>, transform_indices = @transform_16, window_bounds = array<i64: 1, 128>}, {pipeline_mode = #tpu.pipeline_mode<synchronous>, transform_indices = @transform_17, window_bounds = array<i64: 1, 128>}, {transform_indices = @transform_18, window_bounds = array<i64: 16, 8, 128>}]} {
    %c0 = arith.constant 0 : index
    %c0_0 = arith.constant 0 : index
    %c0_1 = arith.constant 0 : index
    %0 = vector.load %arg1[%c0, %c0_0, %c0_1] : memref<16x8x128xf32, #tpu.memory_space<vmem>>, vector<16x8x128xf32>
    %1 = vector.shape_cast %0 : vector<16x8x128xf32> to vector<128x128xf32>
    %2 = arith.truncf %1 : vector<128x128xf32> to vector<128x128xbf16>
    %c0_2 = arith.constant 0 : index
    %c0_3 = arith.constant 0 : index
    %3 = vector.load %arg3[%c0_2, %c0_3] : memref<128x128xbf16, #tpu.memory_space<vmem>>, vector<128x128xbf16>
    %cst = arith.constant dense<0.000000e+00> : vector<128x128xf32>
    %4 = tpu.matmul %2, %3, %cst {dimension_numbers = #tpu.dot_dimension_numbers<[1], [0], [0], [1], [0, 0, 1, 1], [], []>} : vector<128x128xbf16>, vector<128x128xbf16>, vector<128x128xf32> -> vector<128x128xf32>
    %c0_4 = arith.constant 0 : index
    %c0_5 = arith.constant 0 : index
    %5 = vector.load %arg4[%c0_4, %c0_5] : memref<1x128xf32, #tpu.memory_space<vmem>>, vector<1x128xf32>
    %6 = vector.broadcast %5 : vector<1x128xf32> to vector<128x128xf32>
    %7 = arith.addf %4, %6 : vector<128x128xf32>
    %cst_6 = arith.constant 0.176776692 : f32
    %8 = vector.broadcast %cst_6 : f32 to vector<128x128xf32>
    %9 = arith.mulf %7, %8 : vector<128x128xf32>
    %c0_7 = arith.constant 0 : index
    %c0_8 = arith.constant 0 : index
    %10 = vector.load %arg5[%c0_7, %c0_8] : memref<128x128xbf16, #tpu.memory_space<vmem>>, vector<128x128xbf16>
    %cst_9 = arith.constant dense<0.000000e+00> : vector<128x128xf32>
    %11 = tpu.matmul %2, %10, %cst_9 {dimension_numbers = #tpu.dot_dimension_numbers<[1], [0], [0], [1], [0, 0, 1, 1], [], []>} : vector<128x128xbf16>, vector<128x128xbf16>, vector<128x128xf32> -> vector<128x128xf32>
    %c0_10 = arith.constant 0 : index
    %c0_11 = arith.constant 0 : index
    %12 = vector.load %arg6[%c0_10, %c0_11] : memref<1x128xf32, #tpu.memory_space<vmem>>, vector<1x128xf32>
    %13 = vector.broadcast %12 : vector<1x128xf32> to vector<128x128xf32>
    %14 = arith.addf %11, %13 : vector<128x128xf32>
    %c0_12 = arith.constant 0 : index
    %c0_13 = arith.constant 0 : index
    %15 = vector.load %arg7[%c0_12, %c0_13] : memref<128x128xbf16, #tpu.memory_space<vmem>>, vector<128x128xbf16>
    %cst_14 = arith.constant dense<0.000000e+00> : vector<128x128xf32>
    %16 = tpu.matmul %2, %15, %cst_14 {dimension_numbers = #tpu.dot_dimension_numbers<[1], [0], [0], [1], [0, 0, 1, 1], [], []>} : vector<128x128xbf16>, vector<128x128xbf16>, vector<128x128xf32> -> vector<128x128xf32>
    %c0_15 = arith.constant 0 : index
    %c0_16 = arith.constant 0 : index
    %17 = vector.load %arg8[%c0_15, %c0_16] : memref<1x128xf32, #tpu.memory_space<vmem>>, vector<1x128xf32>
    %18 = vector.broadcast %17 : vector<1x128xf32> to vector<128x128xf32>
    %19 = arith.addf %16, %18 : vector<128x128xf32>
    %20 = arith.truncf %9 : vector<128x128xf32> to vector<128x128xbf16>
    %21 = arith.truncf %14 : vector<128x128xf32> to vector<128x128xbf16>
    %22 = arith.truncf %19 : vector<128x128xf32> to vector<128x128xbf16>
    %c0_17 = arith.constant 0 : index
    %c0_18 = arith.constant 0 : index
    %23 = vector.load %arg2[%c0_17, %c0_18] : memref<8x8xf32, #tpu.memory_space<vmem>>, vector<8x8xf32>
    %cst_19 = arith.constant 0.000000e+00 : f32
    %24 = vector.broadcast %cst_19 : f32 to vector<128x128xf32>
    %25 = vector.extract_strided_slice %20 {offsets = [0, 0], sizes = [128, 32], strides = [1, 1]} : vector<128x128xbf16> to vector<128x32xbf16>
    %26 = vector.shape_cast %25 : vector<128x32xbf16> to vector<16x8x32xbf16>
    %27 = vector.extract_strided_slice %21 {offsets = [0, 0], sizes = [128, 32], strides = [1, 1]} : vector<128x128xbf16> to vector<128x32xbf16>
    %28 = vector.shape_cast %27 : vector<128x32xbf16> to vector<16x8x32xbf16>
    %29 = vector.extract_strided_slice %22 {offsets = [0, 0], sizes = [128, 32], strides = [1, 1]} : vector<128x128xbf16> to vector<128x32xbf16>
    %30 = vector.shape_cast %29 : vector<128x32xbf16> to vector<16x8x32xbf16>
    %cst_20 = arith.constant dense<0.000000e+00> : vector<16x8x8xf32>
    %31 = tpu.matmul %26, %28, %cst_20 {dimension_numbers = #tpu.dot_dimension_numbers<[2], [2], [1], [1], [0, 0, 0, 1, 1, 1], [0], [0]>} : vector<16x8x32xbf16>, vector<16x8x32xbf16>, vector<16x8x8xf32> -> vector<16x8x8xf32>
    %32 = vector.shape_cast %23 : vector<8x8xf32> to vector<1x8x8xf32>
    %33 = vector.broadcast %32 : vector<1x8x8xf32> to vector<16x8x8xf32>
    %34 = arith.addf %31, %33 : vector<16x8x8xf32>
    %cst_21 = arith.constant dense<0xFF800000> : vector<16x8xf32>
    %35 = vector.multi_reduction <maximumf>, %34, %cst_21 [2] : vector<16x8x8xf32> to vector<16x8xf32>
    %36 = vector.shape_cast %35 : vector<16x8xf32> to vector<16x8x1xf32>
    %37 = vector.broadcast %36 : vector<16x8x1xf32> to vector<16x8x8xf32>
    %38 = arith.subf %34, %37 : vector<16x8x8xf32>
    %39 = math.exp %38 : vector<16x8x8xf32>
    %cst_22 = arith.constant dense<0.000000e+00> : vector<16x8xf32>
    %40 = vector.multi_reduction <add>, %39, %cst_22 [2] : vector<16x8x8xf32> to vector<16x8xf32>
    %41 = vector.shape_cast %40 : vector<16x8xf32> to vector<16x8x1xf32>
    %42 = tpu.reciprocal %41 {approx = true} : vector<16x8x1xf32> -> vector<16x8x1xf32>
    %43 = vector.broadcast %42 : vector<16x8x1xf32> to vector<16x8x8xf32>
    %44 = arith.mulf %39, %43 : vector<16x8x8xf32>
    %45 = arith.truncf %44 : vector<16x8x8xf32> to vector<16x8x8xbf16>
    %cst_23 = arith.constant dense<0.000000e+00> : vector<16x8x32xf32>
    %46 = tpu.matmul %45, %30, %cst_23 {dimension_numbers = #tpu.dot_dimension_numbers<[2], [1], [1], [2], [0, 0, 0, 1, 1, 2], [0], [0]>} : vector<16x8x8xbf16>, vector<16x8x32xbf16>, vector<16x8x32xf32> -> vector<16x8x32xf32>
    %47 = vector.shape_cast %46 : vector<16x8x32xf32> to vector<128x32xf32>
    %48 = arith.truncf %47 : vector<128x32xf32> to vector<128x32xbf16>
    %c0_24 = arith.constant 0 : index
    %c0_25 = arith.constant 0 : index
    %49 = vector.load %arg9[%c0_24, %c0_25] : memref<128x128xbf16, #tpu.memory_space<vmem>>, vector<32x128xbf16>
    %cst_26 = arith.constant dense<0.000000e+00> : vector<128x128xf32>
    %50 = tpu.matmul %48, %49, %cst_26 {dimension_numbers = #tpu.dot_dimension_numbers<[1], [0], [0], [1], [0, 0, 1, 1], [], []>} : vector<128x32xbf16>, vector<32x128xbf16>, vector<128x128xf32> -> vector<128x128xf32>
    %51 = arith.addf %24, %50 : vector<128x128xf32>
    %52 = vector.extract_strided_slice %20 {offsets = [0, 32], sizes = [128, 32], strides = [1, 1]} : vector<128x128xbf16> to vector<128x32xbf16>
    %53 = vector.shape_cast %52 : vector<128x32xbf16> to vector<16x8x32xbf16>
    %54 = vector.extract_strided_slice %21 {offsets = [0, 32], sizes = [128, 32], strides = [1, 1]} : vector<128x128xbf16> to vector<128x32xbf16>
    %55 = vector.shape_cast %54 : vector<128x32xbf16> to vector<16x8x32xbf16>
    %56 = vector.extract_strided_slice %22 {offsets = [0, 32], sizes = [128, 32], strides = [1, 1]} : vector<128x128xbf16> to vector<128x32xbf16>
    %57 = vector.shape_cast %56 : vector<128x32xbf16> to vector<16x8x32xbf16>
    %cst_27 = arith.constant dense<0.000000e+00> : vector<16x8x8xf32>
    %58 = tpu.matmul %53, %55, %cst_27 {dimension_numbers = #tpu.dot_dimension_numbers<[2], [2], [1], [1], [0, 0, 0, 1, 1, 1], [0], [0]>} : vector<16x8x32xbf16>, vector<16x8x32xbf16>, vector<16x8x8xf32> -> vector<16x8x8xf32>
    %59 = vector.shape_cast %23 : vector<8x8xf32> to vector<1x8x8xf32>
    %60 = vector.broadcast %59 : vector<1x8x8xf32> to vector<16x8x8xf32>
    %61 = arith.addf %58, %60 : vector<16x8x8xf32>
    %cst_28 = arith.constant dense<0xFF800000> : vector<16x8xf32>
    %62 = vector.multi_reduction <maximumf>, %61, %cst_28 [2] : vector<16x8x8xf32> to vector<16x8xf32>
    %63 = vector.shape_cast %62 : vector<16x8xf32> to vector<16x8x1xf32>
    %64 = vector.broadcast %63 : vector<16x8x1xf32> to vector<16x8x8xf32>
    %65 = arith.subf %61, %64 : vector<16x8x8xf32>
    %66 = math.exp %65 : vector<16x8x8xf32>
    %cst_29 = arith.constant dense<0.000000e+00> : vector<16x8xf32>
    %67 = vector.multi_reduction <add>, %66, %cst_29 [2] : vector<16x8x8xf32> to vector<16x8xf32>
    %68 = vector.shape_cast %67 : vector<16x8xf32> to vector<16x8x1xf32>
    %69 = tpu.reciprocal %68 {approx = true} : vector<16x8x1xf32> -> vector<16x8x1xf32>
    %70 = vector.broadcast %69 : vector<16x8x1xf32> to vector<16x8x8xf32>
    %71 = arith.mulf %66, %70 : vector<16x8x8xf32>
    %72 = arith.truncf %71 : vector<16x8x8xf32> to vector<16x8x8xbf16>
    %cst_30 = arith.constant dense<0.000000e+00> : vector<16x8x32xf32>
    %73 = tpu.matmul %72, %57, %cst_30 {dimension_numbers = #tpu.dot_dimension_numbers<[2], [1], [1], [2], [0, 0, 0, 1, 1, 2], [0], [0]>} : vector<16x8x8xbf16>, vector<16x8x32xbf16>, vector<16x8x32xf32> -> vector<16x8x32xf32>
    %74 = vector.shape_cast %73 : vector<16x8x32xf32> to vector<128x32xf32>
    %75 = arith.truncf %74 : vector<128x32xf32> to vector<128x32xbf16>
    %c32 = arith.constant 32 : index
    %c0_31 = arith.constant 0 : index
    %76 = vector.load %arg9[%c32, %c0_31] : memref<128x128xbf16, #tpu.memory_space<vmem>>, vector<32x128xbf16>
    %cst_32 = arith.constant dense<0.000000e+00> : vector<128x128xf32>
    %77 = tpu.matmul %75, %76, %cst_32 {dimension_numbers = #tpu.dot_dimension_numbers<[1], [0], [0], [1], [0, 0, 1, 1], [], []>} : vector<128x32xbf16>, vector<32x128xbf16>, vector<128x128xf32> -> vector<128x128xf32>
    %78 = arith.addf %51, %77 : vector<128x128xf32>
    %79 = vector.extract_strided_slice %20 {offsets = [0, 64], sizes = [128, 32], strides = [1, 1]} : vector<128x128xbf16> to vector<128x32xbf16>
    %80 = vector.shape_cast %79 : vector<128x32xbf16> to vector<16x8x32xbf16>
    %81 = vector.extract_strided_slice %21 {offsets = [0, 64], sizes = [128, 32], strides = [1, 1]} : vector<128x128xbf16> to vector<128x32xbf16>
    %82 = vector.shape_cast %81 : vector<128x32xbf16> to vector<16x8x32xbf16>
    %83 = vector.extract_strided_slice %22 {offsets = [0, 64], sizes = [128, 32], strides = [1, 1]} : vector<128x128xbf16> to vector<128x32xbf16>
    %84 = vector.shape_cast %83 : vector<128x32xbf16> to vector<16x8x32xbf16>
    %cst_33 = arith.constant dense<0.000000e+00> : vector<16x8x8xf32>
    %85 = tpu.matmul %80, %82, %cst_33 {dimension_numbers = #tpu.dot_dimension_numbers<[2], [2], [1], [1], [0, 0, 0, 1, 1, 1], [0], [0]>} : vector<16x8x32xbf16>, vector<16x8x32xbf16>, vector<16x8x8xf32> -> vector<16x8x8xf32>
    %86 = vector.shape_cast %23 : vector<8x8xf32> to vector<1x8x8xf32>
    %87 = vector.broadcast %86 : vector<1x8x8xf32> to vector<16x8x8xf32>
    %88 = arith.addf %85, %87 : vector<16x8x8xf32>
    %cst_34 = arith.constant dense<0xFF800000> : vector<16x8xf32>
    %89 = vector.multi_reduction <maximumf>, %88, %cst_34 [2] : vector<16x8x8xf32> to vector<16x8xf32>
    %90 = vector.shape_cast %89 : vector<16x8xf32> to vector<16x8x1xf32>
    %91 = vector.broadcast %90 : vector<16x8x1xf32> to vector<16x8x8xf32>
    %92 = arith.subf %88, %91 : vector<16x8x8xf32>
    %93 = math.exp %92 : vector<16x8x8xf32>
    %cst_35 = arith.constant dense<0.000000e+00> : vector<16x8xf32>
    %94 = vector.multi_reduction <add>, %93, %cst_35 [2] : vector<16x8x8xf32> to vector<16x8xf32>
    %95 = vector.shape_cast %94 : vector<16x8xf32> to vector<16x8x1xf32>
    %96 = tpu.reciprocal %95 {approx = true} : vector<16x8x1xf32> -> vector<16x8x1xf32>
    %97 = vector.broadcast %96 : vector<16x8x1xf32> to vector<16x8x8xf32>
    %98 = arith.mulf %93, %97 : vector<16x8x8xf32>
    %99 = arith.truncf %98 : vector<16x8x8xf32> to vector<16x8x8xbf16>
    %cst_36 = arith.constant dense<0.000000e+00> : vector<16x8x32xf32>
    %100 = tpu.matmul %99, %84, %cst_36 {dimension_numbers = #tpu.dot_dimension_numbers<[2], [1], [1], [2], [0, 0, 0, 1, 1, 2], [0], [0]>} : vector<16x8x8xbf16>, vector<16x8x32xbf16>, vector<16x8x32xf32> -> vector<16x8x32xf32>
    %101 = vector.shape_cast %100 : vector<16x8x32xf32> to vector<128x32xf32>
    %102 = arith.truncf %101 : vector<128x32xf32> to vector<128x32xbf16>
    %c64 = arith.constant 64 : index
    %c0_37 = arith.constant 0 : index
    %103 = vector.load %arg9[%c64, %c0_37] : memref<128x128xbf16, #tpu.memory_space<vmem>>, vector<32x128xbf16>
    %cst_38 = arith.constant dense<0.000000e+00> : vector<128x128xf32>
    %104 = tpu.matmul %102, %103, %cst_38 {dimension_numbers = #tpu.dot_dimension_numbers<[1], [0], [0], [1], [0, 0, 1, 1], [], []>} : vector<128x32xbf16>, vector<32x128xbf16>, vector<128x128xf32> -> vector<128x128xf32>
    %105 = arith.addf %78, %104 : vector<128x128xf32>
    %106 = vector.extract_strided_slice %20 {offsets = [0, 96], sizes = [128, 32], strides = [1, 1]} : vector<128x128xbf16> to vector<128x32xbf16>
    %107 = vector.shape_cast %106 : vector<128x32xbf16> to vector<16x8x32xbf16>
    %108 = vector.extract_strided_slice %21 {offsets = [0, 96], sizes = [128, 32], strides = [1, 1]} : vector<128x128xbf16> to vector<128x32xbf16>
    %109 = vector.shape_cast %108 : vector<128x32xbf16> to vector<16x8x32xbf16>
    %110 = vector.extract_strided_slice %22 {offsets = [0, 96], sizes = [128, 32], strides = [1, 1]} : vector<128x128xbf16> to vector<128x32xbf16>
    %111 = vector.shape_cast %110 : vector<128x32xbf16> to vector<16x8x32xbf16>
    %cst_39 = arith.constant dense<0.000000e+00> : vector<16x8x8xf32>
    %112 = tpu.matmul %107, %109, %cst_39 {dimension_numbers = #tpu.dot_dimension_numbers<[2], [2], [1], [1], [0, 0, 0, 1, 1, 1], [0], [0]>} : vector<16x8x32xbf16>, vector<16x8x32xbf16>, vector<16x8x8xf32> -> vector<16x8x8xf32>
    %113 = vector.shape_cast %23 : vector<8x8xf32> to vector<1x8x8xf32>
    %114 = vector.broadcast %113 : vector<1x8x8xf32> to vector<16x8x8xf32>
    %115 = arith.addf %112, %114 : vector<16x8x8xf32>
    %cst_40 = arith.constant dense<0xFF800000> : vector<16x8xf32>
    %116 = vector.multi_reduction <maximumf>, %115, %cst_40 [2] : vector<16x8x8xf32> to vector<16x8xf32>
    %117 = vector.shape_cast %116 : vector<16x8xf32> to vector<16x8x1xf32>
    %118 = vector.broadcast %117 : vector<16x8x1xf32> to vector<16x8x8xf32>
    %119 = arith.subf %115, %118 : vector<16x8x8xf32>
    %120 = math.exp %119 : vector<16x8x8xf32>
    %cst_41 = arith.constant dense<0.000000e+00> : vector<16x8xf32>
    %121 = vector.multi_reduction <add>, %120, %cst_41 [2] : vector<16x8x8xf32> to vector<16x8xf32>
    %122 = vector.shape_cast %121 : vector<16x8xf32> to vector<16x8x1xf32>
    %123 = tpu.reciprocal %122 {approx = true} : vector<16x8x1xf32> -> vector<16x8x1xf32>
    %124 = vector.broadcast %123 : vector<16x8x1xf32> to vector<16x8x8xf32>
    %125 = arith.mulf %120, %124 : vector<16x8x8xf32>
    %126 = arith.truncf %125 : vector<16x8x8xf32> to vector<16x8x8xbf16>
    %cst_42 = arith.constant dense<0.000000e+00> : vector<16x8x32xf32>
    %127 = tpu.matmul %126, %111, %cst_42 {dimension_numbers = #tpu.dot_dimension_numbers<[2], [1], [1], [2], [0, 0, 0, 1, 1, 2], [0], [0]>} : vector<16x8x8xbf16>, vector<16x8x32xbf16>, vector<16x8x32xf32> -> vector<16x8x32xf32>
    %128 = vector.shape_cast %127 : vector<16x8x32xf32> to vector<128x32xf32>
    %129 = arith.truncf %128 : vector<128x32xf32> to vector<128x32xbf16>
    %c96 = arith.constant 96 : index
    %c0_43 = arith.constant 0 : index
    %130 = vector.load %arg9[%c96, %c0_43] : memref<128x128xbf16, #tpu.memory_space<vmem>>, vector<32x128xbf16>
    %cst_44 = arith.constant dense<0.000000e+00> : vector<128x128xf32>
    %131 = tpu.matmul %129, %130, %cst_44 {dimension_numbers = #tpu.dot_dimension_numbers<[1], [0], [0], [1], [0, 0, 1, 1], [], []>} : vector<128x32xbf16>, vector<32x128xbf16>, vector<128x128xf32> -> vector<128x128xf32>
    %132 = arith.addf %105, %131 : vector<128x128xf32>
    %133 = arith.addf %1, %132 : vector<128x128xf32>
    %c0_45 = arith.constant 0 : index
    %c0_46 = arith.constant 0 : index
    %134 = vector.load %arg10[%c0_45, %c0_46] : memref<1x128xf32, #tpu.memory_space<vmem>>, vector<1x128xf32>
    %135 = vector.broadcast %134 : vector<1x128xf32> to vector<128x128xf32>
    %136 = arith.addf %133, %135 : vector<128x128xf32>
    %cst_47 = arith.constant dense<0.000000e+00> : vector<128xf32>
    %137 = vector.multi_reduction <add>, %136, %cst_47 [1] : vector<128x128xf32> to vector<128xf32>
    %138 = vector.shape_cast %137 : vector<128xf32> to vector<128x1xf32>
    %cst_48 = arith.constant 1.280000e+02 : f32
    %139 = vector.broadcast %cst_48 : f32 to vector<128x1xf32>
    %140 = arith.divf %138, %139 : vector<128x1xf32>
    %141 = vector.broadcast %140 : vector<128x1xf32> to vector<128x128xf32>
    %142 = arith.subf %136, %141 : vector<128x128xf32>
    %143 = arith.mulf %142, %142 : vector<128x128xf32>
    %cst_49 = arith.constant dense<0.000000e+00> : vector<128xf32>
    %144 = vector.multi_reduction <add>, %143, %cst_49 [1] : vector<128x128xf32> to vector<128xf32>
    %145 = vector.shape_cast %144 : vector<128xf32> to vector<128x1xf32>
    %cst_50 = arith.constant 0.00787401571 : f32
    %146 = vector.broadcast %cst_50 : f32 to vector<128x1xf32>
    %147 = arith.mulf %145, %146 : vector<128x1xf32>
    %148 = math.sqrt %147 : vector<128x1xf32>
    %cst_51 = arith.constant 9.99999997E-7 : f32
    %149 = vector.broadcast %cst_51 : f32 to vector<128x1xf32>
    %150 = arith.addf %148, %149 : vector<128x1xf32>
    %cst_52 = arith.constant 1.000000e+00 : f32
    %151 = vector.broadcast %cst_52 : f32 to vector<128x1xf32>
    %152 = arith.divf %151, %150 : vector<128x1xf32>
    %c0_53 = arith.constant 0 : index
    %c0_54 = arith.constant 0 : index
    %153 = vector.load %arg15[%c0_53, %c0_54] : memref<1x128xf32, #tpu.memory_space<vmem>>, vector<1x128xf32>
    %154 = vector.broadcast %140 : vector<128x1xf32> to vector<128x128xf32>
    %155 = arith.subf %136, %154 : vector<128x128xf32>
    %156 = vector.broadcast %153 : vector<1x128xf32> to vector<128x128xf32>
    %157 = arith.mulf %156, %155 : vector<128x128xf32>
    %158 = vector.broadcast %152 : vector<128x1xf32> to vector<128x128xf32>
    %159 = arith.mulf %157, %158 : vector<128x128xf32>
    %c0_55 = arith.constant 0 : index
    %c0_56 = arith.constant 0 : index
    %160 = vector.load %arg16[%c0_55, %c0_56] : memref<1x128xf32, #tpu.memory_space<vmem>>, vector<1x128xf32>
    %161 = vector.broadcast %160 : vector<1x128xf32> to vector<128x128xf32>
    %162 = arith.addf %159, %161 : vector<128x128xf32>
    %163 = arith.truncf %162 : vector<128x128xf32> to vector<128x128xbf16>
    %c0_57 = arith.constant 0 : index
    %c0_58 = arith.constant 0 : index
    %164 = vector.load %arg11[%c0_57, %c0_58] : memref<128x128xbf16, #tpu.memory_space<vmem>>, vector<128x128xbf16>
    %cst_59 = arith.constant dense<0.000000e+00> : vector<128x128xf32>
    %165 = tpu.matmul %163, %164, %cst_59 {dimension_numbers = #tpu.dot_dimension_numbers<[1], [0], [0], [1], [0, 0, 1, 1], [], []>} : vector<128x128xbf16>, vector<128x128xbf16>, vector<128x128xf32> -> vector<128x128xf32>
    %c0_60 = arith.constant 0 : index
    %c0_61 = arith.constant 0 : index
    %166 = vector.load %arg12[%c0_60, %c0_61] : memref<1x128xf32, #tpu.memory_space<vmem>>, vector<1x128xf32>
    %167 = vector.broadcast %166 : vector<1x128xf32> to vector<128x128xf32>
    %168 = arith.addf %165, %167 : vector<128x128xf32>
    %cst_62 = arith.constant 0.000000e+00 : f32
    %169 = vector.broadcast %cst_62 : f32 to vector<128x128xf32>
    %170 = arith.maximumf %168, %169 : vector<128x128xf32>
    %171 = arith.truncf %170 : vector<128x128xf32> to vector<128x128xbf16>
    %c0_63 = arith.constant 0 : index
    %c0_64 = arith.constant 0 : index
    %172 = vector.load %arg13[%c0_63, %c0_64] : memref<128x128xbf16, #tpu.memory_space<vmem>>, vector<128x128xbf16>
    %cst_65 = arith.constant dense<0.000000e+00> : vector<128x128xf32>
    %173 = tpu.matmul %171, %172, %cst_65 {dimension_numbers = #tpu.dot_dimension_numbers<[1], [0], [0], [1], [0, 0, 1, 1], [], []>} : vector<128x128xbf16>, vector<128x128xbf16>, vector<128x128xf32> -> vector<128x128xf32>
    %c0_66 = arith.constant 0 : index
    %c0_67 = arith.constant 0 : index
    %174 = vector.load %arg14[%c0_66, %c0_67] : memref<1x128xf32, #tpu.memory_space<vmem>>, vector<1x128xf32>
    %175 = vector.broadcast %174 : vector<1x128xf32> to vector<128x128xf32>
    %176 = arith.addf %173, %175 : vector<128x128xf32>
    %177 = arith.addf %162, %176 : vector<128x128xf32>
    %cst_68 = arith.constant dense<0.000000e+00> : vector<128xf32>
    %178 = vector.multi_reduction <add>, %177, %cst_68 [1] : vector<128x128xf32> to vector<128xf32>
    %179 = vector.shape_cast %178 : vector<128xf32> to vector<128x1xf32>
    %cst_69 = arith.constant 1.280000e+02 : f32
    %180 = vector.broadcast %cst_69 : f32 to vector<128x1xf32>
    %181 = arith.divf %179, %180 : vector<128x1xf32>
    %182 = vector.broadcast %181 : vector<128x1xf32> to vector<128x128xf32>
    %183 = arith.subf %177, %182 : vector<128x128xf32>
    %184 = arith.mulf %183, %183 : vector<128x128xf32>
    %cst_70 = arith.constant dense<0.000000e+00> : vector<128xf32>
    %185 = vector.multi_reduction <add>, %184, %cst_70 [1] : vector<128x128xf32> to vector<128xf32>
    %186 = vector.shape_cast %185 : vector<128xf32> to vector<128x1xf32>
    %cst_71 = arith.constant 0.00787401571 : f32
    %187 = vector.broadcast %cst_71 : f32 to vector<128x1xf32>
    %188 = arith.mulf %186, %187 : vector<128x1xf32>
    %189 = math.sqrt %188 : vector<128x1xf32>
    %cst_72 = arith.constant 9.99999997E-7 : f32
    %190 = vector.broadcast %cst_72 : f32 to vector<128x1xf32>
    %191 = arith.addf %189, %190 : vector<128x1xf32>
    %cst_73 = arith.constant 1.000000e+00 : f32
    %192 = vector.broadcast %cst_73 : f32 to vector<128x1xf32>
    %193 = arith.divf %192, %191 : vector<128x1xf32>
    %c0_74 = arith.constant 0 : index
    %c0_75 = arith.constant 0 : index
    %194 = vector.load %arg17[%c0_74, %c0_75] : memref<1x128xf32, #tpu.memory_space<vmem>>, vector<1x128xf32>
    %195 = vector.broadcast %181 : vector<128x1xf32> to vector<128x128xf32>
    %196 = arith.subf %177, %195 : vector<128x128xf32>
    %197 = vector.broadcast %194 : vector<1x128xf32> to vector<128x128xf32>
    %198 = arith.mulf %197, %196 : vector<128x128xf32>
    %199 = vector.broadcast %193 : vector<128x1xf32> to vector<128x128xf32>
    %200 = arith.mulf %198, %199 : vector<128x128xf32>
    %c0_76 = arith.constant 0 : index
    %c0_77 = arith.constant 0 : index
    %201 = vector.load %arg18[%c0_76, %c0_77] : memref<1x128xf32, #tpu.memory_space<vmem>>, vector<1x128xf32>
    %202 = vector.broadcast %201 : vector<1x128xf32> to vector<128x128xf32>
    %203 = arith.addf %200, %202 : vector<128x128xf32>
    %204 = vector.shape_cast %203 : vector<128x128xf32> to vector<16x8x128xf32>
    %c0_78 = arith.constant 0 : index
    %c0_79 = arith.constant 0 : index
    %c0_80 = arith.constant 0 : index
    %205 = vector.load %arg19[%c0_78, %c0_79, %c0_80] : memref<16x8x128xf32, #tpu.memory_space<vmem>>, vector<16x8x128xf32>
    tpu.vector_store %arg19[%c0_78, %c0_79, %c0_80], %204 {strides = array<i32>} : memref<16x8x128xf32, #tpu.memory_space<vmem>>, vector<16x8x128xf32>,
    return
  }
  func.func @transform_0(%arg0: i32) -> (i32, i32, i32) {
    %c0_i32 = arith.constant 0 : i32
    %c0_i32_0 = arith.constant 0 : i32
    %c0_i32_1 = arith.constant 0 : i32
    return %arg0, %c0_i32, %c0_i32_0 : i32, i32, i32
  }
  func.func @transform_1(%arg0: i32) -> (i32, i32) {
    %c0_i32 = arith.constant 0 : i32
    %c0_i32_0 = arith.constant 0 : i32
    %c0_i32_1 = arith.constant 0 : i32
    return %c0_i32, %c0_i32_0 : i32, i32
  }
  func.func @transform_2(%arg0: i32) -> (i32, i32) {
    %c0_i32 = arith.constant 0 : i32
    %c0_i32_0 = arith.constant 0 : i32
    %c0_i32_1 = arith.constant 0 : i32
    return %c0_i32, %c0_i32_0 : i32, i32
  }
  func.func @transform_3(%arg0: i32) -> (i32, i32) {
    %c0_i32 = arith.constant 0 : i32
    %c0_i32_0 = arith.constant 0 : i32
    %c0_i32_1 = arith.constant 0 : i32
    return %c0_i32, %c0_i32_0 : i32, i32
  }
  func.func @transform_4(%arg0: i32) -> (i32, i32) {
    %c0_i32 = arith.constant 0 : i32
    %c0_i32_0 = arith.constant 0 : i32
    %c0_i32_1 = arith.constant 0 : i32
    return %c0_i32, %c0_i32_0 : i32, i32
  }
  func.func @transform_5(%arg0: i32) -> (i32, i32) {
    %c0_i32 = arith.constant 0 : i32
    %c0_i32_0 = arith.constant 0 : i32
    %c0_i32_1 = arith.constant 0 : i32
    return %c0_i32, %c0_i32_0 : i32, i32
  }
  func.func @transform_6(%arg0: i32) -> (i32, i32) {
    %c0_i32 = arith.constant 0 : i32
    %c0_i32_0 = arith.constant 0 : i32
    %c0_i32_1 = arith.constant 0 : i32
    return %c0_i32, %c0_i32_0 : i32, i32
  }
  func.func @transform_7(%arg0: i32) -> (i32, i32) {
    %c0_i32 = arith.constant 0 : i32
    %c0_i32_0 = arith.constant 0 : i32
    %c0_i32_1 = arith.constant 0 : i32
    return %c0_i32, %c0_i32_0 : i32, i32
  }
  func.func @transform_8(%arg0: i32) -> (i32, i32) {
    %c0_i32 = arith.constant 0 : i32
    %c0_i32_0 = arith.constant 0 : i32
    %c0_i32_1 = arith.constant 0 : i32
    return %c0_i32, %c0_i32_0 : i32, i32
  }
  func.func @transform_9(%arg0: i32) -> (i32, i32) {
    %c0_i32 = arith.constant 0 : i32
    %c0_i32_0 = arith.constant 0 : i32
    %c0_i32_1 = arith.constant 0 : i32
    return %c0_i32, %c0_i32_0 : i32, i32
  }
  func.func @transform_10(%arg0: i32) -> (i32, i32) {
    %c0_i32 = arith.constant 0 : i32
    %c0_i32_0 = arith.constant 0 : i32
    %c0_i32_1 = arith.constant 0 : i32
    return %c0_i32, %c0_i32_0 : i32, i32
  }
  func.func @transform_11(%arg0: i32) -> (i32, i32) {
    %c0_i32 = arith.constant 0 : i32
    %c0_i32_0 = arith.constant 0 : i32
    %c0_i32_1 = arith.constant 0 : i32
    return %c0_i32, %c0_i32_0 : i32, i32
  }
  func.func @transform_12(%arg0: i32) -> (i32, i32) {
    %c0_i32 = arith.constant 0 : i32
    %c0_i32_0 = arith.constant 0 : i32
    %c0_i32_1 = arith.constant 0 : i32
    return %c0_i32, %c0_i32_0 : i32, i32
  }
  func.func @transform_13(%arg0: i32) -> (i32, i32) {
    %c0_i32 = arith.constant 0 : i32
    %c0_i32_0 = arith.constant 0 : i32
    %c0_i32_1 = arith.constant 0 : i32
    return %c0_i32, %c0_i32_0 : i32, i32
  }
  func.func @transform_14(%arg0: i32) -> (i32, i32) {
    %c0_i32 = arith.constant 0 : i32
    %c0_i32_0 = arith.constant 0 : i32
    %c0_i32_1 = arith.constant 0 : i32
    return %c0_i32, %c0_i32_0 : i32, i32
  }
  func.func @transform_15(%arg0: i32) -> (i32, i32) {
    %c0_i32 = arith.constant 0 : i32
    %c0_i32_0 = arith.constant 0 : i32
    %c0_i32_1 = arith.constant 0 : i32
    return %c0_i32, %c0_i32_0 : i32, i32
  }
  func.func @transform_16(%arg0: i32) -> (i32, i32) {
    %c0_i32 = arith.constant 0 : i32
    %c0_i32_0 = arith.constant 0 : i32
    %c0_i32_1 = arith.constant 0 : i32
    return %c0_i32, %c0_i32_0 : i32, i32
  }
  func.func @transform_17(%arg0: i32) -> (i32, i32) {
    %c0_i32 = arith.constant 0 : i32
    %c0_i32_0 = arith.constant 0 : i32
    %c0_i32_1 = arith.constant 0 : i32
    return %c0_i32, %c0_i32_0 : i32, i32
  }
  func.func @transform_18(%arg0: i32) -> (i32, i32, i32) {
    %c0_i32 = arith.constant 0 : i32
    %c0_i32_0 = arith.constant 0 : i32
    %c0_i32_1 = arith.constant 0 : i32
    return %arg0, %c0_i32, %c0_i32_0 : i32, i32, i32
  }
}

</mosaic_0001>

<bundles_post_ra>
// kernel: encoder_cell_forward.1
= control target key start
LH: loop header
LB: loop body
LE: loop exit
PB: predicated region body
PF: predicated region fallthrough
CT: control target
= control target key end

     0   :  { %s16063_s0 = inlined_call_operand.hbm [shape: f32[32,8,128], index: 0, kind: input, shape index: {}]   ;;  %s16064_s1 = inlined_call_operand.vmem [shape: f32[8,8], index: 1, kind: input, shape index: {}]   ;;  %s16065_s2 = inlined_call_operand.vmem [shape: bf16[128,128], index: 2, kind: input, shape index: {}]   ;;  %s16066_s3 = inlined_call_operand.vmem [shape: f32[1,128], index: 3, kind: input, shape index: {}]   ;;  %s16067_s4 = inlined_call_operand.hbm [shape: bf16[128,128], index: 4, kind: input, shape index: {}]   ;;  %s16068_s5 = inlined_call_operand.vmem [shape: f32[1,128], index: 5, kind: input, shape index: {}]   ;;  %s16069_s6 = inlined_call_operand.hbm [shape: bf16[128,128], index: 6, kind: input, shape index: {}]   ;;  %s16070_s7 = inlined_call_operand.vmem [shape: f32[1,128], index: 7, kind: input, shape index: {}]   ;;  %s16071_s8 = inlined_call_operand.hbm [shape: bf16[128,128], index: 8, kind: input, shape index: {}]   ;;  %s16072_s9 = inlined_call_operand.vmem [shape: f32[1,128], index: 9, kind: input, shape index: {}]   ;;  %s16073_s10 = inlined_call_operand.hbm [shape: bf16[128,128], index: 10, kind: input, shape index: {}]   ;;  %s16074_s11 = inlined_call_operand.vmem [shape: f32[1,128], index: 11, kind: input, shape index: {}]   ;;  %s16075_s12 = inlined_call_operand.hbm [shape: bf16[128,128], index: 12, kind: input, shape index: {}]   ;;  %s16076_s13 = inlined_call_operand.vmem [shape: f32[1,128], index: 13, kind: input, shape index: {}]   ;;  %s16077_s14 = inlined_call_operand.vmem [shape: f32[1,128], index: 14, kind: input, shape index: {}]   ;;  %s16078_s15 = inlined_call_operand.vmem [shape: f32[1,128], index: 15, kind: input, shape index: {}]   ;;  %s16079_s16 = inlined_call_operand.vmem [shape: f32[1,128], index: 16, kind: input, shape index: {}]   ;;  %s16080_s17 = inlined_call_operand.vmem [shape: f32[1,128], index: 17, kind: input, shape index: {}]   ;;  %s16081_s18 = inlined_call_operand.hbm [shape: f32[32,8,128], index: 18, kind: output, shape index: {}]  }
   0x1   :  { %16169 = sst [smem:[#allocation61_spill]] %s16063_s0 }
   0x2   :  { %16170 = sst [smem:[#allocation62_spill]] %s16064_s1 }
   0x3   :  { %16171 = sst [smem:[#allocation63_spill]] %s16065_s2 }
   0x4   :  { %16172 = sst [smem:[#allocation64_spill]] %s16066_s3 }
   0x5   :  { %16173 = sst [smem:[#allocation65_spill]] %s16067_s4 }
   0x6   :  { %16174 = sst [smem:[#allocation66_spill]] %s16074_s11 }
   0x7   :  { %16175 = sst [smem:[#allocation67_spill]] %s16076_s13 }
   0x8   :  { %16176 = sst [smem:[#allocation68_spill]] %s16077_s14 }
   0x9   :  { %16177 = sst [smem:[#allocation69_spill]] %s16078_s15 }
   0xa   :  { %16178 = sst [smem:[#allocation70_spill]] %s16079_s16 }
   0xb   :  { %16179 = sst [smem:[#allocation71_spill]] %s16080_s17 }
   0xc   :  { %16180 = sst [smem:[#allocation72_spill]] %s16081_s18 }
   0xd   :  { %23 = vsyncpa [#allocation3], 0 }
   0xe   :  { %25 = vsyncpa [#allocation3 + $0x1], 0 }
   0xf   :  { %26 = vsyncpa [#allocation6], 0 }
  0x10   :  { %27 = vsyncpa [#allocation9], 0 }
  0x11   :  { %28 = vsyncpa [#allocation12], 0 }
  0x12   :  { %29 = vsyncpa [#allocation4], 0 }
  0x13   :  { %31 = vsyncpa [#allocation4 + $0x1], 0  ;;  %s12887_s27 = smov 0   ;;  %s12889_s28 = smov 0  }
  0x14   :  { %s12891_s29 = smov 0   ;;  %s12893_s30 = smov 0  }
  0x15 LB: > { %s12774_s0 = smov [#allocation5]   ;;  %s12908_s1 = sadd.s32 4294967295, %s12772_s30   ;;  %s12772_s30 = sphi %s12893_s30, %s16336_s30   ;;  %s12768_s29 = sphi %s12891_s29, %s16335_s29   ;;  %s12764_s28 = sphi %s12889_s28, %s16334_s28   ;;  %s12760_s27 = sphi %s12887_s27, %s16333_s27  }
  0x16   : > { %s472_s19 = sshll.u32 %s12774_s0, 4  ;;  %p10194_p0 = scmp.ge.s32.totalorder %s12772_s30, 1  ;;  %s12913_s19 = int_to_ptr.vmem [resolvable:$true] %s472_s19 }
  0x17   : > { %p16086_p1 = scmp.eq.s32.totalorder %s12908_s1, 0  ;;  %p451_p2 = scmp.lt.s32.totalorder %s12772_s30, 3 }
  0x18   : > { %s12775_s21 = smov [#allocation8]   ;;  %s12776_s23 = smov [#allocation7]  }
  0x19   : > { %p12915_p3 = pnand %p10194_p0, %p451_p2  ;;  %s504_s22 = sshll.u32 %s12775_s21, 4  ;;  %s12928_s22 = int_to_ptr.vmem [resolvable:$true] %s504_s22 }
  0x1a   : > { %s488_s24 = sshll.u32 %s12776_s23, 4  ;;  %s16183_s4 = sld [smem:[#allocation65_spill]]  ;;  %s12930_s24 = int_to_ptr.vmem [resolvable:$true] %s488_s24 }
  0x1b   : > { %s16181_s20 = scalar_select %p12915_p3, 1, 0 }
  0x1c   : > { %p11989_p5 = pneg %p12915_p3 }
  0x1e   : > { %p12924_p6 = pnand %p11989_p5, %p16086_p1 }
  0x20   : > { %s12524_s0 = scalar_lea.hbm %s16183_s4, 1024  ;;  %p12940_p8 = pneg %p12924_p6 }
  0x21   : > { %p12525_p7 = scmp.ne.s32.totalorder %s16183_s4, %s12524_s0  ;;  %p12531_p11 = scmp.lt.u32.totalorder %s12524_s0, %s16183_s4 }
  0x23   : > { %p12527_p9 = pnand %p12940_p8, %p12525_p7 }
  0x25   : > { %p12528_p10 = pneg %p12527_p9 }
  0x27   : > { %p12533_p12 = pnand %p12531_p11, %p12528_p10 }
  0x29   : > { %12536 = shalt.err (!%p12533_p12)
}
  0x2a   : > { %s12537_s17 = scalar_lea.vmem %s12913_s19, 1024  ;;  %p12545_p5 = scmp.lt.s32.totalorder %s12913_s19, %s12913_s19 }
  0x2b   : > { %p12538_p13 = scmp.ne.s32.totalorder %s12913_s19, %s12537_s17  ;;  %p12546_p4 = scmp.lt.s32.totalorder %s12537_s17, %s12537_s17 }
  0x2d   : > { %p12540_p0 = pnand %p12538_p13, %p12940_p8  ;;  %p12547_p7 = por %p12546_p4, %p12545_p5 }
  0x2f   : > { %p12541_p2 = pneg %p12540_p0 }
  0x31   : > { %p12548_p9 = pnand %p12547_p7, %p12541_p2 }
  0x33   : > { %12551 = shalt.err (!%p12548_p9)
}
  0x34   : > { %s12777_s18 = smov 64   ;;  %s12778_s16 = smov 4  }
  0x35   : > { %11992 = dma.hbm_to_vmem [thread:$0]  (!%p12924_p6), %s16183_s4, 1024, %s12913_s19, [#allocation6], %s12777_s18, %s12777_s18, %s12778_s16  }
  0x36   : > { %s12552_s17 = scalar_lea.hbm %s16071_s8, 1024 }
  0x37   : > { %p12553_p4 = scmp.ne.s32.totalorder %s16071_s8, %s12552_s17  ;;  %p12559_p12 = scmp.lt.u32.totalorder %s12552_s17, %s16071_s8 }
  0x39   : > { %p12555_p10 = pnand %p12553_p4, %p12940_p8 }
  0x3b   : > { %p12556_p11 = pneg %p12555_p10 }
  0x3d   : > { %p12561_p13 = pnand %p12559_p12, %p12556_p11 }
  0x3f   : > { %12564 = shalt.err (!%p12561_p13)
}
  0x40   : > { %s12565_s19 = scalar_lea.vmem %s12928_s22, 1024  ;;  %p12573_p7 = scmp.lt.s32.totalorder %s12928_s22, %s12928_s22 }
  0x41   : > { %p12566_p0 = scmp.ne.s32.totalorder %s12928_s22, %s12565_s19  ;;  %p12574_p9 = scmp.lt.s32.totalorder %s12565_s19, %s12565_s19 }
  0x43   : > { %p12568_p2 = pnand %p12566_p0, %p12940_p8  ;;  %p12575_p4 = por %p12574_p9, %p12573_p7 }
  0x45   : > { %p12569_p5 = pneg %p12568_p2 }
  0x47   : > { %p12576_p10 = pnand %p12575_p4, %p12569_p5 }
  0x49   : > { %12579 = shalt.err (!%p12576_p10)
}
  0x4a   : > { %11998 = dma.hbm_to_vmem [thread:$0]  (!%p12924_p6), %s16071_s8, 1024, %s12928_s22, [#allocation9], %s12777_s18, %s12777_s18, %s12778_s16  }
  0x4b   : > { %s12580_s25 = scalar_lea.hbm %s16069_s6, 1024 }
  0x4c   : > { %p12581_p11 = scmp.ne.s32.totalorder %s16069_s6, %s12580_s25  ;;  %p12587_p0 = scmp.lt.u32.totalorder %s12580_s25, %s16069_s6 }
  0x4e   : > { %p12583_p12 = pnand %p12581_p11, %p12940_p8 }
  0x50   : > { %p12584_p13 = pneg %p12583_p12 }
  0x52   : > { %p12589_p2 = pnand %p12587_p0, %p12584_p13 }
  0x54   : > { %12592 = shalt.err (!%p12589_p2)
}
  0x55   : > { %s12593_s22 = scalar_lea.vmem %s12930_s24, 1024  ;;  %p12601_p4 = scmp.lt.s32.totalorder %s12930_s24, %s12930_s24 }
  0x56   : > { %p12594_p5 = scmp.ne.s32.totalorder %s12930_s24, %s12593_s22  ;;  %p12602_p10 = scmp.lt.s32.totalorder %s12593_s22, %s12593_s22 }
  0x58   : > { %p12596_p7 = pnand %p12594_p5, %p12940_p8  ;;  %p12603_p11 = por %p12602_p10, %p12601_p4 }
  0x5a   : > { %p12597_p9 = pneg %p12596_p7 }
  0x5c   : > { %p12604_p12 = pnand %p12603_p11, %p12597_p9 }
  0x5e   : > { %12607 = shalt.err (!%p12604_p12)
}
  0x5f   : > { %11995 = dma.hbm_to_vmem [thread:$0]  (!%p12924_p6), %s16069_s6, 1024, %s12930_s24, [#allocation6], %s12777_s18, %s12777_s18, %s12778_s16  }
  0x60   : > { %s12779_s13 = smov [#allocation10]   ;;  %s12780_s15 = smov [#allocation11]  }
  0x61   : > { %s520_s14 = sshll.u32 %s12779_s13, 4  ;;  %s536_s25 = sshll.u32 %s12780_s15, 4  ;;  %s521_s14 = int_to_ptr.vmem [resolvable:$true] %s520_s14  ;;  %s537_s25 = int_to_ptr.vmem [resolvable:$true] %s536_s25 }
  0x62   : > { %s12608_s23 = scalar_lea.hbm %s16073_s10, 1024 }
  0x63   : > { %p12609_p13 = scmp.ne.s32.totalorder %s16073_s10, %s12608_s23  ;;  %p12615_p5 = scmp.lt.u32.totalorder %s12608_s23, %s16073_s10 }
  0x65   : > { %p12611_p0 = pnand %p12609_p13, %p12940_p8 }
  0x67   : > { %p12612_p2 = pneg %p12611_p0 }
  0x69   : > { %p12617_p7 = pnand %p12615_p5, %p12612_p2 }
  0x6b   : > { %12620 = shalt.err (!%p12617_p7)
}
  0x6c   : > { %s12621_s24 = scalar_lea.vmem %s521_s14, 1024  ;;  %p12629_p11 = scmp.lt.s32.totalorder %s521_s14, %s521_s14 }
  0x6d   : > { %p12622_p9 = scmp.ne.s32.totalorder %s521_s14, %s12621_s24  ;;  %p12630_p12 = scmp.lt.s32.totalorder %s12621_s24, %s12621_s24 }
  0x6f   : > { %p12624_p4 = pnand %p12622_p9, %p12940_p8  ;;  %p12631_p1 = por %p12630_p12, %p12629_p11 }
  0x71   : > { %p12625_p10 = pneg %p12624_p4 }
  0x73   : > { %p12632_p3 = pnand %p12631_p1, %p12625_p10 }
  0x75   : > { %12635 = shalt.err (!%p12632_p3)
}
  0x76   : > { %12001 = dma.hbm_to_vmem [thread:$0]  (!%p12924_p6), %s16073_s10, 1024, %s521_s14, [#allocation9], %s12777_s18, %s12777_s18, %s12778_s16  }
  0x77   : > { %s12636_s26 = scalar_lea.hbm %s16075_s12, 1024 }
  0x78   : > { %p12637_p1 = scmp.ne.s32.totalorder %s16075_s12, %s12636_s26  ;;  %p12643_p0 = scmp.lt.u32.totalorder %s12636_s26, %s16075_s12 }
  0x7a   : > { %p12639_p3 = pnand %p12637_p1, %p12940_p8 }
  0x7c   : > { %p12640_p13 = pneg %p12639_p3 }
  0x7e   : > { %p12645_p2 = pnand %p12643_p0, %p12640_p13 }
  0x80   : > { %12648 = shalt.err (!%p12645_p2)
}
  0x81   : > { %s12649_s19 = scalar_lea.vmem %s537_s25, 1024  ;;  %p12657_p4 = scmp.lt.s32.totalorder %s537_s25, %s537_s25 }
  0x82   : > { %p12650_p5 = scmp.ne.s32.totalorder %s537_s25, %s12649_s19  ;;  %p12658_p10 = scmp.lt.s32.totalorder %s12649_s19, %s12649_s19 }
  0x84   : > { %p12652_p7 = pnand %p12650_p5, %p12940_p8  ;;  %p12659_p11 = por %p12658_p10, %p12657_p4 }
  0x86   : > { %p12653_p9 = pneg %p12652_p7 }
  0x88   : > { %p12660_p12 = pnand %p12659_p11, %p12653_p9 }
  0x8a   : > { %12663 = shalt.err (!%p12660_p12)
}
  0x8b   : > { %12004 = dma.hbm_to_vmem [thread:$0]  (!%p12924_p6), %s16075_s12, 1024, %s537_s25, [#allocation12], %s12777_s18, %s12777_s18, %s12778_s16  }
  0x8c   : > { %s10193_s2 = sadd.s32 4294967294, %s12772_s30   ;;  %s13060_s21 = sadd.s32 1, %s12772_s30  }
  0x8d   : > { %s44_s4 = sadd.s32 1, %s12768_s29  ;;  %s41_s11 = ssub.s32 %s12772_s30, %s13060_s21 }
  0x8e   : > { %p51_p8 = scmp.ne.s32.totalorder %s12768_s29, %s12764_s28  ;;  %p42_p1 = scmp.eq.s32.totalorder %s41_s11, 0 }
  0x8f   : > { %p52_p3 = scmp.eq.s32.totalorder %s12772_s30, 0  ;;  %p57_p13 = scmp.ne.s32.totalorder %s12764_s28, %s12760_s27 }
  0x90   : > { %p438_p0 = scmp.eq.s32.totalorder %s12908_s1, 1  ;;  %p16185_p5 = scmp.eq.s32.totalorder %s12908_s1, 0 }
  0x91   : > { %s13072_s13 = scalar_select %p42_p1, %s12768_s29, %s44_s4  }
  0x92   : > { %p53_p2 = por %p52_p3, %p51_p8  ;;  %p13076_p7 = por %p16185_p5, %p57_p13 }
  0x93   : > { %p13080_p6 = por %p438_p0, %p51_p8  ;;  %p444_p9 = scmp.eq.s32.totalorder %s10193_s2, 1 }
  0x94   : > { %p12018_p4 = scmp.lt.s32.totalorder %s12772_s30, 2  ;;  %s565_s16 = sand.u32 1, %s12768_s29  }
  0x95   : > { %s16187_s18 = scalar_select %p13080_p6, 1, 0 }
  0x96   : > { %p13086_p10 = por %p444_p9, %p57_p13  ;;  %s10201_s26 = sshll.u32 %s565_s16, 7 }
  0x97   : > { %s10483_s0 = sshll.u32 %s12772_s30, 11  ;;  %s16189_s22 = sld [smem:[#allocation61_spill]] }
  0x98   : > { %s16188_s25 = scalar_select %p13086_p10, 1, 0 }
  0x99   : > { %s569_s14 = scalar_lea.vmem [#allocation2], %s10201_s26  ;;  %p13096_p11 = pnand %p12018_p4, %p53_p2 }
  0x9a   : > { %s576_s24 = sshll.u32 %s569_s14, 4  ;;  %s13102_s4 = scalar_lea.sflag [#allocation3], %s565_s16  ;;  %s13100_s24 = int_to_ptr.vmem [resolvable:$true] %s576_s24 }
  0x9b   : > { %p12666_p8 = pneg %p13096_p11 }
  0x9d   : > { %s13094_s19 = scalar_lea.hbm %s16189_s22, %s10483_s0  ;;  %s12669_s23 = scalar_lea.hbm %s16189_s22, 4096 }
  0x9e   : > { %s12664_s11 = scalar_lea.hbm %s13094_s19, 2048  ;;  %p12670_p13 = scmp.lt.u32.totalorder %s13094_s19, %s16189_s22 }
  0x9f   : > { %p12665_p12 = scmp.ne.s32.totalorder %s13094_s19, %s12664_s11  ;;  %p12671_p0 = scmp.lt.u32.totalorder %s12669_s23, %s12664_s11 }
  0xa0   : > { %p12673_p5 = scmp.lt.u32.totalorder %s12664_s11, %s13094_s19 }
  0xa1   : > { %p12667_p1 = pnand %p12666_p8, %p12665_p12  ;;  %p12672_p2 = por %p12671_p0, %p12670_p13 }
  0xa3   : > { %p12668_p3 = pneg %p12667_p1  ;;  %p12674_p9 = por %p12673_p5, %p12672_p2 }
  0xa5   : > { %p12675_p4 = pnand %p12674_p9, %p12668_p3 }
  0xa7   : > { %12678 = shalt.err (!%p12675_p4)
}
  0xa8   : > { %s12679_s16 = scalar_lea.vmem %s13100_s24, 2048  ;;  %s12781_s26 = smov [#allocation2]  }
  0xa9   : > { %p12680_p12 = scmp.ne.s32.totalorder %s13100_s24, %s12679_s16  ;;  %s12684_s0 = sshll.u32 %s12781_s26, 4  ;;  %s12685_s0 = int_to_ptr.vmem [resolvable:$false] %s12684_s0 }
  0xaa   : > { %s12686_s17 = scalar_lea.vmem %s12685_s0, 4096  ;;  %p12687_p6 = scmp.lt.s32.totalorder %s13100_s24, %s12685_s0 }
  0xab   : > { %p12682_p1 = pnand %p12680_p12, %p12666_p8  ;;  %p12688_p13 = scmp.lt.s32.totalorder %s12686_s17, %s12679_s16 }
  0xad   : > { %p12683_p10 = pneg %p12682_p1  ;;  %p12689_p0 = por %p12688_p13, %p12687_p6 }
  0xaf   : > { %p12690_p2 = pnand %p12689_p0, %p12683_p10 }
  0xb1   : > { %12693 = shalt.err (!%p12690_p2)
}
  0xb2   : > { %s12782_s11 = smov 128   ;;  %s12783_s23 = smov 8  }
  0xb3   : > { %12008 = dma.hbm_to_vmem [thread:$0]  (!%p13096_p11), %s13094_s19, 2048, %s13100_s24, %s13102_s4, %s12782_s11, %s12782_s11, %s12783_s23  }
  0xb4   : > { %p16191_p8 = scmp.ne.s32.totalorder %s16181_s20, 0 }
  0xb6   : > { %588 = sbr.rel (%p16191_p8) target bundleno = 5040 (0x13b0), region = 92 }
  0xbd   : > { %s13133_s14 = sand.u32 1, %s12764_s28  }
  0xbe   : > { %s10205_s16 = sshll.u32 %s13133_s14, 7  ;;  %s591_s26 = scalar_lea.sflag [#allocation3], %s13133_s14 }
  0xbf   : > { %s13139_s0 = scalar_lea.vmem [#allocation2], %s10205_s16 }
  0xc0   : > { %12739 = dma.done.wait (%p13076_p7), %s591_s26, 2048  }
  0xc1   : > { %12741 = vsyncadd (%p13076_p7), %s591_s26, 4294965248  ;;  %p16192_p6 = scmp.eq.s32.totalorder %s12908_s1, 0 }
  0xc3   : > { %12743 = dma.done.wait (%p16192_p6), [#allocation6], 2048   ;;  %p16193_p10 = pmov %p16192_p6 }
  0xc4   : > { %p16194_p11 = pmov %p16192_p6 }
  0xc5   : > { %12745 = vsyncadd (%p16193_p10), [#allocation6], 4294965248 }
  0xc6   : > { %12747 = dma.done.wait (%p16194_p11), [#allocation9], 2048   ;;  %p16195_p3 = pmov %p16192_p6 }
  0xc8   : > { %12749 = vsyncadd (%p16195_p3), [#allocation9], 4294965248  ;;  %p16196_p5 = pmov %p16195_p3 }
  0xc9   : > { %p16197_p9 = pmov %p16195_p3 }
  0xca   : > { %12751 = dma.done.wait (%p16196_p5), [#allocation12], 1024  }
  0xcb   : > { %12753 = vsyncadd (%p16197_p9), [#allocation12], 4294966272  ;;  %v12073_v0 = vld [vmem:[#allocation5] sm:$0xff]   ;;  %v12074_v1 = vld [vmem:[#allocation5 + $0x8] sm:$0xff]   ;;  %s16198_s19 = sld [smem:[#allocation63_spill]]  ;;  %v16089_v48 = vmov 0.0  }
  0xcc   : > { %10941 = vmatprep.subr.bf16.mxu1 %v12073_v0  ;;  %v12076_v3 = vld [vmem:[#allocation5 + $0x10] sm:$0xff]   ;;  %v12078_v6 = vld [vmem:[#allocation5 + $0x18] sm:$0xff]   ;;  %v12080_v8 = vld [vmem:[#allocation5 + $0x20] sm:$0xff]   ;;  %vm12785_vm0 = vmmov 0   ;;  %s16199_s3 = sld [smem:[#allocation64_spill]]  ;;  %vm1359_vm1 = vcmask 261120  }
  0xcd   : > { %10942 = vmatpush3.bf16.msra.mxu1 %v12073_v0  ;;  %v670_v10 = vld [vmem:[%s13139_s0] sm:$0xff]  ;;  %v671_v11 = vld [vmem:[%s13139_s0 + $0x8] sm:$0xff]  ;;  %v12084_v15 = vld [vmem:[#allocation5 + $0x30] sm:$0xff]   ;;  %vm2292_vm2 = vcmask 1043456   ;;  %s16222_s11 = sld [smem:[#allocation62_spill]]  ;;  %vm2096_vm3 = vcmask 64512  }
  0xce   : > { %10943 = vmatprep.subr.bf16.mxu1 %v12074_v1  ;;  %v12082_v12 = vld [vmem:[#allocation5 + $0x28] sm:$0xff]   ;;  %v13174_v13 = vpack.c.bf16 %v671_v11, %v670_v10  ;;  %v12086_v17 = vld [vmem:[#allocation5 + $0x38] sm:$0xff]   ;;  %v672_v18 = vld [vmem:[%s13139_s0 + $0x10] sm:$0xff]  ;;  %s12786_s23 = smov 96   ;;  %s12787_s15 = smov 64  }
  0xcf   : > { %v673_v19 = vld [vmem:[%s13139_s0 + $0x18] sm:$0xff]  ;;  %v674_v21 = vld [vmem:[%s13139_s0 + $0x20] sm:$0xff]  ;;  %v675_v22 = vld [vmem:[%s13139_s0 + $0x28] sm:$0xff]  ;;  %s12788_s4 = smov 32   ;;  %s16322_s24 = sld [smem:[#allocation68_spill]] }
  0xd0   : > { %10957 = vmatprep.mubr.bf16.mxu1 %v13174_v13  ;;  %10925 = vmatprep.mubr.bf16.mxu0 %v13174_v13  ;;  %v12089_v23 = vld [vmem:[#allocation7] sm:$0xff]   ;;  %v687_v24 = vpack.c.bf16 %v673_v19, %v672_v18  ;;  %v688_v25 = vpack.c.bf16 %v675_v22, %v674_v21  ;;  %v12090_v26 = vld [vmem:[#allocation7 + $0x8] sm:$0xff]   ;;  %v676_v27 = vld [vmem:[%s13139_s0 + $0x30] sm:$0xff]  ;;  %s16323_s17 = sld [smem:[#allocation69_spill]]  ;;  %s16324_s20 = sld [smem:[#allocation66_spill]] }
  0xd1   : > { %v12075_v2 = vld [vmem:[%s16198_s19] sm:$0xff]   ;;  %v12077_v4 = vld [vmem:[%s16198_s19 + $0x8] sm:$0xff]   ;;  %v12079_v5 = vld [vmem:[%s16198_s19 + $0x10] sm:$0xff]   ;;  %10944 = vmatpush3.bf16.msra.mxu1 %v12074_v1  ;;  %p16329_p4 = scmp.ne.s32.totalorder %s16187_s18, 0 }
  0xd2   : > { %10909 = vmatprep.subr.bf16.mxu0 %v12075_v2  ;;  %10945 = vmatprep.subr.bf16.mxu1 %v12076_v3  ;;  %v12081_v7 = vld [vmem:[%s16198_s19 + $0x18] sm:$0xff]   ;;  %v12083_v9 = vld [vmem:[%s16198_s19 + $0x20] sm:$0xff]   ;;  %v12085_v14 = vld [vmem:[%s16198_s19 + $0x28] sm:$0xff]  }
  0xd3   : > { %10910 = vmatpush3.bf16.msra.mxu0 %v12075_v2  ;;  %v12087_v16 = vld [vmem:[%s16198_s19 + $0x30] sm:$0xff]   ;;  %v12088_v20 = vld [vmem:[%s16198_s19 + $0x38] sm:$0xff]   ;;  %v678_v29 = vld [vmem:[%s13139_s0 + $0x40] sm:$0xff] }
  0xd4   : > { %10911 = vmatprep.subr.bf16.mxu0 %v12077_v4  ;;  %v677_v28 = vld [vmem:[%s13139_s0 + $0x38] sm:$0xff]  ;;  %v679_v30 = vld [vmem:[%s13139_s0 + $0x48] sm:$0xff]  ;;  %v12091_v31 = vld [vmem:[#allocation7 + $0x10] sm:$0xff]  }
  0xd5   : > { %10946 = vmatpush3.bf16.msra.mxu1 %v12076_v3  ;;  %v689_v32 = vpack.c.bf16 %v677_v28, %v676_v27  ;;  %v690_v33 = vpack.c.bf16 %v679_v30, %v678_v29  ;;  %v12092_v34 = vld [vmem:[#allocation7 + $0x18] sm:$0xff]   ;;  %v680_v35 = vld [vmem:[%s13139_s0 + $0x50] sm:$0xff]  ;;  %v682_v37 = vld [vmem:[%s13139_s0 + $0x60] sm:$0xff] }
  0xd6   : > { %10947 = vmatprep.subr.bf16.mxu1 %v12078_v6  ;;  %v681_v36 = vld [vmem:[%s13139_s0 + $0x58] sm:$0xff]  ;;  %v683_v38 = vld [vmem:[%s13139_s0 + $0x68] sm:$0xff]  ;;  %v12093_v40 = vld [vmem:[#allocation7 + $0x20] sm:$0xff]  }
  0xd7   : > { %10912 = vmatpush3.bf16.msra.mxu0 %v12077_v4  ;;  %v691_v39 = vpack.c.bf16 %v681_v36, %v680_v35  ;;  %v692_v41 = vpack.c.bf16 %v683_v38, %v682_v37  ;;  %v12094_v42 = vld [vmem:[#allocation7 + $0x28] sm:$0xff]   ;;  %v684_v43 = vld [vmem:[%s13139_s0 + $0x70] sm:$0xff]  ;;  %v685_v44 = vld [vmem:[%s13139_s0 + $0x78] sm:$0xff] }
  0xd8   : > { %10913 = vmatprep.subr.bf16.mxu0 %v12079_v5  ;;  %v693_v45 = vpack.c.bf16 %v685_v44, %v684_v43  ;;  %v12095_v46 = vld [vmem:[#allocation7 + $0x30] sm:$0xff]   ;;  %v12096_v47 = vld [vmem:[#allocation7 + $0x38] sm:$0xff]   ;;  %v13211_v49 = vld [vmem:[%s16068_s5] ss:$0 sm:$0xff] }
  0xd9   : > { %10948 = vmatpush3.bf16.msra.mxu1 %v12078_v6  ;;  %v13216_v52 = vld [vmem:[%s16199_s3] ss:$0 sm:$0xff] }
  0xda   : > { %10949 = vmatprep.subr.bf16.mxu1 %v12080_v8 }
  0xdb   : > { %10914 = vmatpush3.bf16.msra.mxu0 %v12079_v5 }
  0xdc   : > { %10915 = vmatprep.subr.bf16.mxu0 %v12081_v7 }
  0xdd   : > { %10950 = vmatpush3.bf16.msra.mxu1 %v12080_v8 }
  0xde   : > { %10951 = vmatprep.subr.bf16.mxu1 %v12082_v12 }
  0xdf   : > { %10916 = vmatpush3.bf16.msra.mxu0 %v12081_v7 }
  0xe0   : > { %10917 = vmatprep.subr.bf16.mxu0 %v12083_v9 }
  0xe1   : > { %10952 = vmatpush3.bf16.msra.mxu1 %v12082_v12 }
  0xe2   : > { %10953 = vmatprep.subr.bf16.mxu1 %v12084_v15 }
  0xe3   : > { %10918 = vmatpush3.bf16.msra.mxu0 %v12083_v9 }
  0xe4   : > { %10919 = vmatprep.subr.bf16.mxu0 %v12085_v14 }
  0xe5   : > { %10954 = vmatpush3.bf16.msra.mxu1 %v12084_v15 }
  0xe6   : > { %10955 = vmatprep.subr.bf16.mxu1 %v12086_v17 }
  0xe7   : > { %10920 = vmatpush3.bf16.msra.mxu0 %v12085_v14 }
  0xe8   : > { %10921 = vmatprep.subr.bf16.mxu0 %v12087_v16 }
  0xe9   : > { %10956 = vmatpush3.bf16.msra.mxu1 %v12086_v17 }
  0xea   : > { %11005 = vmatprep.subr.bf16.mxu1 %v16089_v48 }
  0xeb   : > { %10922 = vmatpush3.bf16.msra.mxu0 %v12087_v16 }
  0xec   : > { %10923 = vmatprep.subr.bf16.mxu0 %v12088_v20  ;;  %10958 = vmatmul.mubr.bf16.vlgmr.msra.gmra.mrb[0].mxu1 %v687_v24 }
  0xed   : > { %10961 = vmatprep.mubr.bf16.mxu1 %v688_v25 }
  0xef   : > { %10924 = vmatpush3.bf16.msra.mxu0 %v12088_v20 }
  0xf0   : > { %10973 = vmatprep.subr.bf16.mxu0 %v12089_v23 }
  0xf2   : > { %10926 = vmatmul.mubr.bf16.vlgmr.msra.gmra.mrb[0].mxu0 %v687_v24 }
  0xf3   : > { %10929 = vmatprep.mubr.bf16.mxu0 %v688_v25  ;;  %10974 = vmatpush3.bf16.msra.mxu0 %v12089_v23 }
  0xf4   : > { %10975 = vmatprep.subr.bf16.mxu0 %v12090_v26  ;;  %10962 = vmatmul.mubr.bf16.gmra.mrb[4].mxu1 %v689_v32 }
  0xf5   : > { %10965 = vmatprep.mubr.bf16.mxu1 %v690_v33 }
  0xf7   : > { %10976 = vmatpush3.bf16.msra.mxu0 %v12090_v26 }
  0xf8   : > { %10977 = vmatprep.subr.bf16.mxu0 %v12091_v31 }
  0xfa   : > { %10930 = vmatmul.mubr.bf16.gmra.mrb[4].mxu0 %v689_v32 }
  0xfb   : > { %10933 = vmatprep.mubr.bf16.mxu0 %v690_v33  ;;  %10978 = vmatpush3.bf16.msra.mxu0 %v12091_v31 }
  0xfc   : > { %10979 = vmatprep.subr.bf16.mxu0 %v12092_v34  ;;  %10966 = vmatmul.mubr.bf16.gmra.mrb[8].mxu1 %v691_v39 }
  0xfd   : > { %10969 = vmatprep.mubr.bf16.mxu1 %v692_v41 }
  0xff   : > { %10980 = vmatpush3.bf16.msra.mxu0 %v12092_v34 }
 0x100   : > { %10981 = vmatprep.subr.bf16.mxu0 %v12093_v40 }
 0x102   : > { %10934 = vmatmul.mubr.bf16.gmra.mrb[8].mxu0 %v691_v39 }
 0x103   : > { %10937 = vmatprep.mubr.bf16.mxu0 %v692_v41  ;;  %10982 = vmatpush3.bf16.msra.mxu0 %v12093_v40 }
 0x104   : > { %10983 = vmatprep.subr.bf16.mxu0 %v12094_v42  ;;  %10970 = vmatmul.mubr.bf16.gmra.mrb[12].mxu1 %v693_v45 }
 0x105   : > { %11007 = vmatprep.mubr.msk.bf16.mxu1 %vm12785_vm0, %v16089_v48 }
 0x107   : > { %10984 = vmatpush3.bf16.msra.mxu0 %v12094_v42 }
 0x108   : > { %10985 = vmatprep.subr.bf16.mxu0 %v12095_v46 }
 0x10a   : > { %10938 = vmatmul.mubr.bf16.gmra.mrb[12].mxu0 %v693_v45 }
 0x10b   : > { %10986 = vmatpush3.bf16.msra.mxu0 %v12095_v46  ;;  %10989 = vmatprep.mubr.bf16.mxu0 %v13174_v13 }
 0x10c   : > { %10987 = vmatprep.subr.bf16.mxu0 %v12096_v47 }
 0x10f   : > { %10988 = vmatpush3.bf16.msra.mxu0 %v12096_v47 }
 0x110   : > { %11029 = vmatprep.subr.bf16.mxu0 %v16089_v48 }
 0x112   : > { %10990 = vmatmul.mubr.bf16.vlgmr.msra.gmra.mrb[16].mxu0 %v687_v24 }
 0x113   : > { %10993 = vmatprep.mubr.bf16.mxu0 %v688_v25 }
 0x11a   : > { %10994 = vmatmul.mubr.bf16.gmra.mrb[20].mxu0 %v689_v32 }
 0x11b   : > { %10997 = vmatprep.mubr.bf16.mxu0 %v690_v33 }
 0x122   : > { %10998 = vmatmul.mubr.bf16.gmra.mrb[24].mxu0 %v691_v39 }
 0x123   : > { %11001 = vmatprep.mubr.bf16.mxu0 %v692_v41 }
 0x12a   : > { %11002 = vmatmul.mubr.bf16.gmra.mrb[28].mxu0 %v693_v45 }
 0x12b   : > { %11031 = vmatprep.mubr.msk.bf16.mxu0 %vm12785_vm0, %v16089_v48 }
 0x1bf   : > { %v10959_v50 = vpop.f32.mrb[0].mxu1 }
 0x1c0   : > { %v983_v51 = vpop.f32.mrb[1].mxu1  ;;  %v992_v16 = vadd.f32 %v10959_v50, %v13211_v49 }
 0x1c1   : > { %v984_v53 = vadd.f32 %v13211_v49, %v983_v51  ;;  %v10960_v54 = vpop.f32.mrb[2].mxu1 }
 0x1c2   : > { %v986_v56 = vpop.f32.mrb[3].mxu1  ;;  %v13259_v24 = vpack.c.bf16 %v992_v16, %v992_v16  ;;  %v995_v37 = vadd.f32 %v10960_v54, %v13211_v49 }
 0x1c3   : > { %v13219_v58 = vpack.c.bf16 %v984_v53, %v984_v53  ;;  %v987_v62 = vadd.f32 %v13211_v49, %v986_v56 }
 0x1c4   : > { %v1456_v39 = vsel %vm1359_vm1, %v13259_v24, 0  ;;  %v13295_v44 = vpack.c.bf16 %v995_v37, %v995_v37 }
 0x1c5   : > { %v10927_v55 = vpop.f32.mrb[0].mxu0  ;;  %v1364_v0 = vsel %vm1359_vm1, %v13219_v58, 0  ;;  %v13228_v3 = vpack.c.bf16 %v987_v62, %v987_v62 }
 0x1c6   : > { %v799_v57 = vpop.f32.mrb[1].mxu0  ;;  %11006 = vmatpush3.bf16.xpose.msra.mxu1 %v1364_v0  ;;  %v808_v31 = vadd.f32 %v10927_v55, %v13216_v52 }
 0x1c7   : > { %v800_v59 = vadd.f32 %v13216_v52, %v799_v57  ;;  %v13222_v60 = vpop.f32.mrb[2].mxu0  ;;  %v10963_v1 = vpop.f32.mrb[4].mxu1  ;;  %11011 = vmatprep.subr.bf16.mxu1 %v16089_v48  ;;  %v1410_v18 = vsel %vm1359_vm1, %v13228_v3, 0 }
 0x1c8   : > { %v802_v61 = vpop.f32.mrb[3].mxu0  ;;  %v999_v2 = vpop.f32.mrb[5].mxu1  ;;  %v1008_v10 = vadd.f32 %v10963_v1, %v13211_v49  ;;  %v864_v40 = vmul.f32 0.17677669, %v808_v31  ;;  %v811_v51 = vadd.f32 %v13222_v60, %v13216_v52 }
 0x1c9   : > { %v862_v63 = vmul.f32 0.17677669, %v800_v59  ;;  %v1000_v5 = vadd.f32 %v13211_v49, %v999_v2  ;;  %v13233_v7 = vpop.f32.mrb[6].mxu1  ;;  %v803_v12 = vadd.f32 %v13216_v52, %v802_v61  ;;  %v1502_v2 = vsel %vm1359_vm1, %v13295_v44, 0 }
 0x1ca   : > { %v13235_v9 = vpop.f32.mrb[7].mxu1  ;;  %v13253_v20 = vpack.c.bf16 %v1008_v10, %v1008_v10  ;;  %v13307_v56 = vpack.c.bf16 %v864_v40, %v864_v40 }
 0x1cb   : > { %v13230_v4 = vpack.c.bf16 %v862_v63, %v862_v63  ;;  %v13238_v11 = vpack.c.bf16 %v1000_v5, %v1000_v5  ;;  %v863_v21 = vmul.f32 0.17677669, %v803_v12  ;;  %v1003_v0 = vadd.f32 %v13211_v49, %v13235_v9 }
 0x1cc   : > { %v1640_v33 = vsel %vm1359_vm1, %v13253_v20, 0 }
 0x1cd   : > { %v10931_v6 = vpop.f32.mrb[4].mxu0  ;;  %11008 = vmatmul.mubr.msk.bf16.vlgmr.msra.gmra.mrb[16].mxu1 %vm1359_vm1, %v13230_v4  ;;  %v1548_v19 = vsel %vm1359_vm1, %v13238_v11, 0  ;;  %v13269_v32 = vpack.c.bf16 %v863_v21, %v863_v21  ;;  %v13337_v9 = vpack.c.bf16 %v1003_v0, %v1003_v0 }
 0x1ce   : > { %v815_v8 = vpop.f32.mrb[5].mxu0  ;;  %11012 = vmatpush3.bf16.xpose.msra.mxu1 %v1410_v18  ;;  %11030 = vmatpush3.bf16.xpose.msra.mxu0 %v1548_v19  ;;  %v824_v25 = vadd.f32 %v10931_v6, %v13216_v52  ;;  %v865_v6 = vmul.f32 0.17677669, %v811_v51 }
 0x1cf   : > { %v816_v13 = vadd.f32 %v13216_v52, %v815_v8  ;;  %v13242_v14 = vpop.f32.mrb[6].mxu0  ;;  %11013 = vmatprep.mubr.msk.bf16.mxu1 %vm12785_vm0, %v16089_v48  ;;  %11017 = vmatprep.subr.bf16.mxu1 %v16089_v48  ;;  %v10967_v22 = vpop.f32.mrb[8].mxu1 }
 0x1d0   : > { %v13244_v15 = vpop.f32.mrb[7].mxu0  ;;  %11041 = vmatprep.subr.bf16.mxu0 %v16089_v48  ;;  %v1015_v23 = vpop.f32.mrb[9].mxu1  ;;  %v868_v38 = vmul.f32 0.17677669, %v824_v25  ;;  %v1024_v57 = vadd.f32 %v10967_v22, %v13211_v49  ;;  %v1011_v25 = vadd.f32 %v13233_v7, %v13211_v49 }
 0x1d1   : > { %v866_v17 = vmul.f32 0.17677669, %v816_v13  ;;  %v13264_v28 = vpop.f32.mrb[10].mxu1  ;;  %v1016_v34 = vadd.f32 %v13211_v49, %v1015_v23  ;;  %v819_v18 = vadd.f32 %v13216_v52, %v13244_v15  ;;  %v1594_v15 = vsel %vm1359_vm1, %v13337_v9, 0 }
 0x1d2   : > { %v13266_v30 = vpop.f32.mrb[11].mxu1  ;;  %v13297_v45 = vpack.c.bf16 %v868_v38, %v868_v38  ;;  %v13329_v8 = vpack.c.bf16 %v1024_v57, %v1024_v57  ;;  %v13373_v7 = vpack.c.bf16 %v1011_v25, %v1011_v25  ;;  %v827_v38 = vadd.f32 %v13242_v14, %v13216_v52 }
 0x1d3   : > { %v13262_v26 = vpack.c.bf16 %v866_v17, %v866_v17  ;;  %v13285_v41 = vpack.c.bf16 %v1016_v34, %v1016_v34  ;;  %v13346_v17 = vpack.c.bf16 %v865_v6, %v865_v6 }
 0x1d4   : > { %16200 = vst [vmem:[#allocation19_spill] sm:$0xff] %v13329_v8  ;;  %v1824_v19 = vsel %vm1359_vm1, %v13329_v8, 0  ;;  %v1686_v14 = vsel %vm1359_vm1, %v13373_v7, 0  ;;  %v869_v51 = vmul.f32 0.17677669, %v827_v38 }
 0x1d5   : > { %v10935_v27 = vpop.f32.mrb[8].mxu0  ;;  %11014 = vmatmul.mubr.msk.bf16.vlgmr.msra.gmra.mrb[20].mxu1 %vm1359_vm1, %v13269_v32  ;;  %11032 = vmatmul.mubr.msk.bf16.vlgmr.msra.gmra.mrb[32].mxu0 %vm1359_vm1, %v13262_v26  ;;  %v1732_v59 = vsel %vm1359_vm1, %v13285_v41, 0 }
 0x1d6   : > { %v831_v29 = vpop.f32.mrb[9].mxu0  ;;  %11018 = vmatpush3.bf16.xpose.msra.mxu1 %v1456_v39  ;;  %11042 = vmatpush3.bf16.xpose.msra.mxu0 %v1640_v33  ;;  %v840_v10 = vadd.f32 %v10935_v27, %v13216_v52  ;;  %v13410_v57 = vpack.c.bf16 %v869_v51, %v869_v51  ;;  %v13508_v51 = vld [vmem:[%s16070_s7] ss:$0 sm:$0xff] }
 0x1d7   : > { %v13274_v35 = vpop.f32.mrb[10].mxu0  ;;  %11019 = vmatprep.mubr.msk.bf16.mxu1 %vm12785_vm0, %v16089_v48  ;;  %11043 = vmatprep.mubr.msk.bf16.mxu0 %vm12785_vm0, %v16089_v48  ;;  %v13291_v42 = vpop.f32.mrb[12].mxu1  ;;  %v832_v46 = vadd.f32 %v13216_v52, %v831_v29  ;;  %v867_v29 = vmul.f32 0.17677669, %v819_v18 }
 0x1d8   : > { %v13276_v36 = vpop.f32.mrb[11].mxu0  ;;  %11023 = vmatprep.subr.bf16.mxu1 %v16089_v48  ;;  %11053 = vmatprep.subr.bf16.mxu0 %v16089_v48  ;;  %v1031_v43 = vpop.f32.mrb[13].mxu1  ;;  %v872_v27 = vmul.f32 0.17677669, %v840_v10  ;;  %v1040_v40 = vadd.f32 %v13291_v42, %v13211_v49  ;;  %16207 = vst [vmem:[#allocation26_spill] sm:$0xff] %v13410_v57 }
 0x1d9   : > { %v10972_v50 = vpop.f32.mrb[14].mxu1  ;;  %v870_v1 = vmul.f32 0.17677669, %v832_v46  ;;  %v1032_v21 = vadd.f32 %v13211_v49, %v1031_v43  ;;  %v13382_v39 = vpack.c.bf16 %v867_v29, %v867_v29  ;;  %v1019_v46 = vadd.f32 %v13211_v49, %v13266_v30 }
 0x1da   : > { %v13305_v54 = vadd.f32 %v10972_v50, %v13211_v49  ;;  %v1034_v55 = vpop.f32.mrb[15].mxu1  ;;  %v13375_v33 = vpack.c.bf16 %v872_v27, %v872_v27  ;;  %v13396_v42 = vpack.c.bf16 %v1040_v40, %v1040_v40 }
 0x1db   : > { %v13313_v61 = vadd.f32 %v13211_v49, %v1034_v55  ;;  %v13340_v12 = vpack.c.bf16 %v870_v1, %v870_v1  ;;  %v13365_v31 = vpack.c.bf16 %v1032_v21, %v1032_v21  ;;  %v13404_v30 = vpack.c.bf16 %v1019_v46, %v1019_v46 }
 0x1dc   : > { %16203 = vst [vmem:[#allocation22_spill] sm:$0xff] %v13375_v33  ;;  %16204 = vst [vmem:[#allocation23_spill] sm:$0xff] %v13396_v42 }
 0x1dd   : > { %v13300_v47 = vpop.f32.mrb[12].mxu0  ;;  %11020 = vmatmul.mubr.msk.bf16.vlgmr.msra.gmra.mrb[24].mxu1 %vm1359_vm1, %v13307_v56  ;;  %11044 = vmatmul.mubr.msk.bf16.vlgmr.msra.gmra.mrb[36].mxu0 %vm1359_vm1, %v13297_v45  ;;  %16201 = vst [vmem:[#allocation20_spill] sm:$0xff] %v13340_v12  ;;  %16202 = vst [vmem:[#allocation21_spill] sm:$0xff] %v13365_v31  ;;  %v1916_v43 = vsel %vm1359_vm1, %v13365_v31, 0  ;;  %v13448_v18 = vpack.c.bf16 %v13313_v61, %v13313_v61  ;;  %v13464_v61 = vpack.c.bf16 %v13305_v54, %v13305_v54 }
 0x1de   : > { %v847_v53 = vpop.f32.mrb[13].mxu0  ;;  %11024 = vmatpush3.bf16.xpose.msra.mxu1 %v1502_v2  ;;  %11054 = vmatpush3.bf16.xpose.msra.mxu0 %v1732_v59  ;;  %16205 = vst [vmem:[#allocation24_spill] sm:$0xff] %v13404_v30  ;;  %v835_v59 = vadd.f32 %v13216_v52, %v13276_v36  ;;  %v843_v36 = vadd.f32 %v13274_v35, %v13216_v52 }
 0x1df   : > { %v10940_v62 = vpop.f32.mrb[14].mxu0  ;;  %11025 = vmatprep.mubr.msk.bf16.mxu1 %vm12785_vm0, %v16089_v48  ;;  %11055 = vmatprep.mubr.msk.bf16.mxu0 %vm12785_vm0, %v16089_v48  ;;  %v848_v34 = vadd.f32 %v13216_v52, %v847_v53  ;;  %v856_v53 = vadd.f32 %v13300_v47, %v13216_v52  ;;  %v1778_v47 = vsel %vm1359_vm1, %v13404_v30, 0  ;;  %16211 = vst [vmem:[#allocation30_spill] sm:$0xff] %v13448_v18  ;;  %v1962_v35 = vsel %vm1359_vm1, %v13448_v18, 0 }
 0x1e0   : > { %v13316_v63 = vadd.f32 %v10940_v62, %v13216_v52  ;;  %v850_v60 = vpop.f32.mrb[15].mxu0  ;;  %11035 = vmatprep.subr.bf16.mxu1 %v16089_v48  ;;  %11065 = vmatprep.subr.bf16.mxu0 %v16089_v48  ;;  %v2008_v62 = vsel %vm1359_vm1, %v13396_v42, 0  ;;  %v871_v1 = vmul.f32 0.17677669, %v835_v59  ;;  %v873_v10 = vmul.f32 0.17677669, %v843_v36 }
 0x1e1   : > { %v13327_v5 = vadd.f32 %v13216_v52, %v850_v60  ;;  %v874_v50 = vmul.f32 0.17677669, %v848_v34  ;;  %v1027_v60 = vadd.f32 %v13264_v28, %v13211_v49  ;;  %v876_v0 = vmul.f32 0.17677669, %v856_v53  ;;  %16213 = vst [vmem:[#allocation32_spill] sm:$0xff] %v13464_v61 }
 0x1e2   : > { %v13436_v2 = vpack.c.bf16 %v871_v1, %v871_v1  ;;  %v13453_v52 = vpack.c.bf16 %v873_v10, %v873_v10  ;;  %v2054_v25 = vsel %vm1359_vm1, %v13464_v61, 0  ;;  %v877_v27 = vmul.f32 0.17677669, %v13316_v63 }
 0x1e3   : > { %v13408_v55 = vpack.c.bf16 %v874_v50, %v874_v50  ;;  %v13430_v49 = vpack.c.bf16 %v1027_v60, %v1027_v60  ;;  %v13432_v28 = vpack.c.bf16 %v876_v0, %v876_v0 }
 0x1e4   : > { %16210 = vst [vmem:[#allocation29_spill] sm:$0xff] %v13436_v2  ;;  %16212 = vst [vmem:[#allocation31_spill] sm:$0xff] %v13453_v52  ;;  %v13477_v54 = vpack.c.bf16 %v877_v27, %v877_v27 }
 0x1e5   : > { %v13342_v13 = vpop.f32.mrb[16].mxu0  ;;  %11026 = vmatmul.mubr.msk.bf16.vlgmr.msra.gmra.mrb[28].mxu1 %vm1359_vm1, %v13346_v17  ;;  %11056 = vmatmul.mubr.msk.bf16.vlgmr.msra.gmra.mrb[40].mxu0 %vm1359_vm1, %v13340_v12  ;;  %16206 = vst [vmem:[#allocation25_spill] sm:$0xff] %v13408_v55  ;;  %16208 = vst [vmem:[#allocation27_spill] sm:$0xff] %v13430_v49  ;;  %v1870_v6 = vsel %vm1359_vm1, %v13430_v49, 0 }
 0x1e6   : > { %v13344_v16 = vpop.f32.mrb[17].mxu0  ;;  %11036 = vmatpush3.bf16.xpose.msra.mxu1 %v1594_v15  ;;  %11066 = vmatpush3.bf16.xpose.msra.mxu0 %v1824_v19  ;;  %16209 = vst [vmem:[#allocation28_spill] sm:$0xff] %v13432_v28  ;;  %v875_v19 = vmul.f32 0.17677669, %v13327_v5  ;;  %16215 = vst [vmem:[#allocation34_spill] sm:$0xff] %v13477_v54 }
 0x1e7   : > { %v13353_v22 = vpop.f32.mrb[18].mxu0  ;;  %11037 = vmatprep.mubr.msk.bf16.mxu1 %vm12785_vm0, %v16089_v48  ;;  %11067 = vmatprep.mubr.msk.bf16.mxu0 %vm12785_vm0, %v16089_v48  ;;  %v1152_v53 = vadd.f32 %v13508_v51, %v13344_v16  ;;  %v13527_v16 = vld [vmem:[%s16222_s11] sm:$0xff] }
 0x1e8   : > { %v13355_v23 = vpop.f32.mrb[19].mxu0  ;;  %11047 = vmatprep.subr.bf16.mxu1 %v16089_v48  ;;  %11077 = vmatprep.subr.bf16.mxu0 %v16089_v48  ;;  %v13467_v21 = vpack.c.bf16 %v875_v19, %v875_v19 }
 0x1e9   : > { %v1155_v59 = vadd.f32 %v13508_v51, %v13355_v23 }
 0x1ea   : > { %16214 = vst [vmem:[#allocation33_spill] sm:$0xff] %v13467_v21 }
 0x1eb   : > { %v13516_v60 = vpack.c.bf16 %v1155_v59, %v1155_v59 }
 0x1ed   : > { %v13378_v37 = vpop.f32.mrb[20].mxu0  ;;  %11038 = vmatmul.mubr.msk.bf16.vlgmr.msra.gmra.mrb[32].mxu1 %vm1359_vm1, %v13382_v39  ;;  %11068 = vmatmul.mubr.msk.bf16.vlgmr.msra.gmra.mrb[44].mxu0 %vm1359_vm1, %v13375_v33  ;;  %16221 = vst [vmem:[#allocation40_spill] sm:$0xff] %v13516_v60 }
 0x1ee   : > { %11048 = vmatpush3.bf16.xpose.msra.mxu1 %v1686_v14  ;;  %11078 = vmatpush3.bf16.xpose.msra.mxu0 %v1916_v43  ;;  %v13483_v5 = vpop.f32.mrb[21].mxu0 }
 0x1ef   : > { %11049 = vmatprep.mubr.msk.bf16.mxu1 %vm12785_vm0, %v16089_v48  ;;  %11079 = vmatprep.mubr.msk.bf16.mxu0 %vm12785_vm0, %v16089_v48  ;;  %v13485_v63 = vpop.f32.mrb[22].mxu0 }
 0x1f0   : > { %11059 = vmatprep.subr.bf16.mxu1 %v16089_v48  ;;  %11089 = vmatprep.subr.bf16.mxu0 %v16089_v48  ;;  %v13487_v15 = vpop.f32.mrb[23].mxu0 }
 0x1f5   : > { %11050 = vmatmul.mubr.msk.bf16.vlgmr.msra.gmra.mrb[36].mxu1 %vm1359_vm1, %v13410_v57  ;;  %11080 = vmatmul.mubr.msk.bf16.vlgmr.msra.gmra.mrb[48].mxu0 %vm1359_vm1, %v13408_v55  ;;  %v13489_v29 = vpop.f32.mrb[24].mxu0 }
 0x1f6   : > { %11060 = vmatpush3.bf16.xpose.msra.mxu1 %v1778_v47  ;;  %11090 = vmatpush3.bf16.xpose.msra.mxu0 %v2008_v62  ;;  %v13491_v34 = vpop.f32.mrb[25].mxu0  ;;  %v13514_v62 = vpack.c.bf16 %v1152_v53, %v1152_v53  ;;  %v2340_v47 = vsel %vm2292_vm2, %v13516_v60, 0 }
 0x1f7   : > { %11061 = vmatprep.mubr.msk.bf16.mxu1 %vm12785_vm0, %v16089_v48  ;;  %11091 = vmatprep.mubr.msk.bf16.mxu0 %vm12785_vm0, %v16089_v48  ;;  %v13493_v38 = vpop.f32.mrb[26].mxu0 }
 0x1f8   : > { %11071 = vmatprep.subr.bf16.mxu1 %v16089_v48  ;;  %11101 = vmatprep.subr.bf16.mxu0 %v16089_v48  ;;  %16216 = vst [vmem:[#allocation35_spill] sm:$0xff] %v13493_v38  ;;  %v13495_v40 = vpop.f32.mrb[27].mxu0  ;;  %16220 = vst [vmem:[#allocation39_spill] sm:$0xff] %v13514_v62  ;;  %v2294_v0 = vsel %vm2292_vm2, %v13514_v62, 0 }
 0x1fd   : > { %11062 = vmatmul.mubr.msk.bf16.vlgmr.msra.gmra.mrb[40].mxu1 %vm1359_vm1, %v13436_v2  ;;  %11092 = vmatmul.mubr.msk.bf16.vlgmr.msra.gmra.mrb[52].mxu0 %vm1359_vm1, %v13432_v28  ;;  %v13497_v43 = vpop.f32.mrb[28].mxu0 }
 0x1fe   : > { %11072 = vmatpush3.bf16.xpose.msra.mxu1 %v1870_v6  ;;  %11073 = vmatprep.mubr.msk.bf16.mxu1 %vm12785_vm0, %v16089_v48  ;;  %16217 = vst [vmem:[#allocation36_spill] sm:$0xff] %v13497_v43  ;;  %v13499_v46 = vpop.f32.mrb[29].mxu0 }
 0x1ff   : > { %11083 = vmatprep.subr.bf16.mxu1 %v16089_v48  ;;  %11103 = vmatprep.mubr.msk.bf16.mxu0 %vm12785_vm0, %v16089_v48  ;;  %v13501_v50 = vpop.f32.mrb[30].mxu0 }
 0x200   : > { %16218 = vst [vmem:[#allocation37_spill] sm:$0xff] %v13501_v50  ;;  %v13503_v14 = vpop.f32.mrb[31].mxu0  ;;  %11102 = vmatpush3.bf16.msra.mxu0 %v2294_v0 }
 0x201   : > { %16219 = vst [vmem:[#allocation38_spill] sm:$0xff] %v13503_v14  ;;  %11113 = vmatprep.subr.bf16.mxu0 %v16089_v48 }
 0x205   : > { %11074 = vmatmul.mubr.msk.bf16.vlgmr.msra.gmra.mrb[44].mxu1 %vm1359_vm1, %v13453_v52 }
 0x206   : > { %11084 = vmatpush3.bf16.xpose.msra.mxu1 %v1962_v35  ;;  %11085 = vmatprep.mubr.msk.bf16.mxu1 %vm12785_vm0, %v16089_v48 }
 0x207   : > { %11095 = vmatprep.subr.bf16.mxu1 %v16089_v48 }
 0x20d   : > { %11086 = vmatmul.mubr.msk.bf16.vlgmr.msra.gmra.mrb[48].mxu1 %vm1359_vm1, %v13467_v21 }
 0x20e   : > { %11096 = vmatpush3.bf16.xpose.msra.mxu1 %v2054_v25  ;;  %11097 = vmatprep.mubr.msk.bf16.mxu1 %vm12785_vm0, %v16089_v48 }
 0x20f   : > { %11107 = vmatprep.subr.bf16.mxu1 %v16089_v48 }
 0x215   : > { %11098 = vmatmul.mubr.msk.bf16.vlgmr.msra.gmra.mrb[52].mxu1 %vm1359_vm1, %v13477_v54 }
 0x216   : > { %11109 = vmatprep.mubr.msk.bf16.mxu1 %vm12785_vm0, %v16089_v48  ;;  %11108 = vmatpush3.bf16.msra.mxu1 %v2340_v47 }
 0x217   : > { %11119 = vmatprep.subr.bf16.mxu1 %v16089_v48 }
 0x2a0   : > { %v1400_v23 = vpop.f32.mrb[16].mxu1 }
 0x2a1   : > { %v13530_v1 = vadd.f32 %v1400_v23, %v13527_v16  ;;  %v11009_v36 = vpop.f32.mrb[17].mxu1 }
 0x2a2   : > { %v1403_v6 = vpop.f32.mrb[18].mxu1 }
 0x2a3   : > { %v2097_v10 = vsel %vm2096_vm3, %v13530_v1, -inf  ;;  %v11010_v35 = vpop.f32.mrb[19].mxu1 }
 0x2a4   : > { %2098 = vmax.xlane.f32.xlu0 %v2097_v10 }
 0x2a8   : > { %v1446_v19 = vpop.f32.mrb[20].mxu1  ;;  %v1584_v25 = vpop.f32.mrb[32].mxu0 }
 0x2a9   : > { %v13535_v27 = vadd.f32 %v1584_v25, %v13527_v16  ;;  %v13538_v53 = vadd.f32 %v1446_v19, %v13527_v16  ;;  %v11015_v59 = vpop.f32.mrb[21].mxu1  ;;  %v11033_v0 = vpop.f32.mrb[33].mxu0 }
 0x2aa   : > { %v1449_v47 = vpop.f32.mrb[22].mxu1  ;;  %v1587_v23 = vpop.f32.mrb[34].mxu0 }
 0x2ab   : > { %v2100_v36 = vsel %vm2096_vm3, %v13538_v53, -inf  ;;  %v11016_v6 = vpop.f32.mrb[23].mxu1  ;;  %v11034_v48 = vpop.f32.mrb[35].mxu0  ;;  %v2109_v10 = vsel %vm2096_vm3, %v13535_v27, -inf }
 0x2ac   : > { %2101 = vmax.xlane.f32.xlu0 %v2100_v36 }
 0x2b0   : > { %v1676_v35 = vpop.f32.mrb[36].mxu0  ;;  %2110 = vmax.xlane.f32.xlu0 %v2109_v10  ;;  %v1492_v25 = vpop.f32.mrb[24].mxu1 }
 0x2b1   : > { %v13545_v50 = vadd.f32 %v1676_v35, %v13527_v16  ;;  %v13548_v19 = vadd.f32 %v1492_v25, %v13527_v16  ;;  %v11021_v59 = vpop.f32.mrb[25].mxu1  ;;  %v11045_v0 = vpop.f32.mrb[37].mxu0 }
 0x2b2   : > { %v1495_v47 = vpop.f32.mrb[26].mxu1  ;;  %v1679_v23 = vpop.f32.mrb[38].mxu0 }
 0x2b3   : > { %v2115_v48 = vsel %vm2096_vm3, %v13545_v50, -inf  ;;  %v2103_v36 = vsel %vm2096_vm3, %v13548_v19, -inf  ;;  %v11022_v6 = vpop.f32.mrb[27].mxu1  ;;  %v11046_v14 = vpop.f32.mrb[39].mxu0 }
 0x2b4   : > { %2116 = vmax.xlane.f32.xlu0 %v2115_v48  ;;  %2104 = vmax.xlane.f32.xlu1 %v2103_v36 }
 0x2b8   : > { %v1538_v10 = vpop.f32.mrb[28].mxu1  ;;  %v1768_v35 = vpop.f32.mrb[40].mxu0 }
 0x2b9   : > { %v13555_v60 = vadd.f32 %v1768_v35, %v13527_v16  ;;  %v11027_v25 = vpop.f32.mrb[29].mxu1  ;;  %v13558_v59 = vadd.f32 %v1538_v10, %v13527_v16  ;;  %v11057_v0 = vpop.f32.mrb[41].mxu0 }
 0x2ba   : > { %v1541_v47 = vpop.f32.mrb[30].mxu1  ;;  %v1771_v23 = vpop.f32.mrb[42].mxu0 }
 0x2bb   : > { %v11028_v54 = vpop.f32.mrb[31].mxu1  ;;  %v2121_v61 = vsel %vm2096_vm3, %v13555_v60, -inf  ;;  %v2106_v14 = vsel %vm2096_vm3, %v13558_v59, -inf  ;;  %v11058_v48 = vpop.f32.mrb[43].mxu0 }
 0x2bc   : > { %2122 = vmax.xlane.f32.xlu0 %v2121_v61  ;;  %2107 = vmax.xlane.f32.xlu1 %v2106_v14 }
 0x2c0   : > { %v1630_v36 = vpop.f32.mrb[32].mxu1  ;;  %v1860_v6 = vpop.f32.mrb[44].mxu0 }
 0x2c1   : > { %v13565_v35 = vadd.f32 %v1860_v6, %v13527_v16  ;;  %v13568_v10 = vadd.f32 %v1630_v36, %v13527_v16  ;;  %v11039_v25 = vpop.f32.mrb[33].mxu1  ;;  %v11069_v0 = vpop.f32.mrb[45].mxu0 }
 0x2c2   : > { %v1633_v54 = vpop.f32.mrb[34].mxu1  ;;  %v1863_v47 = vpop.f32.mrb[46].mxu0 }
 0x2c3   : > { %v2127_v23 = vsel %vm2096_vm3, %v13565_v35, -inf  ;;  %v2112_v48 = vsel %vm2096_vm3, %v13568_v10, -inf  ;;  %v11040_v61 = vpop.f32.mrb[35].mxu1  ;;  %v11070_v14 = vpop.f32.mrb[47].mxu0 }
 0x2c4   : > { %2128 = vmax.xlane.f32.xlu0 %v2127_v23  ;;  %2113 = vmax.xlane.f32.xlu1 %v2112_v48 }
 0x2c8   : > { %v1722_v21 = vpop.f32.mrb[36].mxu1  ;;  %v1952_v6 = vpop.f32.mrb[48].mxu0 }
 0x2c9   : > { %v13575_v18 = vadd.f32 %v1952_v6, %v13527_v16  ;;  %v13578_v36 = vadd.f32 %v1722_v21, %v13527_v16  ;;  %v11051_v25 = vpop.f32.mrb[37].mxu1  ;;  %v11081_v0 = vpop.f32.mrb[49].mxu0 }
 0x2ca   : > { %v1725_v54 = vpop.f32.mrb[38].mxu1  ;;  %v1955_v47 = vpop.f32.mrb[50].mxu0 }
 0x2cb   : > { %v2133_v52 = vsel %vm2096_vm3, %v13575_v18, -inf  ;;  %v2118_v61 = vsel %vm2096_vm3, %v13578_v36, -inf  ;;  %v11052_v23 = vpop.f32.mrb[39].mxu1  ;;  %v11082_v48 = vpop.f32.mrb[51].mxu0 }
 0x2cc   : > { %2134 = vmax.xlane.f32.xlu0 %v2133_v52  ;;  %2119 = vmax.xlane.f32.xlu1 %v2118_v61 }
 0x2d0   : > { %v1814_v14 = vpop.f32.mrb[40].mxu1  ;;  %v2044_v6 = vpop.f32.mrb[52].mxu0 }
 0x2d1   : > { %v13585_v49 = vadd.f32 %v2044_v6, %v13527_v16  ;;  %v13588_v21 = vadd.f32 %v1814_v14, %v13527_v16  ;;  %v11063_v25 = vpop.f32.mrb[41].mxu1  ;;  %v11093_v0 = vpop.f32.mrb[53].mxu0 }
 0x2d2   : > { %v1817_v54 = vpop.f32.mrb[42].mxu1  ;;  %v2047_v47 = vpop.f32.mrb[54].mxu0 }
 0x2d3   : > { %v2139_v2 = vsel %vm2096_vm3, %v13585_v49, -inf  ;;  %v2124_v23 = vsel %vm2096_vm3, %v13588_v21, -inf  ;;  %v11064_v52 = vpop.f32.mrb[43].mxu1  ;;  %v11094_v61 = vpop.f32.mrb[55].mxu0 }
 0x2d4   : > { %2140 = vmax.xlane.f32.xlu0 %v2139_v2  ;;  %2125 = vmax.xlane.f32.xlu1 %v2124_v23 }
 0x2d8   : > { %v1906_v48 = vpop.f32.mrb[44].mxu1 }
 0x2d9   : > { %v13595_v6 = vadd.f32 %v1906_v48, %v13527_v16  ;;  %v11075_v14 = vpop.f32.mrb[45].mxu1 }
 0x2da   : > { %v1909_v43 = vpop.f32.mrb[46].mxu1 }
 0x2db   : > { %v2130_v25 = vsel %vm2096_vm3, %v13595_v6, -inf  ;;  %v11076_v0 = vpop.f32.mrb[47].mxu1 }
 0x2dc   : > { %2131 = vmax.xlane.f32.xlu1 %v2130_v25 }
 0x2e0   : > { %v1998_v54 = vpop.f32.mrb[48].mxu1 }
 0x2e1   : > { %v13600_v47 = vadd.f32 %v1998_v54, %v13527_v16  ;;  %v11087_v30 = vpop.f32.mrb[49].mxu1 }
 0x2e2   : > { %v2001_v52 = vpop.f32.mrb[50].mxu1 }
 0x2e3   : > { %v2136_v2 = vsel %vm2096_vm3, %v13600_v47, -inf  ;;  %v11088_v23 = vpop.f32.mrb[51].mxu1 }
 0x2e4   : > { %2137 = vmax.xlane.f32.xlu1 %v2136_v2 }
 0x2e8   : > { %v2090_v61 = vpop.f32.mrb[52].mxu1 }
 0x2e9   : > { %v13605_v48 = vadd.f32 %v2090_v61, %v13527_v16  ;;  %v11099_v43 = vpop.f32.mrb[53].mxu1 }
 0x2ea   : > { %v2093_v14 = vpop.f32.mrb[54].mxu1 }
 0x2eb   : > { %v2142_v25 = vsel %vm2096_vm3, %v13605_v48, -inf  ;;  %v11100_v0 = vpop.f32.mrb[55].mxu1 }
 0x2ec   : > { %2143 = vmax.xlane.f32.xlu1 %v2142_v25 }
 0x331   : > { %v2099_v54 = vpop.xlane.xlu0 %2098 }
 0x332   : > { %v2145_v30 = vsub.f32 %v13530_v1, %v2099_v54 }
 0x334   : > { %v2161_v52 = vmul.f32 1.442695, %v2145_v30 }
 0x336   : > { %12121 = vpow2.f32 %v2161_v52 }
 0x339   : > { %v2102_v57 = vpop.xlane.xlu0 %2101 }
 0x33a   : > { %v2146_v23 = vsub.f32 %v13538_v53, %v2102_v57 }
 0x33c   : > { %v2163_v2 = vmul.f32 1.442695, %v2146_v23 }
 0x33d   : > { %v2111_v38 = vpop.xlane.xlu0 %2110 }
 0x33e   : > { %12123 = vpow2.f32 %v2163_v2  ;;  %v2149_v61 = vsub.f32 %v13535_v27, %v2111_v38 }
 0x340   : > { %v13611_v16 = vpop.eup %12121  ;;  %v2169_v54 = vmul.f32 1.442695, %v2149_v61 }
 0x341   : > { %v2105_v43 = vpop.xlane.xlu1 %2104  ;;  %v2193_v14 = vsel %vm2096_vm3, %v13611_v16, 0.0  ;;  %v2117_v25 = vpop.xlane.xlu0 %2116 }
 0x342   : > { %v2147_v0 = vsub.f32 %v13548_v19, %v2105_v43  ;;  %2194 = vadd.xlane.f32.xlu0 %v2193_v14  ;;  %v2151_v30 = vsub.f32 %v13545_v50, %v2117_v25 }
 0x344   : > { %v2165_v1 = vmul.f32 1.442695, %v2147_v0  ;;  %v2173_v53 = vmul.f32 1.442695, %v2151_v30 }
 0x346   : > { %12125 = vpow2.f32 %v2165_v1 }
 0x347   : > { %12127 = vpow2.f32 %v2169_v54 }
 0x348   : > { %v13618_v57 = vpop.eup %12123  ;;  %12129 = vpow2.f32 %v2173_v53 }
 0x349   : > { %v2123_v52 = vpop.xlane.xlu0 %2122  ;;  %v2108_v23 = vpop.xlane.xlu1 %2107  ;;  %v2196_v38 = vsel %vm2096_vm3, %v13618_v57, 0.0 }
 0x34a   : > { %v2153_v27 = vsub.f32 %v13555_v60, %v2123_v52  ;;  %v2148_v2 = vsub.f32 %v13558_v59, %v2108_v23  ;;  %2197 = vadd.xlane.f32.xlu1 %v2196_v38 }
 0x34c   : > { %v2167_v19 = vmul.f32 1.442695, %v2148_v2  ;;  %v2177_v61 = vmul.f32 1.442695, %v2153_v27 }
 0x34e   : > { %12131 = vpow2.f32 %v2167_v19 }
 0x34f   : > { %12133 = vpow2.f32 %v2177_v61 }
 0x350   : > { %v13624_v50 = vpop.eup %12125 }
 0x351   : > { %v2129_v43 = vpop.xlane.xlu0 %2128  ;;  %v2114_v14 = vpop.xlane.xlu1 %2113  ;;  %v2199_v1 = vsel %vm2096_vm3, %v13624_v50, 0.0 }
 0x352   : > { %v2155_v25 = vsub.f32 %v13565_v35, %v2129_v43  ;;  %v2150_v0 = vsub.f32 %v13568_v10, %v2114_v14  ;;  %v13630_v60 = vpop.eup %12127  ;;  %2200 = vadd.xlane.f32.xlu0 %v2199_v1 }
 0x353   : > { %v2205_v30 = vsel %vm2096_vm3, %v13630_v60, 0.0  ;;  %v13634_v53 = vpop.eup %12129 }
 0x354   : > { %v2181_v59 = vmul.f32 1.442695, %v2155_v25  ;;  %v2171_v54 = vmul.f32 1.442695, %v2150_v0  ;;  %v2211_v27 = vsel %vm2096_vm3, %v13634_v53, 0.0 }
 0x356   : > { %12135 = vpow2.f32 %v2181_v59  ;;  %2206 = vadd.xlane.f32.xlu0 %v2205_v30 }
 0x357   : > { %12137 = vpow2.f32 %v2171_v54 }
 0x358   : > { %v13636_v52 = vpop.eup %12131 }
 0x359   : > { %v2135_v35 = vpop.xlane.xlu0 %2134  ;;  %v2120_v10 = vpop.xlane.xlu1 %2119  ;;  %v2202_v2 = vsel %vm2096_vm3, %v13636_v52, 0.0 }
 0x35a   : > { %v2157_v23 = vsub.f32 %v13575_v18, %v2135_v35  ;;  %v2152_v38 = vsub.f32 %v13578_v36, %v2120_v10  ;;  %v13644_v19 = vpop.eup %12133  ;;  %2212 = vadd.xlane.f32.xlu0 %v2211_v27  ;;  %2203 = vadd.xlane.f32.xlu1 %v2202_v2 }
 0x35b   : > { %v2217_v14 = vsel %vm2096_vm3, %v13644_v19, 0.0 }
 0x35c   : > { %v2185_v61 = vmul.f32 1.442695, %v2157_v23  ;;  %v2175_v43 = vmul.f32 1.442695, %v2152_v38 }
 0x35e   : > { %12139 = vpow2.f32 %v2185_v61  ;;  %2218 = vadd.xlane.f32.xlu0 %v2217_v14 }
 0x35f   : > { %12141 = vpow2.f32 %v2175_v43 }
 0x360   : > { %v13648_v18 = vpop.eup %12135 }
 0x361   : > { %v13650_v36 = vpop.eup %12137  ;;  %v2141_v25 = vpop.xlane.xlu0 %2140  ;;  %v2223_v1 = vsel %vm2096_vm3, %v13648_v18, 0.0 }
 0x362   : > { %v2126_v0 = vpop.xlane.xlu1 %2125  ;;  %v2159_v59 = vsub.f32 %v13585_v49, %v2141_v25  ;;  %v2208_v30 = vsel %vm2096_vm3, %v13650_v36, 0.0  ;;  %2224 = vadd.xlane.f32.xlu0 %v2223_v1 }
 0x363   : > { %v2154_v54 = vsub.f32 %v13588_v21, %v2126_v0  ;;  %2209 = vadd.xlane.f32.xlu1 %v2208_v30 }
 0x364   : > { %v2189_v35 = vmul.f32 1.442695, %v2159_v59 }
 0x365   : > { %v2179_v10 = vmul.f32 1.442695, %v2154_v54 }
 0x366   : > { %12143 = vpow2.f32 %v2189_v35 }
 0x367   : > { %12145 = vpow2.f32 %v2179_v10  ;;  %v1160_v10 = vadd.f32 %v13342_v13, %v13508_v51 }
 0x368   : > { %v13658_v23 = vpop.eup %12139 }
 0x369   : > { %v13660_v38 = vpop.eup %12141  ;;  %v2229_v27 = vsel %vm2096_vm3, %v13658_v23, 0.0  ;;  %v2132_v14 = vpop.xlane.xlu1 %2131 }
 0x36a   : > { %2230 = vadd.xlane.f32.xlu0 %v2229_v27  ;;  %v2214_v49 = vsel %vm2096_vm3, %v13660_v38, 0.0  ;;  %v2156_v25 = vsub.f32 %v13595_v6, %v2132_v14  ;;  %v13722_v27 = vpack.c.bf16 %v1160_v10, %v1160_v10 }
 0x36b   : > { %2215 = vadd.xlane.f32.xlu1 %v2214_v49  ;;  %v1168_v49 = vadd.f32 %v13508_v51, %v13483_v5 }
 0x36c   : > { %v2183_v1 = vmul.f32 1.442695, %v2156_v25  ;;  %16223 = vst [vmem:[#allocation41_spill] sm:$0xff] %v13722_v27 }
 0x36d   : > { %v13730_v14 = vpack.c.bf16 %v1168_v49, %v1168_v49 }
 0x36e   : > { %12147 = vpow2.f32 %v2183_v1 }
 0x36f   : > { %16224 = vst [vmem:[#allocation42_spill] sm:$0xff] %v13730_v14 }
 0x370   : > { %v13666_v21 = vpop.eup %12143 }
 0x371   : > { %v13668_v2 = vpop.eup %12145  ;;  %v2235_v61 = vsel %vm2096_vm3, %v13666_v21, 0.0  ;;  %v2138_v0 = vpop.xlane.xlu1 %2137 }
 0x372   : > { %2236 = vadd.xlane.f32.xlu0 %v2235_v61  ;;  %v2220_v43 = vsel %vm2096_vm3, %v13668_v2, 0.0  ;;  %v2158_v59 = vsub.f32 %v13600_v47, %v2138_v0 }
 0x373   : > { %2221 = vadd.xlane.f32.xlu1 %v2220_v43  ;;  %v1176_v43 = vadd.f32 %v13378_v37, %v13508_v51 }
 0x374   : > { %v2187_v54 = vmul.f32 1.442695, %v2158_v59 }
 0x375   : > { %v13735_v13 = vpack.c.bf16 %v1176_v43, %v1176_v43 }
 0x376   : > { %12149 = vpow2.f32 %v2187_v54 }
 0x377   : > { %16225 = vst [vmem:[#allocation43_spill] sm:$0xff] %v13735_v13 }
 0x378   : > { %v13692_v6 = vpop.eup %12147 }
 0x379   : > { %v2226_v47 = vsel %vm2096_vm3, %v13692_v6, 0.0  ;;  %v2144_v61 = vpop.xlane.xlu1 %2143 }
 0x37a   : > { %v2160_v25 = vsub.f32 %v13605_v48, %v2144_v61  ;;  %v16226_v61 = vmov 0.0  }
 0x37c   : > { %v2191_v0 = vmul.f32 1.442695, %v2160_v25 }
 0x380   : > { %v13698_v30 = vpop.eup %12149 }
 0x381   : > { %v2232_v35 = vsel %vm2096_vm3, %v13698_v30, 0.0 }
 0x384   : > { %3090 = vrot.lane.b32.xlu1 %v13228_v3, %s12786_s23 }
 0x388   : > { %3040 = vrot.lane.b32.xlu0 %v13219_v58, %s12786_s23 }
 0x38c   : > { %3140 = vrot.lane.b32.xlu0 %v13259_v24, %s12786_s23 }
 0x390   : > { %3138 = vrot.lane.b32.xlu0 %v13307_v56, %s12786_s23 }
 0x394   : > { %3240 = vrot.lane.b32.xlu0 %v13238_v11, %s12786_s23 }
 0x398   : > { %3238 = vrot.lane.b32.xlu0 %v13262_v26, %s12786_s23 }
 0x39c   : > { %3340 = vrot.lane.b32.xlu0 %v13253_v20, %s12786_s23 }
 0x3a0   : > { %3338 = vrot.lane.b32.xlu0 %v13297_v45, %s12786_s23 }
 0x3a4   : > { %3440 = vrot.lane.b32.xlu0 %v13285_v41, %s12786_s23 }
 0x3a8   : > { %2227 = vadd.xlane.f32.xlu1 %v2226_v47  ;;  %3438 = vrot.lane.b32.xlu0 %v13340_v12, %s12786_s23  ;;  %v1163_v47 = vadd.f32 %v13353_v22, %v13508_v51 }
 0x3aa   : > { %v13752_v43 = vpack.c.bf16 %v1163_v47, %v1163_v47 }
 0x3ac   : > { %2233 = vadd.xlane.f32.xlu1 %v2232_v35  ;;  %3540 = vrot.lane.b32.xlu0 %v13329_v8, %s12786_s23  ;;  %v2386_v35 = vsel %vm2292_vm2, %v13722_v27, 0  ;;  %16227 = vst [vmem:[#allocation44_spill] sm:$0xff] %v13752_v43 }
 0x3b0   : > { %3538 = vrot.lane.b32.xlu0 %v13375_v33, %s12786_s23 }
 0x3b4   : > { %3640 = vrot.lane.b32.xlu0 %v13365_v31, %s12786_s23 }
 0x3b8   : > { %3638 = vrot.lane.b32.xlu0 %v13408_v55, %s12786_s23 }
 0x3bc   : > { %3740 = vrot.lane.b32.xlu0 %v13396_v42, %s12786_s23 }
 0x3bd   : > { %3038 = vrot.lane.b32.xlu1 %v13230_v4, %s12786_s23 }
 0x3c0   : > { %3738 = vrot.lane.b32.xlu0 %v13432_v28, %s12786_s23 }
 0x3c4   : > { %4030 = vrot.lane.b32.xlu0 %v13514_v62, %s12786_s23 }
 0x3c8   : > { %4126 = vrot.lane.b32.xlu0 %v13722_v27, %s12786_s23 }
 0x3cc   : > { %4222 = vrot.lane.b32.xlu0 %v13730_v14, %s12786_s23 }
 0x3cf   : > { %v2195_v1 = vpop.xlane.xlu0 %2194 }
 0x3d0   : > { %12151 = vrcp.f32 %v2195_v1  ;;  %4318 = vrot.lane.b32.xlu0 %v13735_v13, %s12786_s23  ;;  %v2432_v1 = vsel %vm2292_vm2, %v13752_v43, 0 }
 0x3d1   : > { %12153 = vpow2.f32 %v2191_v0 }
 0x3d7   : > { %v2198_v5 = vpop.xlane.xlu1 %2197 }
 0x3d8   : > { %12155 = vrcp.f32 %v2198_v5 }
 0x3da   : > { %v12152_v59 = vpop.eup %12151 }
 0x3db   : > { %v2257_v37 = vmul.f32 %v12152_v59, %v13611_v16  ;;  %v13740_v54 = vpop.eup %12153 }
 0x3dc   : > { %v2238_v49 = vsel %vm2096_vm3, %v13740_v54, 0.0 }
 0x3dd   : > { %v2273_v48 = vpack.c.bf16 %v2257_v37, %v2257_v37 }
 0x3df   : > { %11104 = vmatmul.mubr.msk.bf16.vlgmr.msra.gmra.mrb[56].mxu0 %vm2096_vm3, %v2273_v48  ;;  %v2201_v10 = vpop.xlane.xlu0 %2200 }
 0x3e0   : > { %11114 = vmatpush3.bf16.msra.mxu0 %v2386_v35  ;;  %11115 = vmatprep.mubr.msk.bf16.mxu0 %vm12785_vm0, %v16226_v61  ;;  %12157 = vrcp.f32 %v2201_v10  ;;  %v2478_v35 = vsel %vm2292_vm2, %v13730_v14, 0 }
 0x3e1   : > { %2239 = vadd.xlane.f32.xlu1 %v2238_v49  ;;  %11125 = vmatprep.subr.bf16.mxu0 %v16226_v61  ;;  %v1171_v49 = vadd.f32 %v13508_v51, %v13487_v15 }
 0x3e2   : > { %v12156_v16 = vpop.eup %12155 }
 0x3e3   : > { %v2258_v22 = vmul.f32 %v12156_v16, %v13618_v57  ;;  %v2207_v25 = vpop.xlane.xlu0 %2206 }
 0x3e4   : > { %12159 = vrcp.f32 %v2207_v25  ;;  %v13773_v25 = vpack.c.bf16 %v1171_v49, %v1171_v49 }
 0x3e5   : > { %v2274_v0 = vpack.c.bf16 %v2258_v22, %v2258_v22 }
 0x3e6   : > { %16228 = vst [vmem:[#allocation45_spill] sm:$0xff] %v13773_v25 }
 0x3e7   : > { %11110 = vmatmul.mubr.msk.bf16.vlgmr.msra.gmra.mrb[56].mxu1 %vm2096_vm3, %v2274_v0  ;;  %v2204_v5 = vpop.xlane.xlu1 %2203  ;;  %v2213_v59 = vpop.xlane.xlu0 %2212 }
 0x3e8   : > { %11120 = vmatpush3.bf16.msra.mxu1 %v2432_v1  ;;  %11121 = vmatprep.mubr.msk.bf16.mxu1 %vm12785_vm0, %v16226_v61  ;;  %12161 = vrcp.f32 %v2204_v5 }
 0x3e9   : > { %11131 = vmatprep.subr.bf16.mxu1 %v16226_v61  ;;  %12163 = vrcp.f32 %v2213_v59  ;;  %v1184_v59 = vadd.f32 %v13508_v51, %v13491_v34 }
 0x3ea   : > { %v12158_v37 = vpop.eup %12157 }
 0x3eb   : > { %v2259_v57 = vmul.f32 %v12158_v37, %v13624_v50  ;;  %v2219_v16 = vpop.xlane.xlu0 %2218 }
 0x3ed   : > { %v2275_v48 = vpack.c.bf16 %v2259_v57, %v2259_v57  ;;  %v1179_v57 = vadd.f32 %v13485_v63, %v13508_v51 }
 0x3ee   : > { %v12160_v47 = vpop.eup %12159 }
 0x3ef   : > { %11116 = vmatmul.mubr.msk.bf16.vlgmr.msra.gmra.mrb[60].mxu0 %vm2096_vm3, %v2275_v48  ;;  %v2261_v50 = vmul.f32 %v12160_v47, %v13630_v60  ;;  %v2570_v60 = vsel %vm2292_vm2, %v13735_v13, 0  ;;  %v2225_v48 = vpop.xlane.xlu0 %2224  ;;  %v13795_v47 = vpack.c.bf16 %v1184_v59, %v1184_v59 }
 0x3f0   : > { %v2210_v10 = vpop.xlane.xlu1 %2209  ;;  %11126 = vmatpush3.bf16.msra.mxu0 %v2478_v35  ;;  %11127 = vmatprep.mubr.msk.bf16.mxu0 %vm12785_vm0, %v16226_v61  ;;  %v13799_v35 = vpack.c.bf16 %v1179_v57, %v1179_v57 }
 0x3f1   : > { %12165 = vrcp.f32 %v2210_v10  ;;  %11137 = vmatprep.subr.bf16.mxu0 %v16226_v61  ;;  %v2277_v15 = vpack.c.bf16 %v2261_v50, %v2261_v50  ;;  %16229 = vst [vmem:[#allocation46_spill] sm:$0xff] %v13795_v47  ;;  %v1192_v50 = vadd.f32 %v13489_v29, %v13508_v51 }
 0x3f2   : > { %3088 = vrot.lane.b32.xlu1 %v13269_v32, %s12786_s23  ;;  %v12162_v22 = vpop.eup %12161  ;;  %12167 = vrcp.f32 %v2219_v16  ;;  %16230 = vst [vmem:[#allocation47_spill] sm:$0xff] %v13799_v35 }
 0x3f3   : > { %v2260_v0 = vmul.f32 %v12162_v22, %v13636_v52  ;;  %v12164_v1 = vpop.eup %12163  ;;  %v2524_v52 = vsel %vm2292_vm2, %v13773_v25, 0  ;;  %v2662_v22 = vsel %vm2292_vm2, %v13795_v47, 0 }
 0x3f4   : > { %v2263_v34 = vmul.f32 %v12164_v1, %v13634_v53 }
 0x3f5   : > { %v2276_v5 = vpack.c.bf16 %v2260_v0, %v2260_v0 }
 0x3f6   : > { %3190 = vrot.lane.b32.xlu1 %v13295_v44, %s12786_s23  ;;  %v2279_v53 = vpack.c.bf16 %v2263_v34, %v2263_v34  ;;  %v16233_v34 = vld [vmem:[#allocation35_spill] sm:$0xff] }
 0x3f7   : > { %11128 = vmatmul.mubr.msk.bf16.vlgmr.msra.gmra.mrb[64].mxu0 %vm2096_vm3, %v2277_v15  ;;  %11122 = vmatmul.mubr.msk.bf16.vlgmr.msra.gmra.mrb[60].mxu1 %vm2096_vm3, %v2276_v5  ;;  %v1187_v15 = vadd.f32 %v13508_v51, %v13495_v40  ;;  %v2231_v1 = vpop.xlane.xlu0 %2230  ;;  %v13821_v40 = vpack.c.bf16 %v1192_v50, %v1192_v50 }
 0x3f8   : > { %v2216_v37 = vpop.xlane.xlu1 %2215  ;;  %11138 = vmatpush3.bf16.msra.mxu0 %v2570_v60  ;;  %11132 = vmatpush3.bf16.msra.mxu1 %v2524_v52  ;;  %v1200_v52 = vadd.f32 %v13508_v51, %v13499_v46 }
 0x3f9   : > { %12169 = vrcp.f32 %v2216_v37  ;;  %11133 = vmatprep.mubr.msk.bf16.mxu1 %vm12785_vm0, %v16226_v61  ;;  %11139 = vmatprep.mubr.msk.bf16.mxu0 %vm12785_vm0, %v16226_v61  ;;  %16231 = vst [vmem:[#allocation48_spill] sm:$0xff] %v13821_v40  ;;  %v13826_v60 = vpack.c.bf16 %v1187_v15, %v1187_v15 }
 0x3fa   : > { %3188 = vrot.lane.b32.xlu1 %v13346_v17, %s12786_s23  ;;  %11143 = vmatprep.subr.bf16.mxu1 %v16226_v61  ;;  %12171 = vrcp.f32 %v2225_v48  ;;  %v2754_v48 = vsel %vm2292_vm2, %v13821_v40, 0 }
 0x3fb   : > { %v12166_v63 = vpop.eup %12165  ;;  %11149 = vmatprep.subr.bf16.mxu0 %v16226_v61  ;;  %16232 = vst [vmem:[#allocation49_spill] sm:$0xff] %v13826_v60 }
 0x3fc   : > { %v2262_v10 = vmul.f32 %v12166_v63, %v13650_v36  ;;  %v12168_v49 = vpop.eup %12167  ;;  %v2616_v36 = vsel %vm2292_vm2, %v13799_v35, 0  ;;  %v2708_v63 = vsel %vm2292_vm2, %v13826_v60, 0 }
 0x3fd   : > { %v2265_v29 = vmul.f32 %v12168_v49, %v13644_v19 }
 0x3fe   : > { %3290 = vrot.lane.b32.xlu1 %v13337_v9, %s12786_s23  ;;  %v2278_v16 = vpack.c.bf16 %v2262_v10, %v2262_v10 }
 0x3ff   : > { %11140 = vmatmul.mubr.msk.bf16.vlgmr.msra.gmra.mrb[68].mxu0 %vm2096_vm3, %v2279_v53  ;;  %v2281_v19 = vpack.c.bf16 %v2265_v29, %v2265_v29  ;;  %v2237_v10 = vpop.xlane.xlu0 %2236  ;;  %v16234_v53 = vld [vmem:[#allocation26_spill] sm:$0xff] }
 0x400   : > { %v2222_v0 = vpop.xlane.xlu1 %2221  ;;  %11150 = vmatpush3.bf16.msra.mxu0 %v2662_v22  ;;  %11134 = vmatmul.mubr.msk.bf16.vlgmr.msra.gmra.mrb[64].mxu1 %vm2096_vm3, %v2278_v16  ;;  %v13847_v16 = vpack.c.bf16 %v1200_v52, %v1200_v52 }
 0x401   : > { %12173 = vrcp.f32 %v2222_v0  ;;  %11144 = vmatpush3.bf16.msra.mxu1 %v2616_v36  ;;  %11145 = vmatprep.mubr.msk.bf16.mxu1 %vm12785_vm0, %v16226_v61 }
 0x402   : > { %3288 = vrot.lane.b32.xlu1 %v13382_v39, %s12786_s23  ;;  %11151 = vmatprep.mubr.msk.bf16.mxu0 %vm12785_vm0, %v16226_v61  ;;  %12175 = vrcp.f32 %v2231_v1  ;;  %v16237_v1 = vld [vmem:[#allocation36_spill] sm:$0xff] }
 0x403   : > { %v12170_v5 = vpop.eup %12169  ;;  %11155 = vmatprep.subr.bf16.mxu1 %v16226_v61  ;;  %11161 = vmatprep.subr.bf16.mxu0 %v16226_v61  ;;  %12177 = vrcp.f32 %v2237_v10  ;;  %v1208_v29 = vadd.f32 %v16237_v1, %v13508_v51  ;;  %v16241_v10 = vld [vmem:[#allocation30_spill] sm:$0xff] }
 0x404   : > { %v2264_v59 = vmul.f32 %v12170_v5, %v13660_v38  ;;  %v12172_v57 = vpop.eup %12171  ;;  %v1195_v38 = vadd.f32 %v16233_v34, %v13508_v51  ;;  %v2846_v5 = vsel %vm2292_vm2, %v13847_v16, 0  ;;  %v3041_v34 = vpop.permute.xlu0 %3040 }
 0x405   : > { %v2267_v46 = vmul.f32 %v12172_v57, %v13648_v18  ;;  %v16236_v18 = vld [vmem:[#allocation24_spill] sm:$0xff]  ;;  %v16239_v57 = vld [vmem:[#allocation27_spill] sm:$0xff] }
 0x406   : > { %3390 = vrot.lane.b32.xlu1 %v13373_v7, %s12786_s23  ;;  %v2280_v37 = vpack.c.bf16 %v2264_v59, %v2264_v59  ;;  %v13852_v22 = vpack.c.bf16 %v1195_v38, %v1195_v38  ;;  %v16238_v59 = vld [vmem:[#allocation29_spill] sm:$0xff]  ;;  %v16240_v38 = vld [vmem:[#allocation31_spill] sm:$0xff] }
 0x407   : > { %11152 = vmatmul.mubr.msk.bf16.vlgmr.msra.gmra.mrb[72].mxu0 %vm2096_vm3, %v2281_v19  ;;  %v2283_v0 = vpack.c.bf16 %v2267_v46, %v2267_v46 }
 0x408   : > { %11162 = vmatpush3.bf16.msra.mxu0 %v2754_v48  ;;  %11146 = vmatmul.mubr.msk.bf16.vlgmr.msra.gmra.mrb[68].mxu1 %vm2096_vm3, %v2280_v37  ;;  %16235 = vst [vmem:[#allocation35_spill] sm:$0xff] %v13852_v22  ;;  %v13870_v37 = vpack.c.bf16 %v1208_v29, %v1208_v29  ;;  %v16245_v29 = vld [vmem:[#allocation40_spill] sm:$0xff] }
 0x409   : > { %11156 = vmatpush3.bf16.msra.mxu1 %v2708_v63  ;;  %11157 = vmatprep.mubr.msk.bf16.mxu1 %vm12785_vm0, %v16226_v61 }
 0x40a   : > { %3388 = vrot.lane.b32.xlu1 %v16234_v53, %s12786_s23  ;;  %11163 = vmatprep.mubr.msk.bf16.mxu0 %vm12785_vm0, %v16226_v61 }
 0x40b   : > { %v12174_v49 = vpop.eup %12173  ;;  %11167 = vmatprep.subr.bf16.mxu1 %v16226_v61  ;;  %11173 = vmatprep.subr.bf16.mxu0 %v16226_v61 }
 0x40c   : > { %v2266_v50 = vmul.f32 %v12174_v49, %v13668_v2  ;;  %v12176_v36 = vpop.eup %12175  ;;  %v2800_v2 = vsel %vm2292_vm2, %v13852_v22, 0  ;;  %v3141_v49 = vpop.permute.xlu0 %3140 }
 0x40d   : > { %v2269_v19 = vmul.f32 %v12176_v36, %v13658_v23  ;;  %v12178_v48 = vpop.eup %12177  ;;  %v2938_v23 = vsel %vm2292_vm2, %v13870_v37, 0  ;;  %v16244_v36 = vld [vmem:[#allocation34_spill] sm:$0xff] }
 0x40e   : > { %3490 = vrot.lane.b32.xlu1 %v16236_v18, %s12786_s23  ;;  %v2282_v15 = vpack.c.bf16 %v2266_v50, %v2266_v50  ;;  %v2271_v63 = vmul.f32 %v12178_v48, %v13666_v21  ;;  %v3046_v50 = vsel %vm1359_vm1, %v3041_v34, 0 }
 0x40f   : > { %11164 = vmatmul.mubr.msk.bf16.vlgmr.msra.gmra.mrb[76].mxu0 %vm2096_vm3, %v2283_v0  ;;  %v2285_v52 = vpack.c.bf16 %v2269_v19, %v2269_v19  ;;  %v16242_v0 = vld [vmem:[#allocation33_spill] sm:$0xff] }
 0x410   : > { %11174 = vmatpush3.bf16.msra.mxu0 %v2846_v5  ;;  %11158 = vmatmul.mubr.msk.bf16.vlgmr.msra.gmra.mrb[72].mxu1 %vm2096_vm3, %v2282_v15  ;;  %v2287_v46 = vpack.c.bf16 %v2271_v63, %v2271_v63  ;;  %v3139_v21 = vpop.permute.xlu0 %3138  ;;  %v16243_v15 = vld [vmem:[#allocation32_spill] sm:$0xff]  ;;  %v13901_v5 = vpop.permute.xlu1 %3090 }
 0x411   : > { %11168 = vmatpush3.bf16.msra.mxu1 %v2800_v2  ;;  %11175 = vmatprep.mubr.msk.bf16.mxu0 %vm12785_vm0, %v16226_v61 }
 0x412   : > { %3488 = vrot.lane.b32.xlu1 %v16238_v59, %s12786_s23  ;;  %11185 = vmatprep.subr.bf16.mxu0 %v16226_v61 }
 0x413   : > { %11169 = vmatprep.mubr.msk.bf16.mxu1 %vm12785_vm0, %v16226_v61  ;;  %11179 = vmatprep.subr.bf16.mxu1 %v16226_v61 }
 0x414   : > { %v3241_v1 = vpop.permute.xlu0 %3240 }
 0x416   : > { %3590 = vrot.lane.b32.xlu1 %v16239_v57, %s12786_s23 }
 0x417   : > { %11176 = vmatmul.mubr.msk.bf16.vlgmr.msra.gmra.mrb[80].mxu0 %vm2096_vm3, %v2285_v52 }
 0x418   : > { %11186 = vmatpush3.bf16.msra.mxu0 %v2938_v23  ;;  %11187 = vmatprep.mubr.msk.bf16.mxu0 %vm12785_vm0, %v16226_v61  ;;  %v3239_v2 = vpop.permute.xlu0 %3238  ;;  %v16246_v23 = vld [vmem:[#allocation38_spill] sm:$0xff] }
 0x419   : > { %11197 = vmatprep.subr.bf16.mxu0 %v16226_v61  ;;  %v1203_v34 = vadd.f32 %v13508_v51, %v16246_v23 }
 0x41a   : > { %3588 = vrot.lane.b32.xlu1 %v16240_v38, %s12786_s23 }
 0x41c   : > { %v3341_v52 = vpop.permute.xlu0 %3340 }
 0x41e   : > { %3690 = vrot.lane.b32.xlu1 %v16241_v10, %s12786_s23 }
 0x41f   : > { %11188 = vmatmul.mubr.msk.bf16.vlgmr.msra.gmra.mrb[84].mxu0 %vm2096_vm3, %v2287_v46 }
 0x420   : > { %11199 = vmatprep.mubr.msk.bf16.mxu0 %vm12785_vm0, %v16226_v61  ;;  %v3339_v63 = vpop.permute.xlu0 %3338 }
 0x421   : > { %11198 = vmatpush3.bf16.xpose.msra.mxu0 %v3046_v50  ;;  %v3146_v50 = vsel %vm1359_vm1, %v3141_v49, 0 }
 0x422   : > { %3688 = vrot.lane.b32.xlu1 %v16242_v0, %s12786_s23  ;;  %11209 = vmatprep.subr.bf16.mxu0 %v16226_v61 }
 0x424   : > { %v3441_v14 = vpop.permute.xlu0 %3440 }
 0x426   : > { %3790 = vrot.lane.b32.xlu1 %v16243_v15, %s12786_s23 }
 0x42a   : > { %3788 = vrot.lane.b32.xlu1 %v16244_v36, %s12786_s23 }
 0x42e   : > { %4078 = vrot.lane.b32.xlu1 %v16245_v29, %s12786_s23 }
 0x432   : > { %4174 = vrot.lane.b32.xlu1 %v13752_v43, %s12786_s23 }
 0x435   : > { %v2228_v19 = vpop.xlane.xlu1 %2227 }
 0x436   : > { %12179 = vrcp.f32 %v2228_v19  ;;  %4270 = vrot.lane.b32.xlu1 %v13773_v25, %s12786_s23  ;;  %v16247_v25 = vld [vmem:[#allocation37_spill] sm:$0xff] }
 0x437   : > { %v1211_v27 = vadd.f32 %v16247_v25, %v13508_v51 }
 0x439   : > { %v2234_v48 = vpop.xlane.xlu1 %2233  ;;  %v13932_v51 = vpack.c.bf16 %v1211_v27, %v1211_v27 }
 0x43a   : > { %12181 = vrcp.f32 %v2234_v48  ;;  %4366 = vrot.lane.b32.xlu1 %v13799_v35, %s12786_s23  ;;  %v13916_v48 = vpack.c.bf16 %v1203_v34, %v1203_v34 }
 0x43c   : > { %v2892_v49 = vsel %vm2292_vm2, %v13916_v48, 0 }
 0x43d   : > { %v3039_v46 = vpop.permute.xlu1 %3038 }
 0x43e   : > { %11200 = vmatmul.mubr.msk.bf16.vlgmr.msra.gmra.mrb[88].mxu0 %vm1359_vm1, %v3039_v46  ;;  %v3246_v46 = vsel %vm1359_vm1, %v3241_v1, 0  ;;  %v3446_v1 = vsel %vm1359_vm1, %v3441_v14, 0 }
 0x43f   : > { %11210 = vmatpush3.bf16.xpose.msra.mxu0 %v3146_v50  ;;  %11211 = vmatprep.mubr.msk.bf16.mxu0 %vm12785_vm0, %v16226_v61 }
 0x440   : > { %v12180_v19 = vpop.eup %12179  ;;  %11221 = vmatprep.subr.bf16.mxu0 %v16226_v61 }
 0x441   : > { %v2268_v13 = vmul.f32 %v12180_v19, %v13692_v6 }
 0x443   : > { %v2284_v35 = vpack.c.bf16 %v2268_v13, %v2268_v13  ;;  %v3439_v13 = vpop.permute.xlu0 %3438 }
 0x444   : > { %v12182_v23 = vpop.eup %12181 }
 0x445   : > { %11170 = vmatmul.mubr.msk.bf16.vlgmr.msra.gmra.mrb[76].mxu1 %vm2096_vm3, %v2284_v35  ;;  %v2270_v6 = vmul.f32 %v12182_v23, %v13698_v30  ;;  %v2984_v35 = vsel %vm2292_vm2, %v13932_v51, 0 }
 0x446   : > { %11180 = vmatpush3.bf16.msra.mxu1 %v2892_v49  ;;  %11212 = vmatmul.mubr.msk.bf16.vlgmr.msra.gmra.mrb[92].mxu0 %vm1359_vm1, %v3139_v21  ;;  %v3346_v21 = vsel %vm1359_vm1, %v3341_v52, 0 }
 0x447   : > { %11222 = vmatpush3.bf16.xpose.msra.mxu0 %v3246_v46  ;;  %11181 = vmatprep.mubr.msk.bf16.mxu1 %vm12785_vm0, %v16226_v61  ;;  %v2286_v25 = vpack.c.bf16 %v2270_v6, %v2270_v6  ;;  %v3541_v30 = vpop.permute.xlu0 %3540 }
 0x448   : > { %11191 = vmatprep.subr.bf16.mxu1 %v16226_v61  ;;  %11223 = vmatprep.mubr.msk.bf16.mxu0 %vm12785_vm0, %v16226_v61  ;;  %v3546_v52 = vsel %vm1359_vm1, %v3541_v30, 0 }
 0x449   : > { %11233 = vmatprep.subr.bf16.mxu0 %v16226_v61 }
 0x44b   : > { %v3539_v27 = vpop.permute.xlu0 %3538 }
 0x44d   : > { %11182 = vmatmul.mubr.msk.bf16.vlgmr.msra.gmra.mrb[80].mxu1 %vm2096_vm3, %v2286_v25 }
 0x44e   : > { %11192 = vmatpush3.bf16.msra.mxu1 %v2984_v35  ;;  %11224 = vmatmul.mubr.msk.bf16.vlgmr.msra.gmra.mrb[96].mxu0 %vm1359_vm1, %v3239_v2 }
 0x44f   : > { %11234 = vmatpush3.bf16.xpose.msra.mxu0 %v3346_v21  ;;  %11235 = vmatprep.mubr.msk.bf16.mxu0 %vm12785_vm0, %v16226_v61  ;;  %v3641_v2 = vpop.permute.xlu0 %3640 }
 0x450   : > { %11245 = vmatprep.subr.bf16.mxu0 %v16226_v61  ;;  %11193 = vmatprep.mubr.msk.bf16.mxu1 %vm12785_vm0, %v16226_v61  ;;  %v3646_v34 = vsel %vm1359_vm1, %v3641_v2, 0 }
 0x451   : > { %11203 = vmatprep.subr.bf16.mxu1 %v16226_v61 }
 0x453   : > { %v3639_v14 = vpop.permute.xlu0 %3638 }
 0x456   : > { %11236 = vmatmul.mubr.msk.bf16.vlgmr.msra.gmra.mrb[100].mxu0 %vm1359_vm1, %v3339_v63 }
 0x457   : > { %11246 = vmatpush3.bf16.xpose.msra.mxu0 %v3446_v1  ;;  %11247 = vmatprep.mubr.msk.bf16.mxu0 %vm12785_vm0, %v16226_v61  ;;  %v3741_v63 = vpop.permute.xlu0 %3740 }
 0x458   : > { %11257 = vmatprep.subr.bf16.mxu0 %v16226_v61  ;;  %v3746_v19 = vsel %vm1359_vm1, %v3741_v63, 0 }
 0x45b   : > { %v3739_v50 = vpop.permute.xlu0 %3738 }
 0x45e   : > { %11248 = vmatmul.mubr.msk.bf16.vlgmr.msra.gmra.mrb[104].mxu0 %vm1359_vm1, %v3439_v13 }
 0x45f   : > { %11258 = vmatpush3.bf16.xpose.msra.mxu0 %v3546_v52  ;;  %11259 = vmatprep.mubr.msk.bf16.mxu0 %vm12785_vm0, %v16226_v61  ;;  %v4031_v46 = vpop.permute.xlu0 %4030 }
 0x460   : > { %11269 = vmatprep.subr.bf16.mxu0 %v16226_v61  ;;  %v4036_v6 = vsel %vm2292_vm2, %v4031_v46, 0 }
 0x466   : > { %11260 = vmatmul.mubr.msk.bf16.vlgmr.msra.gmra.mrb[108].mxu0 %vm1359_vm1, %v3539_v27  ;;  %v3096_v27 = vsel %vm1359_vm1, %v13901_v5, 0 }
 0x467   : > { %11270 = vmatpush3.bf16.xpose.msra.mxu0 %v3646_v34  ;;  %11271 = vmatprep.mubr.msk.bf16.mxu0 %vm12785_vm0, %v16226_v61 }
 0x468   : > { %11281 = vmatprep.subr.bf16.mxu0 %v16226_v61 }
 0x46e   : > { %11272 = vmatmul.mubr.msk.bf16.vlgmr.msra.gmra.mrb[112].mxu0 %vm1359_vm1, %v3639_v14  ;;  %v2240_v23 = vpop.xlane.xlu1 %2239 }
 0x46f   : > { %11282 = vmatpush3.bf16.xpose.msra.mxu0 %v3746_v19  ;;  %12183 = vrcp.f32 %v2240_v23  ;;  %11283 = vmatprep.mubr.msk.bf16.mxu0 %vm12785_vm0, %v16226_v61 }
 0x470   : > { %11293 = vmatprep.subr.bf16.mxu0 %v16226_v61 }
 0x472   : > { %v3089_v49 = vpop.permute.xlu1 %3088 }
 0x476   : > { %11284 = vmatmul.mubr.msk.bf16.vlgmr.msra.gmra.mrb[116].mxu0 %vm1359_vm1, %v3739_v50  ;;  %v3191_v13 = vpop.permute.xlu1 %3190 }
 0x477   : > { %11294 = vmatpush3.bf16.msra.mxu0 %v4036_v6  ;;  %11295 = vmatprep.mubr.msk.bf16.mxu0 %vm12785_vm0, %v16226_v61  ;;  %v3196_v52 = vsel %vm1359_vm1, %v3191_v13, 0 }
 0x478   : > { %11305 = vmatprep.subr.bf16.mxu0 %v16226_v61 }
 0x479   : > { %v12184_v25 = vpop.eup %12183 }
 0x47a   : > { %v3189_v35 = vpop.permute.xlu1 %3188  ;;  %v2272_v21 = vmul.f32 %v12184_v25, %v13740_v54 }
 0x47c   : > { %v2288_v30 = vpack.c.bf16 %v2272_v21, %v2272_v21 }
 0x47e   : > { %11194 = vmatmul.mubr.msk.bf16.vlgmr.msra.gmra.mrb[84].mxu1 %vm2096_vm3, %v2288_v30  ;;  %v3291_v1 = vpop.permute.xlu1 %3290 }
 0x47f   : > { %11204 = vmatpush3.bf16.xpose.msra.mxu1 %v3096_v27  ;;  %11205 = vmatprep.mubr.msk.bf16.mxu1 %vm12785_vm0, %v16226_v61  ;;  %v3296_v5 = vsel %vm1359_vm1, %v3291_v1, 0 }
 0x480   : > { %11215 = vmatprep.subr.bf16.mxu1 %v16226_v61 }
 0x482   : > { %v3289_v2 = vpop.permute.xlu1 %3288 }
 0x486   : > { %11206 = vmatmul.mubr.msk.bf16.vlgmr.msra.gmra.mrb[88].mxu1 %vm1359_vm1, %v3089_v49  ;;  %v3391_v14 = vpop.permute.xlu1 %3390 }
 0x487   : > { %11216 = vmatpush3.bf16.xpose.msra.mxu1 %v3196_v52  ;;  %11217 = vmatprep.mubr.msk.bf16.mxu1 %vm12785_vm0, %v16226_v61  ;;  %v3396_v50 = vsel %vm1359_vm1, %v3391_v14, 0 }
 0x488   : > { %11227 = vmatprep.subr.bf16.mxu1 %v16226_v61 }
 0x48a   : > { %v3389_v54 = vpop.permute.xlu1 %3388 }
 0x48e   : > { %11218 = vmatmul.mubr.msk.bf16.vlgmr.msra.gmra.mrb[92].mxu1 %vm1359_vm1, %v3189_v35  ;;  %v3491_v34 = vpop.permute.xlu1 %3490 }
 0x48f   : > { %11228 = vmatpush3.bf16.xpose.msra.mxu1 %v3296_v5  ;;  %11229 = vmatprep.mubr.msk.bf16.mxu1 %vm12785_vm0, %v16226_v61  ;;  %v3496_v49 = vsel %vm1359_vm1, %v3491_v34, 0 }
 0x490   : > { %11239 = vmatprep.subr.bf16.mxu1 %v16226_v61 }
 0x492   : > { %v3489_v63 = vpop.permute.xlu1 %3488 }
 0x496   : > { %11230 = vmatmul.mubr.msk.bf16.vlgmr.msra.gmra.mrb[96].mxu1 %vm1359_vm1, %v3289_v2  ;;  %v3591_v19 = vpop.permute.xlu1 %3590 }
 0x497   : > { %11240 = vmatpush3.bf16.xpose.msra.mxu1 %v3396_v50  ;;  %11241 = vmatprep.mubr.msk.bf16.mxu1 %vm12785_vm0, %v16226_v61  ;;  %v3596_v6 = vsel %vm1359_vm1, %v3591_v19, 0 }
 0x498   : > { %11251 = vmatprep.subr.bf16.mxu1 %v16226_v61 }
 0x49a   : > { %v3589_v23 = vpop.permute.xlu1 %3588 }
 0x49e   : > { %11242 = vmatmul.mubr.msk.bf16.vlgmr.msra.gmra.mrb[100].mxu1 %vm1359_vm1, %v3389_v54  ;;  %v3691_v46 = vpop.permute.xlu1 %3690 }
 0x49f   : > { %11252 = vmatpush3.bf16.xpose.msra.mxu1 %v3496_v49  ;;  %11253 = vmatprep.mubr.msk.bf16.mxu1 %vm12785_vm0, %v16226_v61  ;;  %v3696_v25 = vsel %vm1359_vm1, %v3691_v46, 0 }
 0x4a0   : > { %11263 = vmatprep.subr.bf16.mxu1 %v16226_v61 }
 0x4a2   : > { %v3689_v13 = vpop.permute.xlu1 %3688 }
 0x4a6   : > { %11254 = vmatmul.mubr.msk.bf16.vlgmr.msra.gmra.mrb[104].mxu1 %vm1359_vm1, %v3489_v63  ;;  %v3791_v35 = vpop.permute.xlu1 %3790 }
 0x4a7   : > { %11264 = vmatpush3.bf16.xpose.msra.mxu1 %v3596_v6  ;;  %11265 = vmatprep.mubr.msk.bf16.mxu1 %vm12785_vm0, %v16226_v61  ;;  %v3796_v52 = vsel %vm1359_vm1, %v3791_v35, 0 }
 0x4a8   : > { %11275 = vmatprep.subr.bf16.mxu1 %v16226_v61 }
 0x4aa   : > { %v3789_v1 = vpop.permute.xlu1 %3788 }
 0x4ae   : > { %11266 = vmatmul.mubr.msk.bf16.vlgmr.msra.gmra.mrb[108].mxu1 %vm1359_vm1, %v3589_v23  ;;  %v4079_v54 = vpop.permute.xlu1 %4078 }
 0x4af   : > { %11276 = vmatpush3.bf16.xpose.msra.mxu1 %v3696_v25  ;;  %11277 = vmatprep.mubr.msk.bf16.mxu1 %vm12785_vm0, %v16226_v61  ;;  %v4084_v19 = vsel %vm2292_vm2, %v4079_v54, 0 }
 0x4b0   : > { %11287 = vmatprep.subr.bf16.mxu1 %v16226_v61 }
 0x4b2   : > { %v14008_v21 = vpop.f32.mrb[56].mxu0 }
 0x4b3   : > { %16248 = vst [vmem:[#allocation26_spill] sm:$0xff] %v14008_v21  ;;  %v11105_v30 = vpop.f32.mrb[57].mxu0 }
 0x4b4   : > { %v2333_v27 = vpop.f32.mrb[58].mxu0 }
 0x4b5   : > { %v11106_v2 = vpop.f32.mrb[59].mxu0 }
 0x4b6   : > { %11278 = vmatmul.mubr.msk.bf16.vlgmr.msra.gmra.mrb[112].mxu1 %vm1359_vm1, %v3689_v13 }
 0x4b7   : > { %11288 = vmatpush3.bf16.xpose.msra.mxu1 %v3796_v52  ;;  %11289 = vmatprep.mubr.msk.bf16.mxu1 %vm12785_vm0, %v16226_v61 }
 0x4b8   : > { %11299 = vmatprep.subr.bf16.mxu1 %v16226_v61 }
 0x4ba   : > { %v14015_v14 = vpop.f32.mrb[56].mxu1 }
 0x4bb   : > { %16249 = vst [vmem:[#allocation24_spill] sm:$0xff] %v14015_v14  ;;  %v11111_v34 = vpop.f32.mrb[57].mxu1 }
 0x4bc   : > { %v2379_v63 = vpop.f32.mrb[58].mxu1 }
 0x4bd   : > { %v11112_v50 = vpop.f32.mrb[59].mxu1 }
 0x4be   : > { %11290 = vmatmul.mubr.msk.bf16.vlgmr.msra.gmra.mrb[116].mxu1 %vm1359_vm1, %v3789_v1 }
 0x4bf   : > { %11300 = vmatpush3.bf16.msra.mxu1 %v4084_v19  ;;  %11301 = vmatprep.mubr.msk.bf16.mxu1 %vm12785_vm0, %v16226_v61 }
 0x4c0   : > { %11311 = vmatprep.subr.bf16.mxu1 %v16226_v61 }
 0x4c2   : > { %v14024_v23 = vpop.f32.mrb[60].mxu0 }
 0x4c3   : > { %16250 = vst [vmem:[#allocation36_spill] sm:$0xff] %v14024_v23  ;;  %v11117_v49 = vpop.f32.mrb[61].mxu0 }
 0x4c4   : > { %v2425_v46 = vpop.f32.mrb[62].mxu0 }
 0x4c5   : > { %v11118_v6 = vpop.f32.mrb[63].mxu0 }
 0x4ca   : > { %v14026_v13 = vpop.f32.mrb[64].mxu0  ;;  %v14028_v25 = vpop.f32.mrb[60].mxu1 }
 0x4cb   : > { %16251 = vst [vmem:[#allocation29_spill] sm:$0xff] %v14026_v13  ;;  %16252 = vst [vmem:[#allocation38_spill] sm:$0xff] %v14028_v25  ;;  %v11129_v35 = vpop.f32.mrb[65].mxu0  ;;  %v11123_v27 = vpop.f32.mrb[61].mxu1 }
 0x4cc   : > { %v2517_v1 = vpop.f32.mrb[66].mxu0  ;;  %v2471_v2 = vpop.f32.mrb[62].mxu1 }
 0x4cd   : > { %v11130_v52 = vpop.f32.mrb[67].mxu0  ;;  %v11124_v54 = vpop.f32.mrb[63].mxu1 }
 0x4d2   : > { %v14032_v34 = vpop.f32.mrb[68].mxu0 }
 0x4d3   : > { %16253 = vst [vmem:[#allocation37_spill] sm:$0xff] %v14032_v34  ;;  %v14034_v63 = vpop.f32.mrb[64].mxu1  ;;  %v11141_v50 = vpop.f32.mrb[69].mxu0 }
 0x4d4   : > { %16254 = vst [vmem:[#allocation50_spill] sm:$0xff] %v14034_v63  ;;  %v11135_v49 = vpop.f32.mrb[65].mxu1  ;;  %v2609_v46 = vpop.f32.mrb[70].mxu0 }
 0x4d5   : > { %v2563_v6 = vpop.f32.mrb[66].mxu1  ;;  %v11142_v35 = vpop.f32.mrb[71].mxu0 }
 0x4d6   : > { %v11136_v5 = vpop.f32.mrb[67].mxu1 }
 0x4da   : > { %v14038_v21 = vpop.f32.mrb[72].mxu0 }
 0x4db   : > { %16255 = vst [vmem:[#allocation51_spill] sm:$0xff] %v14038_v21  ;;  %v14040_v27 = vpop.f32.mrb[68].mxu1  ;;  %v11153_v1 = vpop.f32.mrb[73].mxu0 }
 0x4dc   : > { %16256 = vst [vmem:[#allocation52_spill] sm:$0xff] %v14040_v27  ;;  %v11147_v52 = vpop.f32.mrb[69].mxu1  ;;  %v2701_v54 = vpop.f32.mrb[74].mxu0 }
 0x4dd   : > { %v2655_v30 = vpop.f32.mrb[70].mxu1  ;;  %v11154_v50 = vpop.f32.mrb[75].mxu0 }
 0x4de   : > { %v11148_v23 = vpop.f32.mrb[71].mxu1 }
 0x4e2   : > { %v14044_v25 = vpop.f32.mrb[76].mxu0 }
 0x4e3   : > { %16257 = vst [vmem:[#allocation53_spill] sm:$0xff] %v14044_v25  ;;  %v14046_v49 = vpop.f32.mrb[72].mxu1  ;;  %v11165_v46 = vpop.f32.mrb[77].mxu0 }
 0x4e4   : > { %16258 = vst [vmem:[#allocation54_spill] sm:$0xff] %v14046_v49  ;;  %v11159_v6 = vpop.f32.mrb[73].mxu1  ;;  %v2793_v35 = vpop.f32.mrb[78].mxu0  ;;  %v14057_v46 = vld [vmem:[%s16222_s11] sm:$0xff] }
 0x4e5   : > { %v2747_v19 = vpop.f32.mrb[74].mxu1  ;;  %v11166_v1 = vpop.f32.mrb[79].mxu0 }
 0x4e6   : > { %v11160_v13 = vpop.f32.mrb[75].mxu1 }
 0x4ea   : > { %v14050_v63 = vpop.f32.mrb[80].mxu0 }
 0x4eb   : > { %16259 = vst [vmem:[#allocation55_spill] sm:$0xff] %v14050_v63  ;;  %v11177_v52 = vpop.f32.mrb[81].mxu0 }
 0x4ec   : > { %v2885_v54 = vpop.f32.mrb[82].mxu0 }
 0x4ed   : > { %v11178_v30 = vpop.f32.mrb[83].mxu0 }
 0x4f2   : > { %v14052_v50 = vpop.f32.mrb[84].mxu0 }
 0x4f3   : > { %16260 = vst [vmem:[#allocation56_spill] sm:$0xff] %v14052_v50  ;;  %v11189_v23 = vpop.f32.mrb[85].mxu0 }
 0x4f4   : > { %v2977_v2 = vpop.f32.mrb[86].mxu0 }
 0x4f5   : > { %v11190_v34 = vpop.f32.mrb[87].mxu0 }
 0x511   : > { %v3082_v27 = vpop.f32.mrb[88].mxu0 }
 0x512   : > { %v14060_v19 = vadd.f32 %v14057_v46, %v3082_v27  ;;  %v11201_v13 = vpop.f32.mrb[89].mxu0 }
 0x513   : > { %v3085_v6 = vpop.f32.mrb[90].mxu0 }
 0x514   : > { %v11202_v35 = vpop.f32.mrb[91].mxu0  ;;  %v3838_v1 = vsel %vm2096_vm3, %v14060_v19, -inf }
 0x515   : > { %3839 = vmax.xlane.f32.xlu0 %v3838_v1 }
 0x518   : > { %v14064_v52 = vpop.f32.mrb[76].mxu1 }
 0x519   : > { %16261 = vst [vmem:[#allocation57_spill] sm:$0xff] %v14064_v52  ;;  %v11171_v2 = vpop.f32.mrb[77].mxu1  ;;  %v3182_v54 = vpop.f32.mrb[92].mxu0 }
 0x51a   : > { %v14069_v30 = vadd.f32 %v14057_v46, %v3182_v54  ;;  %v2839_v23 = vpop.f32.mrb[78].mxu1  ;;  %v11213_v27 = vpop.f32.mrb[93].mxu0 }
 0x51b   : > { %v11172_v5 = vpop.f32.mrb[79].mxu1  ;;  %v3185_v13 = vpop.f32.mrb[94].mxu0 }
 0x51c   : > { %v11214_v6 = vpop.f32.mrb[95].mxu0  ;;  %v3844_v35 = vsel %vm2096_vm3, %v14069_v30, -inf }
 0x51d   : > { %3845 = vmax.xlane.f32.xlu0 %v3844_v35 }
 0x520   : > { %v14073_v1 = vpop.f32.mrb[80].mxu1 }
 0x521   : > { %16262 = vst [vmem:[#allocation58_spill] sm:$0xff] %v14073_v1  ;;  %v11183_v34 = vpop.f32.mrb[81].mxu1  ;;  %v3282_v2 = vpop.f32.mrb[96].mxu0 }
 0x522   : > { %v2931_v25 = vpop.f32.mrb[82].mxu1  ;;  %v11225_v52 = vpop.f32.mrb[97].mxu0 }
 0x523   : > { %v11184_v54 = vpop.f32.mrb[83].mxu1  ;;  %v3285_v49 = vpop.f32.mrb[98].mxu0 }
 0x524   : > { %v11226_v23 = vpop.f32.mrb[99].mxu0 }
 0x529   : > { %v3382_v27 = vpop.f32.mrb[100].mxu0 }
 0x52a   : > { %v11237_v5 = vpop.f32.mrb[101].mxu0 }
 0x52b   : > { %v3385_v13 = vpop.f32.mrb[102].mxu0 }
 0x52c   : > { %v11238_v6 = vpop.f32.mrb[103].mxu0 }
 0x531   : > { %v3482_v14 = vpop.f32.mrb[104].mxu0 }
 0x532   : > { %v11249_v62 = vpop.f32.mrb[105].mxu0 }
 0x533   : > { %v3485_v28 = vpop.f32.mrb[106].mxu0 }
 0x534   : > { %v11250_v35 = vpop.f32.mrb[107].mxu0 }
 0x539   : > { %v3582_v42 = vpop.f32.mrb[108].mxu0 }
 0x53a   : > { %v11261_v55 = vpop.f32.mrb[109].mxu0 }
 0x53b   : > { %v3585_v31 = vpop.f32.mrb[110].mxu0 }
 0x53c   : > { %v11262_v33 = vpop.f32.mrb[111].mxu0 }
 0x541   : > { %v3682_v21 = vpop.f32.mrb[112].mxu0 }
 0x542   : > { %v11273_v34 = vpop.f32.mrb[113].mxu0 }
 0x543   : > { %v3685_v63 = vpop.f32.mrb[114].mxu0 }
 0x544   : > { %v11274_v25 = vpop.f32.mrb[115].mxu0 }
 0x549   : > { %v3782_v52 = vpop.f32.mrb[116].mxu0 }
 0x54a   : > { %v11285_v54 = vpop.f32.mrb[117].mxu0 }
 0x54b   : > { %v3785_v49 = vpop.f32.mrb[118].mxu0 }
 0x54c   : > { %v11286_v23 = vpop.f32.mrb[119].mxu0 }
 0x54d   : > { %v14090_v23 = vadd.f32 %v14057_v46, %v3282_v2  ;;  %v14103_v2 = vadd.f32 %v14057_v46, %v3482_v14 }
 0x551   : > { %v14077_v1 = vpop.f32.mrb[84].mxu1 }
 0x552   : > { %16263 = vst [vmem:[#allocation59_spill] sm:$0xff] %v14077_v1  ;;  %v11195_v62 = vpop.f32.mrb[85].mxu1 }
 0x553   : > { %v3023_v28 = vpop.f32.mrb[86].mxu1 }
 0x554   : > { %v11196_v13 = vpop.f32.mrb[87].mxu1 }
 0x555   : > { %v14095_v13 = vadd.f32 %v14057_v46, %v3382_v27 }
 0x559   : > { %v3132_v6 = vpop.f32.mrb[88].mxu1 }
 0x55a   : > { %v14082_v31 = vadd.f32 %v14057_v46, %v3132_v6  ;;  %v11207_v33 = vpop.f32.mrb[89].mxu1  ;;  %v3850_v6 = vsel %vm2096_vm3, %v14090_v23, -inf }
 0x55b   : > { %v3135_v55 = vpop.f32.mrb[90].mxu1 }
 0x55c   : > { %v11208_v63 = vpop.f32.mrb[91].mxu1  ;;  %v3841_v35 = vsel %vm2096_vm3, %v14082_v31, -inf }
 0x55d   : > { %3842 = vmax.xlane.f32.xlu1 %v3841_v35 }
 0x561   : > { %v3232_v34 = vpop.f32.mrb[92].mxu1 }
 0x562   : > { %v14087_v25 = vadd.f32 %v14057_v46, %v3232_v34  ;;  %v11219_v54 = vpop.f32.mrb[93].mxu1 }
 0x563   : > { %v3235_v49 = vpop.f32.mrb[94].mxu1  ;;  %v3856_v54 = vsel %vm2096_vm3, %v14095_v13, -inf }
 0x564   : > { %v11220_v62 = vpop.f32.mrb[95].mxu1  ;;  %v3847_v28 = vsel %vm2096_vm3, %v14087_v25, -inf  ;;  %v14110_v49 = vadd.f32 %v14057_v46, %v3582_v42 }
 0x565   : > { %3848 = vmax.xlane.f32.xlu0 %v3847_v28  ;;  %v3862_v62 = vsel %vm2096_vm3, %v14103_v2, -inf }
 0x569   : > { %3851 = vmax.xlane.f32.xlu0 %v3850_v6  ;;  %v3332_v33 = vpop.f32.mrb[96].mxu1 }
 0x56a   : > { %v14100_v55 = vadd.f32 %v14057_v46, %v3332_v33  ;;  %v11231_v63 = vpop.f32.mrb[97].mxu1 }
 0x56b   : > { %v3335_v35 = vpop.f32.mrb[98].mxu1  ;;  %v14118_v63 = vadd.f32 %v14057_v46, %v3682_v21 }
 0x56c   : > { %v11232_v34 = vpop.f32.mrb[99].mxu1  ;;  %v3853_v27 = vsel %vm2096_vm3, %v14100_v55, -inf }
 0x56d   : > { %3857 = vmax.xlane.f32.xlu0 %v3856_v54  ;;  %3854 = vmax.xlane.f32.xlu1 %v3853_v27  ;;  %v3868_v34 = vsel %vm2096_vm3, %v14110_v49, -inf  ;;  %v14125_v54 = vadd.f32 %v14057_v46, %v3782_v52  ;;  %v3874_v27 = vsel %vm2096_vm3, %v14118_v63, -inf }
 0x571   : > { %3863 = vmax.xlane.f32.xlu0 %v3862_v62  ;;  %v3432_v28 = vpop.f32.mrb[100].mxu1 }
 0x572   : > { %v14115_v14 = vadd.f32 %v14057_v46, %v3432_v28  ;;  %v11243_v6 = vpop.f32.mrb[101].mxu1 }
 0x573   : > { %v3435_v33 = vpop.f32.mrb[102].mxu1 }
 0x574   : > { %v11244_v35 = vpop.f32.mrb[103].mxu1  ;;  %v3859_v42 = vsel %vm2096_vm3, %v14115_v14, -inf }
 0x575   : > { %3869 = vmax.xlane.f32.xlu0 %v3868_v34  ;;  %3860 = vmax.xlane.f32.xlu1 %v3859_v42  ;;  %v3880_v35 = vsel %vm2096_vm3, %v14125_v54, -inf }
 0x579   : > { %3875 = vmax.xlane.f32.xlu0 %v3874_v27  ;;  %v3532_v62 = vpop.f32.mrb[104].mxu1 }
 0x57a   : > { %v14130_v21 = vadd.f32 %v14057_v46, %v3532_v62  ;;  %v11255_v28 = vpop.f32.mrb[105].mxu1 }
 0x57b   : > { %v3535_v6 = vpop.f32.mrb[106].mxu1 }
 0x57c   : > { %v11256_v33 = vpop.f32.mrb[107].mxu1  ;;  %v3865_v34 = vsel %vm2096_vm3, %v14130_v21, -inf }
 0x57d   : > { %3881 = vmax.xlane.f32.xlu0 %v3880_v35  ;;  %3866 = vmax.xlane.f32.xlu1 %v3865_v34 }
 0x581   : > { %v3632_v52 = vpop.f32.mrb[108].mxu1 }
 0x582   : > { %v14137_v42 = vadd.f32 %v14057_v46, %v3632_v52  ;;  %v11267_v27 = vpop.f32.mrb[109].mxu1  ;;  %v14146_v52 = vpop.permute.xlu0 %4126 }
 0x583   : > { %v3635_v5 = vpop.f32.mrb[110].mxu1 }
 0x584   : > { %v11268_v50 = vpop.f32.mrb[111].mxu1  ;;  %v3871_v62 = vsel %vm2096_vm3, %v14137_v42, -inf }
 0x585   : > { %3872 = vmax.xlane.f32.xlu1 %v3871_v62 }
 0x586   : > { %v14150_v62 = vpop.permute.xlu0 %4222 }
 0x589   : > { %v3732_v28 = vpop.f32.mrb[112].mxu1 }
 0x58a   : > { %v14142_v6 = vadd.f32 %v14057_v46, %v3732_v28  ;;  %v11279_v33 = vpop.f32.mrb[113].mxu1  ;;  %v14152_v28 = vpop.permute.xlu0 %4318 }
 0x58b   : > { %v3735_v1 = vpop.f32.mrb[114].mxu1 }
 0x58c   : > { %v11280_v43 = vpop.f32.mrb[115].mxu1  ;;  %v3877_v35 = vsel %vm2096_vm3, %v14142_v6, -inf }
 0x58d   : > { %3878 = vmax.xlane.f32.xlu1 %v3877_v35 }
 0x591   : > { %v3832_v34 = vpop.f32.mrb[116].mxu1 }
 0x592   : > { %v11291_v5 = vpop.f32.mrb[117].mxu1 }
 0x593   : > { %4414 = vrot.lane.b32.xlu0 %v13795_v47, %s12786_s23  ;;  %v3835_v50 = vpop.f32.mrb[118].mxu1 }
 0x594   : > { %v11292_v27 = vpop.f32.mrb[119].mxu1 }
 0x59e   : > { %4462 = vrot.lane.b32.xlu1 %v13826_v60, %s12786_s23 }
 0x5a2   : > { %v3840_v43 = vpop.xlane.xlu0 %3839  ;;  %4510 = vrot.lane.b32.xlu1 %v13821_v40, %s12786_s23 }
 0x5a3   : > { %v3886_v1 = vsub.f32 %v14060_v19, %v3840_v43  ;;  %v14171_v43 = vadd.f32 %v14057_v46, %v3832_v34 }
 0x5a5   : > { %v3902_v33 = vmul.f32 1.442695, %v3886_v1  ;;  %v14175_v1 = vpop.permute.xlu1 %4174 }
 0x5a6   : > { %4558 = vrot.lane.b32.xlu1 %v13852_v22, %s12786_s23 }
 0x5a7   : > { %12185 = vpow2.f32 %v3902_v33 }
 0x5a9   : > { %v14177_v33 = vpop.permute.xlu1 %4270 }
 0x5aa   : > { %v3846_v35 = vpop.xlane.xlu0 %3845 }
 0x5ab   : > { %v3888_v5 = vsub.f32 %v14069_v30, %v3846_v35  ;;  %v3883_v30 = vsel %vm2096_vm3, %v14171_v43, -inf }
 0x5ad   : > { %v3906_v50 = vmul.f32 1.442695, %v3888_v5  ;;  %v14179_v35 = vpop.permute.xlu1 %4366 }
 0x5ae   : > { %16264 = vst [vmem:[#allocation60_spill] sm:$0xff] %v14179_v35 }
 0x5af   : > { %12187 = vpow2.f32 %v3906_v50 }
 0x5b1   : > { %v14162_v27 = vpop.eup %12185 }
 0x5b2   : > { %v3934_v47 = vsel %vm2096_vm3, %v14162_v27, 0.0 }
 0x5b3   : > { %3935 = vadd.xlane.f32.xlu0 %v3934_v47 }
 0x5b9   : > { %v14166_v60 = vpop.eup %12187 }
 0x5ba   : > { %v3940_v19 = vsel %vm2096_vm3, %v14166_v60, 0.0 }
 0x5bb   : > { %3941 = vadd.xlane.f32.xlu0 %v3940_v19 }
 0x5ca   : > { %3884 = vmax.xlane.f32.xlu1 %v3883_v30 }
 0x5ea   : > { %v3843_v47 = vpop.xlane.xlu1 %3842 }
 0x5eb   : > { %v3887_v5 = vsub.f32 %v14082_v31, %v3843_v47 }
 0x5ed   : > { %v3904_v50 = vmul.f32 1.442695, %v3887_v5 }
 0x5ef   : > { %12189 = vpow2.f32 %v3904_v50 }
 0x5f2   : > { %v3849_v22 = vpop.xlane.xlu0 %3848 }
 0x5f3   : > { %v3889_v19 = vsub.f32 %v14087_v25, %v3849_v22 }
 0x5f5   : > { %v3908_v46 = vmul.f32 1.442695, %v3889_v19 }
 0x5f6   : > { %v3852_v34 = vpop.xlane.xlu0 %3851 }
 0x5f7   : > { %12191 = vpow2.f32 %v3908_v46  ;;  %v3890_v40 = vsub.f32 %v14090_v23, %v3852_v34 }
 0x5f9   : > { %v14184_v30 = vpop.eup %12189  ;;  %v3910_v8 = vmul.f32 1.442695, %v3890_v40 }
 0x5fa   : > { %v3858_v29 = vpop.xlane.xlu0 %3857  ;;  %v3855_v12 = vpop.xlane.xlu1 %3854  ;;  %v3937_v35 = vsel %vm2096_vm3, %v14184_v30, 0.0 }
 0x5fb   : > { %12193 = vpow2.f32 %v3910_v8  ;;  %v3892_v31 = vsub.f32 %v14095_v13, %v3858_v29  ;;  %v3891_v47 = vsub.f32 %v14100_v55, %v3855_v12  ;;  %3938 = vadd.xlane.f32.xlu1 %v3937_v35 }
 0x5fd   : > { %v3914_v22 = vmul.f32 1.442695, %v3892_v31  ;;  %v3912_v25 = vmul.f32 1.442695, %v3891_v47 }
 0x5fe   : > { %v3864_v5 = vpop.xlane.xlu0 %3863 }
 0x5ff   : > { %12195 = vpow2.f32 %v3914_v22  ;;  %v3894_v40 = vsub.f32 %v14103_v2, %v3864_v5 }
 0x600   : > { %12197 = vpow2.f32 %v3912_v25 }
 0x601   : > { %v14190_v23 = vpop.eup %12191  ;;  %v3918_v13 = vmul.f32 1.442695, %v3894_v40 }
 0x602   : > { %v3861_v50 = vpop.xlane.xlu1 %3860  ;;  %v3943_v19 = vsel %vm2096_vm3, %v14190_v23, 0.0  ;;  %v3870_v46 = vpop.xlane.xlu0 %3869 }
 0x603   : > { %v3893_v8 = vsub.f32 %v14115_v14, %v3861_v50  ;;  %3944 = vadd.xlane.f32.xlu1 %v3943_v19  ;;  %v3896_v55 = vsub.f32 %v14110_v49, %v3870_v46 }
 0x605   : > { %v14196_v29 = vpop.eup %12193  ;;  %v3916_v12 = vmul.f32 1.442695, %v3893_v8  ;;  %v3922_v31 = vmul.f32 1.442695, %v3896_v55 }
 0x606   : > { %v3946_v35 = vsel %vm2096_vm3, %v14196_v29, 0.0 }
 0x607   : > { %3947 = vadd.xlane.f32.xlu0 %v3946_v35  ;;  %12199 = vpow2.f32 %v3916_v12 }
 0x608   : > { %12201 = vpow2.f32 %v3918_v13 }
 0x609   : > { %v14201_v2 = vpop.eup %12195  ;;  %12203 = vpow2.f32 %v3922_v31 }
 0x60a   : > { %v14203_v34 = vpop.eup %12197  ;;  %v3867_v47 = vpop.xlane.xlu1 %3866  ;;  %v3952_v14 = vsel %vm2096_vm3, %v14201_v2, 0.0 }
 0x60b   : > { %v3895_v22 = vsub.f32 %v14130_v21, %v3867_v47  ;;  %3953 = vadd.xlane.f32.xlu0 %v3952_v14  ;;  %v3949_v49 = vsel %vm2096_vm3, %v14203_v34, 0.0  ;;  %v3876_v47 = vpop.xlane.xlu0 %3875 }
 0x60c   : > { %3950 = vadd.xlane.f32.xlu1 %v3949_v49 }
 0x60d   : > { %v3920_v25 = vmul.f32 1.442695, %v3895_v22  ;;  %v3898_v22 = vsub.f32 %v14118_v63, %v3876_v47 }
 0x60f   : > { %12205 = vpow2.f32 %v3920_v25  ;;  %v3882_v14 = vpop.xlane.xlu0 %3881  ;;  %v3926_v25 = vmul.f32 1.442695, %v3898_v22 }
 0x611   : > { %v14210_v5 = vpop.eup %12199 }
 0x612   : > { %v3873_v40 = vpop.xlane.xlu1 %3872  ;;  %v3955_v19 = vsel %vm2096_vm3, %v14210_v5, 0.0  ;;  %v14215_v46 = vpop.eup %12201 }
 0x613   : > { %v3897_v50 = vsub.f32 %v14137_v42, %v3873_v40  ;;  %3956 = vadd.xlane.f32.xlu1 %v3955_v19  ;;  %v3958_v8 = vsel %vm2096_vm3, %v14215_v46, 0.0  ;;  %v14219_v12 = vpop.eup %12203  ;;  %v14236_v49 = vpop.permute.xlu0 %4414  ;;  %v3900_v40 = vsub.f32 %v14125_v54, %v3882_v14 }
 0x614   : > { %v3964_v42 = vsel %vm2096_vm3, %v14219_v12, 0.0 }
 0x615   : > { %v3924_v21 = vmul.f32 1.442695, %v3897_v50 }
 0x617   : > { %12207 = vpow2.f32 %v3924_v21  ;;  %3959 = vadd.xlane.f32.xlu1 %v3958_v8  ;;  %v3930_v8 = vmul.f32 1.442695, %v3900_v40 }
 0x619   : > { %v14221_v13 = vpop.eup %12205 }
 0x61a   : > { %v3961_v55 = vsel %vm2096_vm3, %v14221_v13, 0.0  ;;  %v3879_v50 = vpop.xlane.xlu1 %3878 }
 0x61b   : > { %3962 = vadd.xlane.f32.xlu0 %v3961_v55  ;;  %3965 = vadd.xlane.f32.xlu1 %v3964_v42  ;;  %v3899_v21 = vsub.f32 %v14142_v6, %v3879_v50  ;;  %v4132_v6 = vsel %vm2292_vm2, %v14146_v52, 0 }
 0x61d   : > { %v3928_v55 = vmul.f32 1.442695, %v3899_v21 }
 0x61e   : > { %v14240_v42 = vpop.permute.xlu1 %4462 }
 0x621   : > { %v14227_v35 = vpop.eup %12207 }
 0x622   : > { %v3967_v31 = vsel %vm2096_vm3, %v14227_v35, 0.0  ;;  %v14245_v54 = vpop.permute.xlu1 %4510 }
 0x623   : > { %3968 = vadd.xlane.f32.xlu0 %v3967_v31 }
 0x626   : > { %v14257_v50 = vpop.permute.xlu1 %4558 }
 0x62c   : > { %4654 = vrot.lane.b32.xlu1 %v13916_v48, %s12786_s23 }
 0x639   : > { %4606 = vrot.lane.b32.xlu0 %v13847_v16, %s12786_s23 }
 0x640   : > { %v3936_v19 = vpop.xlane.xlu0 %3935 }
 0x641   : > { %12209 = vrcp.f32 %v3936_v19 }
 0x642   : > { %12211 = vpow2.f32 %v3926_v25 }
 0x643   : > { %12213 = vpow2.f32 %v3930_v8 }
 0x648   : > { %v3942_v31 = vpop.xlane.xlu0 %3941 }
 0x649   : > { %12215 = vrcp.f32 %v3942_v31 }
 0x64a   : > { %12217 = vpow2.f32 %v3928_v55 }
 0x64b   : > { %v12210_v63 = vpop.eup %12209 }
 0x64c   : > { %v3998_v47 = vmul.f32 %v12210_v63, %v14162_v27  ;;  %v14243_v22 = vpop.eup %12211  ;;  %v4228_v63 = vsel %vm2292_vm2, %v14150_v62, 0 }
 0x64d   : > { %v3970_v25 = vsel %vm2096_vm3, %v14243_v22, 0.0  ;;  %v14252_v40 = vpop.eup %12213 }
 0x64e   : > { %v4014_v14 = vpack.c.bf16 %v3998_v47, %v3998_v47  ;;  %v3976_v52 = vsel %vm2096_vm3, %v14252_v40, 0.0 }
 0x650   : > { %11296 = vmatmul.mubr.msk.bf16.vlgmr.msra.gmra.mrb[120].mxu0 %vm2096_vm3, %v4014_v14  ;;  %3971 = vadd.xlane.f32.xlu1 %v3970_v25 }
 0x651   : > { %11306 = vmatpush3.bf16.msra.mxu0 %v4132_v6  ;;  %11307 = vmatprep.mubr.msk.bf16.mxu0 %vm12785_vm0, %v16226_v61 }
 0x652   : > { %11317 = vmatprep.subr.bf16.mxu0 %v16226_v61 }
 0x653   : > { %v12216_v27 = vpop.eup %12215 }
 0x654   : > { %v14259_v19 = vpop.eup %12217  ;;  %v4000_v21 = vmul.f32 %v12216_v27, %v14166_v60  ;;  %3977 = vadd.xlane.f32.xlu1 %v3976_v52 }
 0x655   : > { %v3973_v31 = vsel %vm2096_vm3, %v14259_v19, 0.0 }
 0x656   : > { %v4016_v8 = vpack.c.bf16 %v4000_v21, %v4000_v21 }
 0x657   : > { %v3885_v55 = vpop.xlane.xlu1 %3884 }
 0x658   : > { %v3901_v47 = vsub.f32 %v14171_v43, %v3885_v55  ;;  %11308 = vmatmul.mubr.msk.bf16.vlgmr.msra.gmra.mrb[124].mxu0 %vm2096_vm3, %v4016_v8  ;;  %3974 = vadd.xlane.f32.xlu0 %v3973_v31  ;;  %v4180_v8 = vsel %vm2292_vm2, %v14175_v1, 0 }
 0x659   : > { %11318 = vmatpush3.bf16.msra.mxu0 %v4228_v63  ;;  %11319 = vmatprep.mubr.msk.bf16.mxu0 %vm12785_vm0, %v16226_v61 }
 0x65a   : > { %v3932_v14 = vmul.f32 1.442695, %v3901_v47  ;;  %11329 = vmatprep.subr.bf16.mxu0 %v16226_v61 }
 0x65c   : > { %12219 = vpow2.f32 %v3932_v14  ;;  %v4276_v14 = vsel %vm2292_vm2, %v14177_v33, 0 }
 0x665   : > { %4750 = vrot.lane.b32.xlu1 %v13932_v51, %s12786_s23 }
 0x666   : > { %v14273_v60 = vpop.eup %12219 }
 0x667   : > { %v3979_v62 = vsel %vm2096_vm3, %v14273_v60, 0.0 }
 0x668   : > { %3980 = vadd.xlane.f32.xlu0 %v3979_v62 }
 0x669   : > { %5076 = vrot.lane.b32.xlu1 %v13230_v4, %s12787_s15 }
 0x66d   : > { %5126 = vrot.lane.b32.xlu1 %v13269_v32, %s12787_s15 }
 0x671   : > { %5176 = vrot.lane.b32.xlu1 %v13307_v56, %s12787_s15 }
 0x675   : > { %5226 = vrot.lane.b32.xlu1 %v13346_v17, %s12787_s15 }
 0x679   : > { %5276 = vrot.lane.b32.xlu1 %v13262_v26, %s12787_s15 }
 0x67d   : > { %5326 = vrot.lane.b32.xlu1 %v13382_v39, %s12787_s15 }
 0x67e   : > { %4702 = vrot.lane.b32.xlu0 %v13870_v37, %s12786_s23 }
 0x681   : > { %5376 = vrot.lane.b32.xlu1 %v13297_v45, %s12787_s15 }
 0x682   : > { %5078 = vrot.lane.b32.xlu0 %v13219_v58, %s12787_s15 }
 0x685   : > { %5426 = vrot.lane.b32.xlu1 %v16234_v53, %s12787_s15 }
 0x686   : > { %5128 = vrot.lane.b32.xlu0 %v13228_v3, %s12787_s15 }
 0x688   : > { %v3939_v43 = vpop.xlane.xlu1 %3938 }
 0x689   : > { %12221 = vrcp.f32 %v3939_v43  ;;  %5528 = vrot.lane.b32.xlu1 %v16236_v18, %s12787_s15 }
 0x68a   : > { %5178 = vrot.lane.b32.xlu0 %v13259_v24, %s12787_s15 }
 0x68d   : > { %5526 = vrot.lane.b32.xlu1 %v16238_v59, %s12787_s15 }
 0x68e   : > { %5228 = vrot.lane.b32.xlu0 %v13295_v44, %s12787_s15 }
 0x690   : > { %v3945_v6 = vpop.xlane.xlu1 %3944 }
 0x691   : > { %12223 = vrcp.f32 %v3945_v6  ;;  %5628 = vrot.lane.b32.xlu1 %v16239_v57, %s12787_s15 }
 0x692   : > { %5278 = vrot.lane.b32.xlu0 %v13238_v11, %s12787_s15 }
 0x693   : > { %v12222_v25 = vpop.eup %12221 }
 0x694   : > { %v3948_v27 = vpop.xlane.xlu0 %3947  ;;  %v3999_v52 = vmul.f32 %v12222_v25, %v14184_v30 }
 0x695   : > { %12225 = vrcp.f32 %v3948_v27  ;;  %5626 = vrot.lane.b32.xlu1 %v16240_v38, %s12787_s15 }
 0x696   : > { %5328 = vrot.lane.b32.xlu0 %v13337_v9, %s12787_s15  ;;  %v4015_v21 = vpack.c.bf16 %v3999_v52, %v3999_v52  ;;  %v16265_v52 = vld [vmem:[#allocation20_spill] sm:$0xff] }
 0x698   : > { %v3954_v55 = vpop.xlane.xlu0 %3953  ;;  %11302 = vmatmul.mubr.msk.bf16.vlgmr.msra.gmra.mrb[120].mxu1 %vm2096_vm3, %v4015_v21 }
 0x699   : > { %12227 = vrcp.f32 %v3954_v55  ;;  %11312 = vmatpush3.bf16.msra.mxu1 %v4180_v8  ;;  %v3951_v31 = vpop.xlane.xlu1 %3950  ;;  %11313 = vmatprep.mubr.msk.bf16.mxu1 %vm12785_vm0, %v16226_v61 }
 0x69a   : > { %12229 = vrcp.f32 %v3951_v31  ;;  %5728 = vrot.lane.b32.xlu1 %v16241_v10, %s12787_s15  ;;  %5378 = vrot.lane.b32.xlu0 %v13253_v20, %s12787_s15 }
 0x69b   : > { %v12224_v30 = vpop.eup %12223  ;;  %11323 = vmatprep.subr.bf16.mxu1 %v16226_v61 }
 0x69c   : > { %v4001_v1 = vmul.f32 %v12224_v30, %v14190_v23  ;;  %v16267_v30 = vld [vmem:[#allocation40_spill] sm:$0xff] }
 0x69e   : > { %5726 = vrot.lane.b32.xlu1 %v16242_v0, %s12787_s15  ;;  %5428 = vrot.lane.b32.xlu0 %v13373_v7, %s12787_s15  ;;  %v4017_v63 = vpack.c.bf16 %v4001_v1, %v4001_v1 }
 0x69f   : > { %v12226_v47 = vpop.eup %12225 }
 0x6a0   : > { %11314 = vmatmul.mubr.msk.bf16.vlgmr.msra.gmra.mrb[124].mxu1 %vm2096_vm3, %v4017_v63  ;;  %v4002_v62 = vmul.f32 %v12226_v47, %v14196_v29  ;;  %v3957_v43 = vpop.xlane.xlu1 %3956  ;;  %v4324_v29 = vsel %vm2292_vm2, %v14152_v28, 0  ;;  %v16266_v28 = vld [vmem:[#allocation60_spill] sm:$0xff]  ;;  %v16268_v63 = vld [vmem:[#allocation19_spill] sm:$0xff]  ;;  %v4420_v47 = vsel %vm2292_vm2, %v14236_v49, 0 }
 0x6a1   : > { %11324 = vmatpush3.bf16.msra.mxu1 %v4276_v14  ;;  %11325 = vmatprep.mubr.msk.bf16.mxu1 %vm12785_vm0, %v16226_v61  ;;  %12231 = vrcp.f32 %v3957_v43  ;;  %v4372_v55 = vsel %vm2292_vm2, %v16266_v28, 0  ;;  %v16270_v43 = vld [vmem:[#allocation22_spill] sm:$0xff] }
 0x6a2   : > { %5828 = vrot.lane.b32.xlu1 %v16243_v15, %s12787_s15  ;;  %5478 = vrot.lane.b32.xlu0 %v13285_v41, %s12787_s15  ;;  %v4018_v23 = vpack.c.bf16 %v4002_v62, %v4002_v62  ;;  %v16269_v62 = vld [vmem:[#allocation44_spill] sm:$0xff] }
 0x6a3   : > { %v12228_v6 = vpop.eup %12227  ;;  %11335 = vmatprep.subr.bf16.mxu1 %v16226_v61 }
 0x6a4   : > { %v12230_v33 = vpop.eup %12229  ;;  %11320 = vmatmul.mubr.msk.bf16.vlgmr.msra.gmra.mrb[128].mxu0 %vm2096_vm3, %v4018_v23  ;;  %v3960_v25 = vpop.xlane.xlu1 %3959  ;;  %v4004_v21 = vmul.f32 %v12228_v6, %v14201_v2 }
 0x6a5   : > { %11330 = vmatpush3.bf16.msra.mxu0 %v4324_v29  ;;  %v4003_v27 = vmul.f32 %v12230_v33, %v14203_v34  ;;  %11331 = vmatprep.mubr.msk.bf16.mxu0 %vm12785_vm0, %v16226_v61  ;;  %12233 = vrcp.f32 %v3960_v25  ;;  %v4468_v33 = vsel %vm2292_vm2, %v14240_v42, 0  ;;  %v16271_v29 = vld [vmem:[#allocation21_spill] sm:$0xff]  ;;  %v4516_v42 = vsel %vm2292_vm2, %v14245_v54, 0 }
 0x6a6   : > { %5826 = vrot.lane.b32.xlu1 %v16244_v36, %s12787_s15  ;;  %5476 = vrot.lane.b32.xlu0 %v16265_v52, %s12787_s15  ;;  %v4020_v1 = vpack.c.bf16 %v4004_v21, %v4004_v21 }
 0x6a7   : > { %v4019_v8 = vpack.c.bf16 %v4003_v27, %v4003_v27  ;;  %11341 = vmatprep.subr.bf16.mxu0 %v16226_v61 }
 0x6a8   : > { %v3963_v31 = vpop.xlane.xlu0 %3962  ;;  %v3966_v34 = vpop.xlane.xlu1 %3965 }
 0x6a9   : > { %11326 = vmatmul.mubr.msk.bf16.vlgmr.msra.gmra.mrb[128].mxu1 %vm2096_vm3, %v4019_v8  ;;  %12235 = vrcp.f32 %v3963_v31  ;;  %v4564_v31 = vsel %vm2292_vm2, %v14257_v50, 0 }
 0x6aa   : > { %11336 = vmatpush3.bf16.msra.mxu1 %v4372_v55  ;;  %6116 = vrot.lane.b32.xlu1 %v16267_v30, %s12787_s15  ;;  %12237 = vrcp.f32 %v3966_v34  ;;  %v16273_v34 = vld [vmem:[#allocation23_spill] sm:$0xff] }
 0x6ab   : > { %5578 = vrot.lane.b32.xlu0 %v16268_v63, %s12787_s15  ;;  %11337 = vmatprep.mubr.msk.bf16.mxu1 %vm12785_vm0, %v16226_v61  ;;  %v12232_v2 = vpop.eup %12231 }
 0x6ac   : > { %11332 = vmatmul.mubr.msk.bf16.vlgmr.msra.gmra.mrb[132].mxu0 %vm2096_vm3, %v4020_v1  ;;  %11347 = vmatprep.subr.bf16.mxu1 %v16226_v61  ;;  %v4005_v14 = vmul.f32 %v12232_v2, %v14210_v5  ;;  %v4655_v50 = vpop.permute.xlu1 %4654 }
 0x6ad   : > { %11342 = vmatpush3.bf16.msra.mxu0 %v4420_v47  ;;  %11343 = vmatprep.mubr.msk.bf16.mxu0 %vm12785_vm0, %v16226_v61 }
 0x6ae   : > { %6212 = vrot.lane.b32.xlu1 %v16269_v62, %s12787_s15  ;;  %11353 = vmatprep.subr.bf16.mxu0 %v16226_v61  ;;  %v4021_v23 = vpack.c.bf16 %v4005_v14, %v4005_v14  ;;  %v16274_v14 = vld [vmem:[#allocation28_spill] sm:$0xff] }
 0x6af   : > { %5576 = vrot.lane.b32.xlu0 %v16270_v43, %s12787_s15  ;;  %v12234_v49 = vpop.eup %12233 }
 0x6b0   : > { %v3969_v6 = vpop.xlane.xlu0 %3968  ;;  %v4006_v5 = vmul.f32 %v12234_v49, %v14215_v46  ;;  %v16272_v46 = vld [vmem:[#allocation25_spill] sm:$0xff] }
 0x6b1   : > { %12239 = vrcp.f32 %v3969_v6  ;;  %11338 = vmatmul.mubr.msk.bf16.vlgmr.msra.gmra.mrb[132].mxu1 %vm2096_vm3, %v4021_v23  ;;  %v4660_v23 = vsel %vm2292_vm2, %v4655_v50, 0  ;;  %v16276_v49 = vld [vmem:[#allocation41_spill] sm:$0xff]  ;;  %v12098_v50 = vld [vmem:[#allocation8 + $0x18] sm:$0xff]  }
 0x6b2   : > { %11348 = vmatpush3.bf16.msra.mxu1 %v4468_v33  ;;  %11349 = vmatprep.mubr.msk.bf16.mxu1 %vm12785_vm0, %v16226_v61  ;;  %v4022_v25 = vpack.c.bf16 %v4006_v5, %v4006_v5 }
 0x6b3   : > { %5678 = vrot.lane.b32.xlu0 %v16271_v29, %s12787_s15  ;;  %11359 = vmatprep.subr.bf16.mxu1 %v16226_v61  ;;  %v12236_v27 = vpop.eup %12235 }
 0x6b4   : > { %v12238_v21 = vpop.eup %12237  ;;  %11344 = vmatmul.mubr.msk.bf16.vlgmr.msra.gmra.mrb[136].mxu0 %vm2096_vm3, %v4022_v25  ;;  %v4007_v8 = vmul.f32 %v12236_v27, %v14221_v13  ;;  %v4607_v54 = vpop.permute.xlu0 %4606 }
 0x6b5   : > { %11354 = vmatpush3.bf16.msra.mxu0 %v4516_v42  ;;  %11355 = vmatprep.mubr.msk.bf16.mxu0 %vm12785_vm0, %v16226_v61  ;;  %v4008_v55 = vmul.f32 %v12238_v21, %v14219_v12  ;;  %v4612_v12 = vsel %vm2292_vm2, %v4607_v54, 0 }
 0x6b6   : > { %v4023_v28 = vpack.c.bf16 %v4007_v8, %v4007_v8  ;;  %11365 = vmatprep.subr.bf16.mxu0 %v16226_v61 }
 0x6b7   : > { %5676 = vrot.lane.b32.xlu0 %v16272_v46, %s12787_s15  ;;  %v4024_v1 = vpack.c.bf16 %v4008_v55, %v4008_v55 }
 0x6b9   : > { %11350 = vmatmul.mubr.msk.bf16.vlgmr.msra.gmra.mrb[136].mxu1 %vm2096_vm3, %v4023_v28 }
 0x6ba   : > { %11360 = vmatpush3.bf16.msra.mxu1 %v4564_v31  ;;  %11361 = vmatprep.mubr.msk.bf16.mxu1 %vm12785_vm0, %v16226_v61 }
 0x6bb   : > { %v12240_v13 = vpop.eup %12239  ;;  %5778 = vrot.lane.b32.xlu0 %v16273_v34, %s12787_s15  ;;  %11371 = vmatprep.subr.bf16.mxu1 %v16226_v61 }
 0x6bc   : > { %v4009_v2 = vmul.f32 %v12240_v13, %v14227_v35  ;;  %11356 = vmatmul.mubr.msk.bf16.vlgmr.msra.gmra.mrb[140].mxu0 %vm2096_vm3, %v4024_v1  ;;  %v16275_v35 = vld [vmem:[#allocation39_spill] sm:$0xff]  ;;  %v12097_v1 = vld [vmem:[#allocation8 + $0x10] sm:$0xff]  }
 0x6bd   : > { %11366 = vmatpush3.bf16.msra.mxu0 %v4612_v12  ;;  %11367 = vmatprep.mubr.msk.bf16.mxu0 %vm12785_vm0, %v16226_v61 }
 0x6be   : > { %v4025_v47 = vpack.c.bf16 %v4009_v2, %v4009_v2  ;;  %11377 = vmatprep.subr.bf16.mxu0 %v16226_v61 }
 0x6bf   : > { %5776 = vrot.lane.b32.xlu0 %v16274_v14, %s12787_s15 }
 0x6c1   : > { %11362 = vmatmul.mubr.msk.bf16.vlgmr.msra.gmra.mrb[140].mxu1 %vm2096_vm3, %v4025_v47 }
 0x6c2   : > { %11372 = vmatpush3.bf16.msra.mxu1 %v4660_v23  ;;  %11373 = vmatprep.mubr.msk.bf16.mxu1 %vm12785_vm0, %v16226_v61 }
 0x6c3   : > { %6068 = vrot.lane.b32.xlu0 %v16275_v35, %s12787_s15  ;;  %11383 = vmatprep.subr.bf16.mxu1 %v16226_v61 }
 0x6c7   : > { %6164 = vrot.lane.b32.xlu0 %v16276_v49, %s12787_s15 }
 0x6dd   : > { %v3972_v6 = vpop.xlane.xlu1 %3971 }
 0x6de   : > { %12241 = vrcp.f32 %v3972_v6 }
 0x6e1   : > { %v3978_v5 = vpop.xlane.xlu1 %3977 }
 0x6e5   : > { %v3975_v33 = vpop.xlane.xlu0 %3974  ;;  %v4751_v28 = vpop.permute.xlu1 %4750 }
 0x6e6   : > { %12243 = vrcp.f32 %v3975_v33  ;;  %v4756_v54 = vsel %vm2292_vm2, %v4751_v28, 0 }
 0x6e7   : > { %12245 = vrcp.f32 %v3978_v5 }
 0x6e8   : > { %v12242_v25 = vpop.eup %12241 }
 0x6e9   : > { %v4010_v27 = vmul.f32 %v12242_v25, %v14243_v22  ;;  %v5077_v6 = vpop.permute.xlu1 %5076 }
 0x6eb   : > { %v4026_v21 = vpack.c.bf16 %v4010_v27, %v4010_v27 }
 0x6ed   : > { %11368 = vmatmul.mubr.msk.bf16.vlgmr.msra.gmra.mrb[144].mxu0 %vm2096_vm3, %v4026_v21  ;;  %v5127_v25 = vpop.permute.xlu1 %5126 }
 0x6ee   : > { %11379 = vmatprep.mubr.msk.bf16.mxu0 %vm12785_vm0, %v16226_v61 }
 0x6f0   : > { %v12244_v42 = vpop.eup %12243 }
 0x6f1   : > { %v4011_v8 = vmul.f32 %v12244_v42, %v14259_v19  ;;  %v12246_v31 = vpop.eup %12245 }
 0x6f2   : > { %v4012_v22 = vmul.f32 %v12246_v31, %v14252_v40 }
 0x6f3   : > { %v4027_v55 = vpack.c.bf16 %v4011_v8, %v4011_v8 }
 0x6f4   : > { %v4028_v12 = vpack.c.bf16 %v4012_v22, %v4012_v22 }
 0x6f5   : > { %v3981_v13 = vpop.xlane.xlu0 %3980  ;;  %11374 = vmatmul.mubr.msk.bf16.vlgmr.msra.gmra.mrb[144].mxu1 %vm2096_vm3, %v4027_v55 }
 0x6f6   : > { %12247 = vrcp.f32 %v3981_v13  ;;  %11384 = vmatpush3.bf16.msra.mxu1 %v4756_v54  ;;  %11385 = vmatprep.mubr.msk.bf16.mxu1 %vm12785_vm0, %v16226_v61 }
 0x6f7   : > { %11429 = vmatprep.subr.bf16.mxu1 %v16226_v61 }
 0x6f9   : > { %v4703_v2 = vpop.permute.xlu0 %4702 }
 0x6fa   : > { %v4708_v19 = vsel %vm2292_vm2, %v4703_v2, 0 }
 0x6fb   : > { %11378 = vmatpush3.bf16.msra.mxu0 %v4708_v19 }
 0x6fc   : > { %11389 = vmatprep.subr.bf16.mxu0 %v12097_v1 }
 0x6fd   : > { %v5079_v33 = vpop.permute.xlu0 %5078 }
 0x6fe   : > { %11380 = vmatmul.mubr.msk.bf16.vlgmr.msra.gmra.mrb[148].mxu0 %vm2096_vm3, %v4028_v12  ;;  %v5084_v40 = vsel %vm1359_vm1, %v5079_v33, 0 }
 0x6ff   : > { %11390 = vmatpush3.bf16.msra.mxu0 %v12097_v1 }
 0x700   : > { %v12248_v47 = vpop.eup %12247  ;;  %11391 = vmatprep.subr.bf16.mxu0 %v12098_v50 }
 0x701   : > { %v4013_v23 = vmul.f32 %v12248_v47, %v14273_v60  ;;  %v5129_v27 = vpop.permute.xlu0 %5128  ;;  %v5177_v60 = vpop.permute.xlu1 %5176 }
 0x702   : > { %v5134_v21 = vsel %vm1359_vm1, %v5129_v27, 0 }
 0x703   : > { %v4029_v5 = vpack.c.bf16 %v4013_v23, %v4013_v23  ;;  %11392 = vmatpush3.bf16.msra.mxu0 %v12098_v50 }
 0x705   : > { %11386 = vmatmul.mubr.msk.bf16.vlgmr.msra.gmra.mrb[148].mxu1 %vm2096_vm3, %v4029_v5  ;;  %v5179_v42 = vpop.permute.xlu0 %5178  ;;  %v5227_v8 = vpop.permute.xlu1 %5226 }
 0x706   : > { %11430 = vmatpush3.bf16.xpose.msra.mxu1 %v5084_v40  ;;  %11431 = vmatprep.mubr.msk.bf16.mxu1 %vm12785_vm0, %v16226_v61  ;;  %v5184_v28 = vsel %vm1359_vm1, %v5179_v42, 0 }
 0x707   : > { %11435 = vmatprep.subr.bf16.mxu1 %v16226_v61 }
 0x709   : > { %v5277_v55 = vpop.permute.xlu1 %5276  ;;  %v5229_v31 = vpop.permute.xlu0 %5228 }
 0x70a   : > { %v5234_v54 = vsel %vm1359_vm1, %v5229_v31, 0 }
 0x70d   : > { %11432 = vmatmul.mubr.msk.bf16.vlgmr.msra.gmra.mrb[152].mxu1 %vm1359_vm1, %v5077_v6  ;;  %v5327_v13 = vpop.permute.xlu1 %5326  ;;  %v5279_v22 = vpop.permute.xlu0 %5278 }
 0x70e   : > { %11436 = vmatpush3.bf16.xpose.msra.mxu1 %v5134_v21  ;;  %11437 = vmatprep.mubr.msk.bf16.mxu1 %vm12785_vm0, %v16226_v61  ;;  %v5284_v19 = vsel %vm1359_vm1, %v5279_v22, 0 }
 0x70f   : > { %11441 = vmatprep.subr.bf16.mxu1 %v16226_v61 }
 0x711   : > { %v5377_v50 = vpop.permute.xlu1 %5376  ;;  %v5329_v23 = vpop.permute.xlu0 %5328 }
 0x712   : > { %v5334_v40 = vsel %vm1359_vm1, %v5329_v23, 0 }
 0x715   : > { %11438 = vmatmul.mubr.msk.bf16.vlgmr.msra.gmra.mrb[156].mxu1 %vm1359_vm1, %v5127_v25  ;;  %v5427_v33 = vpop.permute.xlu1 %5426 }
 0x716   : > { %11442 = vmatpush3.bf16.xpose.msra.mxu1 %v5184_v28  ;;  %11443 = vmatprep.mubr.msk.bf16.mxu1 %vm12785_vm0, %v16226_v61 }
 0x717   : > { %11447 = vmatprep.subr.bf16.mxu1 %v16226_v61 }
 0x719   : > { %v5529_v21 = vpop.permute.xlu1 %5528 }
 0x71d   : > { %11444 = vmatmul.mubr.msk.bf16.vlgmr.msra.gmra.mrb[160].mxu1 %vm1359_vm1, %v5177_v60  ;;  %v5379_v60 = vpop.permute.xlu0 %5378 }
 0x71e   : > { %11448 = vmatpush3.bf16.xpose.msra.mxu1 %v5234_v54  ;;  %11449 = vmatprep.mubr.msk.bf16.mxu1 %vm12785_vm0, %v16226_v61  ;;  %v5384_v42 = vsel %vm1359_vm1, %v5379_v60, 0 }
 0x71f   : > { %11453 = vmatprep.subr.bf16.mxu1 %v16226_v61 }
 0x721   : > { %v5429_v28 = vpop.permute.xlu0 %5428 }
 0x723   : > { %v14455_v1 = vpop.f32.mrb[120].mxu0 }
 0x724   : > { %v11297_v2 = vpop.f32.mrb[121].mxu0 }
 0x725   : > { %v4075_v12 = vpop.f32.mrb[122].mxu0  ;;  %11450 = vmatmul.mubr.msk.bf16.vlgmr.msra.gmra.mrb[164].mxu1 %vm1359_vm1, %v5227_v8  ;;  %v5527_v8 = vpop.permute.xlu1 %5526 }
 0x726   : > { %11454 = vmatpush3.bf16.xpose.msra.mxu1 %v5284_v19  ;;  %v11298_v47 = vpop.f32.mrb[123].mxu0  ;;  %11455 = vmatprep.mubr.msk.bf16.mxu1 %vm12785_vm0, %v16226_v61  ;;  %v12099_v12 = vld [vmem:[#allocation8] sm:$0xff]  }
 0x727   : > { %11459 = vmatprep.subr.bf16.mxu1 %v16226_v61  ;;  %11409 = vmatprep.subr.bf16.mxu0 %v12099_v12 }
 0x729   : > { %v5629_v31 = vpop.permute.xlu1 %5628 }
 0x72a   : > { %v5634_v2 = vsel %vm1359_vm1, %v5629_v31, 0  ;;  %v12100_v31 = vld [vmem:[#allocation8 + $0x8] sm:$0xff]  }
 0x72b   : > { %v14462_v6 = vpop.f32.mrb[124].mxu0 }
 0x72c   : > { %v11309_v5 = vpop.f32.mrb[125].mxu0 }
 0x72d   : > { %v4171_v25 = vpop.f32.mrb[126].mxu0  ;;  %11456 = vmatmul.mubr.msk.bf16.vlgmr.msra.gmra.mrb[168].mxu1 %vm1359_vm1, %v5277_v55  ;;  %v5434_v55 = vsel %vm1359_vm1, %v5429_v28, 0  ;;  %v5627_v54 = vpop.permute.xlu1 %5626 }
 0x72e   : > { %11460 = vmatpush3.bf16.xpose.msra.mxu1 %v5334_v40  ;;  %v11310_v27 = vpop.f32.mrb[127].mxu0  ;;  %11461 = vmatprep.mubr.msk.bf16.mxu1 %vm12785_vm0, %v16226_v61 }
 0x72f   : > { %11465 = vmatprep.subr.bf16.mxu1 %v16226_v61 }
 0x731   : > { %v5729_v22 = vpop.permute.xlu1 %5728 }
 0x735   : > { %11462 = vmatmul.mubr.msk.bf16.vlgmr.msra.gmra.mrb[172].mxu1 %vm1359_vm1, %v5327_v13  ;;  %v5534_v13 = vsel %vm1359_vm1, %v5529_v21, 0  ;;  %v5727_v19 = vpop.permute.xlu1 %5726 }
 0x736   : > { %11466 = vmatpush3.bf16.xpose.msra.mxu1 %v5384_v42  ;;  %11467 = vmatprep.mubr.msk.bf16.mxu1 %vm12785_vm0, %v16226_v61 }
 0x737   : > { %11471 = vmatprep.subr.bf16.mxu1 %v16226_v61 }
 0x739   : > { %v5829_v47 = vpop.permute.xlu1 %5828 }
 0x73d   : > { %11468 = vmatmul.mubr.msk.bf16.vlgmr.msra.gmra.mrb[176].mxu1 %vm1359_vm1, %v5377_v50  ;;  %v5734_v50 = vsel %vm1359_vm1, %v5729_v22, 0  ;;  %v5827_v23 = vpop.permute.xlu1 %5826 }
 0x73e   : > { %11472 = vmatpush3.bf16.xpose.msra.mxu1 %v5434_v55  ;;  %11473 = vmatprep.mubr.msk.bf16.mxu1 %vm12785_vm0, %v16226_v61 }
 0x73f   : > { %11483 = vmatprep.subr.bf16.mxu1 %v16226_v61 }
 0x741   : > { %v6117_v5 = vpop.permute.xlu1 %6116 }
 0x742   : > { %v6122_v40 = vsel %vm2292_vm2, %v6117_v5, 0 }
 0x745   : > { %11474 = vmatmul.mubr.msk.bf16.vlgmr.msra.gmra.mrb[180].mxu1 %vm1359_vm1, %v5427_v33  ;;  %v5834_v33 = vsel %vm1359_vm1, %v5829_v47, 0 }
 0x746   : > { %11484 = vmatpush3.bf16.xpose.msra.mxu1 %v5534_v13  ;;  %11485 = vmatprep.mubr.msk.bf16.mxu1 %vm12785_vm0, %v16226_v61 }
 0x747   : > { %11495 = vmatprep.subr.bf16.mxu1 %v16226_v61 }
 0x74d   : > { %11486 = vmatmul.mubr.msk.bf16.vlgmr.msra.gmra.mrb[184].mxu1 %vm1359_vm1, %v5527_v8 }
 0x74e   : > { %11496 = vmatpush3.bf16.xpose.msra.mxu1 %v5634_v2  ;;  %11497 = vmatprep.mubr.msk.bf16.mxu1 %vm12785_vm0, %v16226_v61 }
 0x74f   : > { %11507 = vmatprep.subr.bf16.mxu1 %v16226_v61 }
 0x755   : > { %11498 = vmatmul.mubr.msk.bf16.vlgmr.msra.gmra.mrb[188].mxu1 %vm1359_vm1, %v5627_v54 }
 0x756   : > { %11508 = vmatpush3.bf16.xpose.msra.mxu1 %v5734_v50  ;;  %11509 = vmatprep.mubr.msk.bf16.mxu1 %vm12785_vm0, %v16226_v61 }
 0x757   : > { %11519 = vmatprep.subr.bf16.mxu1 %v16226_v61 }
 0x75d   : > { %11510 = vmatmul.mubr.msk.bf16.vlgmr.msra.gmra.mrb[192].mxu1 %vm1359_vm1, %v5727_v19 }
 0x75e   : > { %11520 = vmatpush3.bf16.xpose.msra.mxu1 %v5834_v33  ;;  %11521 = vmatprep.mubr.msk.bf16.mxu1 %vm12785_vm0, %v16226_v61 }
 0x75f   : > { %11531 = vmatprep.subr.bf16.mxu1 %v16226_v61 }
 0x765   : > { %11522 = vmatmul.mubr.msk.bf16.vlgmr.msra.gmra.mrb[196].mxu1 %vm1359_vm1, %v5827_v23 }
 0x766   : > { %11532 = vmatpush3.bf16.msra.mxu1 %v6122_v40  ;;  %11533 = vmatprep.mubr.msk.bf16.mxu1 %vm12785_vm0, %v16226_v61 }
 0x767   : > { %11543 = vmatprep.subr.bf16.mxu1 %v16226_v61 }
 0x76b   : > { %v4120_v25 = vpop.f32.mrb[120].mxu1 }
 0x76c   : > { %v4798_v27 = vpack.c.bf16 %v4120_v25, %v14455_v1  ;;  %v11303_v21 = vpop.f32.mrb[121].mxu1 }
 0x76d   : > { %v4123_v60 = vpop.f32.mrb[122].mxu1 }
 0x76e   : > { %v11304_v42 = vpop.f32.mrb[123].mxu1  ;;  %11393 = vmatprep.mubr.msk.bf16.mxu0 %vm1359_vm1, %v4798_v27 }
 0x773   : > { %v4216_v8 = vpop.f32.mrb[124].mxu1 }
 0x774   : > { %v4799_v28 = vpack.c.bf16 %v4216_v8, %v14462_v6  ;;  %v11315_v55 = vpop.f32.mrb[125].mxu1 }
 0x775   : > { %v4219_v54 = vpop.f32.mrb[126].mxu1 }
 0x776   : > { %v11316_v13 = vpop.f32.mrb[127].mxu1  ;;  %11394 = vmatmul.mubr.msk.bf16.vlgmr.msra.gmra.mrb[152].mxu0 %vm1359_vm1, %v4799_v28 }
 0x777   : > { %v4264_v22 = vpop.f32.mrb[128].mxu0  ;;  %11410 = vmatpush3.bf16.msra.mxu0 %v12099_v12 }
 0x778   : > { %v11321_v2 = vpop.f32.mrb[129].mxu0  ;;  %11411 = vmatprep.subr.bf16.mxu0 %v12100_v31 }
 0x779   : > { %v4267_v19 = vpop.f32.mrb[130].mxu0 }
 0x77a   : > { %v11322_v1 = vpop.f32.mrb[131].mxu0 }
 0x77b   : > { %11412 = vmatpush3.bf16.msra.mxu0 %v12100_v31 }
 0x77c   : > { %v4312_v50 = vpop.f32.mrb[128].mxu1  ;;  %11477 = vmatprep.subr.bf16.mxu0 %v16226_v61 }
 0x77d   : > { %v4800_v47 = vpack.c.bf16 %v4312_v50, %v4264_v22  ;;  %v11327_v23 = vpop.f32.mrb[129].mxu1 }
 0x77e   : > { %v4315_v33 = vpop.f32.mrb[130].mxu1 }
 0x77f   : > { %v11328_v6 = vpop.f32.mrb[131].mxu1  ;;  %11397 = vmatprep.mubr.msk.bf16.mxu0 %vm1359_vm1, %v4800_v47  ;;  %v4360_v5 = vpop.f32.mrb[132].mxu0 }
 0x780   : > { %v11333_v40 = vpop.f32.mrb[133].mxu0 }
 0x781   : > { %v4363_v25 = vpop.f32.mrb[134].mxu0 }
 0x782   : > { %v11334_v27 = vpop.f32.mrb[135].mxu0 }
 0x784   : > { %v4408_v21 = vpop.f32.mrb[132].mxu1 }
 0x785   : > { %v4801_v12 = vpack.c.bf16 %v4408_v21, %v4360_v5  ;;  %v11339_v60 = vpop.f32.mrb[133].mxu1 }
 0x786   : > { %v4411_v42 = vpop.f32.mrb[134].mxu1 }
 0x787   : > { %v11340_v8 = vpop.f32.mrb[135].mxu1  ;;  %11398 = vmatmul.mubr.msk.bf16.gmra.mrb[156].mxu0 %vm1359_vm1, %v4801_v12  ;;  %v4456_v28 = vpop.f32.mrb[136].mxu0 }
 0x788   : > { %v11345_v55 = vpop.f32.mrb[137].mxu0 }
 0x789   : > { %v4459_v31 = vpop.f32.mrb[138].mxu0 }
 0x78a   : > { %v11346_v54 = vpop.f32.mrb[139].mxu0 }
 0x78c   : > { %v4504_v13 = vpop.f32.mrb[136].mxu1 }
 0x78d   : > { %v4802_v22 = vpack.c.bf16 %v4504_v13, %v4456_v28  ;;  %v11351_v2 = vpop.f32.mrb[137].mxu1 }
 0x78e   : > { %v4507_v19 = vpop.f32.mrb[138].mxu1 }
 0x78f   : > { %v11352_v1 = vpop.f32.mrb[139].mxu1  ;;  %11401 = vmatprep.mubr.msk.bf16.mxu0 %vm1359_vm1, %v4802_v22  ;;  %v4552_v50 = vpop.f32.mrb[140].mxu0 }
 0x790   : > { %v11357_v47 = vpop.f32.mrb[141].mxu0 }
 0x791   : > { %v4555_v23 = vpop.f32.mrb[142].mxu0 }
 0x792   : > { %v11358_v33 = vpop.f32.mrb[143].mxu0 }
 0x794   : > { %v4600_v6 = vpop.f32.mrb[140].mxu1 }
 0x795   : > { %v4803_v5 = vpack.c.bf16 %v4600_v6, %v4552_v50  ;;  %v11363_v40 = vpop.f32.mrb[141].mxu1  ;;  %v16277_v6 = vld [vmem:[#allocation24_spill] sm:$0xff] }
 0x796   : > { %v4603_v25 = vpop.f32.mrb[142].mxu1 }
 0x797   : > { %v11364_v27 = vpop.f32.mrb[143].mxu1  ;;  %11402 = vmatmul.mubr.msk.bf16.gmra.mrb[160].mxu0 %vm1359_vm1, %v4803_v5  ;;  %v16278_v5 = vld [vmem:[#allocation26_spill] sm:$0xff]  ;;  %v5479_v25 = vpop.permute.xlu0 %5478 }
 0x798   : > { %v16279_v40 = vpack.c.bf16 %v16277_v6, %v16278_v5  ;;  %v16287_v6 = vld [vmem:[#allocation37_spill] sm:$0xff] }
 0x7c0   : > { %v4648_v21 = vpop.f32.mrb[144].mxu0 }
 0x7c1   : > { %v11369_v12 = vpop.f32.mrb[145].mxu0 }
 0x7c2   : > { %v4651_v60 = vpop.f32.mrb[146].mxu0 }
 0x7c3   : > { %v11370_v42 = vpop.f32.mrb[147].mxu0 }
 0x7c8   : > { %v4696_v8 = vpop.f32.mrb[144].mxu1 }
 0x7c9   : > { %v4804_v28 = vpack.c.bf16 %v4696_v8, %v4648_v21  ;;  %v11375_v55 = vpop.f32.mrb[145].mxu1  ;;  %v14522_v21 = vld [vmem:[%s16222_s11] sm:$0xff]  ;;  %v5484_v8 = vsel %vm1359_vm1, %v5479_v25, 0 }
 0x7ca   : > { %v4699_v31 = vpop.f32.mrb[146].mxu1  ;;  %v16281_v55 = vld [vmem:[#allocation36_spill] sm:$0xff] }
 0x7cb   : > { %v11376_v54 = vpop.f32.mrb[147].mxu1  ;;  %11405 = vmatprep.mubr.msk.bf16.mxu0 %vm1359_vm1, %v4804_v28  ;;  %v16280_v28 = vld [vmem:[#allocation38_spill] sm:$0xff] }
 0x7cc   : > { %v16282_v31 = vpack.c.bf16 %v16280_v28, %v16281_v55 }
 0x7d1   : > { %v4744_v13 = vpop.f32.mrb[148].mxu0 }
 0x7d2   : > { %v11381_v22 = vpop.f32.mrb[149].mxu0 }
 0x7d3   : > { %v4747_v2 = vpop.f32.mrb[150].mxu0  ;;  %v16283_v22 = vld [vmem:[#allocation50_spill] sm:$0xff] }
 0x7d4   : > { %v11382_v19 = vpop.f32.mrb[151].mxu0  ;;  %v16284_v2 = vld [vmem:[#allocation29_spill] sm:$0xff] }
 0x7d5   : > { %v16285_v19 = vpack.c.bf16 %v16283_v22, %v16284_v2  ;;  %v16293_v22 = vld [vmem:[#allocation53_spill] sm:$0xff] }
 0x7d8   : > { %v4792_v1 = vpop.f32.mrb[148].mxu1 }
 0x7d9   : > { %v4805_v50 = vpack.c.bf16 %v4792_v1, %v4744_v13  ;;  %v11387_v47 = vpop.f32.mrb[149].mxu1 }
 0x7da   : > { %v4795_v23 = vpop.f32.mrb[150].mxu1 }
 0x7db   : > { %v11388_v33 = vpop.f32.mrb[151].mxu1  ;;  %11406 = vmatmul.mubr.msk.bf16.gmra.mrb[164].mxu0 %vm1359_vm1, %v4805_v50 }
 0x7dc   : > { %11413 = vmatprep.mubr.msk.bf16.mxu0 %vm1359_vm1, %v16279_v40  ;;  %v16286_v33 = vld [vmem:[#allocation52_spill] sm:$0xff] }
 0x7dd   : > { %v16288_v5 = vpack.c.bf16 %v16286_v33, %v16287_v6  ;;  %v16296_v33 = vld [vmem:[#allocation55_spill] sm:$0xff] }
 0x7e0   : > { %v5120_v27 = vpop.f32.mrb[152].mxu1 }
 0x7e1   : > { %v14525_v12 = vadd.f32 %v14522_v21, %v5120_v27  ;;  %v11433_v60 = vpop.f32.mrb[153].mxu1  ;;  %v16289_v27 = vld [vmem:[#allocation54_spill] sm:$0xff] }
 0x7e2   : > { %v5123_v42 = vpop.f32.mrb[154].mxu1  ;;  %v16290_v60 = vld [vmem:[#allocation51_spill] sm:$0xff] }
 0x7e3   : > { %11414 = vmatmul.mubr.msk.bf16.vlgmr.msra.gmra.mrb[152].mxu0 %vm1359_vm1, %v16282_v31  ;;  %v11434_v54 = vpop.f32.mrb[155].mxu1  ;;  %v5876_v13 = vsel %vm2096_vm3, %v14525_v12, -inf  ;;  %v16291_v42 = vpack.c.bf16 %v16289_v27, %v16290_v60 }
 0x7e4   : > { %11478 = vmatpush3.bf16.xpose.msra.mxu0 %v5484_v8  ;;  %11417 = vmatprep.mubr.msk.bf16.mxu0 %vm1359_vm1, %v16285_v19  ;;  %v5477_v8 = vpop.permute.xlu0 %5476 }
 0x7e5   : > { %5877 = vmax.xlane.f32.xlu0 %v5876_v13  ;;  %11489 = vmatprep.subr.bf16.mxu0 %v16226_v61  ;;  %v16292_v13 = vld [vmem:[#allocation57_spill] sm:$0xff] }
 0x7e6   : > { %v16294_v2 = vpack.c.bf16 %v16292_v13, %v16293_v22 }
 0x7e8   : > { %v5170_v1 = vpop.f32.mrb[156].mxu1 }
 0x7e9   : > { %v14540_v50 = vadd.f32 %v14522_v21, %v5170_v1  ;;  %v11439_v47 = vpop.f32.mrb[157].mxu1 }
 0x7ea   : > { %v5173_v23 = vpop.f32.mrb[158].mxu1  ;;  %v5579_v47 = vpop.permute.xlu0 %5578 }
 0x7eb   : > { %11418 = vmatmul.mubr.msk.bf16.gmra.mrb[156].mxu0 %vm1359_vm1, %v16288_v5  ;;  %v11440_v40 = vpop.f32.mrb[159].mxu1  ;;  %v5879_v25 = vsel %vm2096_vm3, %v14540_v50, -inf  ;;  %v16295_v23 = vld [vmem:[#allocation58_spill] sm:$0xff] }
 0x7ec   : > { %11421 = vmatprep.mubr.msk.bf16.mxu0 %vm1359_vm1, %v16291_v42  ;;  %5880 = vmax.xlane.f32.xlu1 %v5879_v25  ;;  %v16297_v6 = vpack.c.bf16 %v16295_v23, %v16296_v33  ;;  %v16298_v42 = vld [vmem:[#allocation59_spill] sm:$0xff]  ;;  %v5584_v33 = vsel %vm1359_vm1, %v5579_v47, 0 }
 0x7ee   : > { %v5577_v27 = vpop.permute.xlu0 %5576 }
 0x7f0   : > { %v5220_v28 = vpop.f32.mrb[160].mxu1 }
 0x7f1   : > { %v14553_v55 = vadd.f32 %v14522_v21, %v5220_v28  ;;  %v11445_v31 = vpop.f32.mrb[161].mxu1  ;;  %v16299_v28 = vld [vmem:[#allocation56_spill] sm:$0xff] }
 0x7f2   : > { %v5223_v54 = vpop.f32.mrb[162].mxu1  ;;  %v16300_v31 = vpack.c.bf16 %v16298_v42, %v16299_v28  ;;  %v5679_v22 = vpop.permute.xlu0 %5678 }
 0x7f3   : > { %11422 = vmatmul.mubr.msk.bf16.gmra.mrb[160].mxu0 %vm1359_vm1, %v16294_v2  ;;  %v11446_v19 = vpop.f32.mrb[163].mxu1  ;;  %v5882_v1 = vsel %vm2096_vm3, %v14553_v55, -inf }
 0x7f4   : > { %11425 = vmatprep.mubr.msk.bf16.mxu0 %vm1359_vm1, %v16297_v6  ;;  %5883 = vmax.xlane.f32.xlu0 %v5882_v1 }
 0x7f8   : > { %v5270_v5 = vpop.f32.mrb[164].mxu1 }
 0x7f9   : > { %v14566_v40 = vadd.f32 %v14522_v21, %v5270_v5  ;;  %v11451_v25 = vpop.f32.mrb[165].mxu1 }
 0x7fa   : > { %v5273_v60 = vpop.f32.mrb[166].mxu1  ;;  %v5677_v25 = vpop.permute.xlu0 %5676 }
 0x7fb   : > { %11426 = vmatmul.mubr.msk.bf16.gmra.mrb[164].mxu0 %vm1359_vm1, %v16300_v31  ;;  %v11452_v54 = vpop.f32.mrb[167].mxu1  ;;  %v5885_v13 = vsel %vm2096_vm3, %v14566_v40, -inf  ;;  %v5684_v31 = vsel %vm1359_vm1, %v5679_v22, 0 }
 0x7fc   : > { %5886 = vmax.xlane.f32.xlu0 %v5885_v13  ;;  %11479 = vmatprep.mubr.msk.bf16.mxu0 %vm12785_vm0, %v16226_v61 }
 0x7fe   : > { %v5779_v13 = vpop.permute.xlu0 %5778 }
 0x800   : > { %v5320_v2 = vpop.f32.mrb[168].mxu1 }
 0x801   : > { %v14577_v19 = vadd.f32 %v14522_v21, %v5320_v2  ;;  %v11457_v1 = vpop.f32.mrb[169].mxu1 }
 0x802   : > { %v5323_v23 = vpop.f32.mrb[170].mxu1  ;;  %v5777_v22 = vpop.permute.xlu0 %5776 }
 0x803   : > { %v11458_v6 = vpop.f32.mrb[171].mxu1  ;;  %11480 = vmatmul.mubr.msk.bf16.vlgmr.msra.gmra.mrb[168].mxu0 %vm1359_vm1, %v5477_v8  ;;  %v5888_v5 = vsel %vm2096_vm3, %v14577_v19, -inf }
 0x804   : > { %11490 = vmatpush3.bf16.xpose.msra.mxu0 %v5584_v33  ;;  %5889 = vmax.xlane.f32.xlu0 %v5888_v5 }
 0x805   : > { %11491 = vmatprep.mubr.msk.bf16.mxu0 %vm12785_vm0, %v16226_v61  ;;  %11501 = vmatprep.subr.bf16.mxu0 %v16226_v61 }
 0x808   : > { %v5370_v60 = vpop.f32.mrb[172].mxu1 }
 0x809   : > { %v14587_v42 = vadd.f32 %v14522_v21, %v5370_v60  ;;  %v11463_v28 = vpop.f32.mrb[173].mxu1  ;;  %v6069_v60 = vpop.permute.xlu0 %6068 }
 0x80a   : > { %v5373_v47 = vpop.f32.mrb[174].mxu1 }
 0x80b   : > { %v11464_v8 = vpop.f32.mrb[175].mxu1  ;;  %11492 = vmatmul.mubr.msk.bf16.vlgmr.msra.gmra.mrb[172].mxu0 %vm1359_vm1, %v5577_v27  ;;  %v5891_v54 = vsel %vm2096_vm3, %v14587_v42, -inf  ;;  %v5784_v27 = vsel %vm1359_vm1, %v5779_v13, 0 }
 0x80c   : > { %11502 = vmatpush3.bf16.xpose.msra.mxu0 %v5684_v31  ;;  %5892 = vmax.xlane.f32.xlu1 %v5891_v54  ;;  %v6074_v54 = vsel %vm2292_vm2, %v6069_v60, 0 }
 0x80d   : > { %11503 = vmatprep.mubr.msk.bf16.mxu0 %vm12785_vm0, %v16226_v61  ;;  %11513 = vmatprep.subr.bf16.mxu0 %v16226_v61 }
 0x810   : > { %v5420_v2 = vpop.f32.mrb[176].mxu1 }
 0x811   : > { %v14597_v1 = vadd.f32 %v14522_v21, %v5420_v2  ;;  %v11469_v23 = vpop.f32.mrb[177].mxu1 }
 0x812   : > { %v5423_v33 = vpop.f32.mrb[178].mxu1 }
 0x813   : > { %v11470_v6 = vpop.f32.mrb[179].mxu1  ;;  %11504 = vmatmul.mubr.msk.bf16.vlgmr.msra.gmra.mrb[176].mxu0 %vm1359_vm1, %v5677_v25  ;;  %v5894_v5 = vsel %vm2096_vm3, %v14597_v1, -inf }
 0x814   : > { %11514 = vmatpush3.bf16.xpose.msra.mxu0 %v5784_v27  ;;  %5895 = vmax.xlane.f32.xlu0 %v5894_v5 }
 0x815   : > { %11515 = vmatprep.mubr.msk.bf16.mxu0 %vm12785_vm0, %v16226_v61  ;;  %11525 = vmatprep.subr.bf16.mxu0 %v16226_v61 }
 0x818   : > { %v5470_v28 = vpop.f32.mrb[180].mxu1 }
 0x819   : > { %v14607_v47 = vadd.f32 %v14522_v21, %v5470_v28  ;;  %v11475_v31 = vpop.f32.mrb[181].mxu1 }
 0x81a   : > { %v5473_v8 = vpop.f32.mrb[182].mxu1 }
 0x81b   : > { %v11476_v25 = vpop.f32.mrb[183].mxu1  ;;  %11516 = vmatmul.mubr.msk.bf16.vlgmr.msra.gmra.mrb[180].mxu0 %vm1359_vm1, %v5777_v22  ;;  %v5897_v13 = vsel %vm2096_vm3, %v14607_v47, -inf }
 0x81c   : > { %11526 = vmatpush3.bf16.msra.mxu0 %v6074_v54  ;;  %5898 = vmax.xlane.f32.xlu1 %v5897_v13 }
 0x81d   : > { %11527 = vmatprep.mubr.msk.bf16.mxu0 %vm12785_vm0, %v16226_v61  ;;  %11537 = vmatprep.subr.bf16.mxu0 %v16226_v61 }
 0x820   : > { %v5570_v2 = vpop.f32.mrb[184].mxu1 }
 0x821   : > { %v14617_v23 = vadd.f32 %v14522_v21, %v5570_v2  ;;  %v11487_v33 = vpop.f32.mrb[185].mxu1 }
 0x822   : > { %v5573_v27 = vpop.f32.mrb[186].mxu1 }
 0x823   : > { %v11488_v6 = vpop.f32.mrb[187].mxu1  ;;  %v5903_v22 = vsel %vm2096_vm3, %v14617_v23, -inf }
 0x824   : > { %5904 = vmax.xlane.f32.xlu1 %v5903_v22 }
 0x828   : > { %v5670_v5 = vpop.f32.mrb[188].mxu1 }
 0x829   : > { %v14622_v60 = vadd.f32 %v14522_v21, %v5670_v5  ;;  %v11499_v28 = vpop.f32.mrb[189].mxu1 }
 0x82a   : > { %v5673_v31 = vpop.f32.mrb[190].mxu1 }
 0x82b   : > { %v11500_v8 = vpop.f32.mrb[191].mxu1  ;;  %v5909_v54 = vsel %vm2096_vm3, %v14622_v60, -inf }
 0x82c   : > { %5910 = vmax.xlane.f32.xlu1 %v5909_v54 }
 0x830   : > { %v5770_v25 = vpop.f32.mrb[192].mxu1 }
 0x831   : > { %v14627_v13 = vadd.f32 %v14522_v21, %v5770_v25  ;;  %v11511_v2 = vpop.f32.mrb[193].mxu1  ;;  %v14636_v25 = vpop.permute.xlu0 %6164 }
 0x832   : > { %v5773_v33 = vpop.f32.mrb[194].mxu1 }
 0x833   : > { %v11512_v27 = vpop.f32.mrb[195].mxu1  ;;  %v5915_v6 = vsel %vm2096_vm3, %v14627_v13, -inf }
 0x834   : > { %5916 = vmax.xlane.f32.xlu1 %v5915_v6  ;;  %v14639_v27 = vpop.permute.xlu1 %6212 }
 0x838   : > { %v5870_v22 = vpop.f32.mrb[196].mxu1 }
 0x839   : > { %v14632_v5 = vadd.f32 %v14522_v21, %v5870_v22  ;;  %v11523_v28 = vpop.f32.mrb[197].mxu1 }
 0x83a   : > { %v5873_v31 = vpop.f32.mrb[198].mxu1 }
 0x83b   : > { %v11524_v8 = vpop.f32.mrb[199].mxu1  ;;  %v5921_v54 = vsel %vm2096_vm3, %v14632_v5, -inf }
 0x83c   : > { %5922 = vmax.xlane.f32.xlu1 %v5921_v54 }
 0x872   : > { %v5878_v2 = vpop.xlane.xlu0 %5877 }
 0x873   : > { %v5924_v33 = vsub.f32 %v14525_v12, %v5878_v2 }
 0x875   : > { %v5940_v62 = vmul.f32 1.442695, %v5924_v33 }
 0x877   : > { %12249 = vpow2.f32 %v5940_v62 }
 0x879   : > { %v5881_v6 = vpop.xlane.xlu1 %5880 }
 0x87a   : > { %v5925_v22 = vsub.f32 %v14540_v50, %v5881_v6 }
 0x87c   : > { %v5942_v30 = vmul.f32 1.442695, %v5925_v22 }
 0x87e   : > { %12251 = vpow2.f32 %v5942_v30 }
 0x881   : > { %v14642_v28 = vpop.eup %12249  ;;  %v5884_v31 = vpop.xlane.xlu0 %5883 }
 0x882   : > { %v5926_v8 = vsub.f32 %v14553_v55, %v5884_v31  ;;  %v5972_v54 = vsel %vm2096_vm3, %v14642_v28, 0.0 }
 0x883   : > { %5973 = vadd.xlane.f32.xlu0 %v5972_v54 }
 0x884   : > { %v5944_v36 = vmul.f32 1.442695, %v5926_v8 }
 0x886   : > { %12253 = vpow2.f32 %v5944_v36 }
 0x888   : > { %v14647_v12 = vpop.eup %12251 }
 0x889   : > { %v5887_v2 = vpop.xlane.xlu0 %5886  ;;  %v5975_v62 = vsel %vm2096_vm3, %v14647_v12, 0.0 }
 0x88a   : > { %v5927_v50 = vsub.f32 %v14566_v40, %v5887_v2  ;;  %5976 = vadd.xlane.f32.xlu1 %v5975_v62 }
 0x88c   : > { %v5946_v30 = vmul.f32 1.442695, %v5927_v50 }
 0x88e   : > { %12255 = vpow2.f32 %v5946_v30 }
 0x890   : > { %v14652_v33 = vpop.eup %12253 }
 0x891   : > { %v5890_v55 = vpop.xlane.xlu0 %5889  ;;  %v5978_v6 = vsel %vm2096_vm3, %v14652_v33, 0.0 }
 0x892   : > { %v5928_v22 = vsub.f32 %v14577_v19, %v5890_v55  ;;  %5979 = vadd.xlane.f32.xlu0 %v5978_v6 }
 0x894   : > { %v5948_v36 = vmul.f32 1.442695, %v5928_v22 }
 0x896   : > { %12257 = vpow2.f32 %v5948_v36 }
 0x898   : > { %v14657_v31 = vpop.eup %12255 }
 0x899   : > { %v5893_v8 = vpop.xlane.xlu1 %5892  ;;  %v5981_v40 = vsel %vm2096_vm3, %v14657_v31, 0.0 }
 0x89a   : > { %v5929_v54 = vsub.f32 %v14587_v42, %v5893_v8  ;;  %5982 = vadd.xlane.f32.xlu1 %v5981_v40 }
 0x89c   : > { %v5950_v2 = vmul.f32 1.442695, %v5929_v54 }
 0x89e   : > { %12259 = vpow2.f32 %v5950_v2 }
 0x8a0   : > { %v14662_v62 = vpop.eup %12257 }
 0x8a1   : > { %v5896_v50 = vpop.xlane.xlu0 %5895  ;;  %v5984_v19 = vsel %vm2096_vm3, %v14662_v62, 0.0 }
 0x8a2   : > { %v5930_v30 = vsub.f32 %v14597_v1, %v5896_v50  ;;  %5985 = vadd.xlane.f32.xlu0 %v5984_v19 }
 0x8a4   : > { %v5952_v55 = vmul.f32 1.442695, %v5930_v30 }
 0x8a6   : > { %12261 = vpow2.f32 %v5952_v55 }
 0x8a8   : > { %v14667_v6 = vpop.eup %12259 }
 0x8a9   : > { %v5899_v22 = vpop.xlane.xlu1 %5898  ;;  %v5987_v42 = vsel %vm2096_vm3, %v14667_v6, 0.0 }
 0x8aa   : > { %v5931_v36 = vsub.f32 %v14607_v47, %v5899_v22  ;;  %5988 = vadd.xlane.f32.xlu1 %v5987_v42 }
 0x8ac   : > { %v5954_v8 = vmul.f32 1.442695, %v5931_v36 }
 0x8ae   : > { %12263 = vpow2.f32 %v5954_v8 }
 0x8b0   : > { %v14672_v40 = vpop.eup %12261 }
 0x8b1   : > { %v5905_v54 = vpop.xlane.xlu1 %5904  ;;  %v5990_v1 = vsel %vm2096_vm3, %v14672_v40, 0.0 }
 0x8b2   : > { %v5933_v2 = vsub.f32 %v14617_v23, %v5905_v54  ;;  %5991 = vadd.xlane.f32.xlu0 %v5990_v1  ;;  %v16301_v54 = vld [vmem:[#allocation45_spill] sm:$0xff] }
 0x8b3   : > { %v16303_v1 = vld [vmem:[#allocation49_spill] sm:$0xff] }
 0x8b4   : > { %v5958_v50 = vmul.f32 1.442695, %v5933_v2 }
 0x8b6   : > { %12265 = vpow2.f32 %v5958_v50 }
 0x8b8   : > { %v14677_v19 = vpop.eup %12263 }
 0x8b9   : > { %v5911_v30 = vpop.xlane.xlu1 %5910  ;;  %v5993_v47 = vsel %vm2096_vm3, %v14677_v19, 0.0 }
 0x8ba   : > { %v5935_v55 = vsub.f32 %v14622_v60, %v5911_v30  ;;  %5994 = vadd.xlane.f32.xlu1 %v5993_v47  ;;  %v16302_v60 = vld [vmem:[#allocation47_spill] sm:$0xff]  ;;  %v16304_v47 = vld [vmem:[#allocation48_spill] sm:$0xff] }
 0x8bc   : > { %v5962_v22 = vmul.f32 1.442695, %v5935_v55 }
 0x8be   : > { %12267 = vpow2.f32 %v5962_v22 }
 0x8c0   : > { %v14682_v42 = vpop.eup %12265 }
 0x8c1   : > { %v5999_v36 = vsel %vm2096_vm3, %v14682_v42, 0.0 }
 0x8c2   : > { %6000 = vadd.xlane.f32.xlu0 %v5999_v36 }
 0x8c8   : > { %v14686_v23 = vpop.eup %12267 }
 0x8c9   : > { %v6005_v8 = vsel %vm2096_vm3, %v14686_v23, 0.0 }
 0x8ca   : > { %6006 = vadd.xlane.f32.xlu0 %v6005_v8  ;;  %v16305_v8 = vld [vmem:[#allocation35_spill] sm:$0xff] }
 0x8cb   : > { %6308 = vrot.lane.b32.xlu1 %v16301_v54, %s12787_s15 }
 0x8cf   : > { %6404 = vrot.lane.b32.xlu1 %v16302_v60, %s12787_s15 }
 0x8d3   : > { %6500 = vrot.lane.b32.xlu1 %v16303_v1, %s12787_s15 }
 0x8d6   : > { %v5520_v2 = vpop.f32.mrb[168].mxu0 }
 0x8d7   : > { %v14697_v50 = vadd.f32 %v14522_v21, %v5520_v2  ;;  %v11481_v30 = vpop.f32.mrb[169].mxu0  ;;  %6548 = vrot.lane.b32.xlu1 %v16304_v47, %s12787_s15 }
 0x8d8   : > { %v5523_v55 = vpop.f32.mrb[170].mxu0 }
 0x8d9   : > { %v11482_v22 = vpop.f32.mrb[171].mxu0  ;;  %v5900_v36 = vsel %vm2096_vm3, %v14697_v50, -inf }
 0x8da   : > { %5901 = vmax.xlane.f32.xlu0 %v5900_v36 }
 0x8db   : > { %6596 = vrot.lane.b32.xlu1 %v16305_v8, %s12787_s15 }
 0x8de   : > { %v5620_v60 = vpop.f32.mrb[172].mxu0 }
 0x8df   : > { %v14706_v1 = vadd.f32 %v14522_v21, %v5620_v60  ;;  %v11493_v54 = vpop.f32.mrb[173].mxu0 }
 0x8e0   : > { %v5623_v2 = vpop.f32.mrb[174].mxu0 }
 0x8e1   : > { %v11494_v15 = vpop.f32.mrb[175].mxu0  ;;  %v5906_v30 = vsel %vm2096_vm3, %v14706_v1, -inf }
 0x8e2   : > { %5907 = vmax.xlane.f32.xlu0 %v5906_v30 }
 0x8e6   : > { %v5720_v55 = vpop.f32.mrb[176].mxu0 }
 0x8e7   : > { %v14711_v22 = vadd.f32 %v14522_v21, %v5720_v55  ;;  %v11505_v47 = vpop.f32.mrb[177].mxu0  ;;  %v16306_v55 = vld [vmem:[#allocation42_spill] sm:$0xff] }
 0x8e8   : > { %v5723_v36 = vpop.f32.mrb[178].mxu0  ;;  %v5917_v47 = vpop.xlane.xlu1 %5916 }
 0x8e9   : > { %v11506_v0 = vpop.f32.mrb[179].mxu0  ;;  %v5912_v8 = vsel %vm2096_vm3, %v14711_v22, -inf  ;;  %v5937_v36 = vsub.f32 %v14627_v13, %v5917_v47 }
 0x8ea   : > { %5913 = vmax.xlane.f32.xlu0 %v5912_v8 }
 0x8eb   : > { %v5966_v38 = vmul.f32 1.442695, %v5937_v36 }
 0x8ec   : > { %v5923_v8 = vpop.xlane.xlu1 %5922 }
 0x8ee   : > { %v5820_v60 = vpop.f32.mrb[180].mxu0 }
 0x8ef   : > { %v14716_v54 = vadd.f32 %v14522_v21, %v5820_v60  ;;  %v11517_v15 = vpop.f32.mrb[181].mxu0 }
 0x8f0   : > { %v5823_v2 = vpop.f32.mrb[182].mxu0 }
 0x8f1   : > { %v11518_v10 = vpop.f32.mrb[183].mxu0  ;;  %v5918_v30 = vsel %vm2096_vm3, %v14716_v54, -inf  ;;  %v6170_v2 = vsel %vm2292_vm2, %v14636_v25, 0  ;;  %v6218_v25 = vsel %vm2292_vm2, %v14639_v27, 0 }
 0x8f2   : > { %5919 = vmax.xlane.f32.xlu0 %v5918_v30 }
 0x908   : > { %6260 = vrot.lane.b32.xlu0 %v16306_v55, %s12787_s15 }
 0x910   : > { %v5974_v0 = vpop.xlane.xlu0 %5973 }
 0x911   : > { %12269 = vrcp.f32 %v5974_v0 }
 0x917   : > { %v5977_v57 = vpop.xlane.xlu1 %5976 }
 0x918   : > { %12271 = vrcp.f32 %v5977_v57 }
 0x919   : > { %12273 = vpow2.f32 %v5966_v38 }
 0x91b   : > { %v12270_v21 = vpop.eup %12269 }
 0x91c   : > { %v6036_v10 = vmul.f32 %v12270_v21, %v14642_v28 }
 0x91e   : > { %v6052_v60 = vpack.c.bf16 %v6036_v10, %v6036_v10 }
 0x91f   : > { %v5980_v15 = vpop.xlane.xlu0 %5979 }
 0x920   : > { %11528 = vmatmul.mubr.msk.bf16.vlgmr.msra.gmra.mrb[184].mxu0 %vm2096_vm3, %v6052_v60  ;;  %12275 = vrcp.f32 %v5980_v15  ;;  %v16307_v15 = vld [vmem:[#allocation43_spill] sm:$0xff] }
 0x921   : > { %11538 = vmatpush3.bf16.msra.mxu0 %v6170_v2  ;;  %11539 = vmatprep.mubr.msk.bf16.mxu0 %vm12785_vm0, %v16226_v61 }
 0x922   : > { %v12272_v13 = vpop.eup %12271  ;;  %11549 = vmatprep.subr.bf16.mxu0 %v16226_v61 }
 0x923   : > { %v14730_v57 = vpop.eup %12273  ;;  %v6037_v38 = vmul.f32 %v12272_v13, %v14647_v12 }
 0x924   : > { %v6011_v30 = vsel %vm2096_vm3, %v14730_v57, 0.0 }
 0x925   : > { %v6053_v28 = vpack.c.bf16 %v6037_v38, %v6037_v38 }
 0x927   : > { %6012 = vadd.xlane.f32.xlu0 %v6011_v30  ;;  %11534 = vmatmul.mubr.msk.bf16.vlgmr.msra.gmra.mrb[200].mxu1 %vm2096_vm3, %v6053_v28  ;;  %v5983_v47 = vpop.xlane.xlu1 %5982 }
 0x928   : > { %11544 = vmatpush3.bf16.msra.mxu1 %v6218_v25  ;;  %12277 = vrcp.f32 %v5983_v47  ;;  %11545 = vmatprep.mubr.msk.bf16.mxu1 %vm12785_vm0, %v16226_v61 }
 0x929   : > { %11555 = vmatprep.subr.bf16.mxu1 %v16226_v61 }
 0x92a   : > { %v12276_v0 = vpop.eup %12275 }
 0x92b   : > { %v6038_v12 = vmul.f32 %v12276_v0, %v14652_v33  ;;  %v5939_v33 = vsub.f32 %v14632_v5, %v5923_v8 }
 0x92d   : > { %v6054_v36 = vpack.c.bf16 %v6038_v12, %v6038_v12  ;;  %v5970_v28 = vmul.f32 1.442695, %v5939_v33 }
 0x92f   : > { %11540 = vmatmul.mubr.msk.bf16.vlgmr.msra.gmra.mrb[188].mxu0 %vm2096_vm3, %v6054_v36  ;;  %v5986_v13 = vpop.xlane.xlu0 %5985 }
 0x930   : > { %11551 = vmatprep.mubr.msk.bf16.mxu0 %vm12785_vm0, %v16226_v61 }
 0x932   : > { %v12278_v27 = vpop.eup %12277 }
 0x933   : > { %v6039_v21 = vmul.f32 %v12278_v27, %v14657_v31 }
 0x935   : > { %v6055_v10 = vpack.c.bf16 %v6039_v21, %v6039_v21 }
 0x937   : > { %11546 = vmatmul.mubr.msk.bf16.vlgmr.msra.gmra.mrb[204].mxu1 %vm2096_vm3, %v6055_v10  ;;  %v5989_v60 = vpop.xlane.xlu1 %5988 }
 0x938   : > { %11557 = vmatprep.mubr.msk.bf16.mxu1 %vm12785_vm0, %v16226_v61  ;;  %12279 = vrcp.f32 %v5989_v60 }
 0x93d   : > { %6356 = vrot.lane.b32.xlu0 %v16307_v15, %s12787_s15 }
 0x93f   : > { %v14753_v30 = vpop.xlane.xlu0 %5991 }
 0x942   : > { %v12280_v2 = vpop.eup %12279 }
 0x943   : > { %v6041_v31 = vmul.f32 %v12280_v2, %v14667_v6 }
 0x945   : > { %v6057_v0 = vpack.c.bf16 %v6041_v31, %v6041_v31 }
 0x947   : > { %v5995_v38 = vpop.xlane.xlu1 %5994 }
 0x948   : > { %12281 = vrcp.f32 %v5995_v38 }
 0x949   : > { %12283 = vpow2.f32 %v5970_v28 }
 0x94b   : > { %v6309_v25 = vpop.permute.xlu1 %6308 }
 0x94c   : > { %v6314_v47 = vsel %vm2292_vm2, %v6309_v25, 0 }
 0x94d   : > { %11556 = vmatpush3.bf16.msra.mxu1 %v6314_v47 }
 0x94e   : > { %11567 = vmatprep.subr.bf16.mxu1 %v16226_v61 }
 0x94f   : > { %v6001_v12 = vpop.xlane.xlu0 %6000  ;;  %v6405_v36 = vpop.permute.xlu1 %6404 }
 0x950   : > { %12285 = vrcp.f32 %v6001_v12  ;;  %v6410_v5 = vsel %vm2292_vm2, %v6405_v36, 0  ;;  %11558 = vmatmul.mubr.msk.bf16.vlgmr.msra.gmra.mrb[208].mxu1 %vm2096_vm3, %v6057_v0 }
 0x951   : > { %11568 = vmatpush3.bf16.msra.mxu1 %v6410_v5  ;;  %11569 = vmatprep.mubr.msk.bf16.mxu1 %vm12785_vm0, %v16226_v61 }
 0x952   : > { %v12282_v6 = vpop.eup %12281  ;;  %11579 = vmatprep.subr.bf16.mxu1 %v16226_v61 }
 0x953   : > { %v6501_v8 = vpop.permute.xlu1 %6500  ;;  %v6043_v27 = vmul.f32 %v12282_v6, %v14677_v19  ;;  %v14765_v33 = vpop.eup %12283 }
 0x954   : > { %v6506_v2 = vsel %vm2292_vm2, %v6501_v8, 0  ;;  %v6017_v19 = vsel %vm2096_vm3, %v14765_v33, 0.0  ;;  %v16308_v8 = vld [vmem:[#allocation46_spill] sm:$0xff] }
 0x955   : > { %v6059_v21 = vpack.c.bf16 %v6043_v27, %v6043_v27 }
 0x957   : > { %v6007_v10 = vpop.xlane.xlu0 %6006  ;;  %v14763_v60 = vpop.permute.xlu1 %6548 }
 0x958   : > { %12287 = vrcp.f32 %v6007_v10  ;;  %11570 = vmatmul.mubr.msk.bf16.vlgmr.msra.gmra.mrb[212].mxu1 %vm2096_vm3, %v6059_v21 }
 0x959   : > { %11580 = vmatpush3.bf16.msra.mxu1 %v6506_v2  ;;  %11581 = vmatprep.mubr.msk.bf16.mxu1 %vm12785_vm0, %v16226_v61 }
 0x95a   : > { %v12286_v38 = vpop.eup %12285  ;;  %11591 = vmatprep.subr.bf16.mxu1 %v16226_v61 }
 0x95b   : > { %v6045_v28 = vmul.f32 %v12286_v38, %v14682_v42  ;;  %v6597_v31 = vpop.permute.xlu1 %6596 }
 0x95c   : > { %6018 = vadd.xlane.f32.xlu0 %v6017_v19  ;;  %v6602_v47 = vsel %vm2292_vm2, %v6597_v31, 0 }
 0x95d   : > { %v6061_v25 = vpack.c.bf16 %v6045_v28, %v6045_v28 }
 0x960   : > { %11582 = vmatmul.mubr.msk.bf16.vlgmr.msra.gmra.mrb[216].mxu1 %vm2096_vm3, %v6061_v25  ;;  %v16313_v25 = vld [vmem:[#allocation32_spill] sm:$0xff] }
 0x961   : > { %11592 = vmatpush3.bf16.msra.mxu1 %v6602_v47  ;;  %11593 = vmatprep.mubr.msk.bf16.mxu1 %vm12785_vm0, %v16226_v61 }
 0x962   : > { %v12288_v0 = vpop.eup %12287  ;;  %11603 = vmatprep.subr.bf16.mxu1 %v16226_v61 }
 0x963   : > { %v6047_v12 = vmul.f32 %v12288_v0, %v14686_v23 }
 0x965   : > { %v6063_v36 = vpack.c.bf16 %v6047_v12, %v6047_v12 }
 0x967   : > { %v5902_v5 = vpop.xlane.xlu0 %5901 }
 0x968   : > { %v5932_v42 = vsub.f32 %v14697_v50, %v5902_v5  ;;  %11594 = vmatmul.mubr.msk.bf16.vlgmr.msra.gmra.mrb[220].mxu1 %vm2096_vm3, %v6063_v36 }
 0x969   : > { %11605 = vmatprep.mubr.msk.bf16.mxu1 %vm12785_vm0, %v16226_v61 }
 0x96a   : > { %v5956_v6 = vmul.f32 1.442695, %v5932_v42  ;;  %v16314_v42 = vld [vmem:[#allocation34_spill] sm:$0xff] }
 0x96c   : > { %12289 = vpow2.f32 %v5956_v6 }
 0x96d   : > { %12291 = vrcp.f32 %v5986_v13 }
 0x96f   : > { %v5908_v23 = vpop.xlane.xlu0 %5907 }
 0x972   : > { %6452 = vrot.lane.b32.xlu0 %v16308_v8, %s12787_s15 }
 0x976   : > { %v14787_v27 = vpop.eup %12289  ;;  %6644 = vrot.lane.b32.xlu0 %v13847_v16, %s12787_s15 }
 0x977   : > { %v5996_v50 = vsel %vm2096_vm3, %v14787_v27, 0.0  ;;  %v5914_v21 = vpop.xlane.xlu0 %5913  ;;  %v12292_v10 = vpop.eup %12291 }
 0x978   : > { %5997 = vadd.xlane.f32.xlu1 %v5996_v50  ;;  %v6040_v2 = vmul.f32 %v12292_v10, %v14662_v62  ;;  %v16315_v50 = vld [vmem:[#allocation40_spill] sm:$0xff] }
 0x97a   : > { %6740 = vrot.lane.b32.xlu0 %v13870_v37, %s12787_s15  ;;  %v6056_v28 = vpack.c.bf16 %v6040_v2, %v6040_v2 }
 0x97e   : > { %6999 = vrot.lane.b32.xlu0 %v13219_v58, %s12788_s4  ;;  %v5934_v58 = vsub.f32 %v14706_v1, %v5908_v23 }
 0x97f   : > { %v5920_v13 = vpop.xlane.xlu0 %5919 }
 0x982   : > { %7049 = vrot.lane.b32.xlu0 %v13228_v3, %s12788_s4  ;;  %v5960_v3 = vmul.f32 1.442695, %v5934_v58 }
 0x983   : > { %v6261_v38 = vpop.permute.xlu0 %6260 }
 0x984   : > { %v6266_v19 = vsel %vm2292_vm2, %v6261_v38, 0  ;;  %12293 = vpow2.f32 %v5960_v3 }
 0x985   : > { %11550 = vmatpush3.bf16.msra.mxu0 %v6266_v19 }
 0x986   : > { %7099 = vrot.lane.b32.xlu0 %v13259_v24, %s12788_s4  ;;  %11561 = vmatprep.subr.bf16.mxu0 %v16226_v61  ;;  %v5936_v24 = vsub.f32 %v14711_v22, %v5914_v21 }
 0x988   : > { %11552 = vmatmul.mubr.msk.bf16.vlgmr.msra.gmra.mrb[192].mxu0 %vm2096_vm3, %v6056_v28 }
 0x989   : > { %6692 = vrot.lane.b32.xlu1 %v13916_v48, %s12787_s15  ;;  %11563 = vmatprep.mubr.msk.bf16.mxu0 %vm12785_vm0, %v16226_v61 }
 0x98a   : > { %7149 = vrot.lane.b32.xlu0 %v13295_v44, %s12788_s4  ;;  %v5964_v44 = vmul.f32 1.442695, %v5936_v24 }
 0x98c   : > { %12295 = vpow2.f32 %v5964_v44  ;;  %v6554_v44 = vsel %vm2292_vm2, %v14763_v60, 0 }
 0x98e   : > { %7199 = vrot.lane.b32.xlu0 %v13238_v11, %s12788_s4  ;;  %v5938_v11 = vsub.f32 %v14716_v54, %v5920_v13 }
 0x992   : > { %7197 = vrot.lane.b32.xlu0 %v13262_v26, %s12788_s4  ;;  %v14828_v26 = vpop.eup %12293 }
 0x996   : > { %7299 = vrot.lane.b32.xlu0 %v13253_v20, %s12788_s4  ;;  %v5968_v20 = vmul.f32 1.442695, %v5938_v11 }
 0x998   : > { %12297 = vpow2.f32 %v5968_v20 }
 0x999   : > { %12299 = vrcp.f32 %v14753_v30 }
 0x99a   : > { %7297 = vrot.lane.b32.xlu0 %v13297_v45, %s12788_s4  ;;  %v14835_v45 = vpop.eup %12295 }
 0x99e   : > { %7399 = vrot.lane.b32.xlu0 %v13285_v41, %s12788_s4  ;;  %v6002_v41 = vsel %vm2096_vm3, %v14828_v26, 0.0 }
 0x9a2   : > { %7397 = vrot.lane.b32.xlu0 %v16265_v52, %s12788_s4  ;;  %v6008_v52 = vsel %vm2096_vm3, %v14835_v45, 0.0 }
 0x9a6   : > { %7499 = vrot.lane.b32.xlu0 %v16268_v63, %s12788_s4  ;;  %v14841_v63 = vpop.eup %12297 }
 0x9a7   : > { %v12300_v62 = vpop.eup %12299  ;;  %v6014_v1 = vsel %vm2096_vm3, %v14841_v63, 0.0 }
 0x9aa   : > { %7497 = vrot.lane.b32.xlu0 %v16270_v43, %s12788_s4 }
 0x9ad   : > { %6003 = vadd.xlane.f32.xlu1 %v6002_v41 }
 0x9ae   : > { %7599 = vrot.lane.b32.xlu0 %v16271_v29, %s12788_s4  ;;  %v6042_v29 = vmul.f32 %v12300_v62, %v14672_v40  ;;  %v16312_v40 = vld [vmem:[#allocation33_spill] sm:$0xff] }
 0x9b0   : > { %v6058_v30 = vpack.c.bf16 %v6042_v29, %v6042_v29 }
 0x9b1   : > { %6009 = vadd.xlane.f32.xlu1 %v6008_v52 }
 0x9b2   : > { %7597 = vrot.lane.b32.xlu0 %v16272_v46, %s12788_s4  ;;  %v16310_v46 = vld [vmem:[#allocation31_spill] sm:$0xff] }
 0x9b4   : > { %v6013_v43 = vpop.xlane.xlu0 %6012 }
 0x9b5   : > { %6015 = vadd.xlane.f32.xlu1 %v6014_v1  ;;  %12301 = vrcp.f32 %v6013_v43 }
 0x9b6   : > { %7699 = vrot.lane.b32.xlu0 %v16273_v34, %s12788_s4 }
 0x9b8   : > { %v6357_v22 = vpop.permute.xlu0 %6356 }
 0x9b9   : > { %v6362_v54 = vsel %vm2292_vm2, %v6357_v22, 0 }
 0x9ba   : > { %11562 = vmatpush3.bf16.msra.mxu0 %v6362_v54  ;;  %7697 = vrot.lane.b32.xlu0 %v16274_v14, %s12788_s4 }
 0x9bb   : > { %11573 = vmatprep.subr.bf16.mxu0 %v16226_v61 }
 0x9bd   : > { %11564 = vmatmul.mubr.msk.bf16.vlgmr.msra.gmra.mrb[196].mxu0 %vm2096_vm3, %v6058_v30 }
 0x9be   : > { %7989 = vrot.lane.b32.xlu0 %v16275_v35, %s12788_s4  ;;  %11575 = vmatprep.mubr.msk.bf16.mxu0 %vm12785_vm0, %v16226_v61 }
 0x9bf   : > { %v12302_v36 = vpop.eup %12301 }
 0x9c0   : > { %v6049_v6 = vmul.f32 %v12302_v36, %v14730_v57  ;;  %v16316_v57 = vld [vmem:[#allocation44_spill] sm:$0xff] }
 0x9c2   : > { %8085 = vrot.lane.b32.xlu0 %v16276_v49, %s12788_s4  ;;  %v6065_v28 = vpack.c.bf16 %v6049_v6, %v6049_v6 }
 0x9c6   : > { %6788 = vrot.lane.b32.xlu1 %v13932_v51, %s12787_s15 }
 0x9ca   : > { %6997 = vrot.lane.b32.xlu1 %v13230_v4, %s12788_s4 }
 0x9ce   : > { %7047 = vrot.lane.b32.xlu1 %v13269_v32, %s12788_s4 }
 0x9d2   : > { %7097 = vrot.lane.b32.xlu1 %v13307_v56, %s12788_s4 }
 0x9d6   : > { %7147 = vrot.lane.b32.xlu1 %v13346_v17, %s12788_s4 }
 0x9da   : > { %7249 = vrot.lane.b32.xlu1 %v13337_v9, %s12788_s4  ;;  %v16309_v9 = vld [vmem:[#allocation27_spill] sm:$0xff] }
 0x9de   : > { %7247 = vrot.lane.b32.xlu1 %v13382_v39, %s12788_s4 }
 0x9e2   : > { %7349 = vrot.lane.b32.xlu1 %v13373_v7, %s12788_s4 }
 0x9e6   : > { %7347 = vrot.lane.b32.xlu1 %v16234_v53, %s12788_s4 }
 0x9e9   : > { %v14879_v4 = vpop.xlane.xlu0 %6018 }
 0x9ea   : > { %7449 = vrot.lane.b32.xlu1 %v16236_v18, %s12788_s4  ;;  %v16311_v18 = vld [vmem:[#allocation30_spill] sm:$0xff] }
 0x9ed   : > { %v6453_v32 = vpop.permute.xlu0 %6452 }
 0x9ee   : > { %v6458_v56 = vsel %vm2292_vm2, %v6453_v32, 0  ;;  %7447 = vrot.lane.b32.xlu1 %v16238_v59, %s12788_s4 }
 0x9ef   : > { %11574 = vmatpush3.bf16.msra.mxu0 %v6458_v56 }
 0x9f0   : > { %11585 = vmatprep.subr.bf16.mxu0 %v16226_v61 }
 0x9f2   : > { %7549 = vrot.lane.b32.xlu1 %v16309_v9, %s12788_s4 }
 0x9f3   : > { %v14889_v17 = vpop.f32.mrb[184].mxu0 }
 0x9f4   : > { %v11529_v7 = vpop.f32.mrb[185].mxu0 }
 0x9f5   : > { %v6113_v39 = vpop.f32.mrb[186].mxu0 }
 0x9f6   : > { %v11530_v53 = vpop.f32.mrb[187].mxu0  ;;  %7547 = vrot.lane.b32.xlu1 %v16310_v46, %s12788_s4 }
 0x9f7   : > { %v6645_v53 = vpop.permute.xlu0 %6644 }
 0x9f8   : > { %v6650_v36 = vsel %vm2292_vm2, %v6645_v53, 0 }
 0x9fa   : > { %7649 = vrot.lane.b32.xlu1 %v16311_v18, %s12788_s4  ;;  %v14895_v34 = vpop.f32.mrb[200].mxu1 }
 0x9fb   : > { %v6836_v59 = vpack.c.bf16 %v14895_v34, %v14889_v17  ;;  %v11535_v14 = vpop.f32.mrb[201].mxu1 }
 0x9fc   : > { %v6161_v35 = vpop.f32.mrb[202].mxu1 }
 0x9fd   : > { %v11536_v49 = vpop.f32.mrb[203].mxu1  ;;  %v6741_v35 = vpop.permute.xlu0 %6740 }
 0x9fe   : > { %7647 = vrot.lane.b32.xlu1 %v16312_v40, %s12788_s4 }
 0xa02   : > { %v14901_v31 = vpop.f32.mrb[188].mxu0  ;;  %7749 = vrot.lane.b32.xlu1 %v16313_v25, %s12788_s4 }
 0xa03   : > { %v11541_v47 = vpop.f32.mrb[189].mxu0 }
 0xa04   : > { %v6209_v0 = vpop.f32.mrb[190].mxu0 }
 0xa05   : > { %v11542_v12 = vpop.f32.mrb[191].mxu0  ;;  %v5998_v5 = vpop.xlane.xlu1 %5997 }
 0xa06   : > { %7747 = vrot.lane.b32.xlu1 %v16314_v42, %s12788_s4  ;;  %12303 = vrcp.f32 %v5998_v5  ;;  %v7000_v42 = vpop.permute.xlu0 %6999 }
 0xa07   : > { %12305 = vrcp.f32 %v14879_v4  ;;  %v7005_v6 = vsel %vm1359_vm1, %v7000_v42, 0 }
 0xa09   : > { %v6693_v23 = vpop.permute.xlu1 %6692 }
 0xa0a   : > { %8037 = vrot.lane.b32.xlu1 %v16315_v50, %s12788_s4  ;;  %v14910_v21 = vpop.f32.mrb[204].mxu1  ;;  %v6698_v10 = vsel %vm2292_vm2, %v6693_v23, 0  ;;  %v12101_v50 = vld [vmem:[#allocation8 + $0x20] sm:$0xff]  }
 0xa0b   : > { %v6837_v13 = vpack.c.bf16 %v14910_v21, %v14901_v31  ;;  %v11547_v2 = vpop.f32.mrb[205].mxu1  ;;  %11604 = vmatpush3.bf16.msra.mxu1 %v6698_v10 }
 0xa0c   : > { %v6257_v38 = vpop.f32.mrb[206].mxu1  ;;  %11615 = vmatprep.subr.bf16.mxu1 %v16226_v61  ;;  %v7050_v2 = vpop.permute.xlu0 %7049 }
 0xa0d   : > { %v11548_v19 = vpop.f32.mrb[207].mxu1  ;;  %v6746_v38 = vsel %vm2292_vm2, %v6741_v35, 0 }
 0xa0e   : > { %8133 = vrot.lane.b32.xlu1 %v16316_v57, %s12788_s4  ;;  %11606 = vmatmul.mubr.msk.bf16.vlgmr.msra.gmra.mrb[224].mxu1 %vm2096_vm3, %v6065_v28 }
 0xa0f   : > { %11617 = vmatprep.mubr.msk.bf16.mxu1 %vm12785_vm0, %v16226_v61 }
 0xa10   : > { %v12304_v58 = vpop.eup %12303  ;;  %v7100_v57 = vpop.permute.xlu0 %7099 }
 0xa11   : > { %v6044_v3 = vmul.f32 %v12304_v58, %v14787_v27  ;;  %v12306_v46 = vpop.eup %12305  ;;  %v7055_v58 = vsel %vm1359_vm1, %v7050_v2, 0 }
 0xa12   : > { %v6051_v49 = vmul.f32 %v12306_v46, %v14765_v33 }
 0xa13   : > { %v6060_v24 = vpack.c.bf16 %v6044_v3, %v6044_v3 }
 0xa14   : > { %v6067_v12 = vpack.c.bf16 %v6051_v49, %v6051_v49 }
 0xa15   : > { %11576 = vmatmul.mubr.msk.bf16.vlgmr.msra.gmra.mrb[200].mxu0 %vm2096_vm3, %v6060_v24  ;;  %v12102_v24 = vld [vmem:[#allocation8 + $0x28] sm:$0xff]  }
 0xa16   : > { %11586 = vmatpush3.bf16.msra.mxu0 %v6554_v44  ;;  %11587 = vmatprep.mubr.msk.bf16.mxu0 %vm12785_vm0, %v16226_v61 }
 0xa17   : > { %11597 = vmatprep.subr.bf16.mxu0 %v16226_v61 }
 0xa23   : > { %v14928_v11 = vpop.f32.mrb[208].mxu1 }
 0xa24   : > { %v11559_v20 = vpop.f32.mrb[209].mxu1 }
 0xa25   : > { %v6353_v41 = vpop.f32.mrb[210].mxu1 }
 0xa26   : > { %v11560_v52 = vpop.f32.mrb[211].mxu1 }
 0xa27   : > { %v7150_v52 = vpop.permute.xlu0 %7149 }
 0xa2b   : > { %v14930_v62 = vpop.f32.mrb[212].mxu1  ;;  %v7200_v34 = vpop.permute.xlu0 %7199 }
 0xa2c   : > { %v11571_v27 = vpop.f32.mrb[213].mxu1 }
 0xa2d   : > { %v6449_v43 = vpop.f32.mrb[214].mxu1 }
 0xa2e   : > { %v11572_v1 = vpop.f32.mrb[215].mxu1 }
 0xa33   : > { %v14932_v29 = vpop.f32.mrb[216].mxu1 }
 0xa34   : > { %v11583_v60 = vpop.f32.mrb[217].mxu1 }
 0xa35   : > { %v6545_v22 = vpop.f32.mrb[218].mxu1  ;;  %v7105_v60 = vsel %vm1359_vm1, %v7100_v57, 0 }
 0xa36   : > { %v11584_v54 = vpop.f32.mrb[219].mxu1  ;;  %v7155_v22 = vsel %vm1359_vm1, %v7150_v52, 0 }
 0xa3a   : > { %v6004_v30 = vpop.xlane.xlu1 %6003 }
 0xa3b   : > { %12307 = vrcp.f32 %v6004_v30  ;;  %v14935_v32 = vpop.f32.mrb[220].mxu1 }
 0xa3c   : > { %v11595_v56 = vpop.f32.mrb[221].mxu1 }
 0xa3d   : > { %v6641_v9 = vpop.f32.mrb[222].mxu1 }
 0xa3e   : > { %v6010_v7 = vpop.xlane.xlu1 %6009  ;;  %v11596_v39 = vpop.f32.mrb[223].mxu1 }
 0xa3f   : > { %12309 = vrcp.f32 %v6010_v7 }
 0xa42   : > { %v6016_v18 = vpop.xlane.xlu1 %6015 }
 0xa43   : > { %12311 = vrcp.f32 %v6016_v18 }
 0xa45   : > { %v12308_v14 = vpop.eup %12307 }
 0xa46   : > { %v6789_v40 = vpop.permute.xlu1 %6788  ;;  %v6046_v25 = vmul.f32 %v12308_v14, %v14828_v26 }
 0xa47   : > { %v6794_v4 = vsel %vm2292_vm2, %v6789_v40, 0 }
 0xa48   : > { %11616 = vmatpush3.bf16.msra.mxu1 %v6794_v4  ;;  %v6062_v47 = vpack.c.bf16 %v6046_v25, %v6046_v25 }
 0xa49   : > { %v12310_v0 = vpop.eup %12309  ;;  %11641 = vmatprep.subr.bf16.mxu1 %v16226_v61 }
 0xa4a   : > { %11588 = vmatmul.mubr.msk.bf16.vlgmr.msra.gmra.mrb[204].mxu0 %vm2096_vm3, %v6062_v47  ;;  %v6998_v5 = vpop.permute.xlu1 %6997  ;;  %v6048_v33 = vmul.f32 %v12310_v0, %v14835_v45 }
 0xa4b   : > { %11598 = vmatpush3.bf16.msra.mxu0 %v6650_v36  ;;  %11618 = vmatmul.mubr.msk.bf16.vlgmr.msra.gmra.mrb[228].mxu1 %vm2096_vm3, %v6067_v12 }
 0xa4c   : > { %11599 = vmatprep.mubr.msk.bf16.mxu0 %vm12785_vm0, %v16226_v61  ;;  %11609 = vmatprep.subr.bf16.mxu0 %v16226_v61  ;;  %v6064_v23 = vpack.c.bf16 %v6048_v33, %v6048_v33 }
 0xa4d   : > { %11643 = vmatprep.mubr.msk.bf16.mxu1 %vm12785_vm0, %v16226_v61  ;;  %v12312_v10 = vpop.eup %12311 }
 0xa4e   : > { %v7048_v26 = vpop.permute.xlu1 %7047  ;;  %v6050_v45 = vmul.f32 %v12312_v10, %v14841_v63  ;;  %v7198_v10 = vpop.permute.xlu0 %7197 }
 0xa50   : > { %v6066_v3 = vpack.c.bf16 %v6050_v45, %v6050_v45 }
 0xa51   : > { %11642 = vmatpush3.bf16.xpose.msra.mxu1 %v7005_v6 }
 0xa52   : > { %11600 = vmatmul.mubr.msk.bf16.vlgmr.msra.gmra.mrb[208].mxu0 %vm2096_vm3, %v6064_v23  ;;  %v7098_v19 = vpop.permute.xlu1 %7097  ;;  %11647 = vmatprep.subr.bf16.mxu1 %v16226_v61  ;;  %v7300_v2 = vpop.permute.xlu0 %7299 }
 0xa53   : > { %11610 = vmatpush3.bf16.msra.mxu0 %v6746_v38  ;;  %11611 = vmatprep.mubr.msk.bf16.mxu0 %vm12785_vm0, %v16226_v61 }
 0xa54   : > { %11621 = vmatprep.subr.bf16.mxu0 %v12101_v50 }
 0xa56   : > { %v7148_v28 = vpop.permute.xlu1 %7147 }
 0xa58   : > { %11644 = vmatmul.mubr.msk.bf16.vlgmr.msra.gmra.mrb[232].mxu1 %vm1359_vm1, %v6998_v5 }
 0xa59   : > { %11648 = vmatpush3.bf16.xpose.msra.mxu1 %v7055_v58  ;;  %11649 = vmatprep.mubr.msk.bf16.mxu1 %vm12785_vm0, %v16226_v61 }
 0xa5a   : > { %11612 = vmatmul.mubr.msk.bf16.vlgmr.msra.gmra.mrb[212].mxu0 %vm2096_vm3, %v6066_v3  ;;  %v7250_v44 = vpop.permute.xlu1 %7249  ;;  %11653 = vmatprep.subr.bf16.mxu1 %v16226_v61 }
 0xa5b   : > { %11622 = vmatpush3.bf16.msra.mxu0 %v12101_v50  ;;  %v6302_v20 = vpop.f32.mrb[192].mxu0  ;;  %11625 = vmatprep.mubr.msk.bf16.mxu0 %vm1359_vm1, %v6836_v59  ;;  %v7205_v59 = vsel %vm1359_vm1, %v7200_v34, 0  ;;  %v7255_v21 = vsel %vm1359_vm1, %v7250_v44, 0 }
 0xa5c   : > { %v6838_v63 = vpack.c.bf16 %v14928_v11, %v6302_v20  ;;  %v11553_v41 = vpop.f32.mrb[193].mxu0  ;;  %11623 = vmatprep.subr.bf16.mxu0 %v12102_v24  ;;  %v7298_v20 = vpop.permute.xlu0 %7297 }
 0xa5d   : > { %v6305_v27 = vpop.f32.mrb[194].mxu0 }
 0xa5e   : > { %v11554_v43 = vpop.f32.mrb[195].mxu0  ;;  %v7248_v1 = vpop.permute.xlu1 %7247 }
 0xa5f   : > { %11624 = vmatpush3.bf16.msra.mxu0 %v12102_v24 }
 0xa60   : > { %11650 = vmatmul.mubr.msk.bf16.vlgmr.msra.gmra.mrb[236].mxu1 %vm1359_vm1, %v7048_v26  ;;  %11665 = vmatprep.subr.bf16.mxu0 %v16226_v61 }
 0xa61   : > { %11654 = vmatpush3.bf16.xpose.msra.mxu1 %v7105_v60  ;;  %11655 = vmatprep.mubr.msk.bf16.mxu1 %vm12785_vm0, %v16226_v61 }
 0xa62   : > { %v7350_v17 = vpop.permute.xlu1 %7349  ;;  %11626 = vmatmul.mubr.msk.bf16.vlgmr.msra.gmra.mrb[152].mxu0 %vm1359_vm1, %v6837_v13  ;;  %11659 = vmatprep.subr.bf16.mxu1 %v16226_v61 }
 0xa63   : > { %11629 = vmatprep.mubr.msk.bf16.mxu0 %vm1359_vm1, %v6838_v63  ;;  %v7355_v54 = vsel %vm1359_vm1, %v7350_v17, 0 }
 0xa66   : > { %v7348_v11 = vpop.permute.xlu1 %7347 }
 0xa68   : > { %11666 = vmatpush3.bf16.xpose.msra.mxu0 %v7205_v59  ;;  %11656 = vmatmul.mubr.msk.bf16.vlgmr.msra.gmra.mrb[240].mxu1 %vm1359_vm1, %v7098_v19 }
 0xa69   : > { %11660 = vmatpush3.bf16.xpose.msra.mxu1 %v7155_v22  ;;  %11661 = vmatprep.mubr.msk.bf16.mxu1 %vm12785_vm0, %v16226_v61 }
 0xa6a   : > { %11671 = vmatprep.subr.bf16.mxu1 %v16226_v61  ;;  %11677 = vmatprep.subr.bf16.mxu0 %v16226_v61  ;;  %v7450_v31 = vpop.permute.xlu1 %7449 }
 0xa6b   : > { %v7455_v9 = vsel %vm1359_vm1, %v7450_v31, 0 }
 0xa6e   : > { %v7448_v13 = vpop.permute.xlu1 %7447 }
 0xa70   : > { %11662 = vmatmul.mubr.msk.bf16.vlgmr.msra.gmra.mrb[244].mxu1 %vm1359_vm1, %v7148_v28 }
 0xa71   : > { %11672 = vmatpush3.bf16.xpose.msra.mxu1 %v7255_v21  ;;  %11673 = vmatprep.mubr.msk.bf16.mxu1 %vm12785_vm0, %v16226_v61 }
 0xa72   : > { %11683 = vmatprep.subr.bf16.mxu1 %v16226_v61  ;;  %v7550_v30 = vpop.permute.xlu1 %7549 }
 0xa73   : > { %v7555_v39 = vsel %vm1359_vm1, %v7550_v30, 0 }
 0xa76   : > { %v7548_v56 = vpop.permute.xlu1 %7547 }
 0xa78   : > { %11674 = vmatmul.mubr.msk.bf16.vlgmr.msra.gmra.mrb[248].mxu1 %vm1359_vm1, %v7248_v1  ;;  %v7400_v1 = vpop.permute.xlu0 %7399 }
 0xa79   : > { %11684 = vmatpush3.bf16.xpose.msra.mxu1 %v7355_v54  ;;  %11685 = vmatprep.mubr.msk.bf16.mxu1 %vm12785_vm0, %v16226_v61 }
 0xa7a   : > { %11695 = vmatprep.subr.bf16.mxu1 %v16226_v61  ;;  %v7650_v7 = vpop.permute.xlu1 %7649 }
 0xa7b   : > { %v7655_v46 = vsel %vm1359_vm1, %v7650_v7, 0 }
 0xa7c   : > { %v7398_v30 = vpop.permute.xlu0 %7397 }
 0xa7e   : > { %v7648_v53 = vpop.permute.xlu1 %7647 }
 0xa80   : > { %11686 = vmatmul.mubr.msk.bf16.vlgmr.msra.gmra.mrb[252].mxu1 %vm1359_vm1, %v7348_v11 }
 0xa81   : > { %11696 = vmatpush3.bf16.xpose.msra.mxu1 %v7455_v9  ;;  %11697 = vmatprep.mubr.msk.bf16.mxu1 %vm12785_vm0, %v16226_v61 }
 0xa82   : > { %11707 = vmatprep.subr.bf16.mxu1 %v16226_v61  ;;  %v7750_v14 = vpop.permute.xlu1 %7749 }
 0xa83   : > { %v7755_v47 = vsel %vm1359_vm1, %v7750_v14, 0  ;;  %v7500_v14 = vpop.permute.xlu0 %7499 }
 0xa86   : > { %v7748_v4 = vpop.permute.xlu1 %7747 }
 0xa88   : > { %11698 = vmatmul.mubr.msk.bf16.vlgmr.msra.gmra.mrb[0].mxu1 %vm1359_vm1, %v7448_v13 }
 0xa89   : > { %11708 = vmatpush3.bf16.xpose.msra.mxu1 %v7555_v39  ;;  %11709 = vmatprep.mubr.msk.bf16.mxu1 %vm12785_vm0, %v16226_v61 }
 0xa8a   : > { %11719 = vmatprep.subr.bf16.mxu1 %v16226_v61 }
 0xa90   : > { %v6398_v18 = vpop.f32.mrb[196].mxu0  ;;  %11710 = vmatmul.mubr.msk.bf16.vlgmr.msra.gmra.mrb[4].mxu1 %vm1359_vm1, %v7548_v56 }
 0xa91   : > { %v6839_v35 = vpack.c.bf16 %v14930_v62, %v6398_v18  ;;  %v11565_v49 = vpop.f32.mrb[197].mxu0  ;;  %11720 = vmatpush3.bf16.xpose.msra.mxu1 %v7655_v46  ;;  %11721 = vmatprep.mubr.msk.bf16.mxu1 %vm12785_vm0, %v16226_v61  ;;  %v8038_v62 = vpop.permute.xlu1 %8037  ;;  %v7305_v18 = vsel %vm1359_vm1, %v7300_v2, 0 }
 0xa92   : > { %v6401_v40 = vpop.f32.mrb[198].mxu0  ;;  %11731 = vmatprep.subr.bf16.mxu1 %v16226_v61  ;;  %v8043_v0 = vsel %vm2292_vm2, %v8038_v62, 0  ;;  %v7498_v62 = vpop.permute.xlu0 %7497 }
 0xa93   : > { %v11566_v25 = vpop.f32.mrb[199].mxu0  ;;  %11630 = vmatmul.mubr.msk.bf16.gmra.mrb[156].mxu0 %vm1359_vm1, %v6839_v35 }
 0xa98   : > { %11722 = vmatmul.mubr.msk.bf16.vlgmr.msra.gmra.mrb[8].mxu1 %vm1359_vm1, %v7648_v53 }
 0xa99   : > { %11732 = vmatpush3.bf16.xpose.msra.mxu1 %v7755_v47  ;;  %11733 = vmatprep.mubr.msk.bf16.mxu1 %vm12785_vm0, %v16226_v61 }
 0xa9a   : > { %11743 = vmatprep.subr.bf16.mxu1 %v16226_v61 }
 0xaa0   : > { %11734 = vmatmul.mubr.msk.bf16.vlgmr.msra.gmra.mrb[12].mxu1 %vm1359_vm1, %v7748_v4 }
 0xaa1   : > { %11744 = vmatpush3.bf16.msra.mxu1 %v8043_v0  ;;  %11745 = vmatprep.mubr.msk.bf16.mxu1 %vm12785_vm0, %v16226_v61  ;;  %v7405_v0 = vsel %vm1359_vm1, %v7400_v1, 0 }
 0xaa2   : > { %11755 = vmatprep.subr.bf16.mxu1 %v16226_v61 }
 0xae1   : > { %v6734_v12 = vpop.f32.mrb[224].mxu1 }
 0xae2   : > { %v11607_v36 = vpop.f32.mrb[225].mxu1 }
 0xae3   : > { %v6737_v5 = vpop.f32.mrb[226].mxu1 }
 0xae4   : > { %v11608_v42 = vpop.f32.mrb[227].mxu1 }
 0xae5   : > { %v7600_v42 = vpop.permute.xlu0 %7599 }
 0xae8   : > { %v6494_v33 = vpop.f32.mrb[200].mxu0 }
 0xae9   : > { %v6840_v26 = vpack.c.bf16 %v14932_v29, %v6494_v33  ;;  %v11577_v6 = vpop.f32.mrb[201].mxu0 }
 0xaea   : > { %v6497_v23 = vpop.f32.mrb[202].mxu0 }
 0xaeb   : > { %v11578_v50 = vpop.f32.mrb[203].mxu0  ;;  %11633 = vmatprep.mubr.msk.bf16.mxu0 %vm1359_vm1, %v6840_v26  ;;  %v7505_v23 = vsel %vm1359_vm1, %v7500_v14, 0 }
 0xaec   : > { %v7598_v50 = vpop.permute.xlu0 %7597 }
 0xb1d   : > { %v6590_v38 = vpop.f32.mrb[204].mxu0 }
 0xb1e   : > { %v6841_v19 = vpack.c.bf16 %v14935_v32, %v6590_v38  ;;  %v11589_v45 = vpop.f32.mrb[205].mxu0  ;;  %v6830_v28 = vpop.f32.mrb[228].mxu1  ;;  %v15031_v32 = vld [vmem:[%s16222_s11] sm:$0xff] }
 0xb1f   : > { %v6593_v57 = vpop.f32.mrb[206].mxu0  ;;  %v11619_v58 = vpop.f32.mrb[229].mxu1 }
 0xb20   : > { %v11590_v3 = vpop.f32.mrb[207].mxu0  ;;  %v6833_v24 = vpop.f32.mrb[230].mxu1  ;;  %11634 = vmatmul.mubr.msk.bf16.gmra.mrb[160].mxu0 %vm1359_vm1, %v6841_v19  ;;  %v7605_v57 = vsel %vm1359_vm1, %v7600_v42, 0 }
 0xb21   : > { %v11620_v44 = vpop.f32.mrb[231].mxu1  ;;  %v7700_v58 = vpop.permute.xlu0 %7699 }
 0xb25   : > { %v6686_v29 = vpop.f32.mrb[208].mxu0 }
 0xb26   : > { %v6842_v63 = vpack.c.bf16 %v6734_v12, %v6686_v29  ;;  %v11601_v41 = vpop.f32.mrb[209].mxu0 }
 0xb27   : > { %v6689_v52 = vpop.f32.mrb[210].mxu0  ;;  %v7698_v41 = vpop.permute.xlu0 %7697 }
 0xb28   : > { %v11602_v27 = vpop.f32.mrb[211].mxu0  ;;  %11637 = vmatprep.mubr.msk.bf16.mxu0 %vm1359_vm1, %v6842_v63  ;;  %v7705_v52 = vsel %vm1359_vm1, %v7700_v58, 0 }
 0xb2b   : > { %v7041_v43 = vpop.f32.mrb[232].mxu1 }
 0xb2c   : > { %v15034_v60 = vadd.f32 %v15031_v32, %v7041_v43  ;;  %v11645_v17 = vpop.f32.mrb[233].mxu1 }
 0xb2d   : > { %v6782_v34 = vpop.f32.mrb[212].mxu0  ;;  %v7044_v59 = vpop.f32.mrb[234].mxu1 }
 0xb2e   : > { %v6843_v11 = vpack.c.bf16 %v6830_v28, %v6782_v34  ;;  %v11613_v22 = vpop.f32.mrb[213].mxu0  ;;  %v11646_v31 = vpop.f32.mrb[235].mxu1  ;;  %v7797_v21 = vsel %vm2096_vm3, %v15034_v60, -inf }
 0xb2f   : > { %v6785_v13 = vpop.f32.mrb[214].mxu0  ;;  %7798 = vmax.xlane.f32.xlu0 %v7797_v21  ;;  %v7990_v17 = vpop.permute.xlu0 %7989 }
 0xb30   : > { %v11614_v54 = vpop.f32.mrb[215].mxu0  ;;  %11638 = vmatmul.mubr.msk.bf16.gmra.mrb[164].mxu0 %vm1359_vm1, %v6843_v11  ;;  %v7995_v22 = vsel %vm2292_vm2, %v7990_v17, 0 }
 0xb31   : > { %11667 = vmatprep.mubr.msk.bf16.mxu0 %vm12785_vm0, %v16226_v61 }
 0xb33   : > { %v7091_v56 = vpop.f32.mrb[236].mxu1 }
 0xb34   : > { %v15042_v9 = vadd.f32 %v15031_v32, %v7091_v56  ;;  %v11651_v7 = vpop.f32.mrb[237].mxu1 }
 0xb35   : > { %v7094_v39 = vpop.f32.mrb[238].mxu1 }
 0xb36   : > { %v11652_v53 = vpop.f32.mrb[239].mxu1  ;;  %v7800_v46 = vsel %vm2096_vm3, %v15042_v9, -inf }
 0xb37   : > { %7801 = vmax.xlane.f32.xlu1 %v7800_v46 }
 0xb38   : > { %11668 = vmatmul.mubr.msk.bf16.vlgmr.msra.gmra.mrb[216].mxu0 %vm1359_vm1, %v7198_v10 }
 0xb39   : > { %11678 = vmatpush3.bf16.xpose.msra.mxu0 %v7305_v18  ;;  %11679 = vmatprep.mubr.msk.bf16.mxu0 %vm12785_vm0, %v16226_v61 }
 0xb3a   : > { %11689 = vmatprep.subr.bf16.mxu0 %v16226_v61 }
 0xb3b   : > { %v7141_v35 = vpop.f32.mrb[240].mxu1 }
 0xb3c   : > { %v15052_v49 = vadd.f32 %v15031_v32, %v7141_v35  ;;  %v11657_v40 = vpop.f32.mrb[241].mxu1 }
 0xb3d   : > { %v7144_v25 = vpop.f32.mrb[242].mxu1 }
 0xb3e   : > { %v11658_v4 = vpop.f32.mrb[243].mxu1  ;;  %v7803_v47 = vsel %vm2096_vm3, %v15052_v49, -inf }
 0xb3f   : > { %7804 = vmax.xlane.f32.xlu0 %v7803_v47 }
 0xb40   : > { %11680 = vmatmul.mubr.msk.bf16.vlgmr.msra.gmra.mrb[220].mxu0 %vm1359_vm1, %v7298_v20 }
 0xb41   : > { %11690 = vmatpush3.bf16.xpose.msra.mxu0 %v7405_v0  ;;  %11691 = vmatprep.mubr.msk.bf16.mxu0 %vm12785_vm0, %v16226_v61  ;;  %v15116_v0 = vpop.permute.xlu0 %8085 }
 0xb42   : > { %11701 = vmatprep.subr.bf16.mxu0 %v16226_v61 }
 0xb43   : > { %v7191_v12 = vpop.f32.mrb[244].mxu1 }
 0xb44   : > { %v15062_v36 = vadd.f32 %v15031_v32, %v7191_v12  ;;  %v11663_v5 = vpop.f32.mrb[245].mxu1 }
 0xb45   : > { %v7194_v33 = vpop.f32.mrb[246].mxu1 }
 0xb46   : > { %v11664_v26 = vpop.f32.mrb[247].mxu1  ;;  %v7806_v6 = vsel %vm2096_vm3, %v15062_v36, -inf  ;;  %v15119_v33 = vpop.permute.xlu1 %8133 }
 0xb47   : > { %7807 = vmax.xlane.f32.xlu0 %v7806_v6 }
 0xb48   : > { %11692 = vmatmul.mubr.msk.bf16.vlgmr.msra.gmra.mrb[224].mxu0 %vm1359_vm1, %v7398_v30 }
 0xb49   : > { %11702 = vmatpush3.bf16.xpose.msra.mxu0 %v7505_v23  ;;  %11703 = vmatprep.mubr.msk.bf16.mxu0 %vm12785_vm0, %v16226_v61 }
 0xb4a   : > { %11713 = vmatprep.subr.bf16.mxu0 %v16226_v61 }
 0xb4b   : > { %v7291_v10 = vpop.f32.mrb[248].mxu1 }
 0xb4c   : > { %v15072_v2 = vadd.f32 %v15031_v32, %v7291_v10  ;;  %v11675_v38 = vpop.f32.mrb[249].mxu1 }
 0xb4d   : > { %v7294_v19 = vpop.f32.mrb[250].mxu1 }
 0xb4e   : > { %v11676_v45 = vpop.f32.mrb[251].mxu1  ;;  %v7812_v28 = vsel %vm2096_vm3, %v15072_v2, -inf }
 0xb4f   : > { %7813 = vmax.xlane.f32.xlu1 %v7812_v28 }
 0xb50   : > { %11704 = vmatmul.mubr.msk.bf16.vlgmr.msra.gmra.mrb[228].mxu0 %vm1359_vm1, %v7498_v62 }
 0xb51   : > { %11714 = vmatpush3.bf16.xpose.msra.mxu0 %v7605_v57  ;;  %11715 = vmatprep.mubr.msk.bf16.mxu0 %vm12785_vm0, %v16226_v61 }
 0xb52   : > { %11725 = vmatprep.subr.bf16.mxu0 %v16226_v61 }
 0xb53   : > { %v7391_v3 = vpop.f32.mrb[252].mxu1 }
 0xb54   : > { %v15082_v24 = vadd.f32 %v15031_v32, %v7391_v3  ;;  %v11687_v44 = vpop.f32.mrb[253].mxu1 }
 0xb55   : > { %v7394_v29 = vpop.f32.mrb[254].mxu1 }
 0xb56   : > { %v11688_v20 = vpop.f32.mrb[255].mxu1  ;;  %v7818_v63 = vsel %vm2096_vm3, %v15082_v24, -inf }
 0xb57   : > { %7819 = vmax.xlane.f32.xlu1 %v7818_v63 }
 0xb58   : > { %11716 = vmatmul.mubr.msk.bf16.vlgmr.msra.gmra.mrb[232].mxu0 %vm1359_vm1, %v7598_v50 }
 0xb59   : > { %11726 = vmatpush3.bf16.xpose.msra.mxu0 %v7705_v52  ;;  %11727 = vmatprep.mubr.msk.bf16.mxu0 %vm12785_vm0, %v16226_v61 }
 0xb5a   : > { %11737 = vmatprep.subr.bf16.mxu0 %v16226_v61 }
 0xb5b   : > { %v7491_v27 = vpop.f32.mrb[0].mxu1 }
 0xb5c   : > { %v15092_v43 = vadd.f32 %v15031_v32, %v7491_v27  ;;  %v11699_v1 = vpop.f32.mrb[1].mxu1 }
 0xb5d   : > { %v7494_v34 = vpop.f32.mrb[2].mxu1 }
 0xb5e   : > { %v11700_v59 = vpop.f32.mrb[3].mxu1  ;;  %v7824_v11 = vsel %vm2096_vm3, %v15092_v43, -inf }
 0xb5f   : > { %7825 = vmax.xlane.f32.xlu1 %v7824_v11 }
 0xb60   : > { %11728 = vmatmul.mubr.msk.bf16.vlgmr.msra.gmra.mrb[236].mxu0 %vm1359_vm1, %v7698_v41 }
 0xb61   : > { %11738 = vmatpush3.bf16.msra.mxu0 %v7995_v22  ;;  %11739 = vmatprep.mubr.msk.bf16.mxu0 %vm12785_vm0, %v16226_v61 }
 0xb62   : > { %11749 = vmatprep.subr.bf16.mxu0 %v16226_v61 }
 0xb63   : > { %v7591_v31 = vpop.f32.mrb[4].mxu1 }
 0xb64   : > { %v15102_v21 = vadd.f32 %v15031_v32, %v7591_v31  ;;  %v11711_v13 = vpop.f32.mrb[5].mxu1 }
 0xb65   : > { %v7594_v54 = vpop.f32.mrb[6].mxu1 }
 0xb66   : > { %v11712_v30 = vpop.f32.mrb[7].mxu1  ;;  %v7830_v56 = vsel %vm2096_vm3, %v15102_v21, -inf }
 0xb67   : > { %7831 = vmax.xlane.f32.xlu1 %v7830_v56 }
 0xb6b   : > { %v7691_v7 = vpop.f32.mrb[8].mxu1 }
 0xb6c   : > { %v15107_v39 = vadd.f32 %v15031_v32, %v7691_v7  ;;  %v11723_v53 = vpop.f32.mrb[9].mxu1  ;;  %v16317_v7 = vld [vmem:[#allocation45_spill] sm:$0xff] }
 0xb6d   : > { %v7694_v46 = vpop.f32.mrb[10].mxu1 }
 0xb6e   : > { %v11724_v18 = vpop.f32.mrb[11].mxu1  ;;  %v7836_v14 = vsel %vm2096_vm3, %v15107_v39, -inf }
 0xb6f   : > { %7837 = vmax.xlane.f32.xlu1 %v7836_v14 }
 0xb73   : > { %v7791_v35 = vpop.f32.mrb[12].mxu1 }
 0xb74   : > { %v15112_v40 = vadd.f32 %v15031_v32, %v7791_v35  ;;  %v11735_v25 = vpop.f32.mrb[13].mxu1 }
 0xb75   : > { %v7794_v4 = vpop.f32.mrb[14].mxu1  ;;  %v16319_v25 = vld [vmem:[#allocation49_spill] sm:$0xff] }
 0xb76   : > { %v11736_v47 = vpop.f32.mrb[15].mxu1  ;;  %v7842_v62 = vsel %vm2096_vm3, %v15112_v40, -inf }
 0xb77   : > { %7843 = vmax.xlane.f32.xlu1 %v7842_v62  ;;  %v16320_v47 = vld [vmem:[#allocation48_spill] sm:$0xff] }
 0xbbc   : > { %v7799_v12 = vpop.xlane.xlu0 %7798 }
 0xbbd   : > { %v7845_v5 = vsub.f32 %v15034_v60, %v7799_v12 }
 0xbbf   : > { %v7861_v42 = vmul.f32 1.442695, %v7845_v5 }
 0xbc1   : > { %12313 = vpow2.f32 %v7861_v42 }
 0xbc4   : > { %v7802_v26 = vpop.xlane.xlu1 %7801 }
 0xbc5   : > { %v7846_v6 = vsub.f32 %v15042_v9, %v7802_v26 }
 0xbc7   : > { %v7863_v23 = vmul.f32 1.442695, %v7846_v6  ;;  %v16321_v6 = vld [vmem:[#allocation35_spill] sm:$0xff] }
 0xbc9   : > { %12315 = vpow2.f32 %v7863_v23 }
 0xbcb   : > { %v15122_v50 = vpop.eup %12313 }
 0xbcc   : > { %v7805_v10 = vpop.xlane.xlu0 %7804  ;;  %v7893_v38 = vsel %vm2096_vm3, %v15122_v50, 0.0 }
 0xbcd   : > { %v7847_v19 = vsub.f32 %v15052_v49, %v7805_v10  ;;  %7894 = vadd.xlane.f32.xlu0 %v7893_v38 }
 0xbcf   : > { %v7865_v45 = vmul.f32 1.442695, %v7847_v19 }
 0xbd1   : > { %12317 = vpow2.f32 %v7865_v45 }
 0xbd3   : > { %v15127_v60 = vpop.eup %12315 }
 0xbd4   : > { %v7808_v28 = vpop.xlane.xlu0 %7807  ;;  %v7896_v57 = vsel %vm2096_vm3, %v15127_v60, 0.0 }
 0xbd5   : > { %v7848_v9 = vsub.f32 %v15062_v36, %v7808_v28  ;;  %7897 = vadd.xlane.f32.xlu1 %v7896_v57 }
 0xbd7   : > { %v7867_v58 = vmul.f32 1.442695, %v7848_v9 }
 0xbd9   : > { %12319 = vpow2.f32 %v7867_v58 }
 0xbdb   : > { %v15132_v3 = vpop.eup %12317 }
 0xbdc   : > { %v7814_v44 = vpop.xlane.xlu1 %7813  ;;  %v7899_v49 = vsel %vm2096_vm3, %v15132_v3, 0.0 }
 0xbdd   : > { %v7850_v29 = vsub.f32 %v15072_v2, %v7814_v44  ;;  %7900 = vadd.xlane.f32.xlu0 %v7899_v49 }
 0xbdf   : > { %v7871_v20 = vmul.f32 1.442695, %v7850_v29 }
 0xbe1   : > { %12321 = vpow2.f32 %v7871_v20 }
 0xbe3   : > { %v15137_v63 = vpop.eup %12319 }
 0xbe4   : > { %v7820_v41 = vpop.xlane.xlu1 %7819  ;;  %v7902_v36 = vsel %vm2096_vm3, %v15137_v63, 0.0 }
 0xbe5   : > { %v7852_v52 = vsub.f32 %v15082_v24, %v7820_v41  ;;  %7903 = vadd.xlane.f32.xlu1 %v7902_v36 }
 0xbe7   : > { %v7875_v27 = vmul.f32 1.442695, %v7852_v52 }
 0xbe9   : > { %12323 = vpow2.f32 %v7875_v27 }
 0xbeb   : > { %v15142_v1 = vpop.eup %12321 }
 0xbec   : > { %v7826_v17 = vpop.xlane.xlu1 %7825  ;;  %v7908_v2 = vsel %vm2096_vm3, %v15142_v1, 0.0 }
 0xbed   : > { %v7854_v34 = vsub.f32 %v15092_v43, %v7826_v17  ;;  %7909 = vadd.xlane.f32.xlu1 %v7908_v2 }
 0xbef   : > { %v7879_v59 = vmul.f32 1.442695, %v7854_v34 }
 0xbf1   : > { %12325 = vpow2.f32 %v7879_v59 }
 0xbf3   : > { %v15147_v11 = vpop.eup %12323 }
 0xbf4   : > { %v7832_v22 = vpop.xlane.xlu1 %7831  ;;  %v7914_v24 = vsel %vm2096_vm3, %v15147_v11, 0.0 }
 0xbf5   : > { %v7856_v31 = vsub.f32 %v15102_v21, %v7832_v22  ;;  %7915 = vadd.xlane.f32.xlu1 %v7914_v24  ;;  %v16318_v21 = vld [vmem:[#allocation47_spill] sm:$0xff] }
 0xbf7   : > { %v7883_v13 = vmul.f32 1.442695, %v7856_v31 }
 0xbf9   : > { %12327 = vpow2.f32 %v7883_v13 }
 0xbfb   : > { %v15152_v54 = vpop.eup %12325 }
 0xbfc   : > { %v7920_v30 = vsel %vm2096_vm3, %v15152_v54, 0.0  ;;  %v7838_v22 = vpop.xlane.xlu1 %7837 }
 0xbfd   : > { %7921 = vadd.xlane.f32.xlu0 %v7920_v30  ;;  %v7858_v24 = vsub.f32 %v15107_v39, %v7838_v22 }
 0xbff   : > { %v7887_v31 = vmul.f32 1.442695, %v7858_v24 }
 0xc01   : > { %12329 = vpow2.f32 %v7887_v31 }
 0xc03   : > { %v15156_v43 = vpop.eup %12327 }
 0xc04   : > { %v7926_v56 = vsel %vm2096_vm3, %v15156_v43, 0.0 }
 0xc05   : > { %7927 = vadd.xlane.f32.xlu0 %v7926_v56 }
 0xc06   : > { %8229 = vrot.lane.b32.xlu1 %v16317_v7, %s12788_s4 }
 0xc0a   : > { %8325 = vrot.lane.b32.xlu1 %v16318_v21, %s12788_s4  ;;  %v15200_v21 = vpop.xlane.xlu1 %7843 }
 0xc0b   : > { %v7241_v53 = vpop.f32.mrb[216].mxu0  ;;  %v15198_v7 = vpop.eup %12329 }
 0xc0c   : > { %v15165_v46 = vadd.f32 %v15031_v32, %v7241_v53  ;;  %v11669_v18 = vpop.f32.mrb[217].mxu0  ;;  %v7932_v39 = vsel %vm2096_vm3, %v15198_v7, 0.0 }
 0xc0d   : > { %v7244_v14 = vpop.f32.mrb[218].mxu0 }
 0xc0e   : > { %v11670_v35 = vpop.f32.mrb[219].mxu0  ;;  %8421 = vrot.lane.b32.xlu1 %v16319_v25, %s12788_s4  ;;  %v7809_v4 = vsel %vm2096_vm3, %v15165_v46, -inf }
 0xc0f   : > { %7810 = vmax.xlane.f32.xlu0 %v7809_v4  ;;  %v8091_v4 = vsel %vm2292_vm2, %v15116_v0, 0 }
 0xc12   : > { %8469 = vrot.lane.b32.xlu1 %v16320_v47, %s12788_s4 }
 0xc13   : > { %v7341_v62 = vpop.f32.mrb[220].mxu0 }
 0xc14   : > { %v15174_v12 = vadd.f32 %v15031_v32, %v7341_v62  ;;  %v11681_v5 = vpop.f32.mrb[221].mxu0 }
 0xc15   : > { %v7344_v42 = vpop.f32.mrb[222].mxu0 }
 0xc16   : > { %v11682_v26 = vpop.f32.mrb[223].mxu0  ;;  %8517 = vrot.lane.b32.xlu1 %v16321_v6, %s12788_s4  ;;  %v7815_v23 = vsel %vm2096_vm3, %v15174_v12, -inf }
 0xc17   : > { %7816 = vmax.xlane.f32.xlu0 %v7815_v23 }
 0xc1b   : > { %v7441_v10 = vpop.f32.mrb[224].mxu0 }
 0xc1c   : > { %v15181_v38 = vadd.f32 %v15031_v32, %v7441_v10  ;;  %v11693_v19 = vpop.f32.mrb[225].mxu0 }
 0xc1d   : > { %v7444_v45 = vpop.f32.mrb[226].mxu0 }
 0xc1e   : > { %v11694_v28 = vpop.f32.mrb[227].mxu0  ;;  %v7821_v57 = vsel %vm2096_vm3, %v15181_v38, -inf }
 0xc1f   : > { %7822 = vmax.xlane.f32.xlu0 %v7821_v57 }
 0xc23   : > { %v7541_v9 = vpop.f32.mrb[228].mxu0 }
 0xc24   : > { %v15186_v58 = vadd.f32 %v15031_v32, %v7541_v9  ;;  %v11705_v44 = vpop.f32.mrb[229].mxu0 }
 0xc25   : > { %v7544_v49 = vpop.f32.mrb[230].mxu0 }
 0xc26   : > { %v11706_v29 = vpop.f32.mrb[231].mxu0  ;;  %v7827_v20 = vsel %vm2096_vm3, %v15186_v58, -inf }
 0xc27   : > { %7828 = vmax.xlane.f32.xlu0 %v7827_v20 }
 0xc2b   : > { %v7641_v41 = vpop.f32.mrb[232].mxu0 }
 0xc2c   : > { %v11717_v36 = vpop.f32.mrb[233].mxu0  ;;  %v15194_v13 = vadd.f32 %v15031_v32, %v7641_v41 }
 0xc2d   : > { %v7644_v52 = vpop.f32.mrb[234].mxu0 }
 0xc2e   : > { %v11718_v27 = vpop.f32.mrb[235].mxu0  ;;  %v7833_v56 = vsel %vm2096_vm3, %v15194_v13, -inf }
 0xc33   : > { %v7741_v17 = vpop.f32.mrb[236].mxu0 }
 0xc34   : > { %v11729_v2 = vpop.f32.mrb[237].mxu0 }
 0xc35   : > { %v7744_v34 = vpop.f32.mrb[238].mxu0 }
 0xc36   : > { %v11730_v59 = vpop.f32.mrb[239].mxu0 }
 0xc3d   : > { %8181 = vrot.lane.b32.xlu0 %v16306_v55, %s12788_s4  ;;  %v15203_v55 = vadd.f32 %v15031_v32, %v7741_v17 }
 0xc3f   : > { %v7839_v18 = vsel %vm2096_vm3, %v15203_v55, -inf }
 0xc5a   : > { %v7895_v30 = vpop.xlane.xlu0 %7894 }
 0xc5b   : > { %12331 = vrcp.f32 %v7895_v30 }
 0xc5c   : > { %7834 = vmax.xlane.f32.xlu0 %v7833_v56 }
 0xc60   : > { %7933 = vadd.xlane.f32.xlu0 %v7932_v39 }
 0xc62   : > { %v7898_v53 = vpop.xlane.xlu1 %7897 }
 0xc63   : > { %12333 = vrcp.f32 %v7898_v53 }
 0xc64   : > { %7840 = vmax.xlane.f32.xlu0 %v7839_v18 }
 0xc65   : > { %v12332_v14 = vpop.eup %12331 }
 0xc66   : > { %v7957_v35 = vmul.f32 %v12332_v14, %v15122_v50  ;;  %v8139_v50 = vsel %vm2292_vm2, %v15119_v33, 0 }
 0xc68   : > { %v7973_v25 = vpack.c.bf16 %v7957_v35, %v7957_v35 }
 0xc6a   : > { %11740 = vmatmul.mubr.msk.bf16.vlgmr.msra.gmra.mrb[240].mxu0 %vm2096_vm3, %v7973_v25  ;;  %v7901_v32 = vpop.xlane.xlu0 %7900 }
 0xc6b   : > { %11750 = vmatpush3.bf16.msra.mxu0 %v8091_v4  ;;  %12335 = vrcp.f32 %v7901_v32  ;;  %11751 = vmatprep.mubr.msk.bf16.mxu0 %vm12785_vm0, %v16226_v61 }
 0xc6c   : > { %11761 = vmatprep.subr.bf16.mxu0 %v16226_v61 }
 0xc6d   : > { %v12334_v47 = vpop.eup %12333 }
 0xc6e   : > { %v7958_v62 = vmul.f32 %v12334_v47, %v15127_v60 }
 0xc70   : > { %v7974_v5 = vpack.c.bf16 %v7958_v62, %v7958_v62  ;;  %v7860_v62 = vsub.f32 %v15112_v40, %v15200_v21 }
 0xc72   : > { %11746 = vmatmul.mubr.msk.bf16.vlgmr.msra.gmra.mrb[16].mxu1 %vm2096_vm3, %v7974_v5  ;;  %v7904_v0 = vpop.xlane.xlu1 %7903 }
 0xc73   : > { %11756 = vmatpush3.bf16.msra.mxu1 %v8139_v50  ;;  %12337 = vrcp.f32 %v7904_v0  ;;  %11757 = vmatprep.mubr.msk.bf16.mxu1 %vm12785_vm0, %v16226_v61  ;;  %v7891_v50 = vmul.f32 1.442695, %v7860_v62 }
 0xc74   : > { %11767 = vmatprep.subr.bf16.mxu1 %v16226_v61 }
 0xc75   : > { %v12336_v42 = vpop.eup %12335 }
 0xc76   : > { %v7959_v26 = vmul.f32 %v12336_v42, %v15132_v3 }
 0xc78   : > { %v7975_v6 = vpack.c.bf16 %v7959_v26, %v7959_v26 }
 0xc7a   : > { %11752 = vmatmul.mubr.msk.bf16.vlgmr.msra.gmra.mrb[244].mxu0 %vm2096_vm3, %v7975_v6  ;;  %v7910_v60 = vpop.xlane.xlu1 %7909 }
 0xc7b   : > { %12339 = vrcp.f32 %v7910_v60  ;;  %11763 = vmatprep.mubr.msk.bf16.mxu0 %vm12785_vm0, %v16226_v61 }
 0xc7d   : > { %v12338_v33 = vpop.eup %12337 }
 0xc7e   : > { %v7960_v23 = vmul.f32 %v12338_v33, %v15137_v63 }
 0xc80   : > { %v7976_v10 = vpack.c.bf16 %v7960_v23, %v7960_v23 }
 0xc82   : > { %11758 = vmatmul.mubr.msk.bf16.vlgmr.msra.gmra.mrb[20].mxu1 %vm2096_vm3, %v7976_v10  ;;  %v7916_v19 = vpop.xlane.xlu1 %7915 }
 0xc83   : > { %12341 = vrcp.f32 %v7916_v19  ;;  %11769 = vmatprep.mubr.msk.bf16.mxu1 %vm12785_vm0, %v16226_v61 }
 0xc85   : > { %v12340_v3 = vpop.eup %12339 }
 0xc86   : > { %v7962_v45 = vmul.f32 %v12340_v3, %v15142_v1  ;;  %v8230_v28 = vpop.permute.xlu1 %8229 }
 0xc87   : > { %v8235_v57 = vsel %vm2292_vm2, %v8230_v28, 0 }
 0xc88   : > { %v7978_v9 = vpack.c.bf16 %v7962_v45, %v7962_v45  ;;  %11768 = vmatpush3.bf16.msra.mxu1 %v8235_v57 }
 0xc89   : > { %11779 = vmatprep.subr.bf16.mxu1 %v16226_v61 }
 0xc8a   : > { %v7922_v44 = vpop.xlane.xlu0 %7921  ;;  %v8326_v63 = vpop.permute.xlu1 %8325 }
 0xc8b   : > { %12343 = vrcp.f32 %v7922_v44  ;;  %v8331_v49 = vsel %vm2292_vm2, %v8326_v63, 0  ;;  %11770 = vmatmul.mubr.msk.bf16.vlgmr.msra.gmra.mrb[24].mxu1 %vm2096_vm3, %v7978_v9 }
 0xc8c   : > { %11780 = vmatpush3.bf16.msra.mxu1 %v8331_v49  ;;  %11781 = vmatprep.mubr.msk.bf16.mxu1 %vm12785_vm0, %v16226_v61 }
 0xc8d   : > { %v12342_v29 = vpop.eup %12341  ;;  %11791 = vmatprep.subr.bf16.mxu1 %v16226_v61 }
 0xc8e   : > { %v7964_v1 = vmul.f32 %v12342_v29, %v15147_v11  ;;  %v8422_v20 = vpop.permute.xlu1 %8421 }
 0xc8f   : > { %v8427_v27 = vsel %vm2292_vm2, %v8422_v20, 0 }
 0xc90   : > { %v7980_v41 = vpack.c.bf16 %v7964_v1, %v7964_v1 }
 0xc92   : > { %v7928_v36 = vpop.xlane.xlu0 %7927  ;;  %v15240_v52 = vpop.permute.xlu1 %8469 }
 0xc93   : > { %12345 = vrcp.f32 %v7928_v36  ;;  %11782 = vmatmul.mubr.msk.bf16.vlgmr.msra.gmra.mrb[28].mxu1 %vm2096_vm3, %v7980_v41 }
 0xc94   : > { %11792 = vmatpush3.bf16.msra.mxu1 %v8427_v27  ;;  %11793 = vmatprep.mubr.msk.bf16.mxu1 %vm12785_vm0, %v16226_v61 }
 0xc95   : > { %v12344_v17 = vpop.eup %12343  ;;  %11803 = vmatprep.subr.bf16.mxu1 %v16226_v61 }
 0xc96   : > { %v7966_v2 = vmul.f32 %v12344_v17, %v15152_v54  ;;  %v8518_v34 = vpop.permute.xlu1 %8517 }
 0xc97   : > { %v8523_v59 = vsel %vm2292_vm2, %v8518_v34, 0 }
 0xc98   : > { %v7982_v11 = vpack.c.bf16 %v7966_v2, %v7966_v2 }
 0xc9b   : > { %11794 = vmatmul.mubr.msk.bf16.vlgmr.msra.gmra.mrb[32].mxu1 %vm2096_vm3, %v7982_v11 }
 0xc9c   : > { %11804 = vmatpush3.bf16.msra.mxu1 %v8523_v59  ;;  %v7811_v22 = vpop.xlane.xlu0 %7810  ;;  %11805 = vmatprep.mubr.msk.bf16.mxu1 %vm12785_vm0, %v16226_v61 }
 0xc9d   : > { %v12346_v24 = vpop.eup %12345  ;;  %v7849_v31 = vsub.f32 %v15165_v46, %v7811_v22  ;;  %11815 = vmatprep.subr.bf16.mxu1 %v16226_v61 }
 0xc9e   : > { %v7968_v30 = vmul.f32 %v12346_v24, %v15156_v43 }
 0xc9f   : > { %v7869_v56 = vmul.f32 1.442695, %v7849_v31 }
 0xca0   : > { %v7984_v54 = vpack.c.bf16 %v7968_v30, %v7968_v30 }
 0xca1   : > { %12347 = vpow2.f32 %v7869_v56 }
 0xca3   : > { %11806 = vmatmul.mubr.msk.bf16.vlgmr.msra.gmra.mrb[36].mxu1 %vm2096_vm3, %v7984_v54 }
 0xca4   : > { %11817 = vmatprep.mubr.msk.bf16.mxu1 %vm12785_vm0, %v16226_v61  ;;  %v7817_v39 = vpop.xlane.xlu0 %7816 }
 0xcab   : > { %v15258_v53 = vpop.eup %12347 }
 0xcac   : > { %v7823_v18 = vpop.xlane.xlu0 %7822  ;;  %v7905_v14 = vsel %vm2096_vm3, %v15258_v53, 0.0 }
 0xcad   : > { %v7853_v46 = vsub.f32 %v15181_v38, %v7823_v18  ;;  %7906 = vadd.xlane.f32.xlu0 %v7905_v14  ;;  %v7851_v38 = vsub.f32 %v15174_v12, %v7817_v39 }
 0xcaf   : > { %v7877_v35 = vmul.f32 1.442695, %v7853_v46  ;;  %v7873_v5 = vmul.f32 1.442695, %v7851_v38 }
 0xcb1   : > { %12349 = vpow2.f32 %v7877_v35 }
 0xcb2   : > { %12351 = vpow2.f32 %v7873_v5 }
 0xcb3   : > { %12353 = vpow2.f32 %v7891_v50 }
 0xcb4   : > { %v7829_v43 = vpop.xlane.xlu0 %7828 }
 0xcb5   : > { %v7855_v0 = vsub.f32 %v15186_v58, %v7829_v43 }
 0xcb7   : > { %v7881_v26 = vmul.f32 1.442695, %v7855_v0 }
 0xcb8   : > { %v8182_v25 = vpop.permute.xlu0 %8181 }
 0xcb9   : > { %v8187_v4 = vsel %vm2292_vm2, %v8182_v25, 0  ;;  %12355 = vpow2.f32 %v7881_v26 }
 0xcba   : > { %11762 = vmatpush3.bf16.msra.mxu0 %v8187_v4 }
 0xcbb   : > { %v15264_v32 = vpop.eup %12349  ;;  %11773 = vmatprep.subr.bf16.mxu0 %v16226_v61 }
 0xcbc   : > { %v7917_v47 = vsel %vm2096_vm3, %v15264_v32, 0.0  ;;  %v15277_v42 = vpop.eup %12351 }
 0xcbd   : > { %7918 = vadd.xlane.f32.xlu1 %v7917_v47  ;;  %v15281_v6 = vpop.eup %12353 }
 0xcc3   : > { %8277 = vrot.lane.b32.xlu0 %v16307_v15, %s12788_s4  ;;  %v7911_v15 = vsel %vm2096_vm3, %v15277_v42, 0.0  ;;  %v15286_v58 = vpop.eup %12355 }
 0xcc4   : > { %v7923_v23 = vsel %vm2096_vm3, %v15286_v58, 0.0 }
 0xcce   : > { %8613 = vrot.lane.b32.xlu1 %v13916_v48, %s12788_s4  ;;  %v7938_v48 = vsel %vm2096_vm3, %v15281_v6, 0.0 }
 0xce2   : > { %7912 = vadd.xlane.f32.xlu0 %v7911_v15 }
 0xce6   : > { %7939 = vadd.xlane.f32.xlu0 %v7938_v48 }
 0xce9   : > { %v7835_v40 = vpop.xlane.xlu0 %7834 }
 0xcea   : > { %v7857_v12 = vsub.f32 %v15194_v13, %v7835_v40 }
 0xcec   : > { %v7885_v21 = vmul.f32 1.442695, %v7857_v12 }
 0xced   : > { %v7934_v60 = vpop.xlane.xlu0 %7933 }
 0xcee   : > { %12357 = vpow2.f32 %v7885_v21 }
 0xcf1   : > { %v7841_v33 = vpop.xlane.xlu0 %7840 }
 0xcf2   : > { %v7859_v10 = vsub.f32 %v15203_v55, %v7841_v33  ;;  %7924 = vadd.xlane.f32.xlu1 %v7923_v23 }
 0xcf4   : > { %v7889_v19 = vmul.f32 1.442695, %v7859_v10 }
 0xcf6   : > { %12359 = vpow2.f32 %v7889_v19 }
 0xcf8   : > { %v15291_v3 = vpop.eup %12357 }
 0xcf9   : > { %v7929_v45 = vsel %vm2096_vm3, %v15291_v3, 0.0 }
 0xcfa   : > { %7930 = vadd.xlane.f32.xlu1 %v7929_v45 }
 0xcfc   : > { %8373 = vrot.lane.b32.xlu0 %v16308_v8, %s12788_s4 }
 0xd00   : > { %v15297_v13 = vpop.eup %12359  ;;  %8565 = vrot.lane.b32.xlu0 %v13847_v16, %s12788_s4 }
 0xd01   : > { %v7935_v55 = vsel %vm2096_vm3, %v15297_v13, 0.0 }
 0xd02   : > { %7936 = vadd.xlane.f32.xlu1 %v7935_v55 }
 0xd04   : > { %8661 = vrot.lane.b32.xlu0 %v13870_v37, %s12788_s4 }
 0xd13   : > { %8709 = vrot.lane.b32.xlu1 %v13932_v51, %s12788_s4  ;;  %s16328_s4 = sld [smem:[#allocation72_spill]] }
 0xd3a   : > { %v7907_v28 = vpop.xlane.xlu0 %7906 }
 0xd3b   : > { %12361 = vrcp.f32 %v7907_v28 }
 0xd3c   : > { %12363 = vrcp.f32 %v7934_v60 }
 0xd3d   : > { %v15307_v57 = vpop.f32.mrb[240].mxu0 }
 0xd3e   : > { %v11741_v8 = vpop.f32.mrb[241].mxu0  ;;  %v8278_v1 = vpop.permute.xlu0 %8277 }
 0xd3f   : > { %v8034_v9 = vpop.f32.mrb[242].mxu0  ;;  %v8283_v27 = vsel %vm2292_vm2, %v8278_v1, 0 }
 0xd40   : > { %v11742_v44 = vpop.f32.mrb[243].mxu0 }
 0xd45   : > { %v12362_v63 = vpop.eup %12361  ;;  %v15309_v16 = vpop.f32.mrb[16].mxu1 }
 0xd46   : > { %v7961_v49 = vmul.f32 %v12362_v63, %v15258_v53  ;;  %v8757_v29 = vpack.c.bf16 %v15309_v16, %v15307_v57  ;;  %v11747_v37 = vpop.f32.mrb[17].mxu1  ;;  %v12364_v36 = vpop.eup %12363 }
 0xd47   : > { %v8082_v20 = vpop.f32.mrb[18].mxu1  ;;  %v7970_v2 = vmul.f32 %v12364_v36, %v15198_v7 }
 0xd48   : > { %v11748_v51 = vpop.f32.mrb[19].mxu1  ;;  %v7977_v41 = vpack.c.bf16 %v7961_v49, %v7961_v49 }
 0xd49   : > { %v7986_v30 = vpack.c.bf16 %v7970_v2, %v7970_v2 }
 0xd4a   : > { %11764 = vmatmul.mubr.msk.bf16.vlgmr.msra.gmra.mrb[248].mxu0 %vm2096_vm3, %v7977_v41  ;;  %v7919_v17 = vpop.xlane.xlu1 %7918 }
 0xd4b   : > { %11774 = vmatpush3.bf16.msra.mxu0 %v8283_v27  ;;  %11775 = vmatprep.mubr.msk.bf16.mxu0 %vm12785_vm0, %v16226_v61 }
 0xd4c   : > { %11785 = vmatprep.subr.bf16.mxu0 %v16226_v61 }
 0xd4d   : > { %v15320_v11 = vpop.f32.mrb[244].mxu0 }
 0xd4e   : > { %v11753_v34 = vpop.f32.mrb[245].mxu0  ;;  %v8614_v59 = vpop.permute.xlu1 %8613 }
 0xd4f   : > { %v8619_v22 = vsel %vm2292_vm2, %v8614_v59, 0  ;;  %v8130_v24 = vpop.f32.mrb[246].mxu0 }
 0xd50   : > { %v11754_v31 = vpop.f32.mrb[247].mxu0  ;;  %11816 = vmatpush3.bf16.msra.mxu1 %v8619_v22  ;;  %v12104_v22 = vld [vmem:[#allocation8 + $0x38] sm:$0xff]  }
 0xd51   : > { %11827 = vmatprep.subr.bf16.mxu1 %v16226_v61 }
 0xd53   : > { %11818 = vmatmul.mubr.msk.bf16.vlgmr.msra.gmra.mrb[40].mxu1 %vm2096_vm3, %v7986_v30 }
 0xd54   : > { %11829 = vmatprep.mubr.msk.bf16.mxu1 %vm12785_vm0, %v16226_v61 }
 0xd55   : > { %v15327_v56 = vpop.f32.mrb[20].mxu1 }
 0xd56   : > { %v8758_v7 = vpack.c.bf16 %v15327_v56, %v15320_v11  ;;  %v11759_v54 = vpop.f32.mrb[21].mxu1 }
 0xd57   : > { %v8178_v39 = vpop.f32.mrb[22].mxu1 }
 0xd58   : > { %v11760_v53 = vpop.f32.mrb[23].mxu1 }
 0xd5e   : > { %v15331_v18 = vpop.f32.mrb[24].mxu1 }
 0xd5f   : > { %v11771_v14 = vpop.f32.mrb[25].mxu1 }
 0xd60   : > { %v8274_v46 = vpop.f32.mrb[26].mxu1 }
 0xd61   : > { %v11772_v35 = vpop.f32.mrb[27].mxu1 }
 0xd66   : > { %v15333_v43 = vpop.f32.mrb[28].mxu1 }
 0xd67   : > { %v11783_v25 = vpop.f32.mrb[29].mxu1 }
 0xd68   : > { %v8370_v4 = vpop.f32.mrb[30].mxu1 }
 0xd69   : > { %v11784_v47 = vpop.f32.mrb[31].mxu1 }
 0xd6e   : > { %v15335_v38 = vpop.f32.mrb[32].mxu1 }
 0xd6f   : > { %v7913_v62 = vpop.xlane.xlu0 %7912  ;;  %v11795_v5 = vpop.f32.mrb[33].mxu1 }
 0xd70   : > { %12365 = vrcp.f32 %v7913_v62  ;;  %v8466_v50 = vpop.f32.mrb[34].mxu1 }
 0xd71   : > { %v11796_v0 = vpop.f32.mrb[35].mxu1  ;;  %12367 = vrcp.f32 %v7919_v17  ;;  %v12103_v17 = vld [vmem:[#allocation8 + $0x30] sm:$0xff]  }
 0xd73   : > { %v7940_v26 = vpop.xlane.xlu0 %7939 }
 0xd76   : > { %v15337_v15 = vpop.f32.mrb[36].mxu1 }
 0xd77   : > { %v11807_v48 = vpop.f32.mrb[37].mxu1  ;;  %v8374_v33 = vpop.permute.xlu0 %8373 }
 0xd78   : > { %v8562_v40 = vpop.f32.mrb[38].mxu1  ;;  %v8379_v19 = vsel %vm2292_vm2, %v8374_v33, 0 }
 0xd79   : > { %v11808_v12 = vpop.f32.mrb[39].mxu1 }
 0xd7a   : > { %v12366_v21 = vpop.eup %12365 }
 0xd7b   : > { %v7963_v60 = vmul.f32 %v12366_v21, %v15277_v42  ;;  %v12368_v10 = vpop.eup %12367  ;;  %v8475_v42 = vsel %vm2292_vm2, %v15240_v52, 0  ;;  %v8566_v44 = vpop.permute.xlu0 %8565 }
 0xd7c   : > { %v7965_v55 = vmul.f32 %v12368_v10, %v15264_v32  ;;  %v8571_v37 = vsel %vm2292_vm2, %v8566_v44, 0  ;;  %v12509_v44 = vld [vmem:[%s13139_s0 + $0x10] sm:$0xff] }
 0xd7d   : > { %v7979_v23 = vpack.c.bf16 %v7963_v60, %v7963_v60 }
 0xd7e   : > { %v7981_v28 = vpack.c.bf16 %v7965_v55, %v7965_v55  ;;  %v15389_v55 = vld [vmem:[%s16072_s9] ss:$0 sm:$0xff] }
 0xd7f   : > { %11776 = vmatmul.mubr.msk.bf16.vlgmr.msra.gmra.mrb[252].mxu0 %vm2096_vm3, %v7979_v23  ;;  %v7925_v45 = vpop.xlane.xlu1 %7924  ;;  %v8662_v41 = vpop.permute.xlu0 %8661 }
 0xd80   : > { %11786 = vmatpush3.bf16.msra.mxu0 %v8379_v19  ;;  %12369 = vrcp.f32 %v7925_v45  ;;  %11787 = vmatprep.mubr.msk.bf16.mxu0 %vm12785_vm0, %v16226_v61  ;;  %v8667_v34 = vsel %vm2292_vm2, %v8662_v41, 0 }
 0xd81   : > { %11797 = vmatprep.subr.bf16.mxu0 %v16226_v61  ;;  %12371 = vrcp.f32 %v7940_v26 }
 0xd87   : > { %11788 = vmatmul.mubr.msk.bf16.vlgmr.msra.gmra.mrb[0].mxu0 %vm2096_vm3, %v7981_v28  ;;  %v7931_v8 = vpop.xlane.xlu1 %7930 }
 0xd88   : > { %11798 = vmatpush3.bf16.msra.mxu0 %v8475_v42  ;;  %12373 = vrcp.f32 %v7931_v8  ;;  %11799 = vmatprep.mubr.msk.bf16.mxu0 %vm12785_vm0, %v16226_v61  ;;  %v12508_v42 = vld [vmem:[%s13139_s0] sm:$0xff] }
 0xd89   : > { %11809 = vmatprep.subr.bf16.mxu0 %v16226_v61 }
 0xd8a   : > { %v12370_v9 = vpop.eup %12369 }
 0xd8b   : > { %v7967_v32 = vmul.f32 %v12370_v9, %v15286_v58  ;;  %v12372_v49 = vpop.eup %12371 }
 0xd8c   : > { %v7972_v20 = vmul.f32 %v12372_v49, %v15281_v6 }
 0xd8d   : > { %v7983_v63 = vpack.c.bf16 %v7967_v32, %v7967_v32 }
 0xd8e   : > { %v7988_v2 = vpack.c.bf16 %v7972_v20, %v7972_v20 }
 0xd8f   : > { %11800 = vmatmul.mubr.msk.bf16.vlgmr.msra.gmra.mrb[4].mxu0 %vm2096_vm3, %v7983_v63  ;;  %v7937_v52 = vpop.xlane.xlu1 %7936 }
 0xd90   : > { %11810 = vmatpush3.bf16.msra.mxu0 %v8571_v37  ;;  %12375 = vrcp.f32 %v7937_v52  ;;  %11811 = vmatprep.mubr.msk.bf16.mxu0 %vm12785_vm0, %v16226_v61  ;;  %v12510_v37 = vld [vmem:[%s13139_s0 + $0x8] sm:$0xff] }
 0xd91   : > { %11821 = vmatprep.subr.bf16.mxu0 %v16226_v61 }
 0xd92   : > { %v12374_v1 = vpop.eup %12373 }
 0xd93   : > { %v7969_v58 = vmul.f32 %v12374_v1, %v15291_v3  ;;  %v8710_v51 = vpop.permute.xlu1 %8709 }
 0xd94   : > { %v8715_v36 = vsel %vm2292_vm2, %v8710_v51, 0 }
 0xd95   : > { %v7985_v27 = vpack.c.bf16 %v7969_v58, %v7969_v58  ;;  %11828 = vmatpush3.bf16.msra.mxu1 %v8715_v36  ;;  %v12511_v58 = vld [vmem:[%s13139_s0 + $0x18] sm:$0xff] }
 0xd97   : > { %11812 = vmatmul.mubr.msk.bf16.vlgmr.msra.gmra.mrb[8].mxu0 %vm2096_vm3, %v7985_v27 }
 0xd98   : > { %11822 = vmatpush3.bf16.msra.mxu0 %v8667_v34  ;;  %11830 = vmatmul.mubr.msk.bf16.vlgmr.msra.gmra.mrb[44].mxu1 %vm2096_vm3, %v7988_v2 }
 0xd99   : > { %11823 = vmatprep.mubr.msk.bf16.mxu0 %vm12785_vm0, %v16226_v61  ;;  %11833 = vmatprep.subr.bf16.mxu0 %v12103_v17 }
 0xd9a   : > { %v12376_v6 = vpop.eup %12375 }
 0xd9b   : > { %v7971_v3 = vmul.f32 %v12376_v6, %v15297_v13 }
 0xd9d   : > { %v7987_v59 = vpack.c.bf16 %v7971_v3, %v7971_v3  ;;  %v12513_v3 = vld [vmem:[%s13139_s0 + $0x30] sm:$0xff] }
 0xd9f   : > { %11824 = vmatmul.mubr.msk.bf16.vlgmr.msra.gmra.mrb[12].mxu0 %vm2096_vm3, %v7987_v59 }
 0xda0   : > { %11834 = vmatpush3.bf16.msra.mxu0 %v12103_v17  ;;  %11837 = vmatprep.mubr.msk.bf16.mxu0 %vm1359_vm1, %v8757_v29  ;;  %v12512_v17 = vld [vmem:[%s13139_s0 + $0x20] sm:$0xff] }
 0xda1   : > { %11835 = vmatprep.subr.bf16.mxu0 %v12104_v22 }
 0xda4   : > { %11836 = vmatpush3.bf16.msra.mxu0 %v12104_v22 }
 0xda7   : > { %11838 = vmatmul.mubr.msk.bf16.vlgmr.msra.gmra.mrb[152].mxu0 %vm1359_vm1, %v8758_v7 }
 0xe1d   : > { %v8223_v61 = vpop.f32.mrb[248].mxu0 }
 0xe1e   : > { %v8759_v13 = vpack.c.bf16 %v15331_v18, %v8223_v61  ;;  %v11765_v24 = vpop.f32.mrb[249].mxu0  ;;  %v12514_v61 = vld [vmem:[%s13139_s0 + $0x28] sm:$0xff] }
 0xe1f   : > { %v8226_v31 = vpop.f32.mrb[250].mxu0  ;;  %v12515_v24 = vld [vmem:[%s13139_s0 + $0x38] sm:$0xff] }
 0xe20   : > { %v11766_v30 = vpop.f32.mrb[251].mxu0  ;;  %11841 = vmatprep.mubr.msk.bf16.mxu0 %vm1359_vm1, %v8759_v13 }
 0xe26   : > { %v8655_v54 = vpop.f32.mrb[40].mxu1 }
 0xe27   : > { %v11819_v39 = vpop.f32.mrb[41].mxu1 }
 0xe28   : > { %v8658_v57 = vpop.f32.mrb[42].mxu1 }
 0xe29   : > { %v11820_v16 = vpop.f32.mrb[43].mxu1 }
 0xe52   : > { %v8319_v29 = vpop.f32.mrb[252].mxu0 }
 0xe53   : > { %v8760_v53 = vpack.c.bf16 %v15333_v43, %v8319_v29  ;;  %v11777_v14 = vpop.f32.mrb[253].mxu0  ;;  %v12516_v29 = vld [vmem:[%s13139_s0 + $0x40] sm:$0xff] }
 0xe54   : > { %v8322_v46 = vpop.f32.mrb[254].mxu0 }
 0xe55   : > { %v11778_v11 = vpop.f32.mrb[255].mxu0  ;;  %11842 = vmatmul.mubr.msk.bf16.gmra.mrb[156].mxu0 %vm1359_vm1, %v8760_v53 }
 0xe56   : > { %v12517_v11 = vld [vmem:[%s13139_s0 + $0x50] sm:$0xff] }
 0xe5a   : > { %v8415_v56 = vpop.f32.mrb[0].mxu0 }
 0xe5b   : > { %v8761_v7 = vpack.c.bf16 %v15335_v38, %v8415_v56  ;;  %v11789_v18 = vpop.f32.mrb[1].mxu0 }
 0xe5c   : > { %v8418_v35 = vpop.f32.mrb[2].mxu0  ;;  %v12518_v18 = vld [vmem:[%s13139_s0 + $0x48] sm:$0xff] }
 0xe5d   : > { %v11790_v25 = vpop.f32.mrb[3].mxu0  ;;  %11845 = vmatprep.mubr.msk.bf16.mxu0 %vm1359_vm1, %v8761_v7 }
 0xe5e   : > { %v12519_v25 = vld [vmem:[%s13139_s0 + $0x58] sm:$0xff] }
 0xe62   : > { %v8511_v4 = vpop.f32.mrb[4].mxu0 }
 0xe63   : > { %v8762_v47 = vpack.c.bf16 %v15337_v15, %v8511_v4  ;;  %v11801_v62 = vpop.f32.mrb[5].mxu0 }
 0xe64   : > { %v8514_v5 = vpop.f32.mrb[6].mxu0 }
 0xe65   : > { %v11802_v50 = vpop.f32.mrb[7].mxu0  ;;  %11846 = vmatmul.mubr.msk.bf16.gmra.mrb[160].mxu0 %vm1359_vm1, %v8762_v47 }
 0xe6a   : > { %v8607_v43 = vpop.f32.mrb[8].mxu0 }
 0xe6b   : > { %v8763_v0 = vpack.c.bf16 %v8655_v54, %v8607_v43  ;;  %v11813_v26 = vpop.f32.mrb[9].mxu0  ;;  %v8751_v48 = vpop.f32.mrb[44].mxu1 }
 0xe6c   : > { %v8610_v40 = vpop.f32.mrb[10].mxu0  ;;  %v11831_v38 = vpop.f32.mrb[45].mxu1 }
 0xe6d   : > { %v11814_v12 = vpop.f32.mrb[11].mxu0  ;;  %v8754_v21 = vpop.f32.mrb[46].mxu1  ;;  %11849 = vmatprep.mubr.msk.bf16.mxu0 %vm1359_vm1, %v8763_v0 }
 0xe6e   : > { %v11832_v60 = vpop.f32.mrb[47].mxu1 }
 0xe72   : > { %v8703_v33 = vpop.f32.mrb[12].mxu0 }
 0xe73   : > { %v8764_v15 = vpack.c.bf16 %v8751_v48, %v8703_v33  ;;  %v11825_v23 = vpop.f32.mrb[13].mxu0  ;;  %v12520_v48 = vld [vmem:[%s13139_s0 + $0x60] sm:$0xff]  ;;  %v12521_v33 = vld [vmem:[%s13139_s0 + $0x70] sm:$0xff] }
 0xe74   : > { %v8706_v10 = vpop.f32.mrb[14].mxu0 }
 0xe75   : > { %v11826_v19 = vpop.f32.mrb[15].mxu0  ;;  %11850 = vmatmul.mubr.msk.bf16.gmra.mrb[164].mxu0 %vm1359_vm1, %v8764_v15  ;;  %v12522_v10 = vld [vmem:[%s13139_s0 + $0x68] sm:$0xff] }
 0xe7a   : > { %v11839_v45 = vpop.f32.mrb[152].mxu0 }
 0xe7b   : > { %v8839_v28 = vpop.f32.mrb[153].mxu0  ;;  %v8920_v63 = vadd.f32 %v12509_v44, %v11839_v45 }
 0xe7c   : > { %v8918_v8 = vadd.f32 %v12508_v42, %v8839_v28  ;;  %v11840_v9 = vpop.f32.mrb[154].mxu0  ;;  %v12523_v28 = vld [vmem:[%s13139_s0 + $0x78] sm:$0xff]  ;;  %s15881_s0 = scalar_lea.vmem [#allocation13], %s10205_s16  ;;  %s10532_s16 = sshll.u32 %s12908_s1, 11 }
 0xe7d   : > { %v8842_v32 = vpop.f32.mrb[155].mxu0  ;;  %v15402_v20 = vadd.f32 %v15389_v55, %v8920_v63  ;;  %v8921_v51 = vadd.f32 %v12511_v58, %v11840_v9  ;;  %s10072_s15 = sshll.u32 %s15881_s0, 4  ;;  %s12789_s1 = smov [#allocation13]   ;;  %s16017_s15 = int_to_ptr.vmem [resolvable:$true] %s10072_s15 }
 0xe7e   : > { %v15394_v49 = vadd.f32 %v15389_v55, %v8918_v8  ;;  %v8919_v52 = vadd.f32 %v12510_v37, %v8842_v32  ;;  %s12694_s26 = scalar_lea.vmem %s16017_s15, 2048 }
 0xe7f   : > { %v15408_v41 = vadd.f32 %v15389_v55, %v8921_v51  ;;  %p12695_p7 = scmp.ne.s32.totalorder %s16017_s15, %s12694_s26 }
 0xe80   : > { %v15398_v1 = vadd.f32 %v15389_v55, %v8919_v52  ;;  %8957 = vadd.xlane.f32.xlu0 %v15394_v49 }
 0xe81   : > { %p12696_p12 = pnand %p12695_p7, %p16329_p4 }
 0xe82   : > { %8959 = vadd.xlane.f32.xlu1 %v15398_v1 }
 0xe83   : > { %p12697_p1 = pneg %p12696_p12 }
 0xe84   : > { %8961 = vadd.xlane.f32.xlu0 %v15402_v20 }
 0xe88   : > { %8963 = vadd.xlane.f32.xlu0 %v15408_v41 }
 0xf0d   : > { %v8958_v50 = vpop.xlane.xlu0 %8957 }
 0xf0e   : > { %v8990_v60 = vmul.f32 0.0078125, %v8958_v50 }
 0xf0f   : > { %v8960_v12 = vpop.xlane.xlu1 %8959 }
 0xf10   : > { %v8991_v45 = vmul.f32 0.0078125, %v8960_v12  ;;  %v15463_v32 = vsub.f32 %v15394_v49, %v8990_v60 }
 0xf11   : > { %v8962_v0 = vpop.xlane.xlu0 %8961 }
 0xf12   : > { %v8992_v44 = vmul.f32 0.0078125, %v8962_v0  ;;  %v15470_v37 = vsub.f32 %v15398_v1, %v8991_v45  ;;  %v9022_v49 = vmul.f32 %v15463_v32, %v15463_v32 }
 0xf14   : > { %v15477_v51 = vsub.f32 %v15402_v20, %v8992_v44  ;;  %v9023_v1 = vmul.f32 %v15470_v37, %v15470_v37 }
 0xf15   : > { %v8964_v9 = vpop.xlane.xlu0 %8963 }
 0xf16   : > { %v8993_v52 = vmul.f32 0.0078125, %v8964_v9 }
 0xf28   : > { %v11843_v36 = vpop.f32.mrb[156].mxu0 }
 0xf29   : > { %v8855_v27 = vpop.f32.mrb[157].mxu0  ;;  %v8924_v59 = vadd.f32 %v12513_v3, %v11843_v36  ;;  %v15483_v36 = vsub.f32 %v15408_v41, %v8993_v52  ;;  %v12107_v41 = vld [vmem:[#allocation10 + $0x10] sm:$0xff]  }
 0xf2a   : > { %v8922_v2 = vadd.f32 %v12512_v17, %v8855_v27  ;;  %v11844_v34 = vpop.f32.mrb[158].mxu0  ;;  %v12105_v27 = vld [vmem:[#allocation10] sm:$0xff]   ;;  %v12106_v17 = vld [vmem:[#allocation10 + $0x8] sm:$0xff]   ;;  %v12111_v3 = vld [vmem:[#allocation10 + $0x30] sm:$0xff]  }
 0xf2b   : > { %v8858_v6 = vpop.f32.mrb[159].mxu0  ;;  %v8925_v31 = vadd.f32 %v12515_v24, %v11844_v34  ;;  %v15423_v54 = vadd.f32 %v15389_v55, %v8924_v59  ;;  %v9025_v20 = vmul.f32 %v15483_v36, %v15483_v36  ;;  %11853 = vmatprep.subr.bf16.mxu1 %v12105_v27  ;;  %v12109_v34 = vld [vmem:[#allocation10 + $0x20] sm:$0xff]   ;;  %v12112_v59 = vld [vmem:[#allocation10 + $0x38] sm:$0xff]  }
 0xf2c   : > { %v15414_v22 = vadd.f32 %v15389_v55, %v8922_v2  ;;  %v8923_v13 = vadd.f32 %v12514_v61, %v8858_v6  ;;  %11854 = vmatpush3.bf16.msra.mxu1 %v12105_v27  ;;  %v12108_v2 = vld [vmem:[#allocation10 + $0x18] sm:$0xff]   ;;  %v12110_v6 = vld [vmem:[#allocation10 + $0x28] sm:$0xff]  }
 0xf2d   : > { %v15427_v39 = vadd.f32 %v15389_v55, %v8925_v31  ;;  %11855 = vmatprep.subr.bf16.mxu1 %v12106_v17 }
 0xf2e   : > { %v15419_v30 = vadd.f32 %v15389_v55, %v8923_v13  ;;  %8965 = vadd.xlane.f32.xlu0 %v15414_v22 }
 0xf30   : > { %8967 = vadd.xlane.f32.xlu1 %v15419_v30  ;;  %11856 = vmatpush3.bf16.msra.mxu1 %v12106_v17 }
 0xf31   : > { %11857 = vmatprep.subr.bf16.mxu1 %v12107_v41 }
 0xf32   : > { %8969 = vadd.xlane.f32.xlu0 %v15423_v54 }
 0xf34   : > { %8971 = vadd.xlane.f32.xlu1 %v15427_v39  ;;  %11858 = vmatpush3.bf16.msra.mxu1 %v12107_v41 }
 0xf35   : > { %11859 = vmatprep.subr.bf16.mxu1 %v12108_v2 }
 0xf38   : > { %v11847_v57 = vpop.f32.mrb[160].mxu0  ;;  %11860 = vmatpush3.bf16.msra.mxu1 %v12108_v2 }
 0xf39   : > { %v8871_v16 = vpop.f32.mrb[161].mxu0  ;;  %v8928_v56 = vadd.f32 %v12517_v11, %v11847_v57  ;;  %11861 = vmatprep.subr.bf16.mxu1 %v12109_v34 }
 0xf3a   : > { %v8926_v53 = vadd.f32 %v12516_v29, %v8871_v16  ;;  %v11848_v14 = vpop.f32.mrb[162].mxu0 }
 0xf3b   : > { %v8874_v46 = vpop.f32.mrb[163].mxu0  ;;  %v8929_v4 = vadd.f32 %v12519_v25, %v11848_v14  ;;  %v15443_v62 = vadd.f32 %v15389_v55, %v8928_v56 }
 0xf3c   : > { %v15434_v7 = vadd.f32 %v15389_v55, %v8926_v53  ;;  %v8927_v35 = vadd.f32 %v12518_v18, %v8874_v46  ;;  %11862 = vmatpush3.bf16.msra.mxu1 %v12109_v34 }
 0xf3d   : > { %v15447_v5 = vadd.f32 %v15389_v55, %v8929_v4  ;;  %11863 = vmatprep.subr.bf16.mxu1 %v12110_v6 }
 0xf3e   : > { %v15439_v47 = vadd.f32 %v15389_v55, %v8927_v35  ;;  %8973 = vadd.xlane.f32.xlu0 %v15434_v7 }
 0xf40   : > { %8975 = vadd.xlane.f32.xlu1 %v15439_v47  ;;  %11864 = vmatpush3.bf16.msra.mxu1 %v12110_v6 }
 0xf41   : > { %11865 = vmatprep.subr.bf16.mxu1 %v12111_v3 }
 0xf42   : > { %8977 = vadd.xlane.f32.xlu0 %v15443_v62 }
 0xf44   : > { %8979 = vadd.xlane.f32.xlu1 %v15447_v5  ;;  %11866 = vmatpush3.bf16.msra.mxu1 %v12111_v3 }
 0xf45   : > { %11867 = vmatprep.subr.bf16.mxu1 %v12112_v59 }
 0xf48   : > { %v11851_v43 = vpop.f32.mrb[164].mxu0  ;;  %11868 = vmatpush3.bf16.msra.mxu1 %v12112_v59 }
 0xf49   : > { %v8887_v26 = vpop.f32.mrb[165].mxu0  ;;  %v8932_v15 = vadd.f32 %v12521_v33, %v11851_v43 }
 0xf4a   : > { %v8930_v40 = vadd.f32 %v12520_v48, %v8887_v26  ;;  %v11852_v38 = vpop.f32.mrb[166].mxu0 }
 0xf4b   : > { %v8890_v21 = vpop.f32.mrb[167].mxu0  ;;  %v8933_v42 = vadd.f32 %v12523_v28, %v11852_v38  ;;  %v15466_v63 = vadd.f32 %v15389_v55, %v8932_v15 }
 0xf4c   : > { %v15454_v23 = vadd.f32 %v15389_v55, %v8930_v40  ;;  %v8931_v19 = vadd.f32 %v12522_v10, %v8890_v21 }
 0xf4d   : > { %v15473_v58 = vadd.f32 %v15389_v55, %v8933_v42 }
 0xf4e   : > { %v15459_v8 = vadd.f32 %v15389_v55, %v8931_v19  ;;  %8981 = vadd.xlane.f32.xlu0 %v15454_v23  ;;  %v9024_v55 = vmul.f32 %v15477_v51, %v15477_v51 }
 0xf50   : > { %8983 = vadd.xlane.f32.xlu1 %v15459_v8 }
 0xf52   : > { %8985 = vadd.xlane.f32.xlu0 %v15466_v63 }
 0xf54   : > { %8987 = vadd.xlane.f32.xlu1 %v15473_v58 }
 0xf56   : > { %9038 = vadd.xlane.f32.xlu0 %v9022_v49 }
 0xf58   : > { %9040 = vadd.xlane.f32.xlu1 %v9023_v1 }
 0xf5a   : > { %9042 = vadd.xlane.f32.xlu0 %v9024_v55 }
 0xf5c   : > { %9044 = vadd.xlane.f32.xlu1 %v9025_v20 }
 0xfbb   : > { %v8966_v61 = vpop.xlane.xlu0 %8965 }
 0xfbc   : > { %v8994_v13 = vmul.f32 0.0078125, %v8966_v61 }
 0xfbd   : > { %v8968_v24 = vpop.xlane.xlu1 %8967 }
 0xfbe   : > { %v15492_v31 = vsub.f32 %v15414_v22, %v8994_v13  ;;  %v8995_v57 = vmul.f32 0.0078125, %v8968_v24 }
 0xfbf   : > { %v8970_v16 = vpop.xlane.xlu0 %8969 }
 0xfc0   : > { %v15495_v29 = vsub.f32 %v15419_v30, %v8995_v57  ;;  %v8996_v53 = vmul.f32 0.0078125, %v8970_v16  ;;  %v9026_v14 = vmul.f32 %v15492_v31, %v15492_v31 }
 0xfc1   : > { %v8972_v46 = vpop.xlane.xlu1 %8971 }
 0xfc2   : > { %v15500_v11 = vsub.f32 %v15423_v54, %v8996_v53  ;;  %v8997_v56 = vmul.f32 0.0078125, %v8972_v46  ;;  %9046 = vadd.xlane.f32.xlu0 %v9026_v14  ;;  %v9027_v18 = vmul.f32 %v15495_v29, %v15495_v29 }
 0xfc4   : > { %v15505_v22 = vsub.f32 %v15427_v39, %v8997_v56  ;;  %9048 = vadd.xlane.f32.xlu1 %v9027_v18  ;;  %v9028_v30 = vmul.f32 %v15500_v11, %v15500_v11 }
 0xfc6   : > { %9050 = vadd.xlane.f32.xlu0 %v9028_v30  ;;  %v9029_v35 = vmul.f32 %v15505_v22, %v15505_v22 }
 0xfc8   : > { %9052 = vadd.xlane.f32.xlu1 %v9029_v35 }
 0xfcb   : > { %v8974_v25 = vpop.xlane.xlu0 %8973 }
 0xfcc   : > { %v8998_v54 = vmul.f32 0.0078125, %v8974_v25 }
 0xfcd   : > { %v8976_v4 = vpop.xlane.xlu1 %8975 }
 0xfce   : > { %v15512_v50 = vsub.f32 %v15434_v7, %v8998_v54  ;;  %v8999_v43 = vmul.f32 0.0078125, %v8976_v4 }
 0xfcf   : > { %v8978_v0 = vpop.xlane.xlu0 %8977 }
 0xfd0   : > { %v15515_v39 = vsub.f32 %v15439_v47, %v8999_v43  ;;  %v9000_v26 = vmul.f32 0.0078125, %v8978_v0  ;;  %v9030_v48 = vmul.f32 %v15512_v50, %v15512_v50 }
 0xfd1   : > { %v8980_v40 = vpop.xlane.xlu1 %8979 }
 0xfd2   : > { %v15520_v38 = vsub.f32 %v15443_v62, %v9000_v26  ;;  %v9001_v12 = vmul.f32 0.0078125, %v8980_v40  ;;  %9054 = vadd.xlane.f32.xlu0 %v9030_v48  ;;  %v9031_v21 = vmul.f32 %v15515_v39, %v15515_v39 }
 0xfd4   : > { %v15525_v7 = vsub.f32 %v15447_v5, %v9001_v12  ;;  %9056 = vadd.xlane.f32.xlu1 %v9031_v21  ;;  %v9032_v47 = vmul.f32 %v15520_v38, %v15520_v38  ;;  %v15554_v12 = vld [vmem:[%s16322_s24] ss:$0 sm:$0xff]  ;;  %s16325_s24 = sld [smem:[#allocation67_spill]] }
 0xfd6   : > { %9058 = vadd.xlane.f32.xlu0 %v9032_v47  ;;  %v9033_v60 = vmul.f32 %v15525_v7, %v15525_v7  ;;  %v9253_v47 = vmul.f32 %v15554_v12, %v15463_v32 }
 0xfd8   : > { %9060 = vadd.xlane.f32.xlu1 %v9033_v60  ;;  %v9254_v60 = vmul.f32 %v15554_v12, %v15470_v37 }
 0xfdb   : > { %v8982_v33 = vpop.xlane.xlu0 %8981 }
 0xfdc   : > { %v9002_v62 = vmul.f32 0.0078125, %v8982_v33 }
 0xfdd   : > { %v8984_v15 = vpop.xlane.xlu1 %8983 }
 0xfde   : > { %v15532_v10 = vsub.f32 %v15454_v23, %v9002_v62  ;;  %v9003_v19 = vmul.f32 0.0078125, %v8984_v15  ;;  %v15563_v15 = vld [vmem:[%s16323_s17] ss:$0 sm:$0xff]  ;;  %s16326_s17 = sld [smem:[#allocation70_spill]] }
 0xfdf   : > { %v8986_v45 = vpop.xlane.xlu0 %8985 }
 0xfe0   : > { %v15535_v5 = vsub.f32 %v15459_v8, %v9003_v19  ;;  %v9004_v28 = vmul.f32 0.0078125, %v8986_v45  ;;  %v9034_v42 = vmul.f32 %v15532_v10, %v15532_v10  ;;  %v9255_v45 = vmul.f32 %v15554_v12, %v15477_v51 }
 0xfe1   : > { %v8988_v9 = vpop.xlane.xlu1 %8987 }
 0xfe2   : > { %v15540_v44 = vsub.f32 %v15466_v63, %v9004_v28  ;;  %v9005_v52 = vmul.f32 0.0078125, %v8988_v9  ;;  %9062 = vadd.xlane.f32.xlu0 %v9034_v42  ;;  %v9035_v49 = vmul.f32 %v15535_v5, %v15535_v5  ;;  %v9256_v42 = vmul.f32 %v15554_v12, %v15483_v36 }
 0xfe3   : > { %v9039_v23 = vpop.xlane.xlu0 %9038 }
 0xfe4   : > { %v15545_v1 = vsub.f32 %v15473_v58, %v9005_v52  ;;  %v9070_v55 = vmul.f32 0.007874016, %v9039_v23  ;;  %9064 = vadd.xlane.f32.xlu1 %v9035_v49  ;;  %v9036_v8 = vmul.f32 %v15540_v44, %v15540_v44 }
 0xfe5   : > { %v9041_v20 = vpop.xlane.xlu1 %9040 }
 0xfe6   : > { %12377 = vrsqrt.f32 %v9070_v55  ;;  %9066 = vadd.xlane.f32.xlu0 %v9036_v8  ;;  %v9071_v27 = vmul.f32 0.007874016, %v9041_v20  ;;  %v9037_v17 = vmul.f32 %v15545_v1, %v15545_v1  ;;  %vm9088_vm4 = vcmp.eq.f32.partialorder %v9070_v55, inf  ;;  %v12113_v8 = vld [vmem:[#allocation11] sm:$0xff]   ;;  %v12114_v20 = vld [vmem:[#allocation11 + $0x8] sm:$0xff]  }
 0xfe7   : > { %v9043_v63 = vpop.xlane.xlu0 %9042  ;;  %v9091_v3 = vand.u32 2147483648, %v9070_v55  ;;  %vm9090_vm5 = vcmp.eq.f32.partialorder %v9070_v55, 0.0  ;;  %11885 = vmatprep.subr.bf16.mxu0 %v12113_v8 }
 0xfe8   : > { %v9072_v41 = vmul.f32 0.007874016, %v9043_v63  ;;  %12379 = vrsqrt.f32 %v9071_v27  ;;  %9068 = vadd.xlane.f32.xlu1 %v9037_v17  ;;  %vm9095_vm6 = vcmp.eq.f32.partialorder %v9071_v27, inf  ;;  %v9098_v16 = vand.u32 2147483648, %v9071_v27  ;;  %11886 = vmatpush3.bf16.msra.mxu0 %v12113_v8  ;;  %v12116_v63 = vld [vmem:[#allocation11 + $0x18] sm:$0xff]   ;;  %v12117_v17 = vld [vmem:[#allocation11 + $0x20] sm:$0xff]  }
 0xfe9   : > { %v9045_v2 = vpop.xlane.xlu1 %9044  ;;  %vm9097_vm7 = vcmp.eq.f32.partialorder %v9071_v27, 0.0  ;;  %11887 = vmatprep.subr.bf16.mxu0 %v12114_v20  ;;  %v12119_v8 = vld [vmem:[#allocation11 + $0x30] sm:$0xff]  }
 0xfea   : > { %12381 = vrsqrt.f32 %v9072_v41  ;;  %v9073_v58 = vmul.f32 0.007874016, %v9045_v2  ;;  %vm9102_vm8 = vcmp.eq.f32.partialorder %v9072_v41, inf  ;;  %v9105_v56 = vand.u32 2147483648, %v9072_v41 }
 0xfeb   : > { %vm9104_vm9 = vcmp.eq.f32.partialorder %v9072_v41, 0.0 }
 0xfec   : > { %12383 = vrsqrt.f32 %v9073_v58  ;;  %vm9109_vm10 = vcmp.eq.f32.partialorder %v9073_v58, inf  ;;  %v9112_v0 = vand.u32 2147483648, %v9073_v58  ;;  %vm9111_vm11 = vcmp.eq.f32.partialorder %v9073_v58, 0.0  ;;  %11888 = vmatpush3.bf16.msra.mxu0 %v12114_v20  ;;  %v12120_v20 = vld [vmem:[#allocation11 + $0x38] sm:$0xff]  }
 0xff0   : > { %v12378_v34 = vpop.eup %12377 }
 0xff1   : > { %v9087_v6 = vmul.f32 %v12378_v34, %v9070_v55 }
 0xff2   : > { %v12380_v59 = vpop.eup %12379 }
 0xff3   : > { %v9089_v61 = vsel %vm9088_vm4, %v9070_v55, %v9087_v6  ;;  %v9094_v24 = vmul.f32 %v12380_v59, %v9071_v27 }
 0xff4   : > { %v12382_v13 = vpop.eup %12381  ;;  %v9092_v57 = vsel %vm9090_vm5, %v9091_v3, %v9089_v61 }
 0xff5   : > { %v9101_v53 = vmul.f32 %v12382_v13, %v9072_v41  ;;  %v9198_v14 = vadd.f32 1e-06, %v9092_v57  ;;  %v9096_v46 = vsel %vm9095_vm6, %v9071_v27, %v9094_v24  ;;  %v12115_v27 = vld [vmem:[#allocation11 + $0x10] sm:$0xff]  }
 0xff6   : > { %v12384_v18 = vpop.eup %12383  ;;  %v9099_v35 = vsel %vm9097_vm7, %v9098_v16, %v9096_v46  ;;  %11889 = vmatprep.subr.bf16.mxu0 %v12115_v27 }
 0xff7   : > { %v9103_v30 = vsel %vm9102_vm8, %v9072_v41, %v9101_v53  ;;  %12385 = vrcp.f32 %v9198_v14  ;;  %v9108_v54 = vmul.f32 %v12384_v18, %v9073_v58  ;;  %v9199_v4 = vadd.f32 1e-06, %v9099_v35  ;;  %11890 = vmatpush3.bf16.msra.mxu0 %v12115_v27  ;;  %v12118_v41 = vld [vmem:[#allocation11 + $0x28] sm:$0xff]  }
 0xff8   : > { %v9106_v25 = vsel %vm9104_vm9, %v9105_v56, %v9103_v30  ;;  %11891 = vmatprep.subr.bf16.mxu0 %v12116_v63 }
 0xff9   : > { %v9200_v43 = vadd.f32 1e-06, %v9106_v25  ;;  %v9110_v26 = vsel %vm9109_vm10, %v9073_v58, %v9108_v54  ;;  %12387 = vrcp.f32 %v9199_v4 }
 0xffa   : > { %v9113_v48 = vsel %vm9111_vm11, %v9112_v0, %v9110_v26 }
 0xffb   : > { %12389 = vrcp.f32 %v9200_v43  ;;  %v9201_v40 = vadd.f32 1e-06, %v9113_v48  ;;  %11892 = vmatpush3.bf16.msra.mxu0 %v12116_v63 }
 0xffc   : > { %11893 = vmatprep.subr.bf16.mxu0 %v12117_v17 }
 0xffd   : > { %12391 = vrcp.f32 %v9201_v40 }
 0xfff   : > { %11894 = vmatpush3.bf16.msra.mxu0 %v12117_v17 }
0x1000   : > { %11895 = vmatprep.subr.bf16.mxu0 %v12118_v41 }
0x1001   : > { %v12386_v21 = vpop.eup %12385 }
0x1002   : > { %v9269_v33 = vmul.f32 %v12386_v21, %v9253_v47 }
0x1003   : > { %v12388_v62 = vpop.eup %12387  ;;  %11896 = vmatpush3.bf16.msra.mxu0 %v12118_v41  ;;  %v9257_v41 = vmul.f32 %v15554_v12, %v15492_v31 }
0x1004   : > { %v9270_v28 = vmul.f32 %v12388_v62, %v9254_v60  ;;  %v15570_v32 = vadd.f32 %v15563_v15, %v9269_v33  ;;  %11897 = vmatprep.subr.bf16.mxu0 %v12119_v8 }
0x1005   : > { %v12390_v19 = vpop.eup %12389 }
0x1006   : > { %v9271_v9 = vmul.f32 %v12390_v19, %v9255_v45  ;;  %v15573_v37 = vadd.f32 %v15563_v15, %v9270_v28 }
0x1007   : > { %v12392_v52 = vpop.eup %12391  ;;  %11898 = vmatpush3.bf16.msra.mxu0 %v12119_v8 }
0x1008   : > { %v9272_v49 = vmul.f32 %v12392_v52, %v9256_v42  ;;  %v9308_v23 = vpack.c.bf16 %v15573_v37, %v15570_v32  ;;  %v15578_v55 = vadd.f32 %v15563_v15, %v9271_v9  ;;  %11899 = vmatprep.subr.bf16.mxu0 %v12120_v20 }
0x100a   : > { %11869 = vmatprep.mubr.bf16.mxu1 %v9308_v23  ;;  %v15581_v51 = vadd.f32 %v15563_v15, %v9272_v49 }
0x100b   : > { %11900 = vmatpush3.bf16.msra.mxu0 %v12120_v20 }
0x100c   : > { %v9309_v36 = vpack.c.bf16 %v15581_v51, %v15578_v55 }
0x100e   : > { %11870 = vmatmul.mubr.bf16.vlgmr.msra.gmra.mrb[48].mxu1 %v9309_v36 }
0x104f   : > { %v9047_v2 = vpop.xlane.xlu0 %9046 }
0x1050   : > { %v9074_v58 = vmul.f32 0.007874016, %v9047_v2  ;;  %v9258_v2 = vmul.f32 %v15554_v12, %v15495_v29 }
0x1051   : > { %v9049_v34 = vpop.xlane.xlu1 %9048 }
0x1052   : > { %12393 = vrsqrt.f32 %v9074_v58  ;;  %v9075_v6 = vmul.f32 0.007874016, %v9049_v34  ;;  %vm9116_vm12 = vcmp.eq.f32.partialorder %v9074_v58, inf  ;;  %vm9118_vm13 = vcmp.eq.f32.partialorder %v9074_v58, 0.0 }
0x1053   : > { %v9051_v3 = vpop.xlane.xlu0 %9050  ;;  %v9119_v14 = vand.u32 2147483648, %v9074_v58 }
0x1054   : > { %v9076_v59 = vmul.f32 0.007874016, %v9051_v3  ;;  %12395 = vrsqrt.f32 %v9075_v6  ;;  %vm9123_vm14 = vcmp.eq.f32.partialorder %v9075_v6, inf  ;;  %vm9125_vm15 = vcmp.eq.f32.partialorder %v9075_v6, 0.0 }
0x1055   : > { %v9053_v61 = vpop.xlane.xlu1 %9052  ;;  %v9126_v35 = vand.u32 2147483648, %v9075_v6  ;;  %v9260_v3 = vmul.f32 %v15554_v12, %v15505_v22 }
0x1056   : > { %12397 = vrsqrt.f32 %v9076_v59  ;;  %v9077_v13 = vmul.f32 0.007874016, %v9053_v61  ;;  %vm9130_vm0 = vcmp.eq.f32.partialorder %v9076_v59, inf  ;;  %vm9132_vm1 = vcmp.eq.f32.partialorder %v9076_v59, 0.0 }
0x1057   : > { %v9133_v0 = vand.u32 2147483648, %v9076_v59 }
0x1058   : > { %12399 = vrsqrt.f32 %v9077_v13  ;;  %vm9137_vm2 = vcmp.eq.f32.partialorder %v9077_v13, inf  ;;  %v9140_v28 = vand.u32 2147483648, %v9077_v13  ;;  %vm9139_vm3 = vcmp.eq.f32.partialorder %v9077_v13, 0.0 }
0x105c   : > { %v12394_v24 = vpop.eup %12393 }
0x105d   : > { %v9115_v57 = vmul.f32 %v12394_v24, %v9074_v58 }
0x105e   : > { %v12396_v16 = vpop.eup %12395 }
0x105f   : > { %v9117_v53 = vsel %vm9116_vm12, %v9074_v58, %v9115_v57  ;;  %v9055_v46 = vpop.xlane.xlu0 %9054  ;;  %v9122_v18 = vmul.f32 %v12396_v16, %v9075_v6 }
0x1060   : > { %v12398_v56 = vpop.eup %12397  ;;  %v15585_v30 = vmul.f32 0.007874016, %v9055_v46  ;;  %v9120_v4 = vsel %vm9118_vm13, %v9119_v14, %v9117_v53 }
0x1061   : > { %v9129_v25 = vmul.f32 %v12398_v56, %v9076_v59  ;;  %v9057_v54 = vpop.xlane.xlu1 %9056  ;;  %v9124_v43 = vsel %vm9123_vm14, %v9075_v6, %v9122_v18  ;;  %v9202_v19 = vadd.f32 1e-06, %v9120_v4  ;;  %v9259_v6 = vmul.f32 %v15554_v12, %v15500_v11 }
0x1062   : > { %12401 = vrsqrt.f32 %v15585_v30  ;;  %v12400_v26 = vpop.eup %12399  ;;  %v15588_v40 = vmul.f32 0.007874016, %v9057_v54  ;;  %v9127_v47 = vsel %vm9125_vm15, %v9126_v35, %v9124_v43  ;;  %vm9144_vm4 = vcmp.eq.f32.partialorder %v15585_v30, inf }
0x1063   : > { %v9131_v48 = vsel %vm9130_vm0, %v9076_v59, %v9129_v25  ;;  %v9059_v21 = vpop.xlane.xlu0 %9058  ;;  %v9136_v33 = vmul.f32 %v12400_v26, %v9077_v13  ;;  %v9203_v9 = vadd.f32 1e-06, %v9127_v47  ;;  %vm9146_vm5 = vcmp.eq.f32.partialorder %v15585_v30, 0.0 }
0x1064   : > { %v9134_v60 = vsel %vm9132_vm1, %v9133_v0, %v9131_v48  ;;  %v9080_v62 = vmul.f32 0.007874016, %v9059_v21  ;;  %12403 = vrsqrt.f32 %v15588_v40  ;;  %v9147_v31 = vand.u32 2147483648, %v15585_v30 }
0x1065   : > { %v9204_v45 = vadd.f32 1e-06, %v9134_v60  ;;  %v9061_v42 = vpop.xlane.xlu1 %9060  ;;  %v9138_v52 = vsel %vm9137_vm2, %v9077_v13, %v9136_v33  ;;  %vm9151_vm6 = vcmp.eq.f32.partialorder %v15588_v40, inf  ;;  %vm9153_vm11 = vcmp.eq.f32.partialorder %v15588_v40, 0.0 }
0x1066   : > { %12405 = vrsqrt.f32 %v9080_v62  ;;  %v9141_v49 = vsel %vm9139_vm3, %v9140_v28, %v9138_v52  ;;  %v15592_v36 = vmul.f32 0.007874016, %v9061_v42  ;;  %vm9158_vm7 = vcmp.eq.f32.partialorder %v9080_v62, inf }
0x1067   : > { %12407 = vrcp.f32 %v9204_v45  ;;  %v9205_v23 = vadd.f32 1e-06, %v9141_v49  ;;  %vm9160_vm8 = vcmp.eq.f32.partialorder %v9080_v62, 0.0  ;;  %v9161_v11 = vand.u32 2147483648, %v9080_v62 }
0x1068   : > { %12409 = vrcp.f32 %v9202_v19  ;;  %vm9165_vm9 = vcmp.eq.f32.partialorder %v15592_v36, inf  ;;  %vm9167_vm10 = vcmp.eq.f32.partialorder %v15592_v36, 0.0  ;;  %v9168_v48 = vand.u32 2147483648, %v15592_v36 }
0x1069   : > { %12411 = vrcp.f32 %v9203_v9  ;;  %v9154_v42 = vand.u32 2147483648, %v15588_v40 }
0x106a   : > { %12413 = vrcp.f32 %v9205_v23 }
0x106b   : > { %12415 = vrsqrt.f32 %v15592_v36 }
0x106c   : > { %v12402_v27 = vpop.eup %12401 }
0x106d   : > { %v9143_v63 = vmul.f32 %v12402_v27, %v15585_v30 }
0x106e   : > { %v12404_v17 = vpop.eup %12403 }
0x106f   : > { %v9063_v58 = vpop.xlane.xlu0 %9062  ;;  %v9145_v59 = vsel %vm9144_vm4, %v15585_v30, %v9143_v63  ;;  %v9150_v16 = vmul.f32 %v12404_v17, %v15588_v40 }
0x1070   : > { %v12406_v34 = vpop.eup %12405  ;;  %v15606_v61 = vmul.f32 0.007874016, %v9063_v58  ;;  %v9148_v56 = vsel %vm9146_vm5, %v9147_v31, %v9145_v59 }
0x1071   : > { %v12408_v13 = vpop.eup %12407  ;;  %v9157_v29 = vmul.f32 %v12406_v34, %v9080_v62  ;;  %v9065_v24 = vpop.xlane.xlu1 %9064  ;;  %v9206_v21 = vadd.f32 1e-06, %v9148_v56  ;;  %v9152_v47 = vsel %vm9151_vm6, %v15588_v40, %v9150_v16  ;;  %v9261_v34 = vmul.f32 %v15554_v12, %v15512_v50 }
0x1072   : > { %v12410_v57 = vpop.eup %12409  ;;  %12417 = vrsqrt.f32 %v15606_v61  ;;  %v15613_v14 = vmul.f32 0.007874016, %v9065_v24  ;;  %v9275_v33 = vmul.f32 %v12408_v13, %v9259_v6  ;;  %v9155_v20 = vsel %vm9153_vm11, %v9154_v42, %v9152_v47 }
0x1073   : > { %v12412_v22 = vpop.eup %12411  ;;  %v9159_v53 = vsel %vm9158_vm7, %v9080_v62, %v9157_v29  ;;  %v9067_v46 = vpop.xlane.xlu0 %9066  ;;  %v9273_v54 = vmul.f32 %v12410_v57, %v9257_v41  ;;  %vm9172_vm12 = vcmp.eq.f32.partialorder %v15606_v61, inf  ;;  %v9175_v17 = vand.u32 2147483648, %v15606_v61 }
0x1074   : > { %v12414_v18 = vpop.eup %12413  ;;  %v9162_v35 = vsel %vm9160_vm8, %v9161_v11, %v9159_v53  ;;  %v15617_v25 = vmul.f32 0.007874016, %v9067_v46  ;;  %v9274_v4 = vmul.f32 %v12412_v22, %v9258_v2  ;;  %12419 = vrsqrt.f32 %v15613_v14 }
0x1075   : > { %v12416_v43 = vpop.eup %12415  ;;  %v9208_v0 = vadd.f32 1e-06, %v9162_v35  ;;  %v9069_v30 = vpop.xlane.xlu1 %9068  ;;  %v15632_v19 = vadd.f32 %v15563_v15, %v9273_v54  ;;  %v9276_v28 = vmul.f32 %v12414_v18, %v9260_v3  ;;  %v15645_v23 = vadd.f32 %v15563_v15, %v9275_v33 }
0x1076   : > { %v9164_v26 = vmul.f32 %v12416_v43, %v15592_v36  ;;  %12421 = vrsqrt.f32 %v15617_v25  ;;  %v15628_v60 = vmul.f32 0.007874016, %v9069_v30  ;;  %v15635_v45 = vadd.f32 %v15563_v15, %v9274_v4 }
0x1077   : > { %12423 = vrcp.f32 %v9208_v0  ;;  %v15648_v8 = vadd.f32 %v15563_v15, %v9276_v28  ;;  %vm9174_vm13 = vcmp.eq.f32.partialorder %v15606_v61, 0.0  ;;  %v9262_v6 = vmul.f32 %v15554_v12, %v15515_v39 }
0x1078   : > { %v9166_v62 = vsel %vm9165_vm9, %v15592_v36, %v9164_v26  ;;  %12425 = vrsqrt.f32 %v15628_v60  ;;  %v9310_v49 = vpack.c.bf16 %v15635_v45, %v15632_v19  ;;  %v9207_v36 = vadd.f32 1e-06, %v9155_v20 }
0x1079   : > { %v9169_v9 = vsel %vm9167_vm10, %v9168_v48, %v9166_v62  ;;  %12427 = vrcp.f32 %v9206_v21  ;;  %v9311_v40 = vpack.c.bf16 %v15648_v8, %v15645_v23  ;;  %vm9179_vm14 = vcmp.eq.f32.partialorder %v15613_v14, inf }
0x107a   : > { %v9209_v52 = vadd.f32 1e-06, %v9169_v9  ;;  %11873 = vmatprep.mubr.bf16.mxu1 %v9310_v49  ;;  %v9182_v31 = vand.u32 2147483648, %v15613_v14  ;;  %vm9181_vm15 = vcmp.eq.f32.partialorder %v15613_v14, 0.0  ;;  %vm9186_vm0 = vcmp.eq.f32.partialorder %v15617_v25, inf }
0x107b   : > { %11874 = vmatmul.mubr.bf16.gmra.mrb[52].mxu1 %v9311_v40  ;;  %v9189_v50 = vand.u32 2147483648, %v15617_v25  ;;  %vm9188_vm1 = vcmp.eq.f32.partialorder %v15617_v25, 0.0  ;;  %v9263_v22 = vmul.f32 %v15554_v12, %v15520_v38  ;;  %vm9193_vm2 = vcmp.eq.f32.partialorder %v15628_v60, inf }
0x107c   : > { %v12418_v27 = vpop.eup %12417  ;;  %12429 = vrcp.f32 %v9209_v52  ;;  %v9196_v35 = vand.u32 2147483648, %v15628_v60  ;;  %vm9195_vm3 = vcmp.eq.f32.partialorder %v15628_v60, 0.0  ;;  %v9265_v28 = vmul.f32 %v15554_v12, %v15532_v10 }
0x107d   : > { %v9171_v63 = vmul.f32 %v12418_v27, %v15606_v61  ;;  %12431 = vrcp.f32 %v9207_v36  ;;  %v9266_v9 = vmul.f32 %v15554_v12, %v15535_v5  ;;  %v9267_v27 = vmul.f32 %v15554_v12, %v15540_v44 }
0x107e   : > { %v12420_v41 = vpop.eup %12419 }
0x107f   : > { %v9173_v2 = vsel %vm9172_vm12, %v15606_v61, %v9171_v63  ;;  %v9178_v3 = vmul.f32 %v12420_v41, %v15613_v14  ;;  %v9268_v63 = vmul.f32 %v15554_v12, %v15545_v1 }
0x1080   : > { %v12422_v58 = vpop.eup %12421  ;;  %v9176_v59 = vsel %vm9174_vm13, %v9175_v17, %v9173_v2 }
0x1081   : > { %v12424_v13 = vpop.eup %12423  ;;  %v9185_v29 = vmul.f32 %v12422_v58, %v15617_v25  ;;  %v9210_v24 = vadd.f32 1e-06, %v9176_v59  ;;  %v9180_v61 = vsel %vm9179_vm14, %v15613_v14, %v9178_v3  ;;  %v9264_v14 = vmul.f32 %v15554_v12, %v15525_v7  ;;  %v10458_v12 = vld [vmem:[%s16324_s20] ss:$0 sm:$0xff]  ;;  %s16327_s20 = sld [smem:[#allocation71_spill]] }
0x1082   : > { %v12426_v39 = vpop.eup %12425  ;;  %v9183_v11 = vsel %vm9181_vm15, %v9182_v31, %v9180_v61  ;;  %v9279_v4 = vmul.f32 %v12424_v13, %v9263_v22 }
0x1083   : > { %v9187_v57 = vsel %vm9186_vm0, %v15617_v25, %v9185_v29  ;;  %12433 = vrcp.f32 %v9210_v24  ;;  %v9192_v53 = vmul.f32 %v12426_v39, %v15628_v60  ;;  %v9211_v46 = vadd.f32 1e-06, %v9183_v11  ;;  %v12428_v56 = vpop.eup %12427 }
0x1084   : > { %v9190_v16 = vsel %vm9188_vm1, %v9189_v50, %v9187_v57  ;;  %v9277_v43 = vmul.f32 %v12428_v56, %v9261_v34  ;;  %v15684_v21 = vadd.f32 %v15563_v15, %v9279_v4 }
0x1085   : > { %v9212_v18 = vadd.f32 1e-06, %v9190_v16  ;;  %v9194_v25 = vsel %vm9193_vm2, %v15628_v60, %v9192_v53  ;;  %12435 = vrcp.f32 %v9211_v46 }
0x1086   : > { %v12430_v54 = vpop.eup %12429  ;;  %v9197_v38 = vsel %vm9195_vm3, %v9196_v35, %v9194_v25  ;;  %v15687_v47 = vadd.f32 %v15563_v15, %v9277_v43 }
0x1087   : > { %12437 = vrcp.f32 %v9212_v18  ;;  %v9280_v0 = vmul.f32 %v12430_v54, %v9264_v14  ;;  %v12432_v26 = vpop.eup %12431  ;;  %v9213_v48 = vadd.f32 1e-06, %v9197_v38 }
0x1088   : > { %v9278_v30 = vmul.f32 %v12432_v26, %v9262_v6 }
0x1089   : > { %v15681_v7 = vadd.f32 %v15563_v15, %v9280_v0  ;;  %12439 = vrcp.f32 %v9213_v48 }
0x108a   : > { %v15690_v60 = vadd.f32 %v15563_v15, %v9278_v30 }
0x108b   : > { %v9313_v33 = vpack.c.bf16 %v15681_v7, %v15684_v21 }
0x108c   : > { %v9312_v42 = vpack.c.bf16 %v15690_v60, %v15687_v47 }
0x108d   : > { %v12434_v62 = vpop.eup %12433 }
0x108e   : > { %11877 = vmatprep.mubr.bf16.mxu1 %v9312_v42  ;;  %v9281_v52 = vmul.f32 %v12434_v62, %v9265_v28 }
0x108f   : > { %v12436_v49 = vpop.eup %12435  ;;  %11878 = vmatmul.mubr.bf16.gmra.mrb[56].mxu1 %v9313_v33 }
0x1090   : > { %v9282_v36 = vmul.f32 %v12436_v49, %v9266_v9  ;;  %v15705_v10 = vadd.f32 %v15563_v15, %v9281_v52 }
0x1091   : > { %v12438_v20 = vpop.eup %12437 }
0x1092   : > { %v15708_v40 = vadd.f32 %v15563_v15, %v9282_v36  ;;  %v9283_v17 = vmul.f32 %v12438_v20, %v9267_v27 }
0x1093   : > { %v12440_v5 = vpop.eup %12439 }
0x1094   : > { %v9314_v41 = vpack.c.bf16 %v15708_v40, %v15705_v10  ;;  %v9284_v2 = vmul.f32 %v12440_v5, %v9268_v63  ;;  %v15713_v58 = vadd.f32 %v15563_v15, %v9283_v17 }
0x1096   : > { %11881 = vmatprep.mubr.bf16.mxu1 %v9314_v41  ;;  %v15716_v44 = vadd.f32 %v15563_v15, %v9284_v2 }
0x1098   : > { %v9315_v1 = vpack.c.bf16 %v15716_v44, %v15713_v58 }
0x109a   : > { %11882 = vmatmul.mubr.bf16.gmra.mrb[60].mxu1 %v9315_v1 }
0x10e1   : > { %v11871_v34 = vpop.f32.mrb[48].mxu1 }
0x10e2   : > { %v9430_v6 = vadd.f32 %v11871_v34, %v10458_v12  ;;  %v9421_v3 = vpop.f32.mrb[49].mxu1 }
0x10e3   : > { %v9422_v59 = vadd.f32 %v10458_v12, %v9421_v3  ;;  %v11872_v13 = vpop.f32.mrb[50].mxu1 }
0x10e4   : > { %v9433_v31 = vadd.f32 %v11872_v13, %v10458_v12  ;;  %v9424_v29 = vpop.f32.mrb[51].mxu1  ;;  %v9486_v61 = vmax.f32 %v9430_v6, 0.0 }
0x10e5   : > { %v9425_v24 = vadd.f32 %v10458_v12, %v9424_v29  ;;  %v9484_v15 = vmax.f32 %v9422_v59, 0.0 }
0x10e6   : > { %v9487_v50 = vmax.f32 %v9433_v31, 0.0 }
0x10e7   : > { %v9485_v39 = vmax.f32 %v9425_v24, 0.0 }
0x10e8   : > { %v9501_v57 = vpack.c.bf16 %v9487_v50, %v9486_v61  ;;  %v10467_v50 = vld [vmem:[%s16325_s24] ss:$0 sm:$0xff] }
0x10e9   : > { %v9500_v11 = vpack.c.bf16 %v9485_v39, %v9484_v15 }
0x10eb   : > { %11901 = vmatprep.mubr.bf16.mxu0 %v9500_v11 }
0x10ec   : > { %11902 = vmatmul.mubr.bf16.vlgmr.msra.gmra.mrb[16].mxu0 %v9501_v57 }
0x114e   : > { %v11875_v22 = vpop.f32.mrb[52].mxu1 }
0x114f   : > { %v9446_v16 = vadd.f32 %v11875_v22, %v10458_v12  ;;  %v9437_v53 = vpop.f32.mrb[53].mxu1 }
0x1150   : > { %v9438_v46 = vadd.f32 %v10458_v12, %v9437_v53  ;;  %v11876_v56 = vpop.f32.mrb[54].mxu1 }
0x1151   : > { %v9449_v14 = vadd.f32 %v11876_v56, %v10458_v12  ;;  %v9440_v18 = vpop.f32.mrb[55].mxu1  ;;  %v9490_v54 = vmax.f32 %v9446_v16, 0.0 }
0x1152   : > { %v9441_v35 = vadd.f32 %v10458_v12, %v9440_v18  ;;  %v9488_v4 = vmax.f32 %v9438_v46, 0.0 }
0x1153   : > { %v9491_v25 = vmax.f32 %v9449_v14, 0.0 }
0x1154   : > { %v9489_v38 = vmax.f32 %v9441_v35, 0.0 }
0x1155   : > { %v9503_v43 = vpack.c.bf16 %v9491_v25, %v9490_v54 }
0x1156   : > { %v9502_v0 = vpack.c.bf16 %v9489_v38, %v9488_v4 }
0x1158   : > { %11905 = vmatprep.mubr.bf16.mxu0 %v9502_v0 }
0x1159   : > { %11906 = vmatmul.mubr.bf16.gmra.mrb[20].mxu0 %v9503_v43 }
0x1162   : > { %v11879_v26 = vpop.f32.mrb[56].mxu1 }
0x1163   : > { %v9462_v48 = vadd.f32 %v11879_v26, %v10458_v12  ;;  %v9453_v30 = vpop.f32.mrb[57].mxu1 }
0x1164   : > { %v9454_v33 = vadd.f32 %v10458_v12, %v9453_v30  ;;  %v11880_v62 = vpop.f32.mrb[58].mxu1 }
0x1165   : > { %v9465_v28 = vadd.f32 %v11880_v62, %v10458_v12  ;;  %v9456_v42 = vpop.f32.mrb[59].mxu1  ;;  %v9494_v52 = vmax.f32 %v9462_v48, 0.0 }
0x1166   : > { %v9457_v9 = vadd.f32 %v10458_v12, %v9456_v42  ;;  %v9492_v20 = vmax.f32 %v9454_v33, 0.0 }
0x1167   : > { %v9495_v49 = vmax.f32 %v9465_v28, 0.0 }
0x1168   : > { %v9493_v27 = vmax.f32 %v9457_v9, 0.0 }
0x1169   : > { %v9505_v36 = vpack.c.bf16 %v9495_v49, %v9494_v52 }
0x116a   : > { %v9504_v63 = vpack.c.bf16 %v9493_v27, %v9492_v20 }
0x116c   : > { %11909 = vmatprep.mubr.bf16.mxu0 %v9504_v63 }
0x116d   : > { %11910 = vmatmul.mubr.bf16.gmra.mrb[24].mxu0 %v9505_v36  ;;  %v11883_v17 = vpop.f32.mrb[60].mxu1 }
0x116e   : > { %v9478_v5 = vadd.f32 %v11883_v17, %v10458_v12  ;;  %v9469_v41 = vpop.f32.mrb[61].mxu1 }
0x116f   : > { %v9470_v2 = vadd.f32 %v10458_v12, %v9469_v41  ;;  %v11884_v1 = vpop.f32.mrb[62].mxu1 }
0x1170   : > { %v9481_v34 = vadd.f32 %v11884_v1, %v10458_v12  ;;  %v9472_v6 = vpop.f32.mrb[63].mxu1  ;;  %v9498_v59 = vmax.f32 %v9478_v5, 0.0 }
0x1171   : > { %v9473_v3 = vadd.f32 %v10458_v12, %v9472_v6  ;;  %v9496_v31 = vmax.f32 %v9470_v2, 0.0 }
0x1172   : > { %v9499_v13 = vmax.f32 %v9481_v34, 0.0 }
0x1173   : > { %v9497_v29 = vmax.f32 %v9473_v3, 0.0 }
0x1174   : > { %v9507_v24 = vpack.c.bf16 %v9499_v13, %v9498_v59 }
0x1175   : > { %v9506_v61 = vpack.c.bf16 %v9497_v29, %v9496_v31 }
0x1177   : > { %11913 = vmatprep.mubr.bf16.mxu0 %v9506_v61 }
0x1178   : > { %11914 = vmatmul.mubr.bf16.gmra.mrb[28].mxu0 %v9507_v24 }
0x11bf   : > { %v11903_v15 = vpop.f32.mrb[16].mxu0 }
0x11c0   : > { %v9622_v39 = vadd.f32 %v11903_v15, %v10467_v50  ;;  %v9613_v57 = vpop.f32.mrb[17].mxu0 }
0x11c1   : > { %v11904_v11 = vpop.f32.mrb[18].mxu0  ;;  %v9614_v12 = vadd.f32 %v10467_v50, %v9613_v57 }
0x11c2   : > { %v15727_v22 = vadd.f32 %v9622_v39, %v15578_v55  ;;  %v9625_v16 = vadd.f32 %v11904_v11, %v10467_v50  ;;  %v9616_v53 = vpop.f32.mrb[19].mxu0 }
0x11c3   : > { %v9617_v56 = vadd.f32 %v10467_v50, %v9616_v53  ;;  %v9676_v14 = vadd.f32 %v9614_v12, %v15570_v32 }
0x11c4   : > { %v15730_v46 = vadd.f32 %v9625_v16, %v15581_v51  ;;  %9696 = vadd.xlane.f32.xlu0 %v15727_v22 }
0x11c5   : > { %v9677_v18 = vadd.f32 %v9617_v56, %v15573_v37 }
0x11c6   : > { %9698 = vadd.xlane.f32.xlu1 %v15730_v46 }
0x11c8   : > { %9692 = vadd.xlane.f32.xlu0 %v9676_v14 }
0x11ca   : > { %9694 = vadd.xlane.f32.xlu1 %v9677_v18 }
0x122c   : > { %v11907_v35 = vpop.f32.mrb[20].mxu0 }
0x122d   : > { %v9638_v55 = vadd.f32 %v11907_v35, %v10467_v50  ;;  %v9629_v54 = vpop.f32.mrb[21].mxu0 }
0x122e   : > { %v11908_v25 = vpop.f32.mrb[22].mxu0  ;;  %v9630_v51 = vadd.f32 %v10467_v50, %v9629_v54 }
0x122f   : > { %v15737_v4 = vadd.f32 %v9638_v55, %v15645_v23  ;;  %v9641_v38 = vadd.f32 %v11908_v25, %v10467_v50  ;;  %v9632_v43 = vpop.f32.mrb[23].mxu0 }
0x1230   : > { %v9633_v32 = vadd.f32 %v10467_v50, %v9632_v43  ;;  %v15744_v37 = vadd.f32 %v9630_v51, %v15632_v19 }
0x1231   : > { %v15740_v0 = vadd.f32 %v9641_v38, %v15648_v8  ;;  %9704 = vadd.xlane.f32.xlu0 %v15737_v4 }
0x1232   : > { %v15748_v26 = vadd.f32 %v9633_v32, %v15635_v45 }
0x1233   : > { %9706 = vadd.xlane.f32.xlu1 %v15740_v0 }
0x1235   : > { %9700 = vadd.xlane.f32.xlu0 %v15744_v37 }
0x1237   : > { %9702 = vadd.xlane.f32.xlu1 %v15748_v26 }
0x1240   : > { %v11911_v23 = vpop.f32.mrb[24].mxu0 }
0x1241   : > { %v9654_v48 = vadd.f32 %v11911_v23, %v10467_v50  ;;  %v9645_v30 = vpop.f32.mrb[25].mxu0 }
0x1242   : > { %v11912_v8 = vpop.f32.mrb[26].mxu0  ;;  %v9646_v62 = vadd.f32 %v10467_v50, %v9645_v30 }
0x1243   : > { %v15753_v33 = vadd.f32 %v9654_v48, %v15684_v21  ;;  %v9657_v28 = vadd.f32 %v11912_v8, %v10467_v50  ;;  %v9648_v19 = vpop.f32.mrb[27].mxu0 }
0x1244   : > { %v9649_v9 = vadd.f32 %v10467_v50, %v9648_v19  ;;  %v15760_v45 = vadd.f32 %v9646_v62, %v15687_v47 }
0x1245   : > { %v15756_v42 = vadd.f32 %v9657_v28, %v15681_v7  ;;  %9712 = vadd.xlane.f32.xlu0 %v15753_v33 }
0x1246   : > { %v15764_v52 = vadd.f32 %v9649_v9, %v15690_v60 }
0x1247   : > { %9714 = vadd.xlane.f32.xlu1 %v15756_v42 }
0x1249   : > { %9708 = vadd.xlane.f32.xlu0 %v15760_v45 }
0x124b   : > { %9710 = vadd.xlane.f32.xlu1 %v15764_v52  ;;  %v11915_v21 = vpop.f32.mrb[28].mxu0 }
0x124c   : > { %v9661_v49 = vpop.f32.mrb[29].mxu0  ;;  %v9670_v36 = vadd.f32 %v11915_v21, %v10467_v50 }
0x124d   : > { %v9662_v20 = vadd.f32 %v10467_v50, %v9661_v49  ;;  %v11916_v7 = vpop.f32.mrb[30].mxu0 }
0x124e   : > { %v9664_v27 = vpop.f32.mrb[31].mxu0  ;;  %v9673_v17 = vadd.f32 %v11916_v7, %v10467_v50  ;;  %v15776_v41 = vadd.f32 %v9670_v36, %v15713_v58 }
0x124f   : > { %v15769_v63 = vadd.f32 %v9662_v20, %v15705_v10  ;;  %v9665_v47 = vadd.f32 %v10467_v50, %v9664_v27 }
0x1250   : > { %v15780_v1 = vadd.f32 %v9673_v17, %v15716_v44 }
0x1251   : > { %v15772_v5 = vadd.f32 %v9665_v47, %v15708_v40  ;;  %v9697_v60 = vpop.xlane.xlu0 %9696  ;;  %9716 = vadd.xlane.f32.xlu0 %v15769_v63 }
0x1252   : > { %v9726_v34 = vmul.f32 0.0078125, %v9697_v60 }
0x1253   : > { %v9699_v2 = vpop.xlane.xlu1 %9698  ;;  %9718 = vadd.xlane.f32.xlu1 %v15772_v5 }
0x1254   : > { %v9727_v3 = vmul.f32 0.0078125, %v9699_v2  ;;  %v15787_v58 = vsub.f32 %v15727_v22, %v9726_v34 }
0x1255   : > { %9720 = vadd.xlane.f32.xlu0 %v15776_v41  ;;  %v9693_v10 = vpop.xlane.xlu0 %9692 }
0x1256   : > { %v9724_v6 = vmul.f32 0.0078125, %v9693_v10  ;;  %v15794_v29 = vsub.f32 %v15730_v46, %v9727_v3  ;;  %v9758_v61 = vmul.f32 %v15787_v58, %v15787_v58 }
0x1257   : > { %9722 = vadd.xlane.f32.xlu1 %v15780_v1  ;;  %v9695_v40 = vpop.xlane.xlu1 %9694 }
0x1258   : > { %v15784_v59 = vsub.f32 %v9676_v14, %v9724_v6  ;;  %v9725_v13 = vmul.f32 0.0078125, %v9695_v40  ;;  %v9759_v50 = vmul.f32 %v15794_v29, %v15794_v29 }
0x125a   : > { %v15789_v31 = vsub.f32 %v9677_v18, %v9725_v13  ;;  %v9756_v44 = vmul.f32 %v15784_v59, %v15784_v59 }
0x125c   : > { %9772 = vadd.xlane.f32.xlu0 %v9756_v44  ;;  %v9757_v24 = vmul.f32 %v15789_v31, %v15789_v31 }
0x125e   : > { %9774 = vadd.xlane.f32.xlu1 %v9757_v24 }
0x1260   : > { %9776 = vadd.xlane.f32.xlu0 %v9758_v61 }
0x1262   : > { %9778 = vadd.xlane.f32.xlu1 %v9759_v50 }
0x12be   : > { %v9705_v15 = vpop.xlane.xlu0 %9704 }
0x12bf   : > { %v9730_v39 = vmul.f32 0.0078125, %v9705_v15 }
0x12c0   : > { %v9707_v57 = vpop.xlane.xlu1 %9706 }
0x12c1   : > { %v15803_v11 = vsub.f32 %v15737_v4, %v9730_v39  ;;  %v9731_v22 = vmul.f32 0.0078125, %v9707_v57 }
0x12c2   : > { %v9701_v12 = vpop.xlane.xlu0 %9700 }
0x12c3   : > { %v15806_v16 = vsub.f32 %v15740_v0, %v9731_v22  ;;  %v9728_v53 = vmul.f32 0.0078125, %v9701_v12  ;;  %v9762_v46 = vmul.f32 %v15803_v11, %v15803_v11 }
0x12c4   : > { %v9703_v56 = vpop.xlane.xlu1 %9702 }
0x12c5   : > { %v15811_v14 = vsub.f32 %v15744_v37, %v9728_v53  ;;  %v9729_v18 = vmul.f32 0.0078125, %v9703_v56  ;;  %9784 = vadd.xlane.f32.xlu0 %v9762_v46  ;;  %v9763_v35 = vmul.f32 %v15806_v16, %v15806_v16 }
0x12c7   : > { %v15816_v55 = vsub.f32 %v15748_v26, %v9729_v18  ;;  %9786 = vadd.xlane.f32.xlu1 %v9763_v35  ;;  %v9760_v54 = vmul.f32 %v15811_v14, %v15811_v14 }
0x12c9   : > { %9780 = vadd.xlane.f32.xlu0 %v9760_v54  ;;  %v9761_v25 = vmul.f32 %v15816_v55, %v15816_v55 }
0x12cb   : > { %9782 = vadd.xlane.f32.xlu1 %v9761_v25 }
0x12d2   : > { %v9713_v4 = vpop.xlane.xlu0 %9712 }
0x12d3   : > { %v9734_v51 = vmul.f32 0.0078125, %v9713_v4 }
0x12d4   : > { %v9715_v38 = vpop.xlane.xlu1 %9714 }
0x12d5   : > { %v15823_v43 = vsub.f32 %v15753_v33, %v9734_v51  ;;  %v9735_v0 = vmul.f32 0.0078125, %v9715_v38 }
0x12d6   : > { %v9709_v32 = vpop.xlane.xlu0 %9708 }
0x12d7   : > { %v15826_v37 = vsub.f32 %v15756_v42, %v9735_v0  ;;  %v9732_v26 = vmul.f32 0.0078125, %v9709_v32  ;;  %v9766_v23 = vmul.f32 %v15823_v43, %v15823_v43 }
0x12d8   : > { %v9711_v48 = vpop.xlane.xlu1 %9710 }
0x12d9   : > { %v15831_v30 = vsub.f32 %v15760_v45, %v9732_v26  ;;  %v9733_v8 = vmul.f32 0.0078125, %v9711_v48  ;;  %9792 = vadd.xlane.f32.xlu0 %v9766_v23  ;;  %v9767_v62 = vmul.f32 %v15826_v37, %v15826_v37 }
0x12db   : > { %v15836_v33 = vsub.f32 %v15764_v52, %v9733_v8  ;;  %9794 = vadd.xlane.f32.xlu1 %v9767_v62  ;;  %v9764_v28 = vmul.f32 %v15831_v30, %v15831_v30  ;;  %v15865_v8 = vld [vmem:[%s16326_s17] ss:$0 sm:$0xff]  ;;  %s16015_s17 = scalar_lea.hbm %s16328_s4, %s10532_s16 }
0x12dc   : > { %v9987_v62 = vmul.f32 %v15865_v8, %v15784_v59 }
0x12dd   : > { %9788 = vadd.xlane.f32.xlu0 %v9764_v28  ;;  %v9765_v19 = vmul.f32 %v15836_v33, %v15836_v33 }
0x12de   : > { %v9717_v42 = vpop.xlane.xlu0 %9716 }
0x12df   : > { %9790 = vadd.xlane.f32.xlu1 %v9765_v19  ;;  %v9736_v9 = vmul.f32 0.0078125, %v9717_v42  ;;  %v15872_v19 = vld [vmem:[%s16327_s20] ss:$0 sm:$0xff]  ;;  %s12698_s20 = sshll.u32 %s12789_s1, 4  ;;  %s12699_s20 = int_to_ptr.vmem [resolvable:$false] %s12698_s20 }
0x12e0   : > { %v9719_v45 = vpop.xlane.xlu1 %9718  ;;  %s12700_s24 = scalar_lea.vmem %s12699_s20, 4096  ;;  %p12701_p13 = scmp.lt.s32.totalorder %s16017_s15, %s12699_s20 }
0x12e1   : > { %v15843_v21 = vsub.f32 %v15769_v63, %v9736_v9  ;;  %v9737_v49 = vmul.f32 0.0078125, %v9719_v45  ;;  %v9988_v9 = vmul.f32 %v15865_v8, %v15789_v31  ;;  %v9990_v31 = vmul.f32 %v15865_v8, %v15794_v29  ;;  %p12702_p0 = scmp.lt.s32.totalorder %s12700_s24, %s12694_s26 }
0x12e2   : > { %v9721_v20 = vpop.xlane.xlu0 %9720 }
0x12e3   : > { %v15846_v52 = vsub.f32 %v15772_v5, %v9737_v49  ;;  %v9738_v7 = vmul.f32 0.0078125, %v9721_v20  ;;  %v9768_v27 = vmul.f32 %v15843_v21, %v15843_v21  ;;  %v9989_v49 = vmul.f32 %v15865_v8, %v15787_v58  ;;  %p12703_p2 = por %p12702_p0, %p12701_p13 }
0x12e4   : > { %v9723_v36 = vpop.xlane.xlu1 %9722 }
0x12e5   : > { %v15851_v47 = vsub.f32 %v15776_v41, %v9738_v7  ;;  %v9739_v17 = vmul.f32 0.0078125, %v9723_v36  ;;  %9796 = vadd.xlane.f32.xlu0 %v9768_v27  ;;  %v9769_v60 = vmul.f32 %v15846_v52, %v15846_v52  ;;  %p12704_p8 = pnand %p12703_p2, %p12697_p1 }
0x12e7   : > { %v15856_v63 = vsub.f32 %v15780_v1, %v9739_v17  ;;  %9798 = vadd.xlane.f32.xlu1 %v9769_v60  ;;  %v9770_v5 = vmul.f32 %v15851_v47, %v15851_v47 }
0x12e9   : > { %9800 = vadd.xlane.f32.xlu0 %v9770_v5  ;;  %v9773_v2 = vpop.xlane.xlu0 %9772  ;;  %v9771_v10 = vmul.f32 %v15856_v63, %v15856_v63 }
0x12ea   : > { %v9804_v34 = vmul.f32 0.007874016, %v9773_v2 }
0x12eb   : > { %9802 = vadd.xlane.f32.xlu1 %v9771_v10  ;;  %v9775_v41 = vpop.xlane.xlu1 %9774 }
0x12ec   : > { %12441 = vrsqrt.f32 %v9804_v34  ;;  %v9805_v6 = vmul.f32 0.007874016, %v9775_v41  ;;  %vm9822_vm4 = vcmp.eq.f32.partialorder %v9804_v34, inf  ;;  %v9825_v61 = vand.u32 2147483648, %v9804_v34 }
0x12ed   : > { %v9777_v40 = vpop.xlane.xlu0 %9776  ;;  %vm9824_vm5 = vcmp.eq.f32.partialorder %v9804_v34, 0.0 }
0x12ee   : > { %v9806_v3 = vmul.f32 0.007874016, %v9777_v40  ;;  %12443 = vrsqrt.f32 %v9805_v6  ;;  %vm9829_vm6 = vcmp.eq.f32.partialorder %v9805_v6, inf  ;;  %v9832_v53 = vand.u32 2147483648, %v9805_v6 }
0x12ef   : > { %v9779_v13 = vpop.xlane.xlu1 %9778  ;;  %vm9831_vm7 = vcmp.eq.f32.partialorder %v9805_v6, 0.0 }
0x12f0   : > { %12445 = vrsqrt.f32 %v9806_v3  ;;  %v9807_v1 = vmul.f32 0.007874016, %v9779_v13  ;;  %vm9836_vm8 = vcmp.eq.f32.partialorder %v9806_v3, inf  ;;  %v9839_v18 = vand.u32 2147483648, %v9806_v3 }
0x12f1   : > { %vm9838_vm9 = vcmp.eq.f32.partialorder %v9806_v3, 0.0 }
0x12f2   : > { %12447 = vrsqrt.f32 %v9807_v1  ;;  %vm9843_vm10 = vcmp.eq.f32.partialorder %v9807_v1, inf  ;;  %v9846_v32 = vand.u32 2147483648, %v9807_v1  ;;  %vm9845_vm11 = vcmp.eq.f32.partialorder %v9807_v1, 0.0 }
0x12f6   : > { %v12442_v44 = vpop.eup %12441 }
0x12f7   : > { %v9821_v24 = vmul.f32 %v12442_v44, %v9804_v34 }
0x12f8   : > { %v12444_v50 = vpop.eup %12443 }
0x12f9   : > { %v9823_v15 = vsel %vm9822_vm4, %v9804_v34, %v9821_v24  ;;  %v9828_v22 = vmul.f32 %v12444_v50, %v9805_v6 }
0x12fa   : > { %v12446_v39 = vpop.eup %12445  ;;  %v9826_v57 = vsel %vm9824_vm5, %v9825_v61, %v9823_v15 }
0x12fb   : > { %v9932_v12 = vadd.f32 1e-06, %v9826_v57  ;;  %v9835_v46 = vmul.f32 %v12446_v39, %v9806_v3  ;;  %v9830_v56 = vsel %vm9829_vm6, %v9805_v6, %v9828_v22 }
0x12fc   : > { %v12448_v35 = vpop.eup %12447  ;;  %v9833_v54 = vsel %vm9831_vm7, %v9832_v53, %v9830_v56 }
0x12fd   : > { %12449 = vrcp.f32 %v9932_v12  ;;  %v9837_v25 = vsel %vm9836_vm8, %v9806_v3, %v9835_v46  ;;  %v9933_v4 = vadd.f32 1e-06, %v9833_v54  ;;  %v9842_v38 = vmul.f32 %v12448_v35, %v9807_v1 }
0x12fe   : > { %v9840_v51 = vsel %vm9838_vm9, %v9839_v18, %v9837_v25 }
0x12ff   : > { %v9934_v0 = vadd.f32 1e-06, %v9840_v51  ;;  %12451 = vrcp.f32 %v9933_v4  ;;  %v9844_v26 = vsel %vm9843_vm10, %v9807_v1, %v9842_v38 }
0x1300   : > { %v9847_v23 = vsel %vm9845_vm11, %v9846_v32, %v9844_v26 }
0x1301   : > { %12453 = vrcp.f32 %v9934_v0  ;;  %v9935_v48 = vadd.f32 1e-06, %v9847_v23 }
0x1303   : > { %12455 = vrcp.f32 %v9935_v48 }
0x1307   : > { %v12450_v28 = vpop.eup %12449 }
0x1308   : > { %v10003_v42 = vmul.f32 %v12450_v28, %v9987_v62 }
0x1309   : > { %v12452_v45 = vpop.eup %12451 }
0x130a   : > { %v10026_v20 = vadd.f32 %v15872_v19, %v10003_v42  ;;  %v10004_v27 = vmul.f32 %v12452_v45, %v9988_v9 }
0x130b   : > { %v12454_v7 = vpop.eup %12453 }
0x130c   : > { %10042 = vst [vmem:[%s15881_s0] sm:$0xff] %v10026_v20  ;;  %v10005_v59 = vmul.f32 %v12454_v7, %v9989_v49  ;;  %v10027_v36 = vadd.f32 %v15872_v19, %v10004_v27  ;;  %v9993_v20 = vmul.f32 %v15865_v8, %v15803_v11 }
0x130d   : > { %v12456_v17 = vpop.eup %12455 }
0x130e   : > { %v10028_v58 = vadd.f32 %v15872_v19, %v10005_v59  ;;  %10043 = vst [vmem:[%s15881_s0 + $0x8] sm:$0xff] %v10027_v36  ;;  %v10006_v60 = vmul.f32 %v12456_v17, %v9990_v31  ;;  %v9994_v36 = vmul.f32 %v15865_v8, %v15806_v16  ;;  %v9991_v17 = vmul.f32 %v15865_v8, %v15811_v14 }
0x1310   : > { %10044 = vst [vmem:[%s15881_s0 + $0x10] sm:$0xff] %v10028_v58  ;;  %v10029_v5 = vadd.f32 %v15872_v19, %v10006_v60  ;;  %v9992_v58 = vmul.f32 %v15865_v8, %v15816_v55 }
0x1312   : > { %10045 = vst [vmem:[%s15881_s0 + $0x18] sm:$0xff] %v10029_v5 }
0x1352   : > { %v9785_v2 = vpop.xlane.xlu0 %9784 }
0x1353   : > { %v9810_v10 = vmul.f32 0.007874016, %v9785_v2 }
0x1354   : > { %v9787_v34 = vpop.xlane.xlu1 %9786 }
0x1355   : > { %12457 = vrsqrt.f32 %v9810_v10  ;;  %v9811_v41 = vmul.f32 0.007874016, %v9787_v34  ;;  %vm9864_vm12 = vcmp.eq.f32.partialorder %v9810_v10, inf  ;;  %v9867_v44 = vand.u32 2147483648, %v9810_v10 }
0x1356   : > { %v9781_v6 = vpop.xlane.xlu0 %9780  ;;  %vm9866_vm13 = vcmp.eq.f32.partialorder %v9810_v10, 0.0 }
0x1357   : > { %v9808_v40 = vmul.f32 0.007874016, %v9781_v6  ;;  %12459 = vrsqrt.f32 %v9811_v41  ;;  %vm9871_vm14 = vcmp.eq.f32.partialorder %v9811_v41, inf  ;;  %v9874_v12 = vand.u32 2147483648, %v9811_v41 }
0x1358   : > { %v9783_v29 = vpop.xlane.xlu1 %9782  ;;  %vm9873_vm15 = vcmp.eq.f32.partialorder %v9811_v41, 0.0 }
0x1359   : > { %12461 = vrsqrt.f32 %v9808_v40  ;;  %v9809_v3 = vmul.f32 0.007874016, %v9783_v29  ;;  %vm9850_vm0 = vcmp.eq.f32.partialorder %v9808_v40, inf  ;;  %v9853_v18 = vand.u32 2147483648, %v9808_v40 }
0x135a   : > { %vm9852_vm1 = vcmp.eq.f32.partialorder %v9808_v40, 0.0 }
0x135b   : > { %12463 = vrsqrt.f32 %v9809_v3  ;;  %vm9857_vm2 = vcmp.eq.f32.partialorder %v9809_v3, inf  ;;  %v9860_v23 = vand.u32 2147483648, %v9809_v3  ;;  %vm9859_vm3 = vcmp.eq.f32.partialorder %v9809_v3, 0.0 }
0x135f   : > { %v12458_v13 = vpop.eup %12457 }
0x1360   : > { %v9863_v1 = vmul.f32 %v12458_v13, %v9810_v10 }
0x1361   : > { %v12460_v24 = vpop.eup %12459 }
0x1362   : > { %v9865_v61 = vsel %vm9864_vm12, %v9810_v10, %v9863_v1  ;;  %v9870_v39 = vmul.f32 %v12460_v24, %v9811_v41 }
0x1363   : > { %v12462_v50 = vpop.eup %12461  ;;  %v9868_v15 = vsel %vm9866_vm13, %v9867_v44, %v9865_v61 }
0x1364   : > { %v9938_v22 = vadd.f32 1e-06, %v9868_v15  ;;  %v9849_v53 = vmul.f32 %v12462_v50, %v9808_v40  ;;  %v9872_v56 = vsel %vm9871_vm14, %v9811_v41, %v9870_v39 }
0x1365   : > { %v12464_v54 = vpop.eup %12463  ;;  %v9875_v25 = vsel %vm9873_vm15, %v9874_v12, %v9872_v56 }
0x1366   : > { %v9793_v57 = vpop.xlane.xlu0 %9792  ;;  %12465 = vrcp.f32 %v9938_v22  ;;  %v9851_v4 = vsel %vm9850_vm0, %v9808_v40, %v9849_v53  ;;  %v9939_v51 = vadd.f32 1e-06, %v9875_v25  ;;  %v9856_v0 = vmul.f32 %v12464_v54, %v9809_v3 }
0x1367   : > { %v15892_v46 = vmul.f32 0.007874016, %v9793_v57  ;;  %v9854_v38 = vsel %vm9852_vm1, %v9853_v18, %v9851_v4 }
0x1368   : > { %v9795_v35 = vpop.xlane.xlu1 %9794  ;;  %v9936_v26 = vadd.f32 1e-06, %v9854_v38  ;;  %v9858_v62 = vsel %vm9857_vm2, %v9809_v3, %v9856_v0 }
0x1369   : > { %12467 = vrsqrt.f32 %v15892_v46  ;;  %v15895_v48 = vmul.f32 0.007874016, %v9795_v35  ;;  %v9861_v9 = vsel %vm9859_vm3, %v9860_v23, %v9858_v62  ;;  %vm9892_vm4 = vcmp.eq.f32.partialorder %v15892_v46, inf }
0x136a   : > { %v9789_v32 = vpop.xlane.xlu0 %9788  ;;  %12469 = vrcp.f32 %v9939_v51  ;;  %v9937_v45 = vadd.f32 1e-06, %v9861_v9  ;;  %vm9894_vm5 = vcmp.eq.f32.partialorder %v15892_v46, 0.0  ;;  %v9895_v10 = vand.u32 2147483648, %v15892_v46 }
0x136b   : > { %v15897_v28 = vmul.f32 0.007874016, %v9789_v32  ;;  %12471 = vrcp.f32 %v9936_v26  ;;  %vm9899_vm6 = vcmp.eq.f32.partialorder %v15895_v48, inf  ;;  %vm9901_vm7 = vcmp.eq.f32.partialorder %v15895_v48, 0.0 }
0x136c   : > { %v9791_v42 = vpop.xlane.xlu1 %9790  ;;  %12473 = vrsqrt.f32 %v15895_v48  ;;  %v9902_v1 = vand.u32 2147483648, %v15895_v48 }
0x136d   : > { %12475 = vrsqrt.f32 %v15897_v28  ;;  %v15901_v49 = vmul.f32 0.007874016, %v9791_v42  ;;  %vm9878_vm8 = vcmp.eq.f32.partialorder %v15897_v28, inf  ;;  %vm9880_vm9 = vcmp.eq.f32.partialorder %v15897_v28, 0.0 }
0x136e   : > { %12477 = vrcp.f32 %v9937_v45 }
0x136f   : > { %12479 = vrsqrt.f32 %v15901_v49  ;;  %vm9885_vm10 = vcmp.eq.f32.partialorder %v15901_v49, inf  ;;  %v9888_v38 = vand.u32 2147483648, %v15901_v49  ;;  %vm9887_vm11 = vcmp.eq.f32.partialorder %v15901_v49, 0.0 }
0x1370   : > { %v12466_v27 = vpop.eup %12465 }
0x1371   : > { %v10009_v60 = vmul.f32 %v12466_v27, %v9993_v20  ;;  %v9997_v27 = vmul.f32 %v15865_v8, %v15823_v43 }
0x1372   : > { %v9797_v7 = vpop.xlane.xlu0 %9796 }
0x1373   : > { %v15906_v59 = vmul.f32 0.007874016, %v9797_v7  ;;  %v12468_v31 = vpop.eup %12467  ;;  %v10032_v16 = vadd.f32 %v15872_v19, %v10009_v60 }
0x1374   : > { %v9799_v5 = vpop.xlane.xlu1 %9798  ;;  %v9891_v2 = vmul.f32 %v12468_v31, %v15892_v46  ;;  %v12470_v11 = vpop.eup %12469 }
0x1375   : > { %12481 = vrsqrt.f32 %v15906_v59  ;;  %v15921_v14 = vmul.f32 0.007874016, %v9799_v5  ;;  %v12472_v34 = vpop.eup %12471  ;;  %v10010_v41 = vmul.f32 %v12470_v11, %v9994_v36  ;;  %10048 = vst [vmem:[%s15881_s0 + $0x30] sm:$0xff] %v10032_v16  ;;  %vm9906_vm12 = vcmp.eq.f32.partialorder %v15906_v59, inf }
0x1376   : > { %v9801_v55 = vpop.xlane.xlu0 %9800  ;;  %v9893_v6 = vsel %vm9892_vm4, %v15892_v46, %v9891_v2  ;;  %v12474_v29 = vpop.eup %12473  ;;  %v10007_v3 = vmul.f32 %v12472_v34, %v9991_v17  ;;  %v9881_v46 = vand.u32 2147483648, %v15897_v28  ;;  %vm9908_vm13 = vcmp.eq.f32.partialorder %v15906_v59, 0.0 }
0x1377   : > { %v15925_v40 = vmul.f32 0.007874016, %v9801_v55  ;;  %v9896_v13 = vsel %vm9894_vm5, %v9895_v10, %v9893_v6  ;;  %12483 = vrsqrt.f32 %v15921_v14  ;;  %v12476_v44 = vpop.eup %12475  ;;  %v10033_v24 = vadd.f32 %v15872_v19, %v10010_v41 }
0x1378   : > { %v9942_v61 = vadd.f32 1e-06, %v9896_v13  ;;  %v9898_v50 = vmul.f32 %v12474_v29, %v15895_v48  ;;  %v12478_v15 = vpop.eup %12477  ;;  %v10030_v39 = vadd.f32 %v15872_v19, %v10007_v3  ;;  %v9877_v57 = vmul.f32 %v12476_v44, %v15897_v28  ;;  %v9803_v56 = vpop.xlane.xlu1 %9802 }
0x1379   : > { %12485 = vrsqrt.f32 %v15925_v40  ;;  %v12480_v22 = vpop.eup %12479  ;;  %10049 = vst [vmem:[%s15881_s0 + $0x38] sm:$0xff] %v10033_v24  ;;  %v10008_v12 = vmul.f32 %v12478_v15, %v9992_v58  ;;  %v15956_v26 = vmul.f32 0.007874016, %v9803_v56  ;;  %vm9913_vm14 = vcmp.eq.f32.partialorder %v15921_v14, inf }
0x137a   : > { %12487 = vrcp.f32 %v9942_v61  ;;  %v9900_v53 = vsel %vm9899_vm6, %v15895_v48, %v9898_v50  ;;  %10046 = vst [vmem:[%s15881_s0 + $0x20] sm:$0xff] %v10030_v39  ;;  %v9879_v35 = vsel %vm9878_vm8, %v15897_v28, %v9877_v57  ;;  %v9884_v54 = vmul.f32 %v12480_v22, %v15901_v49 }
0x137b   : > { %v9903_v18 = vsel %vm9901_vm7, %v9902_v1, %v9900_v53  ;;  %v10031_v25 = vadd.f32 %v15872_v19, %v10008_v12  ;;  %v9882_v51 = vsel %vm9880_vm9, %v9881_v46, %v9879_v35  ;;  %v9909_v28 = vand.u32 2147483648, %v15906_v59 }
0x137c   : > { %v9943_v4 = vadd.f32 1e-06, %v9903_v18  ;;  %v9940_v0 = vadd.f32 1e-06, %v9882_v51  ;;  %v9886_v32 = vsel %vm9885_vm10, %v15901_v49, %v9884_v54  ;;  %v9916_v36 = vand.u32 2147483648, %v15921_v14 }
0x137d   : > { %10047 = vst [vmem:[%s15881_s0 + $0x28] sm:$0xff] %v10031_v25  ;;  %v9889_v48 = vsel %vm9887_vm11, %v9888_v38, %v9886_v32  ;;  %vm9915_vm15 = vcmp.eq.f32.partialorder %v15921_v14, 0.0  ;;  %vm9920_vm0 = vcmp.eq.f32.partialorder %v15925_v40, inf  ;;  %v9923_v43 = vand.u32 2147483648, %v15925_v40 }
0x137e   : > { %12489 = vrcp.f32 %v9943_v4  ;;  %v9941_v62 = vadd.f32 1e-06, %v9889_v48  ;;  %vm9922_vm1 = vcmp.eq.f32.partialorder %v15925_v40, 0.0  ;;  %v9998_v16 = vmul.f32 %v15865_v8, %v15826_v37 }
0x137f   : > { %v12482_v23 = vpop.eup %12481  ;;  %12491 = vrcp.f32 %v9940_v0  ;;  %v9995_v34 = vmul.f32 %v15865_v8, %v15831_v30  ;;  %vm9927_vm2 = vcmp.eq.f32.partialorder %v15956_v26, inf  ;;  %v9930_v61 = vand.u32 2147483648, %v15956_v26 }
0x1380   : > { %v9905_v42 = vmul.f32 %v12482_v23, %v15906_v59  ;;  %12493 = vrsqrt.f32 %v15956_v26  ;;  %vm9929_vm3 = vcmp.eq.f32.partialorder %v15956_v26, 0.0  ;;  %v10000_v53 = vmul.f32 %v15865_v8, %v15846_v52 }
0x1381   : > { %v12484_v9 = vpop.eup %12483  ;;  %12495 = vrcp.f32 %v9941_v62  ;;  %v10002_v52 = vmul.f32 %v15865_v8, %v15856_v63 }
0x1382   : > { %v9907_v45 = vsel %vm9906_vm12, %v15906_v59, %v9905_v42  ;;  %v9912_v20 = vmul.f32 %v12484_v9, %v15921_v14 }
0x1383   : > { %v9910_v49 = vsel %vm9908_vm13, %v9909_v28, %v9907_v45  ;;  %v12486_v7 = vpop.eup %12485 }
0x1384   : > { %v9944_v31 = vadd.f32 1e-06, %v9910_v49  ;;  %v12488_v17 = vpop.eup %12487  ;;  %v9914_v58 = vsel %vm9913_vm14, %v15921_v14, %v9912_v20  ;;  %v9919_v60 = vmul.f32 %v12486_v7, %v15925_v40 }
0x1385   : > { %v10013_v59 = vmul.f32 %v12488_v17, %v9997_v27  ;;  %v9917_v5 = vsel %vm9915_vm15, %v9916_v36, %v9914_v58 }
0x1386   : > { %12497 = vrcp.f32 %v9944_v31  ;;  %v9945_v2 = vadd.f32 1e-06, %v9917_v5  ;;  %v9921_v11 = vsel %vm9920_vm0, %v15925_v40, %v9919_v60  ;;  %v9996_v40 = vmul.f32 %v15865_v8, %v15836_v33 }
0x1387   : > { %v10036_v10 = vadd.f32 %v15872_v19, %v10013_v59  ;;  %v9924_v14 = vsel %vm9922_vm1, %v9923_v43, %v9921_v11  ;;  %v9999_v33 = vmul.f32 %v15865_v8, %v15843_v21  ;;  %v10001_v21 = vmul.f32 %v15865_v8, %v15851_v47 }
0x1388   : > { %v12490_v55 = vpop.eup %12489  ;;  %12499 = vrcp.f32 %v9945_v2  ;;  %v9946_v41 = vadd.f32 1e-06, %v9924_v14 }
0x1389   : > { %v12492_v6 = vpop.eup %12491  ;;  %10052 = vst [vmem:[%s15881_s0 + $0x50] sm:$0xff] %v10036_v10  ;;  %v10014_v29 = vmul.f32 %v12490_v55, %v9998_v16 }
0x138a   : > { %v12494_v3 = vpop.eup %12493  ;;  %v10011_v13 = vmul.f32 %v12492_v6, %v9995_v34  ;;  %12501 = vrcp.f32 %v9946_v41 }
0x138b   : > { %v12496_v37 = vpop.eup %12495  ;;  %v10037_v1 = vadd.f32 %v15872_v19, %v10014_v29  ;;  %v9926_v44 = vmul.f32 %v12494_v3, %v15956_v26 }
0x138c   : > { %v10034_v30 = vadd.f32 %v15872_v19, %v10011_v13  ;;  %v10012_v24 = vmul.f32 %v12496_v37, %v9996_v40 }
0x138d   : > { %10053 = vst [vmem:[%s15881_s0 + $0x58] sm:$0xff] %v10037_v1  ;;  %v9928_v50 = vsel %vm9927_vm2, %v15956_v26, %v9926_v44 }
0x138e   : > { %10050 = vst [vmem:[%s15881_s0 + $0x40] sm:$0xff] %v10034_v30  ;;  %v10035_v15 = vadd.f32 %v15872_v19, %v10012_v24  ;;  %v9931_v39 = vsel %vm9929_vm3, %v9930_v61, %v9928_v50 }
0x138f   : > { %v9947_v22 = vadd.f32 1e-06, %v9931_v39 }
0x1390   : > { %v12498_v57 = vpop.eup %12497  ;;  %10051 = vst [vmem:[%s15881_s0 + $0x48] sm:$0xff] %v10035_v15 }
0x1391   : > { %v10015_v12 = vmul.f32 %v12498_v57, %v9999_v33  ;;  %12503 = vrcp.f32 %v9947_v22 }
0x1392   : > { %v12500_v46 = vpop.eup %12499 }
0x1393   : > { %v10038_v56 = vadd.f32 %v15872_v19, %v10015_v12  ;;  %v10016_v18 = vmul.f32 %v12500_v46, %v10000_v53 }
0x1394   : > { %v12502_v35 = vpop.eup %12501 }
0x1395   : > { %10054 = vst [vmem:[%s15881_s0 + $0x60] sm:$0xff] %v10038_v56  ;;  %v10039_v54 = vadd.f32 %v15872_v19, %v10016_v18  ;;  %v10017_v25 = vmul.f32 %v12502_v35, %v10001_v21 }
0x1397   : > { %10055 = vst [vmem:[%s15881_s0 + $0x68] sm:$0xff] %v10039_v54  ;;  %v10040_v4 = vadd.f32 %v15872_v19, %v10017_v25 }
0x1399   : > { %10056 = vst [vmem:[%s15881_s0 + $0x70] sm:$0xff] %v10040_v4 }
0x139b   : > { %v12504_v51 = vpop.eup %12503 }
0x139c   : > { %v10018_v47 = vmul.f32 %v12504_v51, %v10002_v52 }
0x139e   : > { %v10041_v38 = vadd.f32 %v15872_v19, %v10018_v47 }
0x13a0   : > { %10057 = vst [vmem:[%s15881_s0 + $0x78] sm:$0xff] %v10041_v38 }
0x13a1   : > { %12707 = shalt.err (!%p12704_p8)
}
0x13a2   : > { %s12708_s0 = scalar_lea.hbm %s16015_s17, 2048  ;;  %s12712_s1 = scalar_lea.hbm %s16328_s4, 4096 }
0x13a3   : > { %p12709_p6 = scmp.ne.s32.totalorder %s16015_s17, %s12708_s0  ;;  %p12713_p3 = scmp.lt.u32.totalorder %s16015_s17, %s16328_s4 }
0x13a4   : > { %p12714_p5 = scmp.lt.u32.totalorder %s12712_s1, %s12708_s0  ;;  %p12716_p7 = scmp.lt.u32.totalorder %s12708_s0, %s16015_s17 }
0x13a5   : > { %p12710_p10 = pnand %p12709_p6, %p16329_p4 }
0x13a6   : > { %p12715_p9 = por %p12714_p5, %p12713_p3 }
0x13a7   : > { %p12711_p11 = pneg %p12710_p10 }
0x13a8   : > { %p12717_p12 = por %p12716_p7, %p12715_p9 }
0x13aa   : > { %p12718_p1 = pnand %p12717_p12, %p12711_p11 }
0x13ac   : > { %12721 = shalt.err (!%p12718_p1)
}
0x13ad   : > { %s12790_s26 = smov 128   ;;  %s12791_s24 = smov 8  }
0x13ae   : > { %s16330_s3 = scalar_lea.sflag [#allocation4], %s13133_s14 }
0x13af   : > { %11987 = dma.vmem_to_hbm [thread:$0]  (%p16329_p4), %s16017_s15, 2048, %s16015_s17, %s16330_s3, %s12790_s26, %s12790_s26, %s12791_s24  }
0x13b0 PF: > { %s10087_s23 = sand.u32 1, %s12760_s27   ;;  %p16331_p13 = scmp.ne.s32.totalorder %s16188_s25, 0 }
0x13b1   : > { %p16332_p0 = scmp.ge.s32.totalorder %s12772_s30, 2  ;;  %s10088_s0 = scalar_lea.sflag [#allocation4], %s10087_s23 }
0x13b3   : > { %p12010_p2 = pnand %p16332_p0, %p16331_p13 }
0x13b5   : > { %12755 = dma.done.wait (!%p12010_p2), %s10088_s0, 2048  }
0x13b6   : > { %12757 = vsyncadd (!%p12010_p2), %s10088_s0, 4294965248  ;;  %p34_p8 = scmp.ge.s32.totalorder %s13060_s21, 4   ;;  %s16333_s27 = smov %s12764_s28 }
0x13b7   : > { %s16334_s28 = smov %s12768_s29  ;;  %s16335_s29 = smov %s13072_s13 }
0x13b8   : > { %s16336_s30 = smov %s13060_s21  ;;  %36 = sbr.rel (!%p34_p8) target bundleno = 21 (0x15), region = 157 }
0x13bf   :  { %10093 = vsyncpa [#allocation3], 1 }
0x13c0   :  { %10095 = vsyncpa [#allocation3 + $0x1], 1 }
0x13c1   :  { %10096 = vsyncpa [#allocation6], 1 }
0x13c2   :  { %10097 = vsyncpa [#allocation9], 1 }
0x13c3   :  { %10098 = vsyncpa [#allocation12], 1 }
0x13c4   :  { %10099 = vsyncpa [#allocation4], 1 }
0x13c5   :  { %10101 = vsyncpa [#allocation4 + $0x1], 1 }

</bundles_post_ra>
